<compile_context>
chip_gen: v7x
topology: tpu7x:2x2x1
jax: 0.10.0
libtpu: 0.0.40
codegen_flags: <defaults>
</compile_context>

<pallas_src>
import functools

import jax
import jax.numpy as jnp
from jax.experimental import pallas as pl
from jax.experimental.pallas import tpu as pltpu


# ----------------------------------------------------------------------------
# Kernels
# ----------------------------------------------------------------------------

def _upsample_kernel(x_ref, out_ref):
    """Pure nearest-2x upsample (use_conv=False path).

    x_ref:   [Bb, C, H, W]           (NCHW block)
    out_ref: [2, 2, Bb, C, H, W]     parity-blocked: out[di, dj, b, c, i, j]
                                     == upsampled[b, c, 2i+di, 2j+dj]
    """
    x = x_ref[...]
    for di in range(2):
        for dj in range(2):
            out_ref[di, dj] = x


def _upsample_conv_kernel(x_ref, w_ref, b_ref, out_ref, xpad_ref, *,
                          Bb, H, W, Cin, Cout):
    """Fused nearest-2x upsample + 3x3 conv (padding=1), parity-decomposed.

    x_ref:    [Bb, H, W, Cin]            NHWC block of original-resolution input
    w_ref:    [16, Cin, Cout]            effective (parity-folded) weights,
                                         index = ((di*2+dj)*2 + a)*2 + c
    b_ref:    [1, Cout]                  conv bias
    out_ref:  [2, 2, Bb, H*W, Cout]      parity-blocked output
    xpad_ref: [Bb, H+2, W+2, Cin] VMEM   zero-padded input (1-pixel halo)
    """
    # Zero-padded copy of the input block (halo of 1 handles conv padding=1
    # and the image borders of the upsampled grid in one go).
    xpad_ref[...] = jnp.zeros_like(xpad_ref)
    xpad_ref[:, 1:H + 1, 1:W + 1, :] = x_ref[...]

    bias = b_ref[...].astype(jnp.float32)            # [1, Cout], broadcasts

    for di in range(2):
        for dj in range(2):
            acc = jnp.zeros((Bb * H * W, Cout), jnp.float32)
            for a in range(2):
                for c in range(2):
                    tap = ((di * 2 + dj) * 2 + a) * 2 + c
                    patch = xpad_ref[:, di + a:di + a + H, dj + c:dj + c + W, :]
                    patch = patch.reshape(Bb * H * W, Cin)
                    acc = acc + jnp.dot(patch, w_ref[tap],
                                        preferred_element_type=jnp.float32)
            acc = acc + bias
            out_ref[di, dj] = acc.reshape(Bb, H * W, Cout).astype(out_ref.dtype)


# ----------------------------------------------------------------------------
# Wrappers
# ----------------------------------------------------------------------------

def _pick_block_b(B, block_b):
    if block_b is None:
        # Amortise per-step overhead but keep >= 2 grid steps when possible
        # (feeds both TensorCores on v7x).
        block_b = min(8, B if B == 1 else max(1, B // 2))
    block_b = min(block_b, B)
    while B % block_b:
        block_b -= 1
    return block_b


def upsample_nearest2x(x, *, block_b=None):
    """x: [B, C, H, W] -> [B, C, 2H, 2W], nearest-neighbour."""
    B, C, H, W = x.shape
    Bb = _pick_block_b(B, block_b)

    out_blocked = pl.pallas_call(
        _upsample_kernel,
        out_shape=jax.ShapeDtypeStruct((2, 2, B, C, H, W), x.dtype),
        grid_spec=pltpu.PrefetchScalarGridSpec(
            num_scalar_prefetch=0,
            grid=(B // Bb,),
            in_specs=[
                pl.BlockSpec((Bb, C, H, W), lambda i: (i, 0, 0, 0)),
            ],
            out_specs=pl.BlockSpec((2, 2, Bb, C, H, W),
                                   lambda i: (0, 0, i, 0, 0, 0)),
        ),
        compiler_params=pltpu.CompilerParams(
            dimension_semantics=("parallel",)),
    )(x)

    # (di, dj, b, c, i, j) -> (b, c, i, di, j, dj) -> [B, C, 2H, 2W]
    out = out_blocked.transpose(2, 3, 4, 0, 5, 1).reshape(B, C, 2 * H, 2 * W)
    return out


def upsample_conv2d(x, conv_w, conv_b, *, block_b=None):
    """Nearest-2x upsample followed by Conv2d(k=3, padding=1), fused.

    x:      [B, Cin, H, W]   (NCHW, like PyTorch)
    conv_w: [Cout, Cin, 3, 3] (PyTorch OIHW layout)
    conv_b: [Cout]
    returns [B, Cout, 2H, 2W]
    """
    B, Cin, H, W = x.shape
    Cout = conv_w.shape[0]
    assert conv_w.shape == (Cout, Cin, 3, 3)
    Bb = _pick_block_b(B, block_b)

    # --- trace-time weight folding (tiny, done once outside the kernel) -----
    # For output row 2i+di, the 3x3 row-taps {0,1,2} of the upsampled image map
    # onto original rows {i-1, i} (di=0) or {i, i+1} (di=1); padded-row slice
    # start is di+a with tap groups below. Columns are symmetric.
    w_t = jnp.transpose(conv_w, (2, 3, 1, 0))          # [3, 3, Cin, Cout]
    parity_groups = (((0,), (1, 2)), ((0, 1), (2,)))   # [parity][tap] -> k idxs
    taps = []
    for di in range(2):
        for dj in range(2):
            for a in range(2):
                for c in range(2):
                    wsum = jnp.zeros((Cin, Cout), conv_w.dtype)
                    for ky in parity_groups[di][a]:
                        for kx in parity_groups[dj][c]:
                            wsum = wsum + w_t[ky, kx]
                    taps.append(wsum)
    w_eff = jnp.stack(taps, axis=0)                    # [16, Cin, Cout]

    # Layout plumbing: channels-last inside the kernel (lane axis = channels).
    x_nhwc = jnp.transpose(x, (0, 2, 3, 1))            # [B, H, W, Cin]
    bias2 = conv_b.reshape(1, Cout)

    kernel = functools.partial(_upsample_conv_kernel,
                               Bb=Bb, H=H, W=W, Cin=Cin, Cout=Cout)

    out_blocked = pl.pallas_call(
        kernel,
        out_shape=jax.ShapeDtypeStruct((2, 2, B, H * W, Cout), x.dtype),
        grid_spec=pltpu.PrefetchScalarGridSpec(
            num_scalar_prefetch=0,
            grid=(B // Bb,),
            in_specs=[
                pl.BlockSpec((Bb, H, W, Cin), lambda i: (i, 0, 0, 0)),   # x
                pl.BlockSpec((16, Cin, Cout), lambda i: (0, 0, 0)),      # w_eff
                pl.BlockSpec((1, Cout), lambda i: (0, 0)),               # bias
            ],
            out_specs=pl.BlockSpec((2, 2, Bb, H * W, Cout),
                                   lambda i: (0, 0, i, 0, 0)),
            scratch_shapes=[pltpu.VMEM((Bb, H + 2, W + 2, Cin), x.dtype)],
        ),
        compiler_params=pltpu.CompilerParams(
            dimension_semantics=("parallel",)),
    )(x_nhwc, w_eff, bias2)

    # (di, dj, b, hw, c) -> (di, dj, b, i, j, c) -> (b, c, i, di, j, dj) -> NCHW
    out = out_blocked.reshape(2, 2, B, H, W, Cout)
    out = out.transpose(2, 5, 3, 0, 4, 1).reshape(B, Cout, 2 * H, 2 * W)
    return out


def upsample_forward(x, *, channels, use_conv, dims=2, out_channels=None,
                     padding=1, conv_w=None, conv_b=None, block_b=None):
    """Mirrors Upsample.forward for dims=2."""
    assert x.shape[1] == channels
    assert dims == 2, "only dims=2 implemented"  # TODO(synk): dims=1/3
    if use_conv:
        assert padding == 1, "only padding=1 implemented"
        out_channels = out_channels or channels
        assert conv_w.shape == (out_channels, channels, 3, 3)
        return upsample_conv2d(x, conv_w, conv_b, block_b=block_b)
    return upsample_nearest2x(x, block_b=block_b)


# ----------------------------------------------------------------------------
# Pure-JAX reference (mirrors the PyTorch forward)
# ----------------------------------------------------------------------------

def upsample_ref(x, conv_w=None, conv_b=None, use_conv=False):
    up = jnp.repeat(jnp.repeat(x, 2, axis=2), 2, axis=3)
    if not use_conv:
        return up
    out = jax.lax.conv_general_dilated(
        up, conv_w, window_strides=(1, 1), padding=((1, 1), (1, 1)),
        dimension_numbers=("NCHW", "OIHW", "NCHW"),
        precision=jax.lax.Precision.HIGHEST)
    return out + conv_b[None, :, None, None]


if __name__ == "__main__":
    B, C, H, W = 4, 32, 16, 16
    Cout = 64

    key = jax.random.PRNGKey(0)
    k_x, k_w, k_b = jax.random.split(key, 3)
    x = jax.random.normal(k_x, (B, C, H, W), dtype=jnp.float32)
    conv_w = jax.random.normal(k_w, (Cout, C, 3, 3), dtype=jnp.float32) * 0.05
    conv_b = jax.random.normal(k_b, (Cout,), dtype=jnp.float32) * 0.05

    # use_conv=True path (upsample + 3x3 conv, fused)
    y_conv = upsample_forward(x, channels=C, use_conv=True, out_channels=Cout,
                              conv_w=conv_w, conv_b=conv_b)
    y_conv = jax.block_until_ready(y_conv)
    y_conv_ref = upsample_ref(x, conv_w, conv_b, use_conv=True)
    assert y_conv.shape == (B, Cout, 2 * H, 2 * W)
    assert jnp.allclose(y_conv, y_conv_ref, atol=1e-3, rtol=1e-3), \
        "upsample+conv mismatch vs reference"

    # use_conv=False path (pure nearest upsample)
    y_up = upsample_forward(x, channels=C, use_conv=False)
    y_up = jax.block_until_ready(y_up)
    y_up_ref = upsample_ref(x, use_conv=False)
    assert y_up.shape == (B, C, 2 * H, 2 * W)
    assert jnp.allclose(y_up, y_up_ref), "upsample mismatch vs reference"

    print("KERNEL_OK")
</pallas_src>

<mosaic_0001>
module attributes {stable_mosaic.version = 11 : i64} {
  func.func @_upsample_conv_kernel(%arg0: i32, %arg1: memref<2x16x16x32xf32, #tpu.memory_space<vmem>>, %arg2: memref<16x32x64xf32, #tpu.memory_space<vmem>>, %arg3: memref<1x64xf32, #tpu.memory_space<vmem>>, %arg4: memref<2x2x2x256x64xf32, #tpu.memory_space<vmem>>, %arg5: memref<2x18x18x32xf32, #tpu.memory_space<vmem>>) attributes {dimension_semantics = [#tpu.dimension_semantics<parallel>], iteration_bounds = array<i64: 2>, scalar_prefetch = 0 : i64, scratch_operands = 1 : i64, tpu.core_type = #tpu.core_type<tc>, window_params = [{transform_indices = @transform_0, window_bounds = array<i64: 2, 16, 16, 32>}, {pipeline_mode = #tpu.pipeline_mode<synchronous>, transform_indices = @transform_1, window_bounds = array<i64: 16, 32, 64>}, {pipeline_mode = #tpu.pipeline_mode<synchronous>, transform_indices = @transform_2, window_bounds = array<i64: 1, 64>}, {transform_indices = @transform_3, window_bounds = array<i64: 2, 2, 2, 256, 64>}]} {
    %cst = arith.constant 0.000000e+00 : f32
    %0 = vector.broadcast %cst : f32 to vector<2x18x18x32xf32>
    %c0 = arith.constant 0 : index
    %c0_0 = arith.constant 0 : index
    %c0_1 = arith.constant 0 : index
    %c0_2 = arith.constant 0 : index
    %1 = vector.load %arg5[%c0, %c0_0, %c0_1, %c0_2] : memref<2x18x18x32xf32, #tpu.memory_space<vmem>>, vector<2x18x18x32xf32>
    tpu.vector_store %arg5[%c0, %c0_0, %c0_1, %c0_2], %0 {strides = array<i32>} : memref<2x18x18x32xf32, #tpu.memory_space<vmem>>, vector<2x18x18x32xf32>,
    %c0_3 = arith.constant 0 : index
    %c0_4 = arith.constant 0 : index
    %c0_5 = arith.constant 0 : index
    %c0_6 = arith.constant 0 : index
    %2 = vector.load %arg1[%c0_3, %c0_4, %c0_5, %c0_6] : memref<2x16x16x32xf32, #tpu.memory_space<vmem>>, vector<2x16x16x32xf32>
    %c0_7 = arith.constant 0 : index
    %c1 = arith.constant 1 : index
    %c1_8 = arith.constant 1 : index
    %c0_9 = arith.constant 0 : index
    %3 = vector.load %arg5[%c0_7, %c1, %c1_8, %c0_9] : memref<2x18x18x32xf32, #tpu.memory_space<vmem>>, vector<2x16x16x32xf32>
    tpu.vector_store %arg5[%c0_7, %c1, %c1_8, %c0_9], %2 {strides = array<i32>} : memref<2x18x18x32xf32, #tpu.memory_space<vmem>>, vector<2x16x16x32xf32>,
    %c0_10 = arith.constant 0 : index
    %c0_11 = arith.constant 0 : index
    %4 = vector.load %arg3[%c0_10, %c0_11] : memref<1x64xf32, #tpu.memory_space<vmem>>, vector<1x64xf32>
    %cst_12 = arith.constant 0.000000e+00 : f32
    %5 = vector.broadcast %cst_12 : f32 to vector<512x64xf32>
    %c0_13 = arith.constant 0 : index
    %c0_14 = arith.constant 0 : index
    %c0_15 = arith.constant 0 : index
    %c0_16 = arith.constant 0 : index
    %6 = vector.load %arg5[%c0_13, %c0_14, %c0_15, %c0_16] : memref<2x18x18x32xf32, #tpu.memory_space<vmem>>, vector<2x16x16x32xf32>
    %7 = vector.shape_cast %6 : vector<2x16x16x32xf32> to vector<512x32xf32>
    %c0_17 = arith.constant 0 : index
    %c0_18 = arith.constant 0 : index
    %c0_19 = arith.constant 0 : index
    %8 = vector.load %arg2[%c0_17, %c0_18, %c0_19] : memref<16x32x64xf32, #tpu.memory_space<vmem>>, vector<1x32x64xf32>
    %9 = vector.shape_cast %8 : vector<1x32x64xf32> to vector<32x64xf32>
    %cst_20 = arith.constant dense<0.000000e+00> : vector<512x64xf32>
    %10 = tpu.matmul %7, %9, %cst_20 {dimension_numbers = #tpu.dot_dimension_numbers<[1], [0], [0], [1], [0, 0, 1, 1], [], []>} : vector<512x32xf32>, vector<32x64xf32>, vector<512x64xf32> -> vector<512x64xf32>
    %11 = arith.addf %5, %10 : vector<512x64xf32>
    %c0_21 = arith.constant 0 : index
    %c0_22 = arith.constant 0 : index
    %c1_23 = arith.constant 1 : index
    %c0_24 = arith.constant 0 : index
    %12 = vector.load %arg5[%c0_21, %c0_22, %c1_23, %c0_24] : memref<2x18x18x32xf32, #tpu.memory_space<vmem>>, vector<2x16x16x32xf32>
    %13 = vector.shape_cast %12 : vector<2x16x16x32xf32> to vector<512x32xf32>
    %c1_25 = arith.constant 1 : index
    %c0_26 = arith.constant 0 : index
    %c0_27 = arith.constant 0 : index
    %14 = vector.load %arg2[%c1_25, %c0_26, %c0_27] : memref<16x32x64xf32, #tpu.memory_space<vmem>>, vector<1x32x64xf32>
    %15 = vector.shape_cast %14 : vector<1x32x64xf32> to vector<32x64xf32>
    %cst_28 = arith.constant dense<0.000000e+00> : vector<512x64xf32>
    %16 = tpu.matmul %13, %15, %cst_28 {dimension_numbers = #tpu.dot_dimension_numbers<[1], [0], [0], [1], [0, 0, 1, 1], [], []>} : vector<512x32xf32>, vector<32x64xf32>, vector<512x64xf32> -> vector<512x64xf32>
    %17 = arith.addf %11, %16 : vector<512x64xf32>
    %c0_29 = arith.constant 0 : index
    %c1_30 = arith.constant 1 : index
    %c0_31 = arith.constant 0 : index
    %c0_32 = arith.constant 0 : index
    %18 = vector.load %arg5[%c0_29, %c1_30, %c0_31, %c0_32] : memref<2x18x18x32xf32, #tpu.memory_space<vmem>>, vector<2x16x16x32xf32>
    %19 = vector.shape_cast %18 : vector<2x16x16x32xf32> to vector<512x32xf32>
    %c2 = arith.constant 2 : index
    %c0_33 = arith.constant 0 : index
    %c0_34 = arith.constant 0 : index
    %20 = vector.load %arg2[%c2, %c0_33, %c0_34] : memref<16x32x64xf32, #tpu.memory_space<vmem>>, vector<1x32x64xf32>
    %21 = vector.shape_cast %20 : vector<1x32x64xf32> to vector<32x64xf32>
    %cst_35 = arith.constant dense<0.000000e+00> : vector<512x64xf32>
    %22 = tpu.matmul %19, %21, %cst_35 {dimension_numbers = #tpu.dot_dimension_numbers<[1], [0], [0], [1], [0, 0, 1, 1], [], []>} : vector<512x32xf32>, vector<32x64xf32>, vector<512x64xf32> -> vector<512x64xf32>
    %23 = arith.addf %17, %22 : vector<512x64xf32>
    %c0_36 = arith.constant 0 : index
    %c1_37 = arith.constant 1 : index
    %c1_38 = arith.constant 1 : index
    %c0_39 = arith.constant 0 : index
    %24 = vector.load %arg5[%c0_36, %c1_37, %c1_38, %c0_39] : memref<2x18x18x32xf32, #tpu.memory_space<vmem>>, vector<2x16x16x32xf32>
    %25 = vector.shape_cast %24 : vector<2x16x16x32xf32> to vector<512x32xf32>
    %c3 = arith.constant 3 : index
    %c0_40 = arith.constant 0 : index
    %c0_41 = arith.constant 0 : index
    %26 = vector.load %arg2[%c3, %c0_40, %c0_41] : memref<16x32x64xf32, #tpu.memory_space<vmem>>, vector<1x32x64xf32>
    %27 = vector.shape_cast %26 : vector<1x32x64xf32> to vector<32x64xf32>
    %cst_42 = arith.constant dense<0.000000e+00> : vector<512x64xf32>
    %28 = tpu.matmul %25, %27, %cst_42 {dimension_numbers = #tpu.dot_dimension_numbers<[1], [0], [0], [1], [0, 0, 1, 1], [], []>} : vector<512x32xf32>, vector<32x64xf32>, vector<512x64xf32> -> vector<512x64xf32>
    %29 = arith.addf %23, %28 : vector<512x64xf32>
    %30 = vector.broadcast %4 : vector<1x64xf32> to vector<512x64xf32>
    %31 = arith.addf %29, %30 : vector<512x64xf32>
    %32 = vector.shape_cast %31 : vector<512x64xf32> to vector<2x256x64xf32>
    %c0_43 = arith.constant 0 : index
    %c0_44 = arith.constant 0 : index
    %c0_45 = arith.constant 0 : index
    %c0_46 = arith.constant 0 : index
    %c0_47 = arith.constant 0 : index
    %33 = vector.load %arg4[%c0_43, %c0_44, %c0_45, %c0_46, %c0_47] : memref<2x2x2x256x64xf32, #tpu.memory_space<vmem>>, vector<1x1x2x256x64xf32>
    %34 = vector.shape_cast %33 : vector<1x1x2x256x64xf32> to vector<2x256x64xf32>
    %35 = vector.shape_cast %32 : vector<2x256x64xf32> to vector<1x1x2x256x64xf32>
    tpu.vector_store %arg4[%c0_43, %c0_44, %c0_45, %c0_46, %c0_47], %35 {strides = array<i32>} : memref<2x2x2x256x64xf32, #tpu.memory_space<vmem>>, vector<1x1x2x256x64xf32>,
    %cst_48 = arith.constant 0.000000e+00 : f32
    %36 = vector.broadcast %cst_48 : f32 to vector<512x64xf32>
    %c0_49 = arith.constant 0 : index
    %c0_50 = arith.constant 0 : index
    %c1_51 = arith.constant 1 : index
    %c0_52 = arith.constant 0 : index
    %37 = vector.load %arg5[%c0_49, %c0_50, %c1_51, %c0_52] : memref<2x18x18x32xf32, #tpu.memory_space<vmem>>, vector<2x16x16x32xf32>
    %38 = vector.shape_cast %37 : vector<2x16x16x32xf32> to vector<512x32xf32>
    %c4 = arith.constant 4 : index
    %c0_53 = arith.constant 0 : index
    %c0_54 = arith.constant 0 : index
    %39 = vector.load %arg2[%c4, %c0_53, %c0_54] : memref<16x32x64xf32, #tpu.memory_space<vmem>>, vector<1x32x64xf32>
    %40 = vector.shape_cast %39 : vector<1x32x64xf32> to vector<32x64xf32>
    %cst_55 = arith.constant dense<0.000000e+00> : vector<512x64xf32>
    %41 = tpu.matmul %38, %40, %cst_55 {dimension_numbers = #tpu.dot_dimension_numbers<[1], [0], [0], [1], [0, 0, 1, 1], [], []>} : vector<512x32xf32>, vector<32x64xf32>, vector<512x64xf32> -> vector<512x64xf32>
    %42 = arith.addf %36, %41 : vector<512x64xf32>
    %c0_56 = arith.constant 0 : index
    %c0_57 = arith.constant 0 : index
    %c2_58 = arith.constant 2 : index
    %c0_59 = arith.constant 0 : index
    %43 = vector.load %arg5[%c0_56, %c0_57, %c2_58, %c0_59] : memref<2x18x18x32xf32, #tpu.memory_space<vmem>>, vector<2x16x16x32xf32>
    %44 = vector.shape_cast %43 : vector<2x16x16x32xf32> to vector<512x32xf32>
    %c5 = arith.constant 5 : index
    %c0_60 = arith.constant 0 : index
    %c0_61 = arith.constant 0 : index
    %45 = vector.load %arg2[%c5, %c0_60, %c0_61] : memref<16x32x64xf32, #tpu.memory_space<vmem>>, vector<1x32x64xf32>
    %46 = vector.shape_cast %45 : vector<1x32x64xf32> to vector<32x64xf32>
    %cst_62 = arith.constant dense<0.000000e+00> : vector<512x64xf32>
    %47 = tpu.matmul %44, %46, %cst_62 {dimension_numbers = #tpu.dot_dimension_numbers<[1], [0], [0], [1], [0, 0, 1, 1], [], []>} : vector<512x32xf32>, vector<32x64xf32>, vector<512x64xf32> -> vector<512x64xf32>
    %48 = arith.addf %42, %47 : vector<512x64xf32>
    %c0_63 = arith.constant 0 : index
    %c1_64 = arith.constant 1 : index
    %c1_65 = arith.constant 1 : index
    %c0_66 = arith.constant 0 : index
    %49 = vector.load %arg5[%c0_63, %c1_64, %c1_65, %c0_66] : memref<2x18x18x32xf32, #tpu.memory_space<vmem>>, vector<2x16x16x32xf32>
    %50 = vector.shape_cast %49 : vector<2x16x16x32xf32> to vector<512x32xf32>
    %c6 = arith.constant 6 : index
    %c0_67 = arith.constant 0 : index
    %c0_68 = arith.constant 0 : index
    %51 = vector.load %arg2[%c6, %c0_67, %c0_68] : memref<16x32x64xf32, #tpu.memory_space<vmem>>, vector<1x32x64xf32>
    %52 = vector.shape_cast %51 : vector<1x32x64xf32> to vector<32x64xf32>
    %cst_69 = arith.constant dense<0.000000e+00> : vector<512x64xf32>
    %53 = tpu.matmul %50, %52, %cst_69 {dimension_numbers = #tpu.dot_dimension_numbers<[1], [0], [0], [1], [0, 0, 1, 1], [], []>} : vector<512x32xf32>, vector<32x64xf32>, vector<512x64xf32> -> vector<512x64xf32>
    %54 = arith.addf %48, %53 : vector<512x64xf32>
    %c0_70 = arith.constant 0 : index
    %c1_71 = arith.constant 1 : index
    %c2_72 = arith.constant 2 : index
    %c0_73 = arith.constant 0 : index
    %55 = vector.load %arg5[%c0_70, %c1_71, %c2_72, %c0_73] : memref<2x18x18x32xf32, #tpu.memory_space<vmem>>, vector<2x16x16x32xf32>
    %56 = vector.shape_cast %55 : vector<2x16x16x32xf32> to vector<512x32xf32>
    %c7 = arith.constant 7 : index
    %c0_74 = arith.constant 0 : index
    %c0_75 = arith.constant 0 : index
    %57 = vector.load %arg2[%c7, %c0_74, %c0_75] : memref<16x32x64xf32, #tpu.memory_space<vmem>>, vector<1x32x64xf32>
    %58 = vector.shape_cast %57 : vector<1x32x64xf32> to vector<32x64xf32>
    %cst_76 = arith.constant dense<0.000000e+00> : vector<512x64xf32>
    %59 = tpu.matmul %56, %58, %cst_76 {dimension_numbers = #tpu.dot_dimension_numbers<[1], [0], [0], [1], [0, 0, 1, 1], [], []>} : vector<512x32xf32>, vector<32x64xf32>, vector<512x64xf32> -> vector<512x64xf32>
    %60 = arith.addf %54, %59 : vector<512x64xf32>
    %61 = vector.broadcast %4 : vector<1x64xf32> to vector<512x64xf32>
    %62 = arith.addf %60, %61 : vector<512x64xf32>
    %63 = vector.shape_cast %62 : vector<512x64xf32> to vector<2x256x64xf32>
    %c0_77 = arith.constant 0 : index
    %c1_78 = arith.constant 1 : index
    %c0_79 = arith.constant 0 : index
    %c0_80 = arith.constant 0 : index
    %c0_81 = arith.constant 0 : index
    %64 = vector.load %arg4[%c0_77, %c1_78, %c0_79, %c0_80, %c0_81] : memref<2x2x2x256x64xf32, #tpu.memory_space<vmem>>, vector<1x1x2x256x64xf32>
    %65 = vector.shape_cast %64 : vector<1x1x2x256x64xf32> to vector<2x256x64xf32>
    %66 = vector.shape_cast %63 : vector<2x256x64xf32> to vector<1x1x2x256x64xf32>
    tpu.vector_store %arg4[%c0_77, %c1_78, %c0_79, %c0_80, %c0_81], %66 {strides = array<i32>} : memref<2x2x2x256x64xf32, #tpu.memory_space<vmem>>, vector<1x1x2x256x64xf32>,
    %cst_82 = arith.constant 0.000000e+00 : f32
    %67 = vector.broadcast %cst_82 : f32 to vector<512x64xf32>
    %c0_83 = arith.constant 0 : index
    %c1_84 = arith.constant 1 : index
    %c0_85 = arith.constant 0 : index
    %c0_86 = arith.constant 0 : index
    %68 = vector.load %arg5[%c0_83, %c1_84, %c0_85, %c0_86] : memref<2x18x18x32xf32, #tpu.memory_space<vmem>>, vector<2x16x16x32xf32>
    %69 = vector.shape_cast %68 : vector<2x16x16x32xf32> to vector<512x32xf32>
    %c8 = arith.constant 8 : index
    %c0_87 = arith.constant 0 : index
    %c0_88 = arith.constant 0 : index
    %70 = vector.load %arg2[%c8, %c0_87, %c0_88] : memref<16x32x64xf32, #tpu.memory_space<vmem>>, vector<1x32x64xf32>
    %71 = vector.shape_cast %70 : vector<1x32x64xf32> to vector<32x64xf32>
    %cst_89 = arith.constant dense<0.000000e+00> : vector<512x64xf32>
    %72 = tpu.matmul %69, %71, %cst_89 {dimension_numbers = #tpu.dot_dimension_numbers<[1], [0], [0], [1], [0, 0, 1, 1], [], []>} : vector<512x32xf32>, vector<32x64xf32>, vector<512x64xf32> -> vector<512x64xf32>
    %73 = arith.addf %67, %72 : vector<512x64xf32>
    %c0_90 = arith.constant 0 : index
    %c1_91 = arith.constant 1 : index
    %c1_92 = arith.constant 1 : index
    %c0_93 = arith.constant 0 : index
    %74 = vector.load %arg5[%c0_90, %c1_91, %c1_92, %c0_93] : memref<2x18x18x32xf32, #tpu.memory_space<vmem>>, vector<2x16x16x32xf32>
    %75 = vector.shape_cast %74 : vector<2x16x16x32xf32> to vector<512x32xf32>
    %c9 = arith.constant 9 : index
    %c0_94 = arith.constant 0 : index
    %c0_95 = arith.constant 0 : index
    %76 = vector.load %arg2[%c9, %c0_94, %c0_95] : memref<16x32x64xf32, #tpu.memory_space<vmem>>, vector<1x32x64xf32>
    %77 = vector.shape_cast %76 : vector<1x32x64xf32> to vector<32x64xf32>
    %cst_96 = arith.constant dense<0.000000e+00> : vector<512x64xf32>
    %78 = tpu.matmul %75, %77, %cst_96 {dimension_numbers = #tpu.dot_dimension_numbers<[1], [0], [0], [1], [0, 0, 1, 1], [], []>} : vector<512x32xf32>, vector<32x64xf32>, vector<512x64xf32> -> vector<512x64xf32>
    %79 = arith.addf %73, %78 : vector<512x64xf32>
    %c0_97 = arith.constant 0 : index
    %c2_98 = arith.constant 2 : index
    %c0_99 = arith.constant 0 : index
    %c0_100 = arith.constant 0 : index
    %80 = vector.load %arg5[%c0_97, %c2_98, %c0_99, %c0_100] : memref<2x18x18x32xf32, #tpu.memory_space<vmem>>, vector<2x16x16x32xf32>
    %81 = vector.shape_cast %80 : vector<2x16x16x32xf32> to vector<512x32xf32>
    %c10 = arith.constant 10 : index
    %c0_101 = arith.constant 0 : index
    %c0_102 = arith.constant 0 : index
    %82 = vector.load %arg2[%c10, %c0_101, %c0_102] : memref<16x32x64xf32, #tpu.memory_space<vmem>>, vector<1x32x64xf32>
    %83 = vector.shape_cast %82 : vector<1x32x64xf32> to vector<32x64xf32>
    %cst_103 = arith.constant dense<0.000000e+00> : vector<512x64xf32>
    %84 = tpu.matmul %81, %83, %cst_103 {dimension_numbers = #tpu.dot_dimension_numbers<[1], [0], [0], [1], [0, 0, 1, 1], [], []>} : vector<512x32xf32>, vector<32x64xf32>, vector<512x64xf32> -> vector<512x64xf32>
    %85 = arith.addf %79, %84 : vector<512x64xf32>
    %c0_104 = arith.constant 0 : index
    %c2_105 = arith.constant 2 : index
    %c1_106 = arith.constant 1 : index
    %c0_107 = arith.constant 0 : index
    %86 = vector.load %arg5[%c0_104, %c2_105, %c1_106, %c0_107] : memref<2x18x18x32xf32, #tpu.memory_space<vmem>>, vector<2x16x16x32xf32>
    %87 = vector.shape_cast %86 : vector<2x16x16x32xf32> to vector<512x32xf32>
    %c11 = arith.constant 11 : index
    %c0_108 = arith.constant 0 : index
    %c0_109 = arith.constant 0 : index
    %88 = vector.load %arg2[%c11, %c0_108, %c0_109] : memref<16x32x64xf32, #tpu.memory_space<vmem>>, vector<1x32x64xf32>
    %89 = vector.shape_cast %88 : vector<1x32x64xf32> to vector<32x64xf32>
    %cst_110 = arith.constant dense<0.000000e+00> : vector<512x64xf32>
    %90 = tpu.matmul %87, %89, %cst_110 {dimension_numbers = #tpu.dot_dimension_numbers<[1], [0], [0], [1], [0, 0, 1, 1], [], []>} : vector<512x32xf32>, vector<32x64xf32>, vector<512x64xf32> -> vector<512x64xf32>
    %91 = arith.addf %85, %90 : vector<512x64xf32>
    %92 = vector.broadcast %4 : vector<1x64xf32> to vector<512x64xf32>
    %93 = arith.addf %91, %92 : vector<512x64xf32>
    %94 = vector.shape_cast %93 : vector<512x64xf32> to vector<2x256x64xf32>
    %c1_111 = arith.constant 1 : index
    %c0_112 = arith.constant 0 : index
    %c0_113 = arith.constant 0 : index
    %c0_114 = arith.constant 0 : index
    %c0_115 = arith.constant 0 : index
    %95 = vector.load %arg4[%c1_111, %c0_112, %c0_113, %c0_114, %c0_115] : memref<2x2x2x256x64xf32, #tpu.memory_space<vmem>>, vector<1x1x2x256x64xf32>
    %96 = vector.shape_cast %95 : vector<1x1x2x256x64xf32> to vector<2x256x64xf32>
    %97 = vector.shape_cast %94 : vector<2x256x64xf32> to vector<1x1x2x256x64xf32>
    tpu.vector_store %arg4[%c1_111, %c0_112, %c0_113, %c0_114, %c0_115], %97 {strides = array<i32>} : memref<2x2x2x256x64xf32, #tpu.memory_space<vmem>>, vector<1x1x2x256x64xf32>,
    %cst_116 = arith.constant 0.000000e+00 : f32
    %98 = vector.broadcast %cst_116 : f32 to vector<512x64xf32>
    %c0_117 = arith.constant 0 : index
    %c1_118 = arith.constant 1 : index
    %c1_119 = arith.constant 1 : index
    %c0_120 = arith.constant 0 : index
    %99 = vector.load %arg5[%c0_117, %c1_118, %c1_119, %c0_120] : memref<2x18x18x32xf32, #tpu.memory_space<vmem>>, vector<2x16x16x32xf32>
    %100 = vector.shape_cast %99 : vector<2x16x16x32xf32> to vector<512x32xf32>
    %c12 = arith.constant 12 : index
    %c0_121 = arith.constant 0 : index
    %c0_122 = arith.constant 0 : index
    %101 = vector.load %arg2[%c12, %c0_121, %c0_122] : memref<16x32x64xf32, #tpu.memory_space<vmem>>, vector<1x32x64xf32>
    %102 = vector.shape_cast %101 : vector<1x32x64xf32> to vector<32x64xf32>
    %cst_123 = arith.constant dense<0.000000e+00> : vector<512x64xf32>
    %103 = tpu.matmul %100, %102, %cst_123 {dimension_numbers = #tpu.dot_dimension_numbers<[1], [0], [0], [1], [0, 0, 1, 1], [], []>} : vector<512x32xf32>, vector<32x64xf32>, vector<512x64xf32> -> vector<512x64xf32>
    %104 = arith.addf %98, %103 : vector<512x64xf32>
    %c0_124 = arith.constant 0 : index
    %c1_125 = arith.constant 1 : index
    %c2_126 = arith.constant 2 : index
    %c0_127 = arith.constant 0 : index
    %105 = vector.load %arg5[%c0_124, %c1_125, %c2_126, %c0_127] : memref<2x18x18x32xf32, #tpu.memory_space<vmem>>, vector<2x16x16x32xf32>
    %106 = vector.shape_cast %105 : vector<2x16x16x32xf32> to vector<512x32xf32>
    %c13 = arith.constant 13 : index
    %c0_128 = arith.constant 0 : index
    %c0_129 = arith.constant 0 : index
    %107 = vector.load %arg2[%c13, %c0_128, %c0_129] : memref<16x32x64xf32, #tpu.memory_space<vmem>>, vector<1x32x64xf32>
    %108 = vector.shape_cast %107 : vector<1x32x64xf32> to vector<32x64xf32>
    %cst_130 = arith.constant dense<0.000000e+00> : vector<512x64xf32>
    %109 = tpu.matmul %106, %108, %cst_130 {dimension_numbers = #tpu.dot_dimension_numbers<[1], [0], [0], [1], [0, 0, 1, 1], [], []>} : vector<512x32xf32>, vector<32x64xf32>, vector<512x64xf32> -> vector<512x64xf32>
    %110 = arith.addf %104, %109 : vector<512x64xf32>
    %c0_131 = arith.constant 0 : index
    %c2_132 = arith.constant 2 : index
    %c1_133 = arith.constant 1 : index
    %c0_134 = arith.constant 0 : index
    %111 = vector.load %arg5[%c0_131, %c2_132, %c1_133, %c0_134] : memref<2x18x18x32xf32, #tpu.memory_space<vmem>>, vector<2x16x16x32xf32>
    %112 = vector.shape_cast %111 : vector<2x16x16x32xf32> to vector<512x32xf32>
    %c14 = arith.constant 14 : index
    %c0_135 = arith.constant 0 : index
    %c0_136 = arith.constant 0 : index
    %113 = vector.load %arg2[%c14, %c0_135, %c0_136] : memref<16x32x64xf32, #tpu.memory_space<vmem>>, vector<1x32x64xf32>
    %114 = vector.shape_cast %113 : vector<1x32x64xf32> to vector<32x64xf32>
    %cst_137 = arith.constant dense<0.000000e+00> : vector<512x64xf32>
    %115 = tpu.matmul %112, %114, %cst_137 {dimension_numbers = #tpu.dot_dimension_numbers<[1], [0], [0], [1], [0, 0, 1, 1], [], []>} : vector<512x32xf32>, vector<32x64xf32>, vector<512x64xf32> -> vector<512x64xf32>
    %116 = arith.addf %110, %115 : vector<512x64xf32>
    %c0_138 = arith.constant 0 : index
    %c2_139 = arith.constant 2 : index
    %c2_140 = arith.constant 2 : index
    %c0_141 = arith.constant 0 : index
    %117 = vector.load %arg5[%c0_138, %c2_139, %c2_140, %c0_141] : memref<2x18x18x32xf32, #tpu.memory_space<vmem>>, vector<2x16x16x32xf32>
    %118 = vector.shape_cast %117 : vector<2x16x16x32xf32> to vector<512x32xf32>
    %c15 = arith.constant 15 : index
    %c0_142 = arith.constant 0 : index
    %c0_143 = arith.constant 0 : index
    %119 = vector.load %arg2[%c15, %c0_142, %c0_143] : memref<16x32x64xf32, #tpu.memory_space<vmem>>, vector<1x32x64xf32>
    %120 = vector.shape_cast %119 : vector<1x32x64xf32> to vector<32x64xf32>
    %cst_144 = arith.constant dense<0.000000e+00> : vector<512x64xf32>
    %121 = tpu.matmul %118, %120, %cst_144 {dimension_numbers = #tpu.dot_dimension_numbers<[1], [0], [0], [1], [0, 0, 1, 1], [], []>} : vector<512x32xf32>, vector<32x64xf32>, vector<512x64xf32> -> vector<512x64xf32>
    %122 = arith.addf %116, %121 : vector<512x64xf32>
    %123 = vector.broadcast %4 : vector<1x64xf32> to vector<512x64xf32>
    %124 = arith.addf %122, %123 : vector<512x64xf32>
    %125 = vector.shape_cast %124 : vector<512x64xf32> to vector<2x256x64xf32>
    %c1_145 = arith.constant 1 : index
    %c1_146 = arith.constant 1 : index
    %c0_147 = arith.constant 0 : index
    %c0_148 = arith.constant 0 : index
    %c0_149 = arith.constant 0 : index
    %126 = vector.load %arg4[%c1_145, %c1_146, %c0_147, %c0_148, %c0_149] : memref<2x2x2x256x64xf32, #tpu.memory_space<vmem>>, vector<1x1x2x256x64xf32>
    %127 = vector.shape_cast %126 : vector<1x1x2x256x64xf32> to vector<2x256x64xf32>
    %128 = vector.shape_cast %125 : vector<2x256x64xf32> to vector<1x1x2x256x64xf32>
    tpu.vector_store %arg4[%c1_145, %c1_146, %c0_147, %c0_148, %c0_149], %128 {strides = array<i32>} : memref<2x2x2x256x64xf32, #tpu.memory_space<vmem>>, vector<1x1x2x256x64xf32>,
    return
  }
  func.func @transform_0(%arg0: i32) -> (i32, i32, i32, i32) {
    %c0_i32 = arith.constant 0 : i32
    %c0_i32_0 = arith.constant 0 : i32
    %c0_i32_1 = arith.constant 0 : i32
    %c0_i32_2 = arith.constant 0 : i32
    return %arg0, %c0_i32, %c0_i32_0, %c0_i32_1 : i32, i32, i32, i32
  }
  func.func @transform_1(%arg0: i32) -> (i32, i32, i32) {
    %c0_i32 = arith.constant 0 : i32
    %c0_i32_0 = arith.constant 0 : i32
    %c0_i32_1 = arith.constant 0 : i32
    %c0_i32_2 = arith.constant 0 : i32
    return %c0_i32, %c0_i32_0, %c0_i32_1 : i32, i32, i32
  }
  func.func @transform_2(%arg0: i32) -> (i32, i32) {
    %c0_i32 = arith.constant 0 : i32
    %c0_i32_0 = arith.constant 0 : i32
    %c0_i32_1 = arith.constant 0 : i32
    return %c0_i32, %c0_i32_0 : i32, i32
  }
  func.func @transform_3(%arg0: i32) -> (i32, i32, i32, i32, i32) {
    %c0_i32 = arith.constant 0 : i32
    %c0_i32_0 = arith.constant 0 : i32
    %c0_i32_1 = arith.constant 0 : i32
    %c0_i32_2 = arith.constant 0 : i32
    %c0_i32_3 = arith.constant 0 : i32
    return %c0_i32, %c0_i32_0, %arg0, %c0_i32_1, %c0_i32_2 : i32, i32, i32, i32, i32
  }
}

</mosaic_0001>

<bundles_post_ra>
// kernel: tpu_custom_call.1
= control target key start
LH: loop header
LB: loop body
LE: loop exit
PB: predicated region body
PF: predicated region fallthrough
CT: control target
= control target key end

     0   :  { %8 = vsyncpa [#allocation4], 0  ;;  %s22546_s0 = inlined_call_operand.hbm [shape: f32[4,16,16,32], index: 0, kind: input, shape index: {}]   ;;  %s22547_s1 = inlined_call_operand.hbm [shape: f32[16,32,64], index: 1, kind: input, shape index: {}]   ;;  %s22548_s2 = inlined_call_operand.hbm [shape: f32[1,64], index: 2, kind: input, shape index: {}]   ;;  %s22549_s3 = inlined_call_operand.vmem [shape: f32[2,2,4,256,64], index: 3, kind: output, shape index: {}]  }
   0x1   :  { %10 = vsyncpa [#allocation4 + $0x1], 0 }
   0x2   :  { %11 = vsyncpa [#allocation6], 0  ;;  %s18075_s12 = smov 0   ;;  %s18077_s13 = smov 0  }
   0x3   :  { %s18079_s14 = smov 0   ;;  %s18081_s15 = smov 0  }
   0x4 LB: > { %s18094_s16 = sadd.s32 4294967295, %s18047_s15   ;;  %p37_p0 = scmp.ne.s32.totalorder %s18039_s13, %s18035_s12  ;;  %s18047_s15 = sphi %s18081_s15, %s22875_s15   ;;  %s18043_s14 = sphi %s18079_s14, %s22874_s14   ;;  %s18039_s13 = sphi %s18077_s13, %s22873_s13   ;;  %s18035_s12 = sphi %s18075_s12, %s22872_s12  }
   0x5   : > { %p22550_p1 = scmp.eq.s32.totalorder %s18094_s16, 0  ;;  %p12970_p3 = scmp.ge.s32.totalorder %s18047_s15, 1 }
   0x6   : > { %p116_p4 = scmp.lt.s32.totalorder %s18047_s15, 3  ;;  %s18049_s19 = smov [#allocation5]  }
   0x7   : > { %p18103_p5 = por %p22550_p1, %p37_p0  ;;  %s128_s20 = sshll.u32 %s18049_s19, 4  ;;  %s129_s20 = int_to_ptr.vmem [resolvable:$true] %s128_s20 }
   0x8   : > { %p18107_p6 = pnand %p12970_p3, %p116_p4  ;;  %s18050_s22 = smov [#allocation7]  }
   0x9   : > { %s22656_s17 = scalar_select %p18103_p5, 1, 0 }
   0xa   : > { %s22657_s18 = scalar_select %p18107_p6, 1, 0 }
   0xb   : > { %p17868_p7 = pneg %p18107_p6  ;;  %s142_s23 = sshll.u32 %s18050_s22, 4  ;;  %s18119_s23 = int_to_ptr.vmem [resolvable:$true] %s142_s23 }
   0xc   : > { %s17923_s26 = scalar_lea.hbm %s22547_s1, 8192 }
   0xd   : > { %p18115_p8 = pnand %p17868_p7, %p22550_p1  ;;  %p17924_p9 = scmp.ne.s32.totalorder %s22547_s1, %s17923_s26 }
   0xe   : > { %p17930_p13 = scmp.lt.u32.totalorder %s17923_s26, %s22547_s1 }
   0xf   : > { %p17925_p10 = pneg %p18115_p8 }
  0x11   : > { %p17926_p11 = pnand %p17925_p10, %p17924_p9 }
  0x13   : > { %p17927_p12 = pneg %p17926_p11 }
  0x15   : > { %p17932_p0 = pnand %p17930_p13, %p17927_p12 }
  0x17   : > { %17935 = shalt.err (!%p17932_p0)
}
  0x18   : > { %s17936_s4 = scalar_lea.vmem %s129_s20, 8192  ;;  %p17944_p1 = scmp.lt.s32.totalorder %s129_s20, %s129_s20 }
  0x19   : > { %p17937_p3 = scmp.ne.s32.totalorder %s129_s20, %s17936_s4  ;;  %p17945_p2 = scmp.lt.s32.totalorder %s17936_s4, %s17936_s4 }
  0x1b   : > { %p17939_p4 = pnand %p17937_p3, %p17925_p10  ;;  %p17946_p5 = por %p17945_p2, %p17944_p1 }
  0x1d   : > { %p17940_p7 = pneg %p17939_p4 }
  0x1f   : > { %p17947_p6 = pnand %p17946_p5, %p17940_p7 }
  0x21   : > { %17950 = shalt.err (!%p17947_p6)
}
  0x22   : > { %s18051_s5 = smov 128   ;;  %s18052_s6 = smov 8  }
  0x23   : > { %17871 = dma.hbm_to_vmem [thread:$0]  (!%p18115_p8), %s22547_s1, 8192, %s129_s20, [#allocation6], %s18051_s5, %s18051_s5, %s18052_s6  }
  0x24   : > { %s17951_s11 = scalar_lea.hbm %s22548_s2, 16 }
  0x25   : > { %p17952_p1 = scmp.ne.s32.totalorder %s22548_s2, %s17951_s11  ;;  %p17958_p6 = scmp.lt.u32.totalorder %s17951_s11, %s22548_s2 }
  0x27   : > { %p17954_p2 = pnand %p17952_p1, %p17925_p10 }
  0x29   : > { %p17955_p5 = pneg %p17954_p2 }
  0x2b   : > { %p17960_p9 = pnand %p17958_p6, %p17955_p5 }
  0x2d   : > { %17963 = shalt.err (!%p17960_p9)
}
  0x2e   : > { %s17964_s20 = scalar_lea.vmem %s18119_s23, 16  ;;  %s17971_s25 = scalar_lea.vmem %s18119_s23, 32 }
  0x2f   : > { %p17965_p11 = scmp.ne.s32.totalorder %s18119_s23, %s17964_s20  ;;  %p17972_p0 = scmp.lt.s32.totalorder %s18119_s23, %s18119_s23 }
  0x30   : > { %p17973_p3 = scmp.lt.s32.totalorder %s17971_s25, %s17964_s20 }
  0x31   : > { %p17967_p12 = pnand %p17965_p11, %p17925_p10 }
  0x32   : > { %p17974_p4 = por %p17973_p3, %p17972_p0 }
  0x33   : > { %p17968_p13 = pneg %p17967_p12 }
  0x35   : > { %p17975_p7 = pnand %p17974_p4, %p17968_p13 }
  0x37   : > { %17978 = shalt.err (!%p17975_p7)
}
  0x38   : > { %17874 = dma.hbm_to_vmem [thread:$0]  (!%p18115_p8), %s22548_s2, 16, %s18119_s23, [#allocation6]  }
  0x39   : > { %s18173_s28 = sadd.s32 1, %s18047_s15   ;;  %s24_s29 = sadd.s32 1, %s18043_s14 }
  0x3a   : > { %s21_s21 = ssub.s32 %s18047_s15, %s18173_s28  ;;  %p31_p1 = scmp.ne.s32.totalorder %s18043_s14, %s18039_s13 }
  0x3b   : > { %p22_p10 = scmp.eq.s32.totalorder %s21_s21, 0  ;;  %p32_p2 = scmp.eq.s32.totalorder %s18047_s15, 0 }
  0x3c   : > { %p17881_p5 = scmp.lt.s32.totalorder %s18047_s15, 2  ;;  %p22659_p9 = scmp.eq.s32.totalorder %s18094_s16, 1 }
  0x3d   : > { %s18183_s30 = scalar_select %p22_p10, %s18043_s14, %s24_s29  }
  0x3e   : > { %p33_p6 = por %p32_p2, %p31_p1  ;;  %p18187_p11 = por %p22659_p9, %p31_p1 }
  0x3f   : > { %s153_s7 = sand.u32 1, %s18043_s14   ;;  %s14207_s8 = sshll.u32 %s18047_s15, 13 }
  0x40   : > { %s12974_s23 = sshll.u32 %s153_s7, 9  ;;  %s18196_s11 = scalar_lea.hbm %s22546_s0, %s14207_s8 }
  0x41   : > { %s157_s12 = scalar_lea.vmem [#allocation3], %s12974_s23  ;;  %p18198_p8 = pnand %p17881_p5, %p33_p6 }
  0x42   : > { %s165_s19 = sshll.u32 %s157_s12, 4  ;;  %s18204_s15 = scalar_lea.sflag [#allocation4], %s153_s7  ;;  %s18202_s19 = int_to_ptr.vmem [resolvable:$true] %s165_s19 }
  0x43   : > { %s17979_s24 = scalar_lea.hbm %s18196_s11, 8192  ;;  %p17981_p13 = pneg %p18198_p8 }
  0x44   : > { %p17980_p12 = scmp.ne.s32.totalorder %s18196_s11, %s17979_s24  ;;  %s17984_s26 = scalar_lea.hbm %s22546_s0, 16384 }
  0x45   : > { %p17985_p4 = scmp.lt.u32.totalorder %s18196_s11, %s22546_s0  ;;  %p17986_p7 = scmp.lt.u32.totalorder %s17984_s26, %s17979_s24 }
  0x46   : > { %p17982_p0 = pnand %p17981_p13, %p17980_p12  ;;  %p17988_p1 = scmp.lt.u32.totalorder %s17979_s24, %s18196_s11 }
  0x47   : > { %p17987_p10 = por %p17986_p7, %p17985_p4 }
  0x48   : > { %p17983_p3 = pneg %p17982_p0 }
  0x49   : > { %p17989_p2 = por %p17988_p1, %p17987_p10 }
  0x4b   : > { %p17990_p5 = pnand %p17989_p2, %p17983_p3 }
  0x4d   : > { %17993 = shalt.err (!%p17990_p5)
}
  0x4e   : > { %s17994_s29 = scalar_lea.vmem %s18202_s19, 8192  ;;  %s18053_s7 = smov [#allocation3]  }
  0x4f   : > { %p17995_p6 = scmp.ne.s32.totalorder %s18202_s19, %s17994_s29  ;;  %s17999_s8 = sshll.u32 %s18053_s7, 4  ;;  %s18000_s8 = int_to_ptr.vmem [resolvable:$false] %s17999_s8 }
  0x50   : > { %s18001_s23 = scalar_lea.vmem %s18000_s8, 16384  ;;  %p18002_p0 = scmp.lt.s32.totalorder %s18202_s19, %s18000_s8 }
  0x51   : > { %p17997_p9 = pnand %p17995_p6, %p17981_p13  ;;  %p18003_p4 = scmp.lt.s32.totalorder %s18001_s23, %s17994_s29 }
  0x53   : > { %p17998_p12 = pneg %p17997_p9  ;;  %p18004_p7 = por %p18003_p4, %p18002_p0 }
  0x55   : > { %p18005_p10 = pnand %p18004_p7, %p17998_p12 }
  0x57   : > { %18008 = shalt.err (!%p18005_p10)
}
  0x58   : > { %17878 = dma.hbm_to_vmem [thread:$0]  (!%p18198_p8), %s18196_s11, 8192, %s18202_s19, %s18204_s15, %s18051_s5, %s18051_s5, %s18052_s6  }
  0x59   : > { %p22662_p13 = scmp.ne.s32.totalorder %s22657_s18, 0 }
  0x5b   : > { %177 = sbr.rel (%p22662_p13) target bundleno = 1516 (0x5ec), region = 32 }
  0x62   : > { %s18238_s9 = sand.u32 1, %s18039_s13   ;;  %p22663_p3 = scmp.ne.s32.totalorder %s22656_s17, 0 }
  0x63   : > { %s12979_s10 = sshll.u32 %s18238_s9, 9  ;;  %s180_s12 = scalar_lea.sflag [#allocation4], %s18238_s9 }
  0x64   : > { %s18242_s24 = scalar_lea.vmem [#allocation3], %s12979_s10 }
  0x65   : > { %18026 = dma.done.wait (%p22663_p3), %s180_s12, 8192  }
  0x66   : > { %18028 = vsyncadd (%p22663_p3), %s180_s12, 4294959104  ;;  %p22664_p8 = scmp.eq.s32.totalorder %s18094_s16, 0 }
  0x68   : > { %18030 = dma.done.wait (%p22664_p8), [#allocation6], 8208   ;;  %p22665_p1 = pmov %p22664_p8 }
  0x69   : > { %vm215_vm0 = vcmask 261120   ;;  %vm218_vm1 = vcmask 254976   ;;  %v18054_v0 = vmov 0.0   ;;  %v588_v1 = vld [vmem:[#allocation5 + $0x20] sm:$0xff]  ;;  %v589_v2 = vld [vmem:[#allocation5 + $0x28] sm:$0xff]  ;;  %v590_v6 = vld [vmem:[#allocation5 + $0x30] sm:$0xff] }
  0x6a   : > { %18032 = vsyncadd (%p22665_p1), [#allocation6], 4294959088  ;;  %216 = vst.msk [vmem:[#allocation2] sm:$0xff] %vm215_vm0, %v18054_v0  ;;  %v3435_v3 = vld [vmem:[#allocation5 + $0xa0] sm:$0xff]  ;;  %v16962_v4 = vpack.c.bf16 %v589_v2, %v588_v1  ;;  %v3436_v5 = vld [vmem:[#allocation5 + $0xa8] sm:$0xff]  ;;  %s12982_s17 = sshll.u32 %s18238_s9, 11 }
  0x6b   : > { %217 = vst.msk [vmem:[#allocation2 + $0x8] sm:$0xff] %vm215_vm0, %v18054_v0  ;;  %220 = vst.msk [vmem:[#allocation2 + $0x18] sm:$0xff] %vm215_vm0, %v18054_v0  ;;  %v591_v7 = vld [vmem:[#allocation5 + $0x38] sm:$0xff]  ;;  %v16994_v8 = vpack.c.bf16 %v3436_v5, %v3435_v3  ;;  %v3437_v10 = vld [vmem:[#allocation5 + $0xb0] sm:$0xff]  ;;  %vm3236_vm2 = vcmask 523264   ;;  %s20277_s18 = scalar_lea.vmem [#allocation8], %s12982_s17 }
  0x6c   : > { %221 = vst.msk [vmem:[#allocation2 + $0x20] sm:$0xff] %vm215_vm0, %v18054_v0  ;;  %223 = vst.msk [vmem:[#allocation2 + $0x30] sm:$0xff] %vm215_vm0, %v18054_v0  ;;  %v16966_v9 = vpack.c.bf16 %v591_v7, %v590_v6  ;;  %v3438_v11 = vld [vmem:[#allocation5 + $0xb8] sm:$0xff]  ;;  %16963 = vmatprep.subr.bf16.mxu0 %v16962_v4  ;;  %v519_v15 = vld [vmem:[#allocation5] sm:$0xff]  ;;  %s14209_s5 = sshll.u32 (%p18187_p11), %s18094_s16, 9 }
  0x6d   : > { %224 = vst.msk [vmem:[#allocation2 + $0x38] sm:$0xff] %vm215_vm0, %v18054_v0  ;;  %226 = vst.msk [vmem:[#allocation2 + $0x48] sm:$0xff] %vm215_vm0, %v18054_v0  ;;  %v16998_v13 = vpack.c.bf16 %v3438_v11, %v3437_v10  ;;  %16995 = vmatprep.subr.bf16.mxu1 %v16994_v8  ;;  %16965 = vmatpush3.bf16.msra.mxu0 %v16962_v4  ;;  %v520_v16 = vld [vmem:[#allocation5 + $0x8] sm:$0xff]  ;;  %v3366_v17 = vld [vmem:[#allocation5 + $0x80] sm:$0xff]  ;;  %s22022_s19 = scalar_lea.vmem (%p18187_p11), %s22549_s3, %s14209_s5 }
  0x6e   : > { %227 = vst.msk [vmem:[#allocation2 + $0x50] sm:$0xff] %vm215_vm0, %v18054_v0  ;;  %229 = vst.msk [vmem:[#allocation2 + $0x60] sm:$0xff] %vm215_vm0, %v18054_v0  ;;  %16997 = vmatpush3.bf16.msra.mxu1 %v16994_v8  ;;  %16967 = vmatprep.subr.bf16.mxu0 %v16966_v9  ;;  %v16970_v18 = vpack.c.bf16 %v520_v16, %v519_v15  ;;  %v3367_v19 = vld [vmem:[#allocation5 + $0x88] sm:$0xff]  ;;  %v325_v20 = vld [vmem:[%s18242_s24] sm:$0xff] }
  0x6f   : > { %230 = vst.msk [vmem:[#allocation2 + $0x68] sm:$0xff] %vm215_vm0, %v18054_v0  ;;  %232 = vst.msk [vmem:[#allocation2 + $0x78] sm:$0xff] %vm215_vm0, %v18054_v0  ;;  %v326_v21 = vld [vmem:[%s18242_s24 + $0x8] sm:$0xff]  ;;  %16999 = vmatprep.subr.bf16.mxu1 %v16998_v13  ;;  %v17002_v23 = vpack.c.bf16 %v3367_v19, %v3366_v17  ;;  %v327_v24 = vld [vmem:[%s18242_s24 + $0x10] sm:$0xff] }
  0x70   : > { %233 = vst.msk [vmem:[#allocation2 + $0x80] sm:$0xff] %vm215_vm0, %v18054_v0  ;;  %235 = vst.msk [vmem:[#allocation2 + $0x90] sm:$0xff] %vm215_vm0, %v18054_v0  ;;  %v328_v25 = vld [vmem:[%s18242_s24 + $0x18] sm:$0xff]  ;;  %v329_v26 = vld [vmem:[%s18242_s24 + $0x20] sm:$0xff] }
  0x71   : > { %236 = vst.msk [vmem:[#allocation2 + $0x98] sm:$0xff] %vm215_vm0, %v18054_v0  ;;  %238 = vst.msk [vmem:[#allocation2 + $0xa8] sm:$0xff] %vm215_vm0, %v18054_v0  ;;  %v330_v28 = vld [vmem:[%s18242_s24 + $0x28] sm:$0xff]  ;;  %v331_v29 = vld [vmem:[%s18242_s24 + $0x30] sm:$0xff]  ;;  %16969 = vmatpush3.bf16.msra.mxu0 %v16966_v9 }
  0x72   : > { %239 = vst.msk [vmem:[#allocation2 + $0xb0] sm:$0xff] %vm215_vm0, %v18054_v0  ;;  %241 = vst.msk [vmem:[#allocation2 + $0xc0] sm:$0xff] %vm215_vm0, %v18054_v0  ;;  %v18468_v12 = vld [vmem:[#allocation2 + $0x1] sm:$0xff]  ;;  %v332_v30 = vld [vmem:[%s18242_s24 + $0x38] sm:$0xff]  ;;  %17001 = vmatpush3.bf16.msra.mxu1 %v16998_v13  ;;  %16971 = vmatprep.subr.bf16.mxu0 %v16970_v18 }
  0x73   : > { %242 = vst.msk [vmem:[#allocation2 + $0xc8] sm:$0xff] %vm215_vm0, %v18054_v0  ;;  %244 = vst.msk [vmem:[#allocation2 + $0xd8] sm:$0xff] %vm215_vm0, %v18054_v0  ;;  %15306 = vmatprep.mubr.msk.f32.mxu0 %vm215_vm0, %v18468_v12  ;;  %v3370_v14 = vld [vmem:[#allocation2 + $0x2] sm:$0xff]  ;;  %v335_v33 = vld [vmem:[%s18242_s24 + $0x50] sm:$0xff]  ;;  %17003 = vmatprep.subr.bf16.mxu1 %v17002_v23 }
  0x74   : > { %245 = vst.msk [vmem:[#allocation2 + $0xe0] sm:$0xff] %vm215_vm0, %v18054_v0  ;;  %247 = vst.msk [vmem:[#allocation2 + $0xf0] sm:$0xff] %vm215_vm0, %v18054_v0  ;;  %15722 = vmatprep.mubr.msk.f32.mxu1 %vm215_vm0, %v3370_v14  ;;  %v333_v31 = vld [vmem:[%s18242_s24 + $0x40] sm:$0xff]  ;;  %v334_v32 = vld [vmem:[%s18242_s24 + $0x48] sm:$0xff] }
  0x75   : > { %248 = vst.msk [vmem:[#allocation2 + $0xf8] sm:$0xff] %vm215_vm0, %v18054_v0  ;;  %250 = vst.msk [vmem:[#allocation2 + $0x108] sm:$0xff] %vm215_vm0, %v18054_v0  ;;  %v336_v34 = vld [vmem:[%s18242_s24 + $0x58] sm:$0xff]  ;;  %v337_v35 = vld [vmem:[%s18242_s24 + $0x60] sm:$0xff] }
  0x76   : > { %251 = vst.msk [vmem:[#allocation2 + $0x110] sm:$0xff] %vm215_vm0, %v18054_v0  ;;  %253 = vst.msk [vmem:[#allocation2 + $0x120] sm:$0xff] %vm215_vm0, %v18054_v0  ;;  %v338_v36 = vld [vmem:[%s18242_s24 + $0x68] sm:$0xff]  ;;  %v339_v37 = vld [vmem:[%s18242_s24 + $0x70] sm:$0xff] }
  0x77   : > { %254 = vst.msk [vmem:[#allocation2 + $0x128] sm:$0xff] %vm215_vm0, %v18054_v0  ;;  %256 = vst.msk [vmem:[#allocation2 + $0x138] sm:$0xff] %vm215_vm0, %v18054_v0  ;;  %v340_v38 = vld [vmem:[%s18242_s24 + $0x78] sm:$0xff]  ;;  %v341_v39 = vld [vmem:[%s18242_s24 + $0x80] sm:$0xff] }
  0x78   : > { %257 = vst.msk [vmem:[#allocation2 + $0x140] sm:$0xff] %vm215_vm0, %v18054_v0  ;;  %259 = vst.msk [vmem:[#allocation2 + $0x150] sm:$0xff] %vm215_vm0, %v18054_v0  ;;  %v342_v40 = vld [vmem:[%s18242_s24 + $0x88] sm:$0xff]  ;;  %v343_v41 = vld [vmem:[%s18242_s24 + $0x90] sm:$0xff] }
  0x79   : > { %260 = vst.msk [vmem:[#allocation2 + $0x158] sm:$0xff] %vm215_vm0, %v18054_v0  ;;  %262 = vst.msk [vmem:[#allocation2 + $0x168] sm:$0xff] %vm215_vm0, %v18054_v0  ;;  %v344_v42 = vld [vmem:[%s18242_s24 + $0x98] sm:$0xff]  ;;  %v345_v43 = vld [vmem:[%s18242_s24 + $0xa0] sm:$0xff] }
  0x7a   : > { %263 = vst.msk [vmem:[#allocation2 + $0x170] sm:$0xff] %vm215_vm0, %v18054_v0  ;;  %265 = vst.msk [vmem:[#allocation2 + $0x180] sm:$0xff] %vm215_vm0, %v18054_v0  ;;  %v346_v44 = vld [vmem:[%s18242_s24 + $0xa8] sm:$0xff]  ;;  %v347_v45 = vld [vmem:[%s18242_s24 + $0xb0] sm:$0xff] }
  0x7b   : > { %266 = vst.msk [vmem:[#allocation2 + $0x188] sm:$0xff] %vm215_vm0, %v18054_v0  ;;  %268 = vst.msk [vmem:[#allocation2 + $0x198] sm:$0xff] %vm215_vm0, %v18054_v0  ;;  %v348_v3 = vld [vmem:[%s18242_s24 + $0xb8] sm:$0xff]  ;;  %v349_v4 = vld [vmem:[%s18242_s24 + $0xc0] sm:$0xff] }
  0x7c   : > { %269 = vst.msk [vmem:[#allocation2 + $0x1a0] sm:$0xff] %vm215_vm0, %v18054_v0  ;;  %271 = vst.msk [vmem:[#allocation2 + $0x1b0] sm:$0xff] %vm215_vm0, %v18054_v0  ;;  %v350_v5 = vld [vmem:[%s18242_s24 + $0xc8] sm:$0xff]  ;;  %v351_v6 = vld [vmem:[%s18242_s24 + $0xd0] sm:$0xff] }
  0x7d   : > { %272 = vst.msk [vmem:[#allocation2 + $0x1b8] sm:$0xff] %vm215_vm0, %v18054_v0  ;;  %274 = vst.msk [vmem:[#allocation2 + $0x1c8] sm:$0xff] %vm215_vm0, %v18054_v0  ;;  %v352_v7 = vld [vmem:[%s18242_s24 + $0xd8] sm:$0xff]  ;;  %v353_v8 = vld [vmem:[%s18242_s24 + $0xe0] sm:$0xff] }
  0x7e   : > { %275 = vst.msk [vmem:[#allocation2 + $0x1d0] sm:$0xff] %vm215_vm0, %v18054_v0  ;;  %277 = vst.msk [vmem:[#allocation2 + $0x1e0] sm:$0xff] %vm215_vm0, %v18054_v0  ;;  %v354_v11 = vld [vmem:[%s18242_s24 + $0xe8] sm:$0xff]  ;;  %v521_v15 = vld [vmem:[#allocation5 + $0x10] sm:$0xff] }
  0x7f   : > { %278 = vst.msk [vmem:[#allocation2 + $0x1e8] sm:$0xff] %vm215_vm0, %v18054_v0  ;;  %280 = vst.msk [vmem:[#allocation2 + $0x1f8] sm:$0xff] %vm215_vm0, %v18054_v0  ;;  %v522_v16 = vld [vmem:[#allocation5 + $0x18] sm:$0xff]  ;;  %v3368_v19 = vld [vmem:[#allocation5 + $0x90] sm:$0xff] }
  0x80   : > { %281 = vst.msk [vmem:[#allocation2 + $0x200] sm:$0xff] %vm215_vm0, %v18054_v0  ;;  %283 = vst.msk [vmem:[#allocation2 + $0x210] sm:$0xff] %vm215_vm0, %v18054_v0 }
  0x81   : > { %284 = vst.msk [vmem:[#allocation2 + $0x218] sm:$0xff] %vm215_vm0, %v18054_v0  ;;  %286 = vst.msk [vmem:[#allocation2 + $0x228] sm:$0xff] %vm215_vm0, %v18054_v0 }
  0x82   : > { %287 = vst.msk [vmem:[#allocation2 + $0x230] sm:$0xff] %vm215_vm0, %v18054_v0  ;;  %289 = vst.msk [vmem:[#allocation2 + $0x240] sm:$0xff] %vm215_vm0, %v18054_v0 }
  0x83   : > { %290 = vst.msk [vmem:[#allocation2 + $0x248] sm:$0xff] %vm215_vm0, %v18054_v0  ;;  %292 = vst.msk [vmem:[#allocation2 + $0x258] sm:$0xff] %vm215_vm0, %v18054_v0 }
  0x84   : > { %293 = vst.msk [vmem:[#allocation2 + $0x260] sm:$0xff] %vm215_vm0, %v18054_v0  ;;  %295 = vst.msk [vmem:[#allocation2 + $0x270] sm:$0xff] %vm215_vm0, %v18054_v0 }
  0x85   : > { %296 = vst.msk [vmem:[#allocation2 + $0x278] sm:$0xff] %vm215_vm0, %v18054_v0  ;;  %298 = vst.msk [vmem:[#allocation2 + $0x288] sm:$0xff] %vm215_vm0, %v18054_v0 }
  0x86   : > { %299 = vst.msk [vmem:[#allocation2 + $0x290] sm:$0xff] %vm215_vm0, %v18054_v0  ;;  %301 = vst.msk [vmem:[#allocation2 + $0x2a0] sm:$0xff] %vm215_vm0, %v18054_v0 }
  0x87   : > { %302 = vst.msk [vmem:[#allocation2 + $0x2a8] sm:$0xff] %vm215_vm0, %v18054_v0  ;;  %304 = vst.msk [vmem:[#allocation2 + $0x2b8] sm:$0xff] %vm215_vm0, %v18054_v0 }
  0x88   : > { %305 = vst.msk [vmem:[#allocation2 + $0x2c0] sm:$0xff] %vm215_vm0, %v18054_v0  ;;  %307 = vst.msk [vmem:[#allocation2 + $0x2d0] sm:$0xff] %vm215_vm0, %v18054_v0 }
  0x89   : > { %308 = vst.msk [vmem:[#allocation2 + $0x2d8] sm:$0xff] %vm215_vm0, %v18054_v0  ;;  %310 = vst.msk [vmem:[#allocation2 + $0x2e8] sm:$0xff] %vm215_vm0, %v18054_v0 }
  0x8a   : > { %311 = vst.msk [vmem:[#allocation2 + $0x2f0] sm:$0xff] %vm215_vm0, %v18054_v0  ;;  %313 = vst.msk [vmem:[#allocation2 + $0x300] sm:$0xff] %vm215_vm0, %v18054_v0 }
  0x8b   : > { %314 = vst.msk [vmem:[#allocation2 + $0x308] sm:$0xff] %vm215_vm0, %v18054_v0  ;;  %316 = vst.msk [vmem:[#allocation2 + $0x318] sm:$0xff] %vm215_vm0, %v18054_v0 }
  0x8c   : > { %317 = vst.msk [vmem:[#allocation2 + $0x320] sm:$0xff] %vm215_vm0, %v18054_v0  ;;  %319 = vst.msk [vmem:[#allocation2 + $0x330] sm:$0xff] %vm215_vm0, %v18054_v0 }
  0x8d   : > { %320 = vst.msk [vmem:[#allocation2 + $0x338] sm:$0xff] %vm215_vm0, %v18054_v0  ;;  %322 = vst.msk [vmem:[#allocation2 + $0x348] sm:$0xff] %vm215_vm0, %v18054_v0 }
  0x8e   : > { %323 = vst.msk [vmem:[#allocation2 + $0x350] sm:$0xff] %vm215_vm0, %v18054_v0  ;;  %390 = vst.msk [vmem:[#allocation2 + $0x19] sm:$0xff] %vm215_vm0, %v325_v20  ;;  %v3369_v20 = vld [vmem:[#allocation5 + $0x98] sm:$0xff] }
  0x8f   : > { %219 = vst.msk [vmem:[#allocation2 + $0x10] sm:$0x3] %vm218_vm1, %v18054_v0  ;;  %222 = vst.msk [vmem:[#allocation2 + $0x28] sm:$0x3] %vm218_vm1, %v18054_v0 }
  0x90   : > { %225 = vst.msk [vmem:[#allocation2 + $0x40] sm:$0x3] %vm218_vm1, %v18054_v0  ;;  %228 = vst.msk [vmem:[#allocation2 + $0x58] sm:$0x3] %vm218_vm1, %v18054_v0 }
  0x91   : > { %231 = vst.msk [vmem:[#allocation2 + $0x70] sm:$0x3] %vm218_vm1, %v18054_v0  ;;  %234 = vst.msk [vmem:[#allocation2 + $0x88] sm:$0x3] %vm218_vm1, %v18054_v0 }
  0x92   : > { %237 = vst.msk [vmem:[#allocation2 + $0xa0] sm:$0x3] %vm218_vm1, %v18054_v0  ;;  %240 = vst.msk [vmem:[#allocation2 + $0xb8] sm:$0x3] %vm218_vm1, %v18054_v0 }
  0x93   : > { %243 = vst.msk [vmem:[#allocation2 + $0xd0] sm:$0x3] %vm218_vm1, %v18054_v0  ;;  %246 = vst.msk [vmem:[#allocation2 + $0xe8] sm:$0x3] %vm218_vm1, %v18054_v0 }
  0x94   : > { %249 = vst.msk [vmem:[#allocation2 + $0x100] sm:$0x3] %vm218_vm1, %v18054_v0  ;;  %252 = vst.msk [vmem:[#allocation2 + $0x118] sm:$0x3] %vm218_vm1, %v18054_v0 }
  0x95   : > { %255 = vst.msk [vmem:[#allocation2 + $0x130] sm:$0x3] %vm218_vm1, %v18054_v0  ;;  %258 = vst.msk [vmem:[#allocation2 + $0x148] sm:$0x3] %vm218_vm1, %v18054_v0  ;;  %v18521_v46 = vld [vmem:[#allocation2 + $0x19] sm:$0xff] }
  0x96   : > { %261 = vst.msk [vmem:[#allocation2 + $0x160] sm:$0x3] %vm218_vm1, %v18054_v0  ;;  %264 = vst.msk [vmem:[#allocation2 + $0x178] sm:$0x3] %vm218_vm1, %v18054_v0  ;;  %v18475_v22 = vld [vmem:[#allocation2 + $0x9] sm:$0xff] }
  0x97   : > { %267 = vst.msk [vmem:[#allocation2 + $0x190] sm:$0x3] %vm218_vm1, %v18054_v0  ;;  %270 = vst.msk [vmem:[#allocation2 + $0x1a8] sm:$0x3] %vm218_vm1, %v18054_v0  ;;  %v3371_v27 = vld [vmem:[#allocation2 + $0xa] sm:$0xff]  ;;  %15307 = vmatmul.mubr.msk.f32.vlgmr.msra.gmra.mrb[0].mxu0 %vm215_vm0, %v18475_v22 }
  0x98   : > { %273 = vst.msk [vmem:[#allocation2 + $0x1c0] sm:$0x3] %vm218_vm1, %v18054_v0  ;;  %276 = vst.msk [vmem:[#allocation2 + $0x1d8] sm:$0x3] %vm218_vm1, %v18054_v0  ;;  %15723 = vmatmul.mubr.msk.f32.vlgmr.msra.gmra.mrb[0].mxu1 %vm215_vm0, %v3371_v27  ;;  %16973 = vmatpush3.bf16.msra.mxu0 %v16970_v18  ;;  %v16974_v18 = vpack.c.bf16 %v522_v16, %v521_v15  ;;  %v361_v27 = vld [vmem:[%s18242_s24 + $0x120] sm:$0xff]  ;;  %v382_v16 = vld [vmem:[%s18242_s24 + $0x1c8] sm:$0xff] }
  0x99   : > { %279 = vst.msk [vmem:[#allocation2 + $0x1f0] sm:$0x3] %vm218_vm1, %v18054_v0  ;;  %282 = vst.msk [vmem:[#allocation2 + $0x208] sm:$0x3] %vm218_vm1, %v18054_v0  ;;  %17005 = vmatpush3.bf16.msra.mxu1 %v17002_v23  ;;  %15309 = vmatprep.mubr.msk.f32.mxu0 %vm215_vm0, %v18521_v46  ;;  %v357_v23 = vld [vmem:[%s18242_s24 + $0x100] sm:$0xff] }
  0x9a   : > { %285 = vst.msk [vmem:[#allocation2 + $0x220] sm:$0x3] %vm218_vm1, %v18054_v0  ;;  %288 = vst.msk [vmem:[#allocation2 + $0x238] sm:$0x3] %vm218_vm1, %v18054_v0  ;;  %16975 = vmatprep.subr.bf16.mxu0 %v16974_v18  ;;  %v381_v15 = vld [vmem:[%s18242_s24 + $0x1c0] sm:$0xff] }
  0x9b   : > { %291 = vst.msk [vmem:[#allocation2 + $0x250] sm:$0x3] %vm218_vm1, %v18054_v0  ;;  %294 = vst.msk [vmem:[#allocation2 + $0x268] sm:$0x3] %vm218_vm1, %v18054_v0 }
  0x9c   : > { %297 = vst.msk [vmem:[#allocation2 + $0x280] sm:$0x3] %vm218_vm1, %v18054_v0  ;;  %300 = vst.msk [vmem:[#allocation2 + $0x298] sm:$0x3] %vm218_vm1, %v18054_v0  ;;  %16977 = vmatpush3.bf16.msra.mxu0 %v16974_v18  ;;  %v384_v18 = vld [vmem:[%s18242_s24 + $0x1d8] sm:$0xff] }
  0x9d   : > { %303 = vst.msk [vmem:[#allocation2 + $0x2b0] sm:$0x3] %vm218_vm1, %v18054_v0  ;;  %306 = vst.msk [vmem:[#allocation2 + $0x2c8] sm:$0x3] %vm218_vm1, %v18054_v0 }
  0x9e   : > { %309 = vst.msk [vmem:[#allocation2 + $0x2e0] sm:$0x3] %vm218_vm1, %v18054_v0  ;;  %312 = vst.msk [vmem:[#allocation2 + $0x2f8] sm:$0x3] %vm218_vm1, %v18054_v0 }
  0x9f   : > { %315 = vst.msk [vmem:[#allocation2 + $0x310] sm:$0x3] %vm218_vm1, %v18054_v0  ;;  %318 = vst.msk [vmem:[#allocation2 + $0x328] sm:$0x3] %vm218_vm1, %v18054_v0 }
  0xa0   : > { %321 = vst.msk [vmem:[#allocation2 + $0x340] sm:$0x3] %vm218_vm1, %v18054_v0  ;;  %324 = vst.msk [vmem:[#allocation2 + $0x358] sm:$0x3] %vm218_vm1, %v18054_v0 }
  0xa1   : > { %391 = vst.msk [vmem:[#allocation2 + $0x21] sm:$0xff] %vm215_vm0, %v326_v21  ;;  %392 = vst.msk [vmem:[#allocation2 + $0x31] sm:$0xff] %vm215_vm0, %v327_v24  ;;  %v17006_v21 = vpack.c.bf16 %v3369_v20, %v3368_v19  ;;  %v358_v24 = vld [vmem:[%s18242_s24 + $0x108] sm:$0xff]  ;;  %v385_v20 = vld [vmem:[%s18242_s24 + $0x1e0] sm:$0xff] }
  0xa2   : > { %393 = vst.msk [vmem:[#allocation2 + $0x39] sm:$0xff] %vm215_vm0, %v328_v25  ;;  %394 = vst.msk [vmem:[#allocation2 + $0x49] sm:$0xff] %vm215_vm0, %v329_v26  ;;  %v359_v25 = vld [vmem:[%s18242_s24 + $0x110] sm:$0xff]  ;;  %v360_v26 = vld [vmem:[%s18242_s24 + $0x118] sm:$0xff] }
  0xa3   : > { %395 = vst.msk [vmem:[#allocation2 + $0x51] sm:$0xff] %vm215_vm0, %v330_v28  ;;  %396 = vst.msk [vmem:[#allocation2 + $0x61] sm:$0xff] %vm215_vm0, %v331_v29  ;;  %v362_v28 = vld [vmem:[%s18242_s24 + $0x128] sm:$0xff]  ;;  %17007 = vmatprep.subr.bf16.mxu1 %v17006_v21  ;;  %v363_v29 = vld [vmem:[%s18242_s24 + $0x130] sm:$0xff] }
  0xa4   : > { %397 = vst.msk [vmem:[#allocation2 + $0x69] sm:$0xff] %vm215_vm0, %v332_v30  ;;  %398 = vst.msk [vmem:[#allocation2 + $0x79] sm:$0xff] %vm215_vm0, %v333_v31  ;;  %v364_v30 = vld [vmem:[%s18242_s24 + $0x138] sm:$0xff]  ;;  %v365_v31 = vld [vmem:[%s18242_s24 + $0x140] sm:$0xff]  ;;  %17009 = vmatpush3.bf16.msra.mxu1 %v17006_v21 }
  0xa5   : > { %399 = vst.msk [vmem:[#allocation2 + $0x81] sm:$0xff] %vm215_vm0, %v334_v32  ;;  %400 = vst.msk [vmem:[#allocation2 + $0x91] sm:$0xff] %vm215_vm0, %v335_v33  ;;  %v386_v21 = vld [vmem:[%s18242_s24 + $0x1e8] sm:$0xff] }
  0xa6   : > { %401 = vst.msk [vmem:[#allocation2 + $0x99] sm:$0xff] %vm215_vm0, %v336_v34  ;;  %402 = vst.msk [vmem:[#allocation2 + $0xa9] sm:$0xff] %vm215_vm0, %v337_v35 }
  0xa7   : > { %403 = vst.msk [vmem:[#allocation2 + $0xb1] sm:$0xff] %vm215_vm0, %v338_v36  ;;  %404 = vst.msk [vmem:[#allocation2 + $0xc1] sm:$0xff] %vm215_vm0, %v339_v37 }
  0xa8   : > { %405 = vst.msk [vmem:[#allocation2 + $0xc9] sm:$0xff] %vm215_vm0, %v340_v38  ;;  %406 = vst.msk [vmem:[#allocation2 + $0xd9] sm:$0xff] %vm215_vm0, %v341_v39  ;;  %v3372_v47 = vld [vmem:[#allocation2 + $0x1a] sm:$0xff]  ;;  %v3373_v49 = vld [vmem:[#allocation2 + $0x22] sm:$0xff] }
  0xa9   : > { %407 = vst.msk [vmem:[#allocation2 + $0xe1] sm:$0xff] %vm215_vm0, %v342_v40  ;;  %408 = vst.msk [vmem:[#allocation2 + $0xf1] sm:$0xff] %vm215_vm0, %v343_v41  ;;  %v18523_v48 = vld [vmem:[#allocation2 + $0x21] sm:$0xff]  ;;  %15725 = vmatprep.mubr.msk.f32.mxu1 %vm215_vm0, %v3372_v47  ;;  %v18531_v50 = vld [vmem:[#allocation2 + $0x31] sm:$0xff] }
  0xaa   : > { %409 = vst.msk [vmem:[#allocation2 + $0xf9] sm:$0xff] %vm215_vm0, %v344_v42  ;;  %410 = vst.msk [vmem:[#allocation2 + $0x109] sm:$0xff] %vm215_vm0, %v345_v43  ;;  %v3374_v51 = vld [vmem:[#allocation2 + $0x32] sm:$0xff]  ;;  %15310 = vmatmul.mubr.msk.f32.gmra.mrb[2].mxu0 %vm215_vm0, %v18523_v48  ;;  %15726 = vmatmul.mubr.msk.f32.gmra.mrb[2].mxu1 %vm215_vm0, %v3373_v49  ;;  %v3375_v53 = vld [vmem:[#allocation2 + $0x3a] sm:$0xff] }
  0xab   : > { %411 = vst.msk [vmem:[#allocation2 + $0x111] sm:$0xff] %vm215_vm0, %v346_v44  ;;  %412 = vst.msk [vmem:[#allocation2 + $0x121] sm:$0xff] %vm215_vm0, %v347_v45  ;;  %15312 = vmatprep.mubr.msk.f32.mxu0 %vm215_vm0, %v18531_v50  ;;  %v18538_v52 = vld [vmem:[#allocation2 + $0x39] sm:$0xff]  ;;  %15728 = vmatprep.mubr.msk.f32.mxu1 %vm215_vm0, %v3374_v51  ;;  %v18541_v54 = vld [vmem:[#allocation2 + $0x49] sm:$0xff] }
  0xac   : > { %v3376_v55 = vld [vmem:[#allocation2 + $0x4a] sm:$0xff]  ;;  %v3377_v57 = vld [vmem:[#allocation2 + $0x52] sm:$0xff]  ;;  %v18551_v58 = vld [vmem:[#allocation2 + $0x61] sm:$0xff]  ;;  %413 = vst.msk [vmem:[#allocation2 + $0x129] sm:$0xff] %vm215_vm0, %v348_v3 }
  0xad   : > { %v18548_v56 = vld [vmem:[#allocation2 + $0x51] sm:$0xff]  ;;  %v3378_v59 = vld [vmem:[#allocation2 + $0x62] sm:$0xff]  ;;  %v18561_v62 = vld [vmem:[#allocation2 + $0x79] sm:$0xff]  ;;  %414 = vst.msk [vmem:[#allocation2 + $0x139] sm:$0xff] %vm215_vm0, %v349_v4 }
  0xae   : > { %15313 = vmatmul.mubr.msk.f32.gmra.mrb[4].mxu0 %vm215_vm0, %v18538_v52  ;;  %15729 = vmatmul.mubr.msk.f32.gmra.mrb[4].mxu1 %vm215_vm0, %v3375_v53  ;;  %v18558_v60 = vld [vmem:[#allocation2 + $0x69] sm:$0xff]  ;;  %v3380_v63 = vld [vmem:[#allocation2 + $0x7a] sm:$0xff]  ;;  %v18567_v2 = vld [vmem:[#allocation2 + $0x91] sm:$0xff]  ;;  %415 = vst.msk [vmem:[#allocation2 + $0x141] sm:$0xff] %vm215_vm0, %v350_v5 }
  0xaf   : > { %15315 = vmatprep.mubr.msk.f32.mxu0 %vm215_vm0, %v18541_v54  ;;  %15731 = vmatprep.mubr.msk.f32.mxu1 %vm215_vm0, %v3376_v55  ;;  %v3379_v61 = vld [vmem:[#allocation2 + $0x6a] sm:$0xff]  ;;  %v18565_v0 = vld [vmem:[#allocation2 + $0x81] sm:$0xff]  ;;  %v3382_v9 = vld [vmem:[#allocation2 + $0x92] sm:$0xff]  ;;  %416 = vst.msk [vmem:[#allocation2 + $0x151] sm:$0xff] %vm215_vm0, %v351_v6 }
  0xb0   : > { %v3381_v1 = vld [vmem:[#allocation2 + $0x82] sm:$0xff]  ;;  %v18582_v10 = vld [vmem:[#allocation2 + $0x99] sm:$0xff]  ;;  %417 = vst.msk [vmem:[#allocation2 + $0x159] sm:$0xff] %vm215_vm0, %v352_v7  ;;  %418 = vst.msk [vmem:[#allocation2 + $0x169] sm:$0xff] %vm215_vm0, %v353_v8 }
  0xb1   : > { %v3383_v13 = vld [vmem:[#allocation2 + $0x9a] sm:$0xff]  ;;  %v18590_v14 = vld [vmem:[#allocation2 + $0xa9] sm:$0xff]  ;;  %419 = vst.msk [vmem:[#allocation2 + $0x171] sm:$0xff] %vm215_vm0, %v354_v11  ;;  %422 = vst.msk [vmem:[#allocation2 + $0x1c9] sm:$0xff] %vm215_vm0, %v357_v23 }
  0xb2   : > { %15316 = vmatmul.mubr.msk.f32.gmra.mrb[6].mxu0 %vm215_vm0, %v18548_v56  ;;  %15732 = vmatmul.mubr.msk.f32.gmra.mrb[6].mxu1 %vm215_vm0, %v3377_v57  ;;  %v3384_v17 = vld [vmem:[#allocation2 + $0xaa] sm:$0xff]  ;;  %423 = vst.msk [vmem:[#allocation2 + $0x1d1] sm:$0xff] %vm215_vm0, %v358_v24  ;;  %424 = vst.msk [vmem:[#allocation2 + $0x1e1] sm:$0xff] %vm215_vm0, %v359_v25  ;;  %v3385_v33 = vld [vmem:[#allocation2 + $0xb2] sm:$0xff] }
  0xb3   : > { %15318 = vmatprep.mubr.msk.f32.mxu0 %vm215_vm0, %v18551_v58  ;;  %15734 = vmatprep.mubr.msk.f32.mxu1 %vm215_vm0, %v3378_v59  ;;  %425 = vst.msk [vmem:[#allocation2 + $0x1e9] sm:$0xff] %vm215_vm0, %v360_v26  ;;  %426 = vst.msk [vmem:[#allocation2 + $0x1f9] sm:$0xff] %vm215_vm0, %v361_v27  ;;  %v18617_v32 = vld [vmem:[#allocation2 + $0xb1] sm:$0xff]  ;;  %v18623_v34 = vld [vmem:[#allocation2 + $0xc1] sm:$0xff] }
  0xb4   : > { %427 = vst.msk [vmem:[#allocation2 + $0x201] sm:$0xff] %vm215_vm0, %v362_v28  ;;  %428 = vst.msk [vmem:[#allocation2 + $0x211] sm:$0xff] %vm215_vm0, %v363_v29  ;;  %v3386_v35 = vld [vmem:[#allocation2 + $0xc2] sm:$0xff]  ;;  %v3387_v37 = vld [vmem:[#allocation2 + $0xca] sm:$0xff] }
  0xb5   : > { %429 = vst.msk [vmem:[#allocation2 + $0x219] sm:$0xff] %vm215_vm0, %v364_v30  ;;  %430 = vst.msk [vmem:[#allocation2 + $0x229] sm:$0xff] %vm215_vm0, %v365_v31  ;;  %v18630_v36 = vld [vmem:[#allocation2 + $0xc9] sm:$0xff]  ;;  %v18633_v38 = vld [vmem:[#allocation2 + $0xd9] sm:$0xff] }
  0xb6   : > { %15319 = vmatmul.mubr.msk.f32.gmra.mrb[8].mxu0 %vm215_vm0, %v18558_v60  ;;  %15735 = vmatmul.mubr.msk.f32.gmra.mrb[8].mxu1 %vm215_vm0, %v3379_v61  ;;  %v3388_v39 = vld [vmem:[#allocation2 + $0xda] sm:$0xff]  ;;  %v3389_v41 = vld [vmem:[#allocation2 + $0xe2] sm:$0xff]  ;;  %v18643_v42 = vld [vmem:[#allocation2 + $0xf1] sm:$0xff]  ;;  %446 = vst.msk [vmem:[#allocation2 + $0x2e9] sm:$0xff] %vm215_vm0, %v381_v15 }
  0xb7   : > { %15321 = vmatprep.mubr.msk.f32.mxu0 %vm215_vm0, %v18561_v62  ;;  %15737 = vmatprep.mubr.msk.f32.mxu1 %vm215_vm0, %v3380_v63  ;;  %v18640_v40 = vld [vmem:[#allocation2 + $0xe1] sm:$0xff]  ;;  %v3390_v43 = vld [vmem:[#allocation2 + $0xf2] sm:$0xff]  ;;  %v18650_v49 = vld [vmem:[#allocation2 + $0x109] sm:$0xff]  ;;  %447 = vst.msk [vmem:[#allocation2 + $0x2f1] sm:$0xff] %vm215_vm0, %v382_v16 }
  0xb8   : > { %v18645_v44 = vld [vmem:[#allocation2 + $0xf9] sm:$0xff]  ;;  %v366_v45 = vld [vmem:[%s18242_s24 + $0x148] sm:$0xff]  ;;  %v367_v51 = vld [vmem:[%s18242_s24 + $0x150] sm:$0xff]  ;;  %449 = vst.msk [vmem:[#allocation2 + $0x309] sm:$0xff] %vm215_vm0, %v384_v18 }
  0xb9   : > { %v3391_v47 = vld [vmem:[#allocation2 + $0xfa] sm:$0xff]  ;;  %431 = vst.msk [vmem:[#allocation2 + $0x231] sm:$0xff] %vm215_vm0, %v366_v45  ;;  %v3392_v57 = vld [vmem:[#allocation2 + $0x10a] sm:$0xff]  ;;  %432 = vst.msk [vmem:[#allocation2 + $0x241] sm:$0xff] %vm215_vm0, %v367_v51 }
  0xba   : > { %15322 = vmatmul.mubr.msk.f32.gmra.mrb[10].mxu0 %vm215_vm0, %v18565_v0  ;;  %15738 = vmatmul.mubr.msk.f32.gmra.mrb[10].mxu1 %vm215_vm0, %v3381_v1  ;;  %v368_v53 = vld [vmem:[%s18242_s24 + $0x158] sm:$0xff]  ;;  %v369_v55 = vld [vmem:[%s18242_s24 + $0x160] sm:$0xff]  ;;  %v370_v59 = vld [vmem:[%s18242_s24 + $0x168] sm:$0xff]  ;;  %450 = vst.msk [vmem:[#allocation2 + $0x319] sm:$0xff] %vm215_vm0, %v385_v20 }
  0xbb   : > { %15324 = vmatprep.mubr.msk.f32.mxu0 %vm215_vm0, %v18567_v2  ;;  %15740 = vmatprep.mubr.msk.f32.mxu1 %vm215_vm0, %v3382_v9  ;;  %433 = vst.msk [vmem:[#allocation2 + $0x249] sm:$0xff] %vm215_vm0, %v368_v53  ;;  %434 = vst.msk [vmem:[#allocation2 + $0x259] sm:$0xff] %vm215_vm0, %v369_v55  ;;  %v371_v61 = vld [vmem:[%s18242_s24 + $0x170] sm:$0xff]  ;;  %v372_v63 = vld [vmem:[%s18242_s24 + $0x178] sm:$0xff] }
  0xbc   : > { %435 = vst.msk [vmem:[#allocation2 + $0x261] sm:$0xff] %vm215_vm0, %v370_v59  ;;  %436 = vst.msk [vmem:[#allocation2 + $0x271] sm:$0xff] %vm215_vm0, %v371_v61  ;;  %v373_v1 = vld [vmem:[%s18242_s24 + $0x180] sm:$0xff]  ;;  %v374_v3 = vld [vmem:[%s18242_s24 + $0x188] sm:$0xff] }
  0xbd   : > { %437 = vst.msk [vmem:[#allocation2 + $0x279] sm:$0xff] %vm215_vm0, %v372_v63  ;;  %v375_v4 = vld [vmem:[%s18242_s24 + $0x190] sm:$0xff]  ;;  %438 = vst.msk [vmem:[#allocation2 + $0x289] sm:$0xff] %vm215_vm0, %v373_v1  ;;  %v376_v6 = vld [vmem:[%s18242_s24 + $0x198] sm:$0xff] }
  0xbe   : > { %15325 = vmatmul.mubr.msk.f32.gmra.mrb[12].mxu0 %vm215_vm0, %v18582_v10  ;;  %15741 = vmatmul.mubr.msk.f32.gmra.mrb[12].mxu1 %vm215_vm0, %v3383_v13  ;;  %v18672_v5 = vld [vmem:[#allocation2 + $0x111] sm:$0xff]  ;;  %439 = vst.msk [vmem:[#allocation2 + $0x291] sm:$0xff] %vm215_vm0, %v374_v3  ;;  %440 = vst.msk [vmem:[#allocation2 + $0x2a1] sm:$0xff] %vm215_vm0, %v375_v4  ;;  %v377_v7 = vld [vmem:[%s18242_s24 + $0x1a0] sm:$0xff] }
  0xbf   : > { %15327 = vmatprep.mubr.msk.f32.mxu0 %vm215_vm0, %v18590_v14  ;;  %15743 = vmatprep.mubr.msk.f32.mxu1 %vm215_vm0, %v3384_v17  ;;  %v378_v8 = vld [vmem:[%s18242_s24 + $0x1a8] sm:$0xff]  ;;  %v3393_v9 = vld [vmem:[#allocation2 + $0x112] sm:$0xff]  ;;  %441 = vst.msk [vmem:[#allocation2 + $0x2a9] sm:$0xff] %vm215_vm0, %v376_v6  ;;  %442 = vst.msk [vmem:[#allocation2 + $0x2b9] sm:$0xff] %vm215_vm0, %v377_v7 }
  0xc0   : > { %443 = vst.msk [vmem:[#allocation2 + $0x2c1] sm:$0xff] %vm215_vm0, %v378_v8  ;;  %v379_v11 = vld [vmem:[%s18242_s24 + $0x1b0] sm:$0xff]  ;;  %v380_v13 = vld [vmem:[%s18242_s24 + $0x1b8] sm:$0xff]  ;;  %v18698_v19 = vld [vmem:[#allocation2 + $0x121] sm:$0xff] }
  0xc1   : > { %444 = vst.msk [vmem:[#allocation2 + $0x2d1] sm:$0xff] %vm215_vm0, %v379_v11  ;;  %445 = vst.msk [vmem:[#allocation2 + $0x2d9] sm:$0xff] %vm215_vm0, %v380_v13  ;;  %v383_v17 = vld [vmem:[%s18242_s24 + $0x1d0] sm:$0xff]  ;;  %v3394_v23 = vld [vmem:[#allocation2 + $0x122] sm:$0xff] }
  0xc2   : > { %15328 = vmatmul.mubr.msk.f32.gmra.mrb[14].mxu0 %vm215_vm0, %v18617_v32  ;;  %15744 = vmatmul.mubr.msk.f32.gmra.mrb[14].mxu1 %vm215_vm0, %v3385_v33  ;;  %448 = vst.msk [vmem:[#allocation2 + $0x301] sm:$0xff] %vm215_vm0, %v383_v17  ;;  %451 = vst.msk [vmem:[#allocation2 + $0x321] sm:$0xff] %vm215_vm0, %v386_v21  ;;  %v18712_v24 = vld [vmem:[#allocation2 + $0x129] sm:$0xff]  ;;  %v18715_v26 = vld [vmem:[#allocation2 + $0x139] sm:$0xff] }
  0xc3   : > { %15330 = vmatprep.mubr.msk.f32.mxu0 %vm215_vm0, %v18623_v34  ;;  %15746 = vmatprep.mubr.msk.f32.mxu1 %vm215_vm0, %v3386_v35  ;;  %v3395_v25 = vld [vmem:[#allocation2 + $0x12a] sm:$0xff]  ;;  %v3396_v27 = vld [vmem:[#allocation2 + $0x13a] sm:$0xff]  ;;  %v3397_v29 = vld [vmem:[#allocation2 + $0x142] sm:$0xff] }
  0xc4   : > { %v18722_v28 = vld [vmem:[#allocation2 + $0x141] sm:$0xff]  ;;  %v18725_v30 = vld [vmem:[#allocation2 + $0x151] sm:$0xff]  ;;  %v18732_v33 = vld [vmem:[#allocation2 + $0x159] sm:$0xff] }
  0xc5   : > { %v3398_v31 = vld [vmem:[#allocation2 + $0x152] sm:$0xff]  ;;  %v3399_v35 = vld [vmem:[#allocation2 + $0x15a] sm:$0xff]  ;;  %v1812_v51 = vld [vmem:[#allocation5 + $0x48] sm:$0xff] }
  0xc6   : > { %15331 = vmatmul.mubr.msk.f32.gmra.mrb[16].mxu0 %vm215_vm0, %v18630_v36  ;;  %15747 = vmatmul.mubr.msk.f32.gmra.mrb[16].mxu1 %vm215_vm0, %v3387_v37  ;;  %v18735_v37 = vld [vmem:[#allocation2 + $0x169] sm:$0xff]  ;;  %v3401_v45 = vld [vmem:[#allocation2 + $0x172] sm:$0xff]  ;;  %v4658_v53 = vld [vmem:[#allocation5 + $0xc0] sm:$0xff] }
  0xc7   : > { %15333 = vmatprep.mubr.msk.f32.mxu0 %vm215_vm0, %v18633_v38  ;;  %15749 = vmatprep.mubr.msk.f32.mxu1 %vm215_vm0, %v3388_v39  ;;  %v3400_v39 = vld [vmem:[#allocation2 + $0x16a] sm:$0xff]  ;;  %v18756_v63 = vld [vmem:[#allocation2 + $0x1b9] sm:$0xff]  ;;  %v18771_v8 = vld [vmem:[#allocation2 + $0x1e1] sm:$0xff] }
  0xc8   : > { %v4659_v55 = vld [vmem:[#allocation5 + $0xc8] sm:$0xff]  ;;  %v3403_v1 = vld [vmem:[#allocation2 + $0x1ba] sm:$0xff]  ;;  %v18768_v6 = vld [vmem:[#allocation2 + $0x1d1] sm:$0xff] }
  0xc9   : > { %v18749_v61 = vpack.c.bf16 %v4659_v55, %v4658_v53  ;;  %v18759_v3 = vld [vmem:[#allocation2 + $0x1c9] sm:$0xff]  ;;  %v3405_v7 = vld [vmem:[#allocation2 + $0x1d2] sm:$0xff]  ;;  %v3408_v16 = vld [vmem:[#allocation2 + $0x1fa] sm:$0xff] }
  0xca   : > { %15334 = vmatmul.mubr.msk.f32.gmra.mrb[18].mxu0 %vm215_vm0, %v18640_v40  ;;  %15750 = vmatmul.mubr.msk.f32.gmra.mrb[18].mxu1 %vm215_vm0, %v3389_v41  ;;  %v18739_v41 = vld [vmem:[#allocation2 + $0x1b1] sm:$0xff]  ;;  %v18778_v11 = vld [vmem:[#allocation2 + $0x1e9] sm:$0xff]  ;;  %v18781_v15 = vld [vmem:[#allocation2 + $0x1f9] sm:$0xff] }
  0xcb   : > { %15336 = vmatprep.mubr.msk.f32.mxu0 %vm215_vm0, %v18643_v42  ;;  %15752 = vmatprep.mubr.msk.f32.mxu1 %vm215_vm0, %v3390_v43  ;;  %v18744_v43 = vld [vmem:[#allocation2 + $0x171] sm:$0xff]  ;;  %v18788_v17 = vld [vmem:[#allocation2 + $0x201] sm:$0xff]  ;;  %v18821_v53 = vld [vmem:[#allocation2 + $0x259] sm:$0xff] }
  0xcc   : > { %v3404_v4 = vld [vmem:[#allocation2 + $0x1ca] sm:$0xff]  ;;  %17011 = vmatprep.subr.bf16.mxu1 %v18749_v61  ;;  %v3409_v18 = vld [vmem:[#allocation2 + $0x202] sm:$0xff]  ;;  %v3410_v21 = vld [vmem:[#allocation2 + $0x212] sm:$0xff] }
  0xcd   : > { %v3407_v13 = vld [vmem:[#allocation2 + $0x1ea] sm:$0xff]  ;;  %v3416_v55 = vld [vmem:[#allocation2 + $0x25a] sm:$0xff] }
  0xce   : > { %15337 = vmatmul.mubr.msk.f32.gmra.mrb[20].mxu0 %vm215_vm0, %v18645_v44  ;;  %15753 = vmatmul.mubr.msk.f32.gmra.mrb[20].mxu1 %vm215_vm0, %v3391_v47  ;;  %v1811_v47 = vld [vmem:[#allocation5 + $0x40] sm:$0xff]  ;;  %v18791_v20 = vld [vmem:[#allocation2 + $0x211] sm:$0xff] }
  0xcf   : > { %15339 = vmatprep.mubr.msk.f32.mxu0 %vm215_vm0, %v18650_v49  ;;  %15755 = vmatprep.mubr.msk.f32.mxu1 %vm215_vm0, %v3392_v57  ;;  %v3402_v57 = vld [vmem:[#allocation2 + $0x1b2] sm:$0xff]  ;;  %v18747_v59 = vpack.c.bf16 %v1812_v51, %v1811_v47  ;;  %v18818_v47 = vld [vmem:[#allocation2 + $0x249] sm:$0xff] }
  0xd0   : > { %v3415_v51 = vld [vmem:[#allocation2 + $0x24a] sm:$0xff] }
  0xd1   : > { %16979 = vmatprep.subr.bf16.mxu0 %v18747_v59 }
  0xd2   : > { %15340 = vmatmul.mubr.msk.f32.gmra.mrb[22].mxu0 %vm215_vm0, %v18672_v5  ;;  %15756 = vmatmul.mubr.msk.f32.gmra.mrb[22].mxu1 %vm215_vm0, %v3393_v9  ;;  %v3406_v9 = vld [vmem:[#allocation2 + $0x1e2] sm:$0xff] }
  0xd3   : > { %15342 = vmatprep.mubr.msk.f32.mxu0 %vm215_vm0, %v18698_v19  ;;  %15758 = vmatprep.mubr.msk.f32.mxu1 %vm215_vm0, %v3394_v23  ;;  %v18798_v23 = vld [vmem:[#allocation2 + $0x219] sm:$0xff] }
  0xd6   : > { %15343 = vmatmul.mubr.msk.f32.gmra.mrb[24].mxu0 %vm215_vm0, %v18712_v24  ;;  %15759 = vmatmul.mubr.msk.f32.gmra.mrb[24].mxu1 %vm215_vm0, %v3395_v25  ;;  %v3411_v25 = vld [vmem:[#allocation2 + $0x21a] sm:$0xff] }
  0xd7   : > { %15345 = vmatprep.mubr.msk.f32.mxu0 %vm215_vm0, %v18715_v26  ;;  %15761 = vmatprep.mubr.msk.f32.mxu1 %vm215_vm0, %v3396_v27  ;;  %v18801_v27 = vld [vmem:[#allocation2 + $0x229] sm:$0xff] }
  0xda   : > { %15346 = vmatmul.mubr.msk.f32.gmra.mrb[26].mxu0 %vm215_vm0, %v18722_v28  ;;  %15762 = vmatmul.mubr.msk.f32.gmra.mrb[26].mxu1 %vm215_vm0, %v3397_v29  ;;  %v3412_v29 = vld [vmem:[#allocation2 + $0x22a] sm:$0xff] }
  0xdb   : > { %15348 = vmatprep.mubr.msk.f32.mxu0 %vm215_vm0, %v18725_v30  ;;  %15764 = vmatprep.mubr.msk.f32.mxu1 %vm215_vm0, %v3398_v31  ;;  %v18808_v31 = vld [vmem:[#allocation2 + $0x231] sm:$0xff] }
  0xde   : > { %15349 = vmatmul.mubr.msk.f32.gmra.mrb[28].mxu0 %vm215_vm0, %v18732_v33  ;;  %15765 = vmatmul.mubr.msk.f32.gmra.mrb[28].mxu1 %vm215_vm0, %v3399_v35  ;;  %v3413_v35 = vld [vmem:[#allocation2 + $0x232] sm:$0xff] }
  0xdf   : > { %15351 = vmatprep.mubr.msk.f32.mxu0 %vm215_vm0, %v18735_v37  ;;  %15767 = vmatprep.mubr.msk.f32.mxu1 %vm215_vm0, %v3400_v39  ;;  %v18811_v39 = vld [vmem:[#allocation2 + $0x241] sm:$0xff] }
  0xe2   : > { %15352 = vmatmul.mubr.msk.f32.gmra.mrb[30].mxu0 %vm215_vm0, %v18744_v43  ;;  %15768 = vmatmul.mubr.msk.f32.gmra.mrb[30].mxu1 %vm215_vm0, %v3401_v45  ;;  %v3414_v45 = vld [vmem:[#allocation2 + $0x242] sm:$0xff] }
  0xe3   : > { %15354 = vmatprep.mubr.msk.f32.mxu0 %vm215_vm0, %v18739_v41  ;;  %15770 = vmatprep.mubr.msk.f32.mxu1 %vm215_vm0, %v3402_v57  ;;  %v18828_v57 = vld [vmem:[#allocation2 + $0x261] sm:$0xff] }
  0xe6   : > { %15355 = vmatmul.mubr.msk.f32.gmra.mrb[32].mxu0 %vm215_vm0, %v18756_v63  ;;  %15771 = vmatmul.mubr.msk.f32.gmra.mrb[32].mxu1 %vm215_vm0, %v3403_v1  ;;  %v3417_v1 = vld [vmem:[#allocation2 + $0x262] sm:$0xff] }
  0xe7   : > { %15357 = vmatprep.mubr.msk.f32.mxu0 %vm215_vm0, %v18759_v3  ;;  %15773 = vmatprep.mubr.msk.f32.mxu1 %vm215_vm0, %v3404_v4  ;;  %v18831_v4 = vld [vmem:[#allocation2 + $0x271] sm:$0xff] }
  0xea   : > { %15358 = vmatmul.mubr.msk.f32.gmra.mrb[34].mxu0 %vm215_vm0, %v18768_v6  ;;  %15774 = vmatmul.mubr.msk.f32.gmra.mrb[34].mxu1 %vm215_vm0, %v3405_v7  ;;  %v3418_v7 = vld [vmem:[#allocation2 + $0x272] sm:$0xff] }
  0xeb   : > { %15360 = vmatprep.mubr.msk.f32.mxu0 %vm215_vm0, %v18771_v8  ;;  %15776 = vmatprep.mubr.msk.f32.mxu1 %vm215_vm0, %v3406_v9  ;;  %v18838_v9 = vld [vmem:[#allocation2 + $0x279] sm:$0xff] }
  0xec   : > { %22666 = vst [vmem:[#allocation11_spill] sm:$0xff] %v18838_v9 }
  0xee   : > { %15361 = vmatmul.mubr.msk.f32.gmra.mrb[36].mxu0 %vm215_vm0, %v18778_v11  ;;  %15777 = vmatmul.mubr.msk.f32.gmra.mrb[36].mxu1 %vm215_vm0, %v3407_v13  ;;  %v3419_v13 = vld [vmem:[#allocation2 + $0x27a] sm:$0xff] }
  0xef   : > { %15363 = vmatprep.mubr.msk.f32.mxu0 %vm215_vm0, %v18781_v15  ;;  %15779 = vmatprep.mubr.msk.f32.mxu1 %vm215_vm0, %v3408_v16  ;;  %v18841_v16 = vld [vmem:[#allocation2 + $0x289] sm:$0xff] }
  0xf0   : > { %22667 = vst [vmem:[#allocation12_spill] sm:$0xff] %v18841_v16 }
  0xf2   : > { %15364 = vmatmul.mubr.msk.f32.gmra.mrb[38].mxu0 %vm215_vm0, %v18788_v17  ;;  %15780 = vmatmul.mubr.msk.f32.gmra.mrb[38].mxu1 %vm215_vm0, %v3409_v18  ;;  %v3420_v18 = vld [vmem:[#allocation2 + $0x28a] sm:$0xff] }
  0xf3   : > { %15366 = vmatprep.mubr.msk.f32.mxu0 %vm215_vm0, %v18791_v20  ;;  %15782 = vmatprep.mubr.msk.f32.mxu1 %vm215_vm0, %v3410_v21  ;;  %v18848_v21 = vld [vmem:[#allocation2 + $0x291] sm:$0xff] }
  0xf4   : > { %22668 = vst [vmem:[#allocation13_spill] sm:$0xff] %v18848_v21 }
  0xf6   : > { %15367 = vmatmul.mubr.msk.f32.gmra.mrb[40].mxu0 %vm215_vm0, %v18798_v23  ;;  %15783 = vmatmul.mubr.msk.f32.gmra.mrb[40].mxu1 %vm215_vm0, %v3411_v25  ;;  %v3421_v25 = vld [vmem:[#allocation2 + $0x292] sm:$0xff] }
  0xf7   : > { %15369 = vmatprep.mubr.msk.f32.mxu0 %vm215_vm0, %v18801_v27  ;;  %15785 = vmatprep.mubr.msk.f32.mxu1 %vm215_vm0, %v3412_v29  ;;  %v18851_v29 = vld [vmem:[#allocation2 + $0x2a1] sm:$0xff] }
  0xf8   : > { %22669 = vst [vmem:[#allocation14_spill] sm:$0xff] %v18851_v29 }
  0xfa   : > { %15370 = vmatmul.mubr.msk.f32.gmra.mrb[42].mxu0 %vm215_vm0, %v18808_v31  ;;  %15786 = vmatmul.mubr.msk.f32.gmra.mrb[42].mxu1 %vm215_vm0, %v3413_v35  ;;  %v3422_v35 = vld [vmem:[#allocation2 + $0x2a2] sm:$0xff] }
  0xfb   : > { %15372 = vmatprep.mubr.msk.f32.mxu0 %vm215_vm0, %v18811_v39  ;;  %15788 = vmatprep.mubr.msk.f32.mxu1 %vm215_vm0, %v3414_v45  ;;  %v18858_v45 = vld [vmem:[#allocation2 + $0x2a9] sm:$0xff] }
  0xfc   : > { %22670 = vst [vmem:[#allocation15_spill] sm:$0xff] %v18858_v45 }
  0xfe   : > { %15373 = vmatmul.mubr.msk.f32.gmra.mrb[44].mxu0 %vm215_vm0, %v18818_v47  ;;  %15789 = vmatmul.mubr.msk.f32.gmra.mrb[44].mxu1 %vm215_vm0, %v3415_v51  ;;  %v3423_v51 = vld [vmem:[#allocation2 + $0x2aa] sm:$0xff] }
  0xff   : > { %15375 = vmatprep.mubr.msk.f32.mxu0 %vm215_vm0, %v18821_v53  ;;  %15791 = vmatprep.mubr.msk.f32.mxu1 %vm215_vm0, %v3416_v55  ;;  %v18861_v55 = vld [vmem:[#allocation2 + $0x2b9] sm:$0xff] }
 0x100   : > { %22671 = vst [vmem:[#allocation16_spill] sm:$0xff] %v18861_v55 }
 0x102   : > { %15376 = vmatmul.mubr.msk.f32.gmra.mrb[46].mxu0 %vm215_vm0, %v18828_v57  ;;  %15792 = vmatmul.mubr.msk.f32.gmra.mrb[46].mxu1 %vm215_vm0, %v3417_v1  ;;  %v3424_v1 = vld [vmem:[#allocation2 + $0x2ba] sm:$0xff] }
 0x103   : > { %15378 = vmatprep.mubr.msk.f32.mxu0 %vm215_vm0, %v18831_v4  ;;  %15794 = vmatprep.mubr.msk.f32.mxu1 %vm215_vm0, %v3418_v7  ;;  %v18868_v7 = vld [vmem:[#allocation2 + $0x2c1] sm:$0xff] }
 0x104   : > { %22672 = vst [vmem:[#allocation17_spill] sm:$0xff] %v18868_v7 }
 0x106   : > { %15379 = vmatmul.mubr.msk.f32.gmra.mrb[48].mxu0 %vm215_vm0, %v18838_v9  ;;  %15795 = vmatmul.mubr.msk.f32.gmra.mrb[48].mxu1 %vm215_vm0, %v3419_v13  ;;  %v3425_v13 = vld [vmem:[#allocation2 + $0x2c2] sm:$0xff] }
 0x107   : > { %15381 = vmatprep.mubr.msk.f32.mxu0 %vm215_vm0, %v18841_v16  ;;  %15797 = vmatprep.mubr.msk.f32.mxu1 %vm215_vm0, %v3420_v18  ;;  %v18871_v18 = vld [vmem:[#allocation2 + $0x2d1] sm:$0xff]  ;;  %v2521_v16 = vld [vmem:[#allocation5 + $0x60] sm:$0xff]  ;;  %v5369_v9 = vld [vmem:[#allocation5 + $0xe8] sm:$0xff] }
 0x108   : > { %22673 = vst [vmem:[#allocation18_spill] sm:$0xff] %v18871_v18 }
 0x10a   : > { %15382 = vmatmul.mubr.msk.f32.gmra.mrb[50].mxu0 %vm215_vm0, %v18848_v21  ;;  %15798 = vmatmul.mubr.msk.f32.gmra.mrb[50].mxu1 %vm215_vm0, %v3421_v25  ;;  %v3426_v25 = vld [vmem:[#allocation2 + $0x2d2] sm:$0xff] }
 0x10b   : > { %15384 = vmatprep.mubr.msk.f32.mxu0 %vm215_vm0, %v18851_v29  ;;  %15800 = vmatprep.mubr.msk.f32.mxu1 %vm215_vm0, %v3422_v35  ;;  %v18878_v35 = vld [vmem:[#allocation2 + $0x2d9] sm:$0xff] }
 0x10c   : > { %22674 = vst [vmem:[#allocation19_spill] sm:$0xff] %v18878_v35  ;;  %v4661_v29 = vld [vmem:[#allocation5 + $0xd8] sm:$0xff] }
 0x10e   : > { %15385 = vmatmul.mubr.msk.f32.gmra.mrb[52].mxu0 %vm215_vm0, %v18858_v45  ;;  %15801 = vmatmul.mubr.msk.f32.gmra.mrb[52].mxu1 %vm215_vm0, %v3423_v51  ;;  %v3427_v51 = vld [vmem:[#allocation2 + $0x2da] sm:$0xff] }
 0x10f   : > { %15387 = vmatprep.mubr.msk.f32.mxu0 %vm215_vm0, %v18861_v55  ;;  %15803 = vmatprep.mubr.msk.f32.mxu1 %vm215_vm0, %v3424_v1  ;;  %v18881_v55 = vld [vmem:[#allocation2 + $0x2e9] sm:$0xff]  ;;  %v1814_v45 = vld [vmem:[#allocation5 + $0x58] sm:$0xff] }
 0x110   : > { %22675 = vst [vmem:[#allocation20_spill] sm:$0xff] %v18881_v55  ;;  %v3428_v1 = vld [vmem:[#allocation2 + $0x2ea] sm:$0xff] }
 0x112   : > { %15388 = vmatmul.mubr.msk.f32.gmra.mrb[54].mxu0 %vm215_vm0, %v18868_v7  ;;  %15804 = vmatmul.mubr.msk.f32.gmra.mrb[54].mxu1 %vm215_vm0, %v3425_v13  ;;  %v18888_v13 = vld [vmem:[#allocation2 + $0x2f1] sm:$0xff]  ;;  %v18891_v7 = vld [vmem:[#allocation2 + $0x301] sm:$0xff] }
 0x113   : > { %15390 = vmatprep.mubr.msk.f32.mxu0 %vm215_vm0, %v18871_v18  ;;  %15806 = vmatprep.mubr.msk.f32.mxu1 %vm215_vm0, %v3426_v25  ;;  %22676 = vst [vmem:[#allocation21_spill] sm:$0xff] %v18888_v13  ;;  %v3429_v18 = vld [vmem:[#allocation2 + $0x2f2] sm:$0xff]  ;;  %22677 = vst [vmem:[#allocation22_spill] sm:$0xff] %v18891_v7  ;;  %v3430_v25 = vld [vmem:[#allocation2 + $0x302] sm:$0xff] }
 0x116   : > { %15391 = vmatmul.mubr.msk.f32.gmra.mrb[56].mxu0 %vm215_vm0, %v18878_v35  ;;  %15807 = vmatmul.mubr.msk.f32.gmra.mrb[56].mxu1 %vm215_vm0, %v3427_v51  ;;  %v18898_v51 = vld [vmem:[#allocation2 + $0x309] sm:$0xff]  ;;  %v18901_v35 = vld [vmem:[#allocation2 + $0x319] sm:$0xff] }
 0x117   : > { %15393 = vmatprep.mubr.msk.f32.mxu0 %vm215_vm0, %v18881_v55  ;;  %15809 = vmatprep.mubr.msk.f32.mxu1 %vm215_vm0, %v3428_v1  ;;  %22678 = vst [vmem:[#allocation23_spill] sm:$0xff] %v18898_v51  ;;  %v3431_v55 = vld [vmem:[#allocation2 + $0x30a] sm:$0xff]  ;;  %22679 = vst [vmem:[#allocation24_spill] sm:$0xff] %v18901_v35  ;;  %v3432_v1 = vld [vmem:[#allocation2 + $0x31a] sm:$0xff] }
 0x11a   : > { %15394 = vmatmul.mubr.msk.f32.gmra.mrb[58].mxu0 %vm215_vm0, %v18888_v13  ;;  %15810 = vmatmul.mubr.msk.f32.gmra.mrb[58].mxu1 %vm215_vm0, %v3429_v18  ;;  %v18908_v18 = vld [vmem:[#allocation2 + $0x321] sm:$0xff] }
 0x11b   : > { %15396 = vmatprep.mubr.msk.f32.mxu0 %vm215_vm0, %v18891_v7  ;;  %15812 = vmatprep.mubr.msk.f32.mxu1 %vm215_vm0, %v3430_v25  ;;  %22680 = vst [vmem:[#allocation25_spill] sm:$0xff] %v18908_v18  ;;  %v3433_v7 = vld [vmem:[#allocation2 + $0x322] sm:$0xff]  ;;  %v1813_v25 = vld [vmem:[#allocation5 + $0x50] sm:$0xff] }
 0x11c   : > { %v455_v13 = vld [vmem:[#allocation2] sm:$0xff] }
 0x11e   : > { %15397 = vmatmul.mubr.msk.f32.gmra.mrb[60].mxu0 %vm215_vm0, %v18898_v51  ;;  %15813 = vmatmul.mubr.msk.f32.gmra.mrb[60].mxu1 %vm215_vm0, %v3431_v55  ;;  %v456_v51 = vld [vmem:[#allocation2 + $0x8] sm:$0xff]  ;;  %v4660_v55 = vld [vmem:[#allocation5 + $0xd0] sm:$0xff] }
 0x11f   : > { %15399 = vmatprep.mubr.msk.f32.mxu0 %vm215_vm0, %v18901_v35  ;;  %15815 = vmatprep.mubr.msk.f32.mxu1 %vm215_vm0, %v3432_v1  ;;  %v18917_v35 = vld [vmem:[#allocation2 + $0x18] sm:$0xff]  ;;  %v16982_v1 = vpack.c.bf16 %v1814_v45, %v1813_v25  ;;  %v17014_v21 = vpack.c.bf16 %v4661_v29, %v4660_v55  ;;  %v19222_v45 = vld [vmem:[#allocation2 + $0x2a0] sm:$0xff] }
 0x120   : > { %v19234_v25 = vld [vmem:[#allocation2 + $0x2b8] sm:$0xff]  ;;  %v22685_v55 = vld [vmem:[#allocation15_spill] sm:$0xff] }
 0x122   : > { %15400 = vmatmul.mubr.msk.f32.gmra.mrb[62].mxu0 %vm215_vm0, %v18908_v18  ;;  %15816 = vmatmul.mubr.msk.f32.gmra.mrb[62].mxu1 %vm215_vm0, %v3433_v7  ;;  %v2522_v18 = vld [vmem:[#allocation5 + $0x68] sm:$0xff]  ;;  %v18923_v7 = vld [vmem:[#allocation2 + $0x20] sm:$0xff] }
 0x123   : > { %15410 = vmatprep.mubr.msk.f32.mxu0 %vm215_vm0, %v455_v13  ;;  %15826 = vmatprep.mubr.msk.f32.mxu1 %vm215_vm0, %v18468_v12  ;;  %v5368_v13 = vld [vmem:[#allocation5 + $0xe0] sm:$0xff]  ;;  %v18928_v12 = vld [vmem:[#allocation2 + $0x30] sm:$0xff]  ;;  %v18932_v29 = vpack.c.bf16 %v2522_v18, %v2521_v16 }
 0x124   : > { %v487_v16 = vld [vmem:[#allocation2 + $0x1b0] sm:$0xff]  ;;  %v22684_v18 = vld [vmem:[#allocation14_spill] sm:$0xff] }
 0x126   : > { %15411 = vmatmul.mubr.msk.f32.vlgmr.msra.gmra.mrb[0].mxu0 %vm215_vm0, %v456_v51  ;;  %15827 = vmatmul.mubr.msk.f32.vlgmr.msra.gmra.mrb[0].mxu1 %vm215_vm0, %v18475_v22  ;;  %v18936_v22 = vpack.c.bf16 %v5369_v9, %v5368_v13  ;;  %v355_v9 = vld [vmem:[%s18242_s24 + $0xf0] sm:$0xff]  ;;  %v19230_v51 = vld [vmem:[#allocation2 + $0x2a8] sm:$0xff] }
 0x127   : > { %16981 = vmatpush3.bf16.msra.mxu0 %v18747_v59  ;;  %17013 = vmatpush3.bf16.msra.mxu1 %v18749_v61  ;;  %v18942_v59 = vld [vmem:[#allocation2 + $0x38] sm:$0xff]  ;;  %420 = vst.msk [vmem:[#allocation2 + $0x181] sm:$0xff] %vm215_vm0, %v355_v9  ;;  %v22687_v13 = vld [vmem:[#allocation16_spill] sm:$0xff] }
 0x128   : > { %15413 = vmatprep.mubr.msk.f32.mxu0 %vm215_vm0, %v18917_v35  ;;  %15829 = vmatprep.mubr.msk.f32.mxu1 %vm215_vm0, %v18521_v46  ;;  %v18946_v46 = vld [vmem:[#allocation2 + $0x48] sm:$0xff]  ;;  %v18972_v61 = vld [vmem:[#allocation2 + $0x78] sm:$0xff]  ;;  %v19246_v9 = vld [vmem:[#allocation2 + $0x2d0] sm:$0xff] }
 0x129   : > { %16983 = vmatprep.subr.bf16.mxu0 %v16982_v1  ;;  %17015 = vmatprep.subr.bf16.mxu1 %v17014_v21 }
 0x12a   : > { %15414 = vmatmul.mubr.msk.f32.gmra.mrb[2].mxu0 %vm215_vm0, %v18923_v7  ;;  %15830 = vmatmul.mubr.msk.f32.gmra.mrb[2].mxu1 %vm215_vm0, %v18523_v48  ;;  %v18956_v48 = vld [vmem:[#allocation2 + $0x50] sm:$0xff] }
 0x12b   : > { %15416 = vmatprep.mubr.msk.f32.mxu0 %vm215_vm0, %v18928_v12  ;;  %15832 = vmatprep.mubr.msk.f32.mxu1 %vm215_vm0, %v18531_v50  ;;  %v18960_v50 = vld [vmem:[#allocation2 + $0x60] sm:$0xff] }
 0x12c   : > { %16985 = vmatpush3.bf16.msra.mxu0 %v16982_v1  ;;  %17017 = vmatpush3.bf16.msra.mxu1 %v17014_v21  ;;  %v22682_v21 = vld [vmem:[#allocation12_spill] sm:$0xff]  ;;  %v19242_v1 = vld [vmem:[#allocation2 + $0x2c0] sm:$0xff] }
 0x12d   : > { %16987 = vmatprep.subr.bf16.mxu0 %v18932_v29  ;;  %17019 = vmatprep.subr.bf16.mxu1 %v18936_v22  ;;  %22688 = vst [vmem:[#allocation12_spill] sm:$0xff] %v19246_v9 }
 0x12e   : > { %15417 = vmatmul.mubr.msk.f32.gmra.mrb[4].mxu0 %vm215_vm0, %v18942_v59  ;;  %15833 = vmatmul.mubr.msk.f32.gmra.mrb[4].mxu1 %vm215_vm0, %v18538_v52  ;;  %v18968_v52 = vld [vmem:[#allocation2 + $0x68] sm:$0xff] }
 0x12f   : > { %15419 = vmatprep.mubr.msk.f32.mxu0 %vm215_vm0, %v18946_v46  ;;  %15835 = vmatprep.mubr.msk.f32.mxu1 %vm215_vm0, %v18541_v54  ;;  %v18980_v54 = vld [vmem:[#allocation2 + $0x80] sm:$0xff] }
 0x132   : > { %15420 = vmatmul.mubr.msk.f32.gmra.mrb[6].mxu0 %vm215_vm0, %v18956_v48  ;;  %15836 = vmatmul.mubr.msk.f32.gmra.mrb[6].mxu1 %vm215_vm0, %v18548_v56  ;;  %v18984_v56 = vld [vmem:[#allocation2 + $0x90] sm:$0xff] }
 0x133   : > { %15422 = vmatprep.mubr.msk.f32.mxu0 %vm215_vm0, %v18960_v50  ;;  %15838 = vmatprep.mubr.msk.f32.mxu1 %vm215_vm0, %v18551_v58  ;;  %v18992_v58 = vld [vmem:[#allocation2 + $0x98] sm:$0xff] }
 0x136   : > { %15423 = vmatmul.mubr.msk.f32.gmra.mrb[8].mxu0 %vm215_vm0, %v18968_v52  ;;  %15839 = vmatmul.mubr.msk.f32.gmra.mrb[8].mxu1 %vm215_vm0, %v18558_v60  ;;  %v18996_v60 = vld [vmem:[#allocation2 + $0xa8] sm:$0xff] }
 0x137   : > { %15425 = vmatprep.mubr.msk.f32.mxu0 %vm215_vm0, %v18972_v61  ;;  %15841 = vmatprep.mubr.msk.f32.mxu1 %vm215_vm0, %v18561_v62  ;;  %v19004_v62 = vld [vmem:[#allocation2 + $0xb0] sm:$0xff] }
 0x13a   : > { %15426 = vmatmul.mubr.msk.f32.gmra.mrb[10].mxu0 %vm215_vm0, %v18980_v54  ;;  %15842 = vmatmul.mubr.msk.f32.gmra.mrb[10].mxu1 %vm215_vm0, %v18565_v0  ;;  %v19008_v0 = vld [vmem:[#allocation2 + $0xc0] sm:$0xff] }
 0x13b   : > { %15428 = vmatprep.mubr.msk.f32.mxu0 %vm215_vm0, %v18984_v56  ;;  %15844 = vmatprep.mubr.msk.f32.mxu1 %vm215_vm0, %v18567_v2  ;;  %v19016_v2 = vld [vmem:[#allocation2 + $0xc8] sm:$0xff] }
 0x13e   : > { %15429 = vmatmul.mubr.msk.f32.gmra.mrb[12].mxu0 %vm215_vm0, %v18992_v58  ;;  %15845 = vmatmul.mubr.msk.f32.gmra.mrb[12].mxu1 %vm215_vm0, %v18582_v10  ;;  %v19020_v10 = vld [vmem:[#allocation2 + $0xd8] sm:$0xff] }
 0x13f   : > { %15431 = vmatprep.mubr.msk.f32.mxu0 %vm215_vm0, %v18996_v60  ;;  %15847 = vmatprep.mubr.msk.f32.mxu1 %vm215_vm0, %v18590_v14  ;;  %v19028_v14 = vld [vmem:[#allocation2 + $0xe0] sm:$0xff] }
 0x142   : > { %15432 = vmatmul.mubr.msk.f32.gmra.mrb[14].mxu0 %vm215_vm0, %v19004_v62  ;;  %15848 = vmatmul.mubr.msk.f32.gmra.mrb[14].mxu1 %vm215_vm0, %v18617_v32  ;;  %v19032_v32 = vld [vmem:[#allocation2 + $0xf0] sm:$0xff] }
 0x143   : > { %15434 = vmatprep.mubr.msk.f32.mxu0 %vm215_vm0, %v19008_v0  ;;  %15850 = vmatprep.mubr.msk.f32.mxu1 %vm215_vm0, %v18623_v34  ;;  %v19040_v34 = vld [vmem:[#allocation2 + $0xf8] sm:$0xff] }
 0x146   : > { %15435 = vmatmul.mubr.msk.f32.gmra.mrb[16].mxu0 %vm215_vm0, %v19016_v2  ;;  %15851 = vmatmul.mubr.msk.f32.gmra.mrb[16].mxu1 %vm215_vm0, %v18630_v36  ;;  %v19044_v36 = vld [vmem:[#allocation2 + $0x108] sm:$0xff] }
 0x147   : > { %15437 = vmatprep.mubr.msk.f32.mxu0 %vm215_vm0, %v19020_v10  ;;  %15853 = vmatprep.mubr.msk.f32.mxu1 %vm215_vm0, %v18633_v38  ;;  %v19052_v38 = vld [vmem:[#allocation2 + $0x110] sm:$0xff] }
 0x14a   : > { %15438 = vmatmul.mubr.msk.f32.gmra.mrb[18].mxu0 %vm215_vm0, %v19028_v14  ;;  %15854 = vmatmul.mubr.msk.f32.gmra.mrb[18].mxu1 %vm215_vm0, %v18640_v40  ;;  %v19056_v40 = vld [vmem:[#allocation2 + $0x120] sm:$0xff] }
 0x14b   : > { %15440 = vmatprep.mubr.msk.f32.mxu0 %vm215_vm0, %v19032_v32  ;;  %15856 = vmatprep.mubr.msk.f32.mxu1 %vm215_vm0, %v18643_v42  ;;  %v19064_v42 = vld [vmem:[#allocation2 + $0x128] sm:$0xff] }
 0x14e   : > { %15441 = vmatmul.mubr.msk.f32.gmra.mrb[20].mxu0 %vm215_vm0, %v19040_v34  ;;  %15857 = vmatmul.mubr.msk.f32.gmra.mrb[20].mxu1 %vm215_vm0, %v18645_v44  ;;  %v19068_v44 = vld [vmem:[#allocation2 + $0x138] sm:$0xff] }
 0x14f   : > { %15443 = vmatprep.mubr.msk.f32.mxu0 %vm215_vm0, %v19044_v36  ;;  %15859 = vmatprep.mubr.msk.f32.mxu1 %vm215_vm0, %v18650_v49  ;;  %v19076_v49 = vld [vmem:[#allocation2 + $0x140] sm:$0xff] }
 0x152   : > { %15444 = vmatmul.mubr.msk.f32.gmra.mrb[22].mxu0 %vm215_vm0, %v19052_v38  ;;  %15860 = vmatmul.mubr.msk.f32.gmra.mrb[22].mxu1 %vm215_vm0, %v18672_v5  ;;  %v19080_v5 = vld [vmem:[#allocation2 + $0x150] sm:$0xff] }
 0x153   : > { %15446 = vmatprep.mubr.msk.f32.mxu0 %vm215_vm0, %v19056_v40  ;;  %15862 = vmatprep.mubr.msk.f32.mxu1 %vm215_vm0, %v18698_v19  ;;  %v356_v19 = vld [vmem:[%s18242_s24 + $0xf8] sm:$0xff] }
 0x154   : > { %421 = vst.msk [vmem:[#allocation2 + $0x189] sm:$0xff] %vm215_vm0, %v356_v19  ;;  %v22689_v19 = vld [vmem:[#allocation17_spill] sm:$0xff] }
 0x156   : > { %15447 = vmatmul.mubr.msk.f32.gmra.mrb[24].mxu0 %vm215_vm0, %v19064_v42  ;;  %15863 = vmatmul.mubr.msk.f32.gmra.mrb[24].mxu1 %vm215_vm0, %v18712_v24  ;;  %v19091_v24 = vld [vmem:[#allocation2 + $0x158] sm:$0xff] }
 0x157   : > { %15449 = vmatprep.mubr.msk.f32.mxu0 %vm215_vm0, %v19068_v44  ;;  %15865 = vmatprep.mubr.msk.f32.mxu1 %vm215_vm0, %v18715_v26  ;;  %v19096_v26 = vld [vmem:[#allocation2 + $0x168] sm:$0xff] }
 0x15a   : > { %15450 = vmatmul.mubr.msk.f32.gmra.mrb[26].mxu0 %vm215_vm0, %v19076_v49  ;;  %15866 = vmatmul.mubr.msk.f32.gmra.mrb[26].mxu1 %vm215_vm0, %v18722_v28  ;;  %v19104_v28 = vld [vmem:[#allocation2 + $0x170] sm:$0xff] }
 0x15b   : > { %15452 = vmatprep.mubr.msk.f32.mxu0 %vm215_vm0, %v19080_v5  ;;  %15868 = vmatprep.mubr.msk.f32.mxu1 %vm215_vm0, %v18725_v30  ;;  %v488_v30 = vld [vmem:[#allocation2 + $0x1b8] sm:$0xff] }
 0x15e   : > { %15453 = vmatmul.mubr.msk.f32.gmra.mrb[28].mxu0 %vm215_vm0, %v19091_v24  ;;  %15869 = vmatmul.mubr.msk.f32.gmra.mrb[28].mxu1 %vm215_vm0, %v18732_v33  ;;  %v19115_v33 = vld [vmem:[#allocation2 + $0x1c8] sm:$0xff] }
 0x15f   : > { %15455 = vmatprep.mubr.msk.f32.mxu0 %vm215_vm0, %v19096_v26  ;;  %15871 = vmatprep.mubr.msk.f32.mxu1 %vm215_vm0, %v18735_v37  ;;  %v19122_v37 = vld [vmem:[#allocation2 + $0x1d0] sm:$0xff] }
 0x162   : > { %15456 = vmatmul.mubr.msk.f32.gmra.mrb[30].mxu0 %vm215_vm0, %v19104_v28  ;;  %15872 = vmatmul.mubr.msk.f32.gmra.mrb[30].mxu1 %vm215_vm0, %v18744_v43  ;;  %v19126_v43 = vld [vmem:[#allocation2 + $0x1e0] sm:$0xff] }
 0x163   : > { %15458 = vmatprep.mubr.msk.f32.mxu0 %vm215_vm0, %v487_v16  ;;  %15874 = vmatprep.mubr.msk.f32.mxu1 %vm215_vm0, %v18739_v41  ;;  %v19134_v41 = vld [vmem:[#allocation2 + $0x1e8] sm:$0xff]  ;;  %v19254_v16 = vld [vmem:[#allocation2 + $0x2d8] sm:$0xff] }
 0x166   : > { %15459 = vmatmul.mubr.msk.f32.gmra.mrb[32].mxu0 %vm215_vm0, %v488_v30  ;;  %15875 = vmatmul.mubr.msk.f32.gmra.mrb[32].mxu1 %vm215_vm0, %v18756_v63  ;;  %v19138_v63 = vld [vmem:[#allocation2 + $0x1f8] sm:$0xff] }
 0x167   : > { %15461 = vmatprep.mubr.msk.f32.mxu0 %vm215_vm0, %v19115_v33  ;;  %15877 = vmatprep.mubr.msk.f32.mxu1 %vm215_vm0, %v18759_v3  ;;  %v19146_v3 = vld [vmem:[#allocation2 + $0x200] sm:$0xff] }
 0x168   : > { %v22691_v30 = vld [vmem:[#allocation18_spill] sm:$0xff] }
 0x16a   : > { %15462 = vmatmul.mubr.msk.f32.gmra.mrb[34].mxu0 %vm215_vm0, %v19122_v37  ;;  %15878 = vmatmul.mubr.msk.f32.gmra.mrb[34].mxu1 %vm215_vm0, %v18768_v6  ;;  %v19150_v6 = vld [vmem:[#allocation2 + $0x210] sm:$0xff] }
 0x16b   : > { %15464 = vmatprep.mubr.msk.f32.mxu0 %vm215_vm0, %v19126_v43  ;;  %15880 = vmatprep.mubr.msk.f32.mxu1 %vm215_vm0, %v18771_v8  ;;  %v19158_v8 = vld [vmem:[#allocation2 + $0x218] sm:$0xff] }
 0x16e   : > { %15465 = vmatmul.mubr.msk.f32.gmra.mrb[36].mxu0 %vm215_vm0, %v19134_v41  ;;  %15881 = vmatmul.mubr.msk.f32.gmra.mrb[36].mxu1 %vm215_vm0, %v18778_v11  ;;  %v19162_v11 = vld [vmem:[#allocation2 + $0x228] sm:$0xff] }
 0x16f   : > { %15467 = vmatprep.mubr.msk.f32.mxu0 %vm215_vm0, %v19138_v63  ;;  %15883 = vmatprep.mubr.msk.f32.mxu1 %vm215_vm0, %v18781_v15  ;;  %v19170_v15 = vld [vmem:[#allocation2 + $0x230] sm:$0xff] }
 0x172   : > { %15468 = vmatmul.mubr.msk.f32.gmra.mrb[38].mxu0 %vm215_vm0, %v19146_v3  ;;  %15884 = vmatmul.mubr.msk.f32.gmra.mrb[38].mxu1 %vm215_vm0, %v18788_v17  ;;  %v19174_v17 = vld [vmem:[#allocation2 + $0x240] sm:$0xff] }
 0x173   : > { %15470 = vmatprep.mubr.msk.f32.mxu0 %vm215_vm0, %v19150_v6  ;;  %15886 = vmatprep.mubr.msk.f32.mxu1 %vm215_vm0, %v18791_v20  ;;  %v19182_v20 = vld [vmem:[#allocation2 + $0x248] sm:$0xff] }
 0x176   : > { %15471 = vmatmul.mubr.msk.f32.gmra.mrb[40].mxu0 %vm215_vm0, %v19158_v8  ;;  %15887 = vmatmul.mubr.msk.f32.gmra.mrb[40].mxu1 %vm215_vm0, %v18798_v23  ;;  %v19186_v23 = vld [vmem:[#allocation2 + $0x258] sm:$0xff] }
 0x177   : > { %15473 = vmatprep.mubr.msk.f32.mxu0 %vm215_vm0, %v19162_v11  ;;  %15889 = vmatprep.mubr.msk.f32.mxu1 %vm215_vm0, %v18801_v27  ;;  %v19194_v27 = vld [vmem:[#allocation2 + $0x260] sm:$0xff] }
 0x17a   : > { %15474 = vmatmul.mubr.msk.f32.gmra.mrb[42].mxu0 %vm215_vm0, %v19170_v15  ;;  %15890 = vmatmul.mubr.msk.f32.gmra.mrb[42].mxu1 %vm215_vm0, %v18808_v31  ;;  %v19198_v31 = vld [vmem:[#allocation2 + $0x270] sm:$0xff] }
 0x17b   : > { %15476 = vmatprep.mubr.msk.f32.mxu0 %vm215_vm0, %v19174_v17  ;;  %15892 = vmatprep.mubr.msk.f32.mxu1 %vm215_vm0, %v18811_v39  ;;  %v19206_v39 = vld [vmem:[#allocation2 + $0x278] sm:$0xff] }
 0x17e   : > { %15477 = vmatmul.mubr.msk.f32.gmra.mrb[44].mxu0 %vm215_vm0, %v19182_v20  ;;  %15893 = vmatmul.mubr.msk.f32.gmra.mrb[44].mxu1 %vm215_vm0, %v18818_v47  ;;  %v19210_v47 = vld [vmem:[#allocation2 + $0x288] sm:$0xff] }
 0x17f   : > { %15479 = vmatprep.mubr.msk.f32.mxu0 %vm215_vm0, %v19186_v23  ;;  %15895 = vmatprep.mubr.msk.f32.mxu1 %vm215_vm0, %v18821_v53  ;;  %v22681_v53 = vld [vmem:[#allocation11_spill] sm:$0xff] }
 0x180   : > { %22686 = vst [vmem:[#allocation11_spill] sm:$0xff] %v19242_v1 }
 0x182   : > { %15480 = vmatmul.mubr.msk.f32.gmra.mrb[46].mxu0 %vm215_vm0, %v19194_v27  ;;  %15896 = vmatmul.mubr.msk.f32.gmra.mrb[46].mxu1 %vm215_vm0, %v18828_v57  ;;  %v19218_v57 = vld [vmem:[#allocation2 + $0x290] sm:$0xff] }
 0x183   : > { %15482 = vmatprep.mubr.msk.f32.mxu0 %vm215_vm0, %v19198_v31  ;;  %15898 = vmatprep.mubr.msk.f32.mxu1 %vm215_vm0, %v18831_v4  ;;  %v22683_v4 = vld [vmem:[#allocation13_spill] sm:$0xff] }
 0x184   : > { %22690 = vst [vmem:[#allocation13_spill] sm:$0xff] %v19254_v16 }
 0x186   : > { %15483 = vmatmul.mubr.msk.f32.gmra.mrb[48].mxu0 %vm215_vm0, %v19206_v39  ;;  %15899 = vmatmul.mubr.msk.f32.gmra.mrb[48].mxu1 %vm215_vm0, %v22681_v53  ;;  %v19258_v53 = vld [vmem:[#allocation2 + $0x2e8] sm:$0xff] }
 0x187   : > { %15485 = vmatprep.mubr.msk.f32.mxu0 %vm215_vm0, %v19210_v47  ;;  %15901 = vmatprep.mubr.msk.f32.mxu1 %vm215_vm0, %v22682_v21  ;;  %22692 = vst [vmem:[#allocation14_spill] sm:$0xff] %v19258_v53  ;;  %v22693_v21 = vld [vmem:[#allocation19_spill] sm:$0xff] }
 0x18a   : > { %15486 = vmatmul.mubr.msk.f32.gmra.mrb[50].mxu0 %vm215_vm0, %v19218_v57  ;;  %15902 = vmatmul.mubr.msk.f32.gmra.mrb[50].mxu1 %vm215_vm0, %v22683_v4  ;;  %v19266_v4 = vld [vmem:[#allocation2 + $0x2f0] sm:$0xff] }
 0x18b   : > { %15488 = vmatprep.mubr.msk.f32.mxu0 %vm215_vm0, %v19222_v45  ;;  %15904 = vmatprep.mubr.msk.f32.mxu1 %vm215_vm0, %v22684_v18  ;;  %22694 = vst [vmem:[#allocation15_spill] sm:$0xff] %v19266_v4  ;;  %v22695_v18 = vld [vmem:[#allocation20_spill] sm:$0xff] }
 0x18e   : > { %15489 = vmatmul.mubr.msk.f32.gmra.mrb[52].mxu0 %vm215_vm0, %v19230_v51  ;;  %15905 = vmatmul.mubr.msk.f32.gmra.mrb[52].mxu1 %vm215_vm0, %v22685_v55  ;;  %v19270_v55 = vld [vmem:[#allocation2 + $0x300] sm:$0xff] }
 0x18f   : > { %15491 = vmatprep.mubr.msk.f32.mxu0 %vm215_vm0, %v19234_v25  ;;  %15907 = vmatprep.mubr.msk.f32.mxu1 %vm215_vm0, %v22687_v13  ;;  %22696 = vst [vmem:[#allocation16_spill] sm:$0xff] %v19270_v55  ;;  %v387_v13 = vld [vmem:[%s18242_s24 + $0x1f0] sm:$0xff] }
 0x190   : > { %452 = vst.msk [vmem:[#allocation2 + $0x331] sm:$0xff] %vm215_vm0, %v387_v13  ;;  %v22701_v13 = vld [vmem:[#allocation23_spill] sm:$0xff] }
 0x192   : > { %15492 = vmatmul.mubr.msk.f32.gmra.mrb[54].mxu0 %vm215_vm0, %v19242_v1  ;;  %15908 = vmatmul.mubr.msk.f32.gmra.mrb[54].mxu1 %vm215_vm0, %v22689_v19  ;;  %v388_v19 = vld [vmem:[%s18242_s24 + $0x1f8] sm:$0xff]  ;;  %v9118_v1 = vld [vmem:[#allocation5 + $0x1a0] sm:$0xff] }
 0x193   : > { %15494 = vmatprep.mubr.msk.f32.mxu0 %vm215_vm0, %v19246_v9  ;;  %15910 = vmatprep.mubr.msk.f32.mxu1 %vm215_vm0, %v22691_v30  ;;  %v22697_v30 = vld [vmem:[#allocation21_spill] sm:$0xff]  ;;  %453 = vst.msk [vmem:[#allocation2 + $0x339] sm:$0xff] %vm215_vm0, %v388_v19 }
 0x194   : > { %v19298_v19 = vld [vmem:[#allocation2 + $0x19] sm:$0xff] }
 0x196   : > { %15495 = vmatmul.mubr.msk.f32.gmra.mrb[56].mxu0 %vm215_vm0, %v19254_v16  ;;  %15911 = vmatmul.mubr.msk.f32.gmra.mrb[56].mxu1 %vm215_vm0, %v22693_v21  ;;  %v19281_v21 = vld [vmem:[#allocation2 + $0x308] sm:$0xff]  ;;  %v22704_v16 = vld [vmem:[#allocation25_spill] sm:$0xff] }
 0x197   : > { %15497 = vmatprep.mubr.msk.f32.mxu0 %vm215_vm0, %v19258_v53  ;;  %15913 = vmatprep.mubr.msk.f32.mxu1 %vm215_vm0, %v22695_v18  ;;  %22698 = vst [vmem:[#allocation17_spill] sm:$0xff] %v19281_v21  ;;  %v22699_v18 = vld [vmem:[#allocation22_spill] sm:$0xff] }
 0x198   : > { %v19286_v53 = vld [vmem:[#allocation2 + $0x318] sm:$0xff] }
 0x199   : > { %22700 = vst [vmem:[#allocation18_spill] sm:$0xff] %v19286_v53 }
 0x19a   : > { %15498 = vmatmul.mubr.msk.f32.gmra.mrb[58].mxu0 %vm215_vm0, %v19266_v4  ;;  %15914 = vmatmul.mubr.msk.f32.gmra.mrb[58].mxu1 %vm215_vm0, %v22697_v30  ;;  %v19294_v30 = vld [vmem:[#allocation2 + $0x320] sm:$0xff]  ;;  %v2524_v4 = vld [vmem:[#allocation5 + $0x78] sm:$0xff] }
 0x19b   : > { %15500 = vmatprep.mubr.msk.f32.mxu0 %vm215_vm0, %v19270_v55  ;;  %15916 = vmatprep.mubr.msk.f32.mxu1 %vm215_vm0, %v22699_v18  ;;  %22702 = vst [vmem:[#allocation19_spill] sm:$0xff] %v19294_v30  ;;  %v22703_v55 = vld [vmem:[#allocation24_spill] sm:$0xff] }
 0x19c   : > { %v2523_v18 = vld [vmem:[#allocation5 + $0x70] sm:$0xff] }
 0x19e   : > { %15501 = vmatmul.mubr.msk.f32.gmra.mrb[60].mxu0 %vm215_vm0, %v19281_v21  ;;  %15917 = vmatmul.mubr.msk.f32.gmra.mrb[60].mxu1 %vm215_vm0, %v22701_v13  ;;  %v5370_v13 = vld [vmem:[#allocation5 + $0xf0] sm:$0xff]  ;;  %v19308_v21 = vld [vmem:[#allocation2 + $0x21] sm:$0xff] }
 0x19f   : > { %15503 = vmatprep.mubr.msk.f32.mxu0 %vm215_vm0, %v19286_v53  ;;  %15919 = vmatprep.mubr.msk.f32.mxu1 %vm215_vm0, %v22703_v55  ;;  %v5371_v53 = vld [vmem:[#allocation5 + $0xf8] sm:$0xff]  ;;  %v16990_v55 = vpack.c.bf16 %v2524_v4, %v2523_v18  ;;  %v9119_v18 = vld [vmem:[#allocation5 + $0x1a8] sm:$0xff] }
 0x1a0   : > { %v17022_v9 = vpack.c.bf16 %v5371_v53, %v5370_v13  ;;  %v19320_v4 = vld [vmem:[#allocation2 + $0x39] sm:$0xff]  ;;  %v19508_v13 = vld [vmem:[#allocation2 + $0x1e1] sm:$0xff] }
 0x1a2   : > { %15504 = vmatmul.mubr.msk.f32.gmra.mrb[62].mxu0 %vm215_vm0, %v19294_v30  ;;  %15920 = vmatmul.mubr.msk.f32.gmra.mrb[62].mxu1 %vm215_vm0, %v22704_v16  ;;  %v19312_v30 = vld [vmem:[#allocation2 + $0x31] sm:$0xff]  ;;  %v6277_v16 = vld [vmem:[#allocation5 + $0x128] sm:$0xff] }
 0x1a3   : > { %15514 = vmatprep.mubr.msk.f32.mxu0 %vm215_vm0, %v18917_v35  ;;  %15930 = vmatprep.mubr.msk.f32.mxu1 %vm215_vm0, %v19298_v19  ;;  %v6276_v35 = vld [vmem:[#allocation5 + $0x120] sm:$0xff] }
 0x1a4   : > { %v19326_v53 = vpack.c.bf16 %v6277_v16, %v6276_v35  ;;  %v22710_v35 = vld [vmem:[#allocation11_spill] sm:$0xff] }
 0x1a5   : > { %v19640_v16 = vld [vmem:[#allocation2 + $0x2e9] sm:$0xff] }
 0x1a6   : > { %15515 = vmatmul.mubr.msk.f32.vlgmr.msra.gmra.mrb[0].mxu0 %vm215_vm0, %v18923_v7  ;;  %15931 = vmatmul.mubr.msk.f32.vlgmr.msra.gmra.mrb[0].mxu1 %vm215_vm0, %v19308_v21  ;;  %v19324_v7 = vld [vmem:[#allocation2 + $0x49] sm:$0xff]  ;;  %22713 = vst [vmem:[#allocation11_spill] sm:$0xff] %v19640_v16 }
 0x1a7   : > { %16989 = vmatpush3.bf16.msra.mxu0 %v18932_v29  ;;  %17021 = vmatpush3.bf16.msra.mxu1 %v18936_v22  ;;  %v19330_v29 = vpack.c.bf16 %v9119_v18, %v9118_v1  ;;  %v19340_v22 = vld [vmem:[#allocation2 + $0x61] sm:$0xff]  ;;  %v22714_v18 = vld [vmem:[#allocation13_spill] sm:$0xff] }
 0x1a8   : > { %15517 = vmatprep.mubr.msk.f32.mxu0 %vm215_vm0, %v18928_v12  ;;  %15933 = vmatprep.mubr.msk.f32.mxu1 %vm215_vm0, %v19312_v30  ;;  %v19338_v12 = vld [vmem:[#allocation2 + $0x51] sm:$0xff]  ;;  %v19486_v1 = vld [vmem:[#allocation2 + $0x181] sm:$0xff] }
 0x1a9   : > { %16991 = vmatprep.subr.bf16.mxu0 %v16990_v55  ;;  %17023 = vmatprep.subr.bf16.mxu1 %v17022_v9 }
 0x1aa   : > { %15518 = vmatmul.mubr.msk.f32.gmra.mrb[2].mxu0 %vm215_vm0, %v18942_v59  ;;  %15934 = vmatmul.mubr.msk.f32.gmra.mrb[2].mxu1 %vm215_vm0, %v19320_v4  ;;  %v19352_v59 = vld [vmem:[#allocation2 + $0x69] sm:$0xff] }
 0x1ab   : > { %15520 = vmatprep.mubr.msk.f32.mxu0 %vm215_vm0, %v18946_v46  ;;  %15936 = vmatprep.mubr.msk.f32.mxu1 %vm215_vm0, %v19324_v7  ;;  %v19354_v46 = vld [vmem:[#allocation2 + $0x79] sm:$0xff] }
 0x1ac   : > { %16993 = vmatpush3.bf16.msra.mxu0 %v16990_v55  ;;  %17025 = vmatpush3.bf16.msra.mxu1 %v17022_v9  ;;  %v19497_v9 = vld [vmem:[#allocation2 + $0x1c9] sm:$0xff]  ;;  %v19520_v55 = vld [vmem:[#allocation2 + $0x1f9] sm:$0xff] }
 0x1ad   : > { %17027 = vmatprep.subr.bf16.mxu0 %v19326_v53  ;;  %17059 = vmatprep.subr.bf16.mxu1 %v19330_v29 }
 0x1ae   : > { %15521 = vmatmul.mubr.msk.f32.gmra.mrb[4].mxu0 %vm215_vm0, %v18956_v48  ;;  %15937 = vmatmul.mubr.msk.f32.gmra.mrb[4].mxu1 %vm215_vm0, %v19338_v12  ;;  %v19364_v48 = vld [vmem:[#allocation2 + $0x81] sm:$0xff] }
 0x1af   : > { %15523 = vmatprep.mubr.msk.f32.mxu0 %vm215_vm0, %v18960_v50  ;;  %15939 = vmatprep.mubr.msk.f32.mxu1 %vm215_vm0, %v19340_v22  ;;  %v19366_v50 = vld [vmem:[#allocation2 + $0x91] sm:$0xff] }
 0x1b2   : > { %15524 = vmatmul.mubr.msk.f32.gmra.mrb[6].mxu0 %vm215_vm0, %v18968_v52  ;;  %15940 = vmatmul.mubr.msk.f32.gmra.mrb[6].mxu1 %vm215_vm0, %v19352_v59  ;;  %v19376_v52 = vld [vmem:[#allocation2 + $0x99] sm:$0xff] }
 0x1b3   : > { %15526 = vmatprep.mubr.msk.f32.mxu0 %vm215_vm0, %v18972_v61  ;;  %15942 = vmatprep.mubr.msk.f32.mxu1 %vm215_vm0, %v19354_v46  ;;  %v19378_v61 = vld [vmem:[#allocation2 + $0xa9] sm:$0xff] }
 0x1b6   : > { %15527 = vmatmul.mubr.msk.f32.gmra.mrb[8].mxu0 %vm215_vm0, %v18980_v54  ;;  %15943 = vmatmul.mubr.msk.f32.gmra.mrb[8].mxu1 %vm215_vm0, %v19364_v48  ;;  %v19388_v54 = vld [vmem:[#allocation2 + $0xb1] sm:$0xff] }
 0x1b7   : > { %15529 = vmatprep.mubr.msk.f32.mxu0 %vm215_vm0, %v18984_v56  ;;  %15945 = vmatprep.mubr.msk.f32.mxu1 %vm215_vm0, %v19366_v50  ;;  %v19390_v56 = vld [vmem:[#allocation2 + $0xc1] sm:$0xff] }
 0x1ba   : > { %15530 = vmatmul.mubr.msk.f32.gmra.mrb[10].mxu0 %vm215_vm0, %v18992_v58  ;;  %15946 = vmatmul.mubr.msk.f32.gmra.mrb[10].mxu1 %vm215_vm0, %v19376_v52  ;;  %v19400_v58 = vld [vmem:[#allocation2 + $0xc9] sm:$0xff] }
 0x1bb   : > { %15532 = vmatprep.mubr.msk.f32.mxu0 %vm215_vm0, %v18996_v60  ;;  %15948 = vmatprep.mubr.msk.f32.mxu1 %vm215_vm0, %v19378_v61  ;;  %v19402_v60 = vld [vmem:[#allocation2 + $0xd9] sm:$0xff] }
 0x1be   : > { %15533 = vmatmul.mubr.msk.f32.gmra.mrb[12].mxu0 %vm215_vm0, %v19004_v62  ;;  %15949 = vmatmul.mubr.msk.f32.gmra.mrb[12].mxu1 %vm215_vm0, %v19388_v54  ;;  %v19412_v62 = vld [vmem:[#allocation2 + $0xe1] sm:$0xff] }
 0x1bf   : > { %15535 = vmatprep.mubr.msk.f32.mxu0 %vm215_vm0, %v19008_v0  ;;  %15951 = vmatprep.mubr.msk.f32.mxu1 %vm215_vm0, %v19390_v56  ;;  %v19414_v0 = vld [vmem:[#allocation2 + $0xf1] sm:$0xff] }
 0x1c2   : > { %15536 = vmatmul.mubr.msk.f32.gmra.mrb[14].mxu0 %vm215_vm0, %v19016_v2  ;;  %15952 = vmatmul.mubr.msk.f32.gmra.mrb[14].mxu1 %vm215_vm0, %v19400_v58  ;;  %v19424_v2 = vld [vmem:[#allocation2 + $0xf9] sm:$0xff] }
 0x1c3   : > { %15538 = vmatprep.mubr.msk.f32.mxu0 %vm215_vm0, %v19020_v10  ;;  %15954 = vmatprep.mubr.msk.f32.mxu1 %vm215_vm0, %v19402_v60  ;;  %v19426_v10 = vld [vmem:[#allocation2 + $0x109] sm:$0xff] }
 0x1c6   : > { %15539 = vmatmul.mubr.msk.f32.gmra.mrb[16].mxu0 %vm215_vm0, %v19028_v14  ;;  %15955 = vmatmul.mubr.msk.f32.gmra.mrb[16].mxu1 %vm215_vm0, %v19412_v62  ;;  %v19436_v14 = vld [vmem:[#allocation2 + $0x111] sm:$0xff] }
 0x1c7   : > { %15541 = vmatprep.mubr.msk.f32.mxu0 %vm215_vm0, %v19032_v32  ;;  %15957 = vmatprep.mubr.msk.f32.mxu1 %vm215_vm0, %v19414_v0  ;;  %v19438_v32 = vld [vmem:[#allocation2 + $0x121] sm:$0xff] }
 0x1ca   : > { %15542 = vmatmul.mubr.msk.f32.gmra.mrb[18].mxu0 %vm215_vm0, %v19040_v34  ;;  %15958 = vmatmul.mubr.msk.f32.gmra.mrb[18].mxu1 %vm215_vm0, %v19424_v2  ;;  %v19448_v34 = vld [vmem:[#allocation2 + $0x129] sm:$0xff] }
 0x1cb   : > { %15544 = vmatprep.mubr.msk.f32.mxu0 %vm215_vm0, %v19044_v36  ;;  %15960 = vmatprep.mubr.msk.f32.mxu1 %vm215_vm0, %v19426_v10  ;;  %v19450_v36 = vld [vmem:[#allocation2 + $0x139] sm:$0xff] }
 0x1ce   : > { %15545 = vmatmul.mubr.msk.f32.gmra.mrb[20].mxu0 %vm215_vm0, %v19052_v38  ;;  %15961 = vmatmul.mubr.msk.f32.gmra.mrb[20].mxu1 %vm215_vm0, %v19436_v14  ;;  %v19460_v38 = vld [vmem:[#allocation2 + $0x141] sm:$0xff] }
 0x1cf   : > { %15547 = vmatprep.mubr.msk.f32.mxu0 %vm215_vm0, %v19056_v40  ;;  %15963 = vmatprep.mubr.msk.f32.mxu1 %vm215_vm0, %v19438_v32  ;;  %v19462_v40 = vld [vmem:[#allocation2 + $0x151] sm:$0xff] }
 0x1d2   : > { %15548 = vmatmul.mubr.msk.f32.gmra.mrb[22].mxu0 %vm215_vm0, %v19064_v42  ;;  %15964 = vmatmul.mubr.msk.f32.gmra.mrb[22].mxu1 %vm215_vm0, %v19448_v34  ;;  %v19472_v42 = vld [vmem:[#allocation2 + $0x159] sm:$0xff] }
 0x1d3   : > { %15550 = vmatprep.mubr.msk.f32.mxu0 %vm215_vm0, %v19068_v44  ;;  %15966 = vmatprep.mubr.msk.f32.mxu1 %vm215_vm0, %v19450_v36  ;;  %v19474_v44 = vld [vmem:[#allocation2 + $0x169] sm:$0xff] }
 0x1d6   : > { %15551 = vmatmul.mubr.msk.f32.gmra.mrb[24].mxu0 %vm215_vm0, %v19076_v49  ;;  %15967 = vmatmul.mubr.msk.f32.gmra.mrb[24].mxu1 %vm215_vm0, %v19460_v38  ;;  %v19484_v49 = vld [vmem:[#allocation2 + $0x171] sm:$0xff] }
 0x1d7   : > { %15553 = vmatprep.mubr.msk.f32.mxu0 %vm215_vm0, %v19080_v5  ;;  %15969 = vmatprep.mubr.msk.f32.mxu1 %vm215_vm0, %v19462_v40  ;;  %v1776_v5 = vld [vmem:[#allocation2 + $0x180] sm:$0xff] }
 0x1da   : > { %15554 = vmatmul.mubr.msk.f32.gmra.mrb[26].mxu0 %vm215_vm0, %v19091_v24  ;;  %15970 = vmatmul.mubr.msk.f32.gmra.mrb[26].mxu1 %vm215_vm0, %v19472_v42  ;;  %v1777_v24 = vld [vmem:[#allocation2 + $0x188] sm:$0xff] }
 0x1db   : > { %15556 = vmatprep.mubr.msk.f32.mxu0 %vm215_vm0, %v19096_v26  ;;  %15972 = vmatprep.mubr.msk.f32.mxu1 %vm215_vm0, %v19474_v44  ;;  %v19495_v26 = vld [vmem:[#allocation2 + $0x189] sm:$0xff] }
 0x1de   : > { %15557 = vmatmul.mubr.msk.f32.gmra.mrb[28].mxu0 %vm215_vm0, %v19104_v28  ;;  %15973 = vmatmul.mubr.msk.f32.gmra.mrb[28].mxu1 %vm215_vm0, %v19484_v49  ;;  %v19506_v28 = vld [vmem:[#allocation2 + $0x1d1] sm:$0xff] }
 0x1df   : > { %15559 = vmatprep.mubr.msk.f32.mxu0 %vm215_vm0, %v1776_v5  ;;  %15975 = vmatprep.mubr.msk.f32.mxu1 %vm215_vm0, %v19486_v1  ;;  %v22715_v5 = vld [vmem:[#allocation14_spill] sm:$0xff] }
 0x1e2   : > { %15560 = vmatmul.mubr.msk.f32.gmra.mrb[30].mxu0 %vm215_vm0, %v1777_v24  ;;  %15976 = vmatmul.mubr.msk.f32.gmra.mrb[30].mxu1 %vm215_vm0, %v19495_v26  ;;  %v19650_v24 = vld [vmem:[#allocation2 + $0x2f1] sm:$0xff] }
 0x1e3   : > { %15562 = vmatprep.mubr.msk.f32.mxu0 %vm215_vm0, %v19115_v33  ;;  %15978 = vmatprep.mubr.msk.f32.mxu1 %vm215_vm0, %v19497_v9  ;;  %v19518_v33 = vld [vmem:[#allocation2 + $0x1e9] sm:$0xff] }
 0x1e6   : > { %15563 = vmatmul.mubr.msk.f32.gmra.mrb[32].mxu0 %vm215_vm0, %v19122_v37  ;;  %15979 = vmatmul.mubr.msk.f32.gmra.mrb[32].mxu1 %vm215_vm0, %v19506_v28  ;;  %v19530_v37 = vld [vmem:[#allocation2 + $0x201] sm:$0xff] }
 0x1e7   : > { %15565 = vmatprep.mubr.msk.f32.mxu0 %vm215_vm0, %v19126_v43  ;;  %15981 = vmatprep.mubr.msk.f32.mxu1 %vm215_vm0, %v19508_v13  ;;  %v19532_v43 = vld [vmem:[#allocation2 + $0x211] sm:$0xff] }
 0x1ea   : > { %15566 = vmatmul.mubr.msk.f32.gmra.mrb[34].mxu0 %vm215_vm0, %v19134_v41  ;;  %15982 = vmatmul.mubr.msk.f32.gmra.mrb[34].mxu1 %vm215_vm0, %v19518_v33  ;;  %v19542_v41 = vld [vmem:[#allocation2 + $0x219] sm:$0xff] }
 0x1eb   : > { %15568 = vmatprep.mubr.msk.f32.mxu0 %vm215_vm0, %v19138_v63  ;;  %15984 = vmatprep.mubr.msk.f32.mxu1 %vm215_vm0, %v19520_v55  ;;  %v19544_v63 = vld [vmem:[#allocation2 + $0x229] sm:$0xff] }
 0x1ee   : > { %15569 = vmatmul.mubr.msk.f32.gmra.mrb[36].mxu0 %vm215_vm0, %v19146_v3  ;;  %15985 = vmatmul.mubr.msk.f32.gmra.mrb[36].mxu1 %vm215_vm0, %v19530_v37  ;;  %v19554_v3 = vld [vmem:[#allocation2 + $0x231] sm:$0xff] }
 0x1ef   : > { %15571 = vmatprep.mubr.msk.f32.mxu0 %vm215_vm0, %v19150_v6  ;;  %15987 = vmatprep.mubr.msk.f32.mxu1 %vm215_vm0, %v19532_v43  ;;  %v19556_v6 = vld [vmem:[#allocation2 + $0x241] sm:$0xff] }
 0x1f2   : > { %15572 = vmatmul.mubr.msk.f32.gmra.mrb[38].mxu0 %vm215_vm0, %v19158_v8  ;;  %15988 = vmatmul.mubr.msk.f32.gmra.mrb[38].mxu1 %vm215_vm0, %v19542_v41  ;;  %v19566_v8 = vld [vmem:[#allocation2 + $0x249] sm:$0xff] }
 0x1f3   : > { %15574 = vmatprep.mubr.msk.f32.mxu0 %vm215_vm0, %v19162_v11  ;;  %15990 = vmatprep.mubr.msk.f32.mxu1 %vm215_vm0, %v19544_v63  ;;  %v19568_v11 = vld [vmem:[#allocation2 + $0x259] sm:$0xff] }
 0x1f6   : > { %15575 = vmatmul.mubr.msk.f32.gmra.mrb[40].mxu0 %vm215_vm0, %v19170_v15  ;;  %15991 = vmatmul.mubr.msk.f32.gmra.mrb[40].mxu1 %vm215_vm0, %v19554_v3  ;;  %v19578_v15 = vld [vmem:[#allocation2 + $0x261] sm:$0xff] }
 0x1f7   : > { %15577 = vmatprep.mubr.msk.f32.mxu0 %vm215_vm0, %v19174_v17  ;;  %15993 = vmatprep.mubr.msk.f32.mxu1 %vm215_vm0, %v19556_v6  ;;  %v19580_v17 = vld [vmem:[#allocation2 + $0x271] sm:$0xff] }
 0x1fa   : > { %15578 = vmatmul.mubr.msk.f32.gmra.mrb[42].mxu0 %vm215_vm0, %v19182_v20  ;;  %15994 = vmatmul.mubr.msk.f32.gmra.mrb[42].mxu1 %vm215_vm0, %v19566_v8  ;;  %v19590_v20 = vld [vmem:[#allocation2 + $0x279] sm:$0xff] }
 0x1fb   : > { %15580 = vmatprep.mubr.msk.f32.mxu0 %vm215_vm0, %v19186_v23  ;;  %15996 = vmatprep.mubr.msk.f32.mxu1 %vm215_vm0, %v19568_v11  ;;  %v19592_v23 = vld [vmem:[#allocation2 + $0x289] sm:$0xff] }
 0x1fe   : > { %15581 = vmatmul.mubr.msk.f32.gmra.mrb[44].mxu0 %vm215_vm0, %v19194_v27  ;;  %15997 = vmatmul.mubr.msk.f32.gmra.mrb[44].mxu1 %vm215_vm0, %v19578_v15  ;;  %v19602_v27 = vld [vmem:[#allocation2 + $0x291] sm:$0xff] }
 0x1ff   : > { %15583 = vmatprep.mubr.msk.f32.mxu0 %vm215_vm0, %v19198_v31  ;;  %15999 = vmatprep.mubr.msk.f32.mxu1 %vm215_vm0, %v19580_v17  ;;  %v19604_v31 = vld [vmem:[#allocation2 + $0x2a1] sm:$0xff] }
 0x200   : > { %22705 = vst [vmem:[#allocation20_spill] sm:$0xff] %v19604_v31 }
 0x202   : > { %15584 = vmatmul.mubr.msk.f32.gmra.mrb[46].mxu0 %vm215_vm0, %v19206_v39  ;;  %16000 = vmatmul.mubr.msk.f32.gmra.mrb[46].mxu1 %vm215_vm0, %v19590_v20  ;;  %v19614_v39 = vld [vmem:[#allocation2 + $0x2a9] sm:$0xff] }
 0x203   : > { %15586 = vmatprep.mubr.msk.f32.mxu0 %vm215_vm0, %v19210_v47  ;;  %16002 = vmatprep.mubr.msk.f32.mxu1 %vm215_vm0, %v19592_v23  ;;  %22706 = vst [vmem:[#allocation21_spill] sm:$0xff] %v19614_v39  ;;  %v19616_v47 = vld [vmem:[#allocation2 + $0x2b9] sm:$0xff] }
 0x204   : > { %22707 = vst [vmem:[#allocation22_spill] sm:$0xff] %v19616_v47 }
 0x206   : > { %15587 = vmatmul.mubr.msk.f32.gmra.mrb[48].mxu0 %vm215_vm0, %v19218_v57  ;;  %16003 = vmatmul.mubr.msk.f32.gmra.mrb[48].mxu1 %vm215_vm0, %v19602_v27  ;;  %v19626_v57 = vld [vmem:[#allocation2 + $0x2c1] sm:$0xff] }
 0x207   : > { %15589 = vmatprep.mubr.msk.f32.mxu0 %vm215_vm0, %v19222_v45  ;;  %16005 = vmatprep.mubr.msk.f32.mxu1 %vm215_vm0, %v19604_v31  ;;  %22708 = vst [vmem:[#allocation23_spill] sm:$0xff] %v19626_v57  ;;  %v19628_v45 = vld [vmem:[#allocation2 + $0x2d1] sm:$0xff]  ;;  %v6208_v31 = vld [vmem:[#allocation5 + $0x108] sm:$0xff] }
 0x208   : > { %22709 = vst [vmem:[#allocation24_spill] sm:$0xff] %v19628_v45 }
 0x20a   : > { %15590 = vmatmul.mubr.msk.f32.gmra.mrb[50].mxu0 %vm215_vm0, %v19230_v51  ;;  %16006 = vmatmul.mubr.msk.f32.gmra.mrb[50].mxu1 %vm215_vm0, %v19614_v39  ;;  %v22711_v51 = vld [vmem:[#allocation12_spill] sm:$0xff]  ;;  %v6207_v39 = vld [vmem:[#allocation5 + $0x100] sm:$0xff] }
 0x20b   : > { %15592 = vmatprep.mubr.msk.f32.mxu0 %vm215_vm0, %v19234_v25  ;;  %16008 = vmatprep.mubr.msk.f32.mxu1 %vm215_vm0, %v19616_v47  ;;  %v19638_v25 = vld [vmem:[#allocation2 + $0x2d9] sm:$0xff]  ;;  %22716 = vst [vmem:[#allocation12_spill] sm:$0xff] %v19650_v24 }
 0x20c   : > { %22712 = vst [vmem:[#allocation25_spill] sm:$0xff] %v19638_v25 }
 0x20e   : > { %15593 = vmatmul.mubr.msk.f32.gmra.mrb[52].mxu0 %vm215_vm0, %v22710_v35  ;;  %16009 = vmatmul.mubr.msk.f32.gmra.mrb[52].mxu1 %vm215_vm0, %v19626_v57  ;;  %v19652_v35 = vld [vmem:[#allocation2 + $0x301] sm:$0xff]  ;;  %v6279_v57 = vld [vmem:[#allocation5 + $0x138] sm:$0xff] }
 0x20f   : > { %15595 = vmatprep.mubr.msk.f32.mxu0 %vm215_vm0, %v22711_v51  ;;  %16011 = vmatprep.mubr.msk.f32.mxu1 %vm215_vm0, %v19628_v45  ;;  %22717 = vst [vmem:[#allocation13_spill] sm:$0xff] %v19652_v35  ;;  %v22718_v51 = vld [vmem:[#allocation15_spill] sm:$0xff] }
 0x210   : > { %v22726_v45 = vld [vmem:[#allocation19_spill] sm:$0xff] }
 0x212   : > { %15596 = vmatmul.mubr.msk.f32.gmra.mrb[54].mxu0 %vm215_vm0, %v22714_v18  ;;  %16012 = vmatmul.mubr.msk.f32.gmra.mrb[54].mxu1 %vm215_vm0, %v19638_v25  ;;  %v22719_v18 = vld [vmem:[#allocation16_spill] sm:$0xff]  ;;  %v19664_v25 = vld [vmem:[#allocation2 + $0x319] sm:$0xff] }
 0x213   : > { %15598 = vmatprep.mubr.msk.f32.mxu0 %vm215_vm0, %v22715_v5  ;;  %16014 = vmatprep.mubr.msk.f32.mxu1 %vm215_vm0, %v19640_v16  ;;  %v19662_v5 = vld [vmem:[#allocation2 + $0x309] sm:$0xff]  ;;  %22721 = vst [vmem:[#allocation15_spill] sm:$0xff] %v19664_v25  ;;  %v22722_v16 = vld [vmem:[#allocation17_spill] sm:$0xff] }
 0x214   : > { %22720 = vst [vmem:[#allocation14_spill] sm:$0xff] %v19662_v5 }
 0x216   : > { %15599 = vmatmul.mubr.msk.f32.gmra.mrb[56].mxu0 %vm215_vm0, %v22718_v51  ;;  %16015 = vmatmul.mubr.msk.f32.gmra.mrb[56].mxu1 %vm215_vm0, %v19650_v24  ;;  %v22723_v51 = vld [vmem:[#allocation18_spill] sm:$0xff]  ;;  %v1808_v24 = vld [vmem:[#allocation2 + $0x330] sm:$0xff] }
 0x217   : > { %15601 = vmatprep.mubr.msk.f32.mxu0 %vm215_vm0, %v22719_v18  ;;  %16017 = vmatprep.mubr.msk.f32.mxu1 %vm215_vm0, %v19652_v35  ;;  %v19674_v18 = vld [vmem:[#allocation2 + $0x321] sm:$0xff]  ;;  %v19676_v35 = vld [vmem:[#allocation2 + $0x331] sm:$0xff] }
 0x218   : > { %22724 = vst [vmem:[#allocation16_spill] sm:$0xff] %v19674_v18  ;;  %22725 = vst [vmem:[#allocation17_spill] sm:$0xff] %v19676_v35 }
 0x21a   : > { %15602 = vmatmul.mubr.msk.f32.gmra.mrb[58].mxu0 %vm215_vm0, %v22722_v16  ;;  %16018 = vmatmul.mubr.msk.f32.gmra.mrb[58].mxu1 %vm215_vm0, %v19662_v5  ;;  %v1809_v16 = vld [vmem:[#allocation2 + $0x338] sm:$0xff]  ;;  %v6278_v5 = vld [vmem:[#allocation5 + $0x130] sm:$0xff] }
 0x21b   : > { %15604 = vmatprep.mubr.msk.f32.mxu0 %vm215_vm0, %v22723_v51  ;;  %16020 = vmatprep.mubr.msk.f32.mxu1 %vm215_vm0, %v19664_v25  ;;  %v19685_v51 = vld [vmem:[#allocation2 + $0x339] sm:$0xff] }
 0x21c   : > { %22727 = vst [vmem:[#allocation18_spill] sm:$0xff] %v19685_v51  ;;  %v19687_v25 = vld [vmem:[#allocation2 + $0x1a] sm:$0xff] }
 0x21e   : > { %15605 = vmatmul.mubr.msk.f32.gmra.mrb[60].mxu0 %vm215_vm0, %v22726_v45  ;;  %16021 = vmatmul.mubr.msk.f32.gmra.mrb[60].mxu1 %vm215_vm0, %v19674_v18  ;;  %v9120_v45 = vld [vmem:[#allocation5 + $0x1b0] sm:$0xff]  ;;  %v17030_v18 = vpack.c.bf16 %v6279_v57, %v6278_v5  ;;  %v19708_v57 = vld [vmem:[#allocation2 + $0x3a] sm:$0xff]  ;;  %v19714_v5 = vpack.c.bf16 %v6208_v31, %v6207_v39 }
 0x21f   : > { %15607 = vmatprep.mubr.msk.f32.mxu0 %vm215_vm0, %v1808_v24  ;;  %16023 = vmatprep.mubr.msk.f32.mxu1 %vm215_vm0, %v19676_v35  ;;  %v9121_v24 = vld [vmem:[#allocation5 + $0x1b8] sm:$0xff]  ;;  %v19696_v35 = vld [vmem:[#allocation2 + $0x22] sm:$0xff] }
 0x220   : > { %v17062_v47 = vpack.c.bf16 %v9121_v24, %v9120_v45  ;;  %v20006_v31 = vld [vmem:[#allocation2 + $0x2ba] sm:$0xff]  ;;  %v22730_v39 = vld [vmem:[#allocation21_spill] sm:$0xff]  ;;  %v22735_v45 = vld [vmem:[#allocation24_spill] sm:$0xff] }
 0x221   : > { %22729 = vst [vmem:[#allocation19_spill] sm:$0xff] %v20006_v31  ;;  %v20028_v24 = vld [vmem:[#allocation2 + $0x2da] sm:$0xff] }
 0x222   : > { %15608 = vmatmul.mubr.msk.f32.gmra.mrb[62].mxu0 %vm215_vm0, %v1809_v16  ;;  %16024 = vmatmul.mubr.msk.f32.gmra.mrb[62].mxu1 %vm215_vm0, %v19685_v51  ;;  %v19700_v16 = vld [vmem:[#allocation2 + $0x32] sm:$0xff]  ;;  %v9050_v51 = vld [vmem:[#allocation5 + $0x188] sm:$0xff] }
 0x223   : > { %15618 = vmatprep.mubr.msk.f32.mxu0 %vm215_vm0, %v19298_v19  ;;  %16034 = vmatprep.mubr.msk.f32.mxu1 %vm215_vm0, %v19687_v25  ;;  %v9049_v19 = vld [vmem:[#allocation5 + $0x180] sm:$0xff] }
 0x226   : > { %15619 = vmatmul.mubr.msk.f32.vlgmr.msra.gmra.mrb[0].mxu0 %vm215_vm0, %v19308_v21  ;;  %16035 = vmatmul.mubr.msk.f32.vlgmr.msra.gmra.mrb[0].mxu1 %vm215_vm0, %v19696_v35  ;;  %v19712_v21 = vld [vmem:[#allocation2 + $0x4a] sm:$0xff] }
 0x227   : > { %17029 = vmatpush3.bf16.msra.mxu0 %v19326_v53  ;;  %17061 = vmatpush3.bf16.msra.mxu1 %v19330_v29  ;;  %v19718_v53 = vpack.c.bf16 %v9050_v51, %v9049_v19  ;;  %v19728_v29 = vld [vmem:[#allocation2 + $0x62] sm:$0xff]  ;;  %v20030_v19 = vld [vmem:[#allocation2 + $0x2ea] sm:$0xff] }
 0x228   : > { %15621 = vmatprep.mubr.msk.f32.mxu0 %vm215_vm0, %v19312_v30  ;;  %16037 = vmatprep.mubr.msk.f32.mxu1 %vm215_vm0, %v19700_v16  ;;  %v19726_v30 = vld [vmem:[#allocation2 + $0x52] sm:$0xff]  ;;  %v22734_v51 = vld [vmem:[#allocation23_spill] sm:$0xff] }
 0x229   : > { %17031 = vmatprep.subr.bf16.mxu0 %v17030_v18  ;;  %17063 = vmatprep.subr.bf16.mxu1 %v17062_v47  ;;  %22737 = vst [vmem:[#allocation23_spill] sm:$0xff] %v20030_v19 }
 0x22a   : > { %15622 = vmatmul.mubr.msk.f32.gmra.mrb[2].mxu0 %vm215_vm0, %v19320_v4  ;;  %16038 = vmatmul.mubr.msk.f32.gmra.mrb[2].mxu1 %vm215_vm0, %v19708_v57  ;;  %v19740_v4 = vld [vmem:[#allocation2 + $0x6a] sm:$0xff] }
 0x22b   : > { %15624 = vmatprep.mubr.msk.f32.mxu0 %vm215_vm0, %v19324_v7  ;;  %16040 = vmatprep.mubr.msk.f32.mxu1 %vm215_vm0, %v19712_v21  ;;  %v19742_v7 = vld [vmem:[#allocation2 + $0x7a] sm:$0xff] }
 0x22c   : > { %17033 = vmatpush3.bf16.msra.mxu0 %v17030_v18  ;;  %17065 = vmatpush3.bf16.msra.mxu1 %v17062_v47  ;;  %v20016_v47 = vld [vmem:[#allocation2 + $0x2c2] sm:$0xff]  ;;  %v20018_v18 = vld [vmem:[#allocation2 + $0x2d2] sm:$0xff] }
 0x22d   : > { %17035 = vmatprep.subr.bf16.mxu0 %v19714_v5  ;;  %17067 = vmatprep.subr.bf16.mxu1 %v19718_v53  ;;  %22733 = vst [vmem:[#allocation21_spill] sm:$0xff] %v20018_v18 }
 0x22e   : > { %15625 = vmatmul.mubr.msk.f32.gmra.mrb[4].mxu0 %vm215_vm0, %v19338_v12  ;;  %16041 = vmatmul.mubr.msk.f32.gmra.mrb[4].mxu1 %vm215_vm0, %v19726_v30  ;;  %v19752_v12 = vld [vmem:[#allocation2 + $0x82] sm:$0xff] }
 0x22f   : > { %15627 = vmatprep.mubr.msk.f32.mxu0 %vm215_vm0, %v19340_v22  ;;  %16043 = vmatprep.mubr.msk.f32.mxu1 %vm215_vm0, %v19728_v29  ;;  %v19754_v22 = vld [vmem:[#allocation2 + $0x92] sm:$0xff] }
 0x232   : > { %15628 = vmatmul.mubr.msk.f32.gmra.mrb[6].mxu0 %vm215_vm0, %v19352_v59  ;;  %16044 = vmatmul.mubr.msk.f32.gmra.mrb[6].mxu1 %vm215_vm0, %v19740_v4  ;;  %v19764_v59 = vld [vmem:[#allocation2 + $0x9a] sm:$0xff] }
 0x233   : > { %15630 = vmatprep.mubr.msk.f32.mxu0 %vm215_vm0, %v19354_v46  ;;  %16046 = vmatprep.mubr.msk.f32.mxu1 %vm215_vm0, %v19742_v7  ;;  %v19766_v46 = vld [vmem:[#allocation2 + $0xaa] sm:$0xff] }
 0x236   : > { %15631 = vmatmul.mubr.msk.f32.gmra.mrb[8].mxu0 %vm215_vm0, %v19364_v48  ;;  %16047 = vmatmul.mubr.msk.f32.gmra.mrb[8].mxu1 %vm215_vm0, %v19752_v12  ;;  %v19776_v48 = vld [vmem:[#allocation2 + $0xb2] sm:$0xff] }
 0x237   : > { %15633 = vmatprep.mubr.msk.f32.mxu0 %vm215_vm0, %v19366_v50  ;;  %16049 = vmatprep.mubr.msk.f32.mxu1 %vm215_vm0, %v19754_v22  ;;  %v19778_v50 = vld [vmem:[#allocation2 + $0xc2] sm:$0xff] }
 0x23a   : > { %15634 = vmatmul.mubr.msk.f32.gmra.mrb[10].mxu0 %vm215_vm0, %v19376_v52  ;;  %16050 = vmatmul.mubr.msk.f32.gmra.mrb[10].mxu1 %vm215_vm0, %v19764_v59  ;;  %v19788_v52 = vld [vmem:[#allocation2 + $0xca] sm:$0xff] }
 0x23b   : > { %15636 = vmatprep.mubr.msk.f32.mxu0 %vm215_vm0, %v19378_v61  ;;  %16052 = vmatprep.mubr.msk.f32.mxu1 %vm215_vm0, %v19766_v46  ;;  %v19790_v61 = vld [vmem:[#allocation2 + $0xda] sm:$0xff] }
 0x23e   : > { %15637 = vmatmul.mubr.msk.f32.gmra.mrb[12].mxu0 %vm215_vm0, %v19388_v54  ;;  %16053 = vmatmul.mubr.msk.f32.gmra.mrb[12].mxu1 %vm215_vm0, %v19776_v48  ;;  %v19800_v54 = vld [vmem:[#allocation2 + $0xe2] sm:$0xff] }
 0x23f   : > { %15639 = vmatprep.mubr.msk.f32.mxu0 %vm215_vm0, %v19390_v56  ;;  %16055 = vmatprep.mubr.msk.f32.mxu1 %vm215_vm0, %v19778_v50  ;;  %v19802_v56 = vld [vmem:[#allocation2 + $0xf2] sm:$0xff] }
 0x242   : > { %15640 = vmatmul.mubr.msk.f32.gmra.mrb[14].mxu0 %vm215_vm0, %v19400_v58  ;;  %16056 = vmatmul.mubr.msk.f32.gmra.mrb[14].mxu1 %vm215_vm0, %v19788_v52  ;;  %v19812_v58 = vld [vmem:[#allocation2 + $0xfa] sm:$0xff] }
 0x243   : > { %15642 = vmatprep.mubr.msk.f32.mxu0 %vm215_vm0, %v19402_v60  ;;  %16058 = vmatprep.mubr.msk.f32.mxu1 %vm215_vm0, %v19790_v61  ;;  %v19814_v60 = vld [vmem:[#allocation2 + $0x10a] sm:$0xff] }
 0x246   : > { %15643 = vmatmul.mubr.msk.f32.gmra.mrb[16].mxu0 %vm215_vm0, %v19412_v62  ;;  %16059 = vmatmul.mubr.msk.f32.gmra.mrb[16].mxu1 %vm215_vm0, %v19800_v54  ;;  %v19824_v62 = vld [vmem:[#allocation2 + $0x112] sm:$0xff] }
 0x247   : > { %15645 = vmatprep.mubr.msk.f32.mxu0 %vm215_vm0, %v19414_v0  ;;  %16061 = vmatprep.mubr.msk.f32.mxu1 %vm215_vm0, %v19802_v56  ;;  %v19826_v0 = vld [vmem:[#allocation2 + $0x122] sm:$0xff] }
 0x24a   : > { %15646 = vmatmul.mubr.msk.f32.gmra.mrb[18].mxu0 %vm215_vm0, %v19424_v2  ;;  %16062 = vmatmul.mubr.msk.f32.gmra.mrb[18].mxu1 %vm215_vm0, %v19812_v58  ;;  %v19836_v2 = vld [vmem:[#allocation2 + $0x12a] sm:$0xff] }
 0x24b   : > { %15648 = vmatprep.mubr.msk.f32.mxu0 %vm215_vm0, %v19426_v10  ;;  %16064 = vmatprep.mubr.msk.f32.mxu1 %vm215_vm0, %v19814_v60  ;;  %v19838_v10 = vld [vmem:[#allocation2 + $0x13a] sm:$0xff] }
 0x24e   : > { %15649 = vmatmul.mubr.msk.f32.gmra.mrb[20].mxu0 %vm215_vm0, %v19436_v14  ;;  %16065 = vmatmul.mubr.msk.f32.gmra.mrb[20].mxu1 %vm215_vm0, %v19824_v62  ;;  %v19848_v14 = vld [vmem:[#allocation2 + $0x142] sm:$0xff] }
 0x24f   : > { %15651 = vmatprep.mubr.msk.f32.mxu0 %vm215_vm0, %v19438_v32  ;;  %16067 = vmatprep.mubr.msk.f32.mxu1 %vm215_vm0, %v19826_v0  ;;  %v19850_v32 = vld [vmem:[#allocation2 + $0x152] sm:$0xff] }
 0x252   : > { %15652 = vmatmul.mubr.msk.f32.gmra.mrb[22].mxu0 %vm215_vm0, %v19448_v34  ;;  %16068 = vmatmul.mubr.msk.f32.gmra.mrb[22].mxu1 %vm215_vm0, %v19836_v2  ;;  %v19860_v34 = vld [vmem:[#allocation2 + $0x15a] sm:$0xff] }
 0x253   : > { %15654 = vmatprep.mubr.msk.f32.mxu0 %vm215_vm0, %v19450_v36  ;;  %16070 = vmatprep.mubr.msk.f32.mxu1 %vm215_vm0, %v19838_v10  ;;  %v19862_v36 = vld [vmem:[#allocation2 + $0x16a] sm:$0xff] }
 0x256   : > { %15655 = vmatmul.mubr.msk.f32.gmra.mrb[24].mxu0 %vm215_vm0, %v19460_v38  ;;  %16071 = vmatmul.mubr.msk.f32.gmra.mrb[24].mxu1 %vm215_vm0, %v19848_v14  ;;  %v19872_v38 = vld [vmem:[#allocation2 + $0x172] sm:$0xff] }
 0x257   : > { %15657 = vmatprep.mubr.msk.f32.mxu0 %vm215_vm0, %v19462_v40  ;;  %16073 = vmatprep.mubr.msk.f32.mxu1 %vm215_vm0, %v19850_v32  ;;  %v19874_v40 = vld [vmem:[#allocation2 + $0x182] sm:$0xff] }
 0x25a   : > { %15658 = vmatmul.mubr.msk.f32.gmra.mrb[26].mxu0 %vm215_vm0, %v19472_v42  ;;  %16074 = vmatmul.mubr.msk.f32.gmra.mrb[26].mxu1 %vm215_vm0, %v19860_v34  ;;  %v19884_v42 = vld [vmem:[#allocation2 + $0x18a] sm:$0xff] }
 0x25b   : > { %15660 = vmatprep.mubr.msk.f32.mxu0 %vm215_vm0, %v19474_v44  ;;  %16076 = vmatprep.mubr.msk.f32.mxu1 %vm215_vm0, %v19862_v36  ;;  %v19886_v44 = vld [vmem:[#allocation2 + $0x1ca] sm:$0xff] }
 0x25e   : > { %15661 = vmatmul.mubr.msk.f32.gmra.mrb[28].mxu0 %vm215_vm0, %v19484_v49  ;;  %16077 = vmatmul.mubr.msk.f32.gmra.mrb[28].mxu1 %vm215_vm0, %v19872_v38  ;;  %v19896_v49 = vld [vmem:[#allocation2 + $0x1d2] sm:$0xff] }
 0x25f   : > { %15663 = vmatprep.mubr.msk.f32.mxu0 %vm215_vm0, %v19486_v1  ;;  %16079 = vmatprep.mubr.msk.f32.mxu1 %vm215_vm0, %v19874_v40  ;;  %v19898_v1 = vld [vmem:[#allocation2 + $0x1e2] sm:$0xff] }
 0x262   : > { %15664 = vmatmul.mubr.msk.f32.gmra.mrb[30].mxu0 %vm215_vm0, %v19495_v26  ;;  %16080 = vmatmul.mubr.msk.f32.gmra.mrb[30].mxu1 %vm215_vm0, %v19884_v42  ;;  %v19908_v26 = vld [vmem:[#allocation2 + $0x1ea] sm:$0xff] }
 0x263   : > { %15666 = vmatprep.mubr.msk.f32.mxu0 %vm215_vm0, %v19497_v9  ;;  %16082 = vmatprep.mubr.msk.f32.mxu1 %vm215_vm0, %v19886_v44  ;;  %v19910_v9 = vld [vmem:[#allocation2 + $0x1fa] sm:$0xff] }
 0x266   : > { %15667 = vmatmul.mubr.msk.f32.gmra.mrb[32].mxu0 %vm215_vm0, %v19506_v28  ;;  %16083 = vmatmul.mubr.msk.f32.gmra.mrb[32].mxu1 %vm215_vm0, %v19896_v49  ;;  %v19920_v28 = vld [vmem:[#allocation2 + $0x202] sm:$0xff] }
 0x267   : > { %15669 = vmatprep.mubr.msk.f32.mxu0 %vm215_vm0, %v19508_v13  ;;  %16085 = vmatprep.mubr.msk.f32.mxu1 %vm215_vm0, %v19898_v1  ;;  %v19922_v13 = vld [vmem:[#allocation2 + $0x212] sm:$0xff] }
 0x26a   : > { %15670 = vmatmul.mubr.msk.f32.gmra.mrb[34].mxu0 %vm215_vm0, %v19518_v33  ;;  %16086 = vmatmul.mubr.msk.f32.gmra.mrb[34].mxu1 %vm215_vm0, %v19908_v26  ;;  %v19932_v33 = vld [vmem:[#allocation2 + $0x21a] sm:$0xff] }
 0x26b   : > { %15672 = vmatprep.mubr.msk.f32.mxu0 %vm215_vm0, %v19520_v55  ;;  %16088 = vmatprep.mubr.msk.f32.mxu1 %vm215_vm0, %v19910_v9  ;;  %v19934_v55 = vld [vmem:[#allocation2 + $0x22a] sm:$0xff] }
 0x26e   : > { %15673 = vmatmul.mubr.msk.f32.gmra.mrb[36].mxu0 %vm215_vm0, %v19530_v37  ;;  %16089 = vmatmul.mubr.msk.f32.gmra.mrb[36].mxu1 %vm215_vm0, %v19920_v28  ;;  %v19944_v37 = vld [vmem:[#allocation2 + $0x232] sm:$0xff] }
 0x26f   : > { %15675 = vmatprep.mubr.msk.f32.mxu0 %vm215_vm0, %v19532_v43  ;;  %16091 = vmatprep.mubr.msk.f32.mxu1 %vm215_vm0, %v19922_v13  ;;  %v19946_v43 = vld [vmem:[#allocation2 + $0x242] sm:$0xff] }
 0x272   : > { %15676 = vmatmul.mubr.msk.f32.gmra.mrb[38].mxu0 %vm215_vm0, %v19542_v41  ;;  %16092 = vmatmul.mubr.msk.f32.gmra.mrb[38].mxu1 %vm215_vm0, %v19932_v33  ;;  %v19956_v41 = vld [vmem:[#allocation2 + $0x24a] sm:$0xff] }
 0x273   : > { %15678 = vmatprep.mubr.msk.f32.mxu0 %vm215_vm0, %v19544_v63  ;;  %16094 = vmatprep.mubr.msk.f32.mxu1 %vm215_vm0, %v19934_v55  ;;  %v19958_v63 = vld [vmem:[#allocation2 + $0x25a] sm:$0xff] }
 0x276   : > { %15679 = vmatmul.mubr.msk.f32.gmra.mrb[40].mxu0 %vm215_vm0, %v19554_v3  ;;  %16095 = vmatmul.mubr.msk.f32.gmra.mrb[40].mxu1 %vm215_vm0, %v19944_v37  ;;  %v19968_v3 = vld [vmem:[#allocation2 + $0x262] sm:$0xff] }
 0x277   : > { %15681 = vmatprep.mubr.msk.f32.mxu0 %vm215_vm0, %v19556_v6  ;;  %16097 = vmatprep.mubr.msk.f32.mxu1 %vm215_vm0, %v19946_v43  ;;  %v19970_v6 = vld [vmem:[#allocation2 + $0x272] sm:$0xff] }
 0x27a   : > { %15682 = vmatmul.mubr.msk.f32.gmra.mrb[42].mxu0 %vm215_vm0, %v19566_v8  ;;  %16098 = vmatmul.mubr.msk.f32.gmra.mrb[42].mxu1 %vm215_vm0, %v19956_v41  ;;  %v19980_v8 = vld [vmem:[#allocation2 + $0x27a] sm:$0xff] }
 0x27b   : > { %15684 = vmatprep.mubr.msk.f32.mxu0 %vm215_vm0, %v19568_v11  ;;  %16100 = vmatprep.mubr.msk.f32.mxu1 %vm215_vm0, %v19958_v63  ;;  %v19982_v11 = vld [vmem:[#allocation2 + $0x28a] sm:$0xff] }
 0x27e   : > { %15685 = vmatmul.mubr.msk.f32.gmra.mrb[44].mxu0 %vm215_vm0, %v19578_v15  ;;  %16101 = vmatmul.mubr.msk.f32.gmra.mrb[44].mxu1 %vm215_vm0, %v19968_v3  ;;  %v19992_v15 = vld [vmem:[#allocation2 + $0x292] sm:$0xff] }
 0x27f   : > { %15687 = vmatprep.mubr.msk.f32.mxu0 %vm215_vm0, %v19580_v17  ;;  %16103 = vmatprep.mubr.msk.f32.mxu1 %vm215_vm0, %v19970_v6  ;;  %v19994_v17 = vld [vmem:[#allocation2 + $0x2a2] sm:$0xff] }
 0x282   : > { %15688 = vmatmul.mubr.msk.f32.gmra.mrb[46].mxu0 %vm215_vm0, %v19590_v20  ;;  %16104 = vmatmul.mubr.msk.f32.gmra.mrb[46].mxu1 %vm215_vm0, %v19980_v8  ;;  %v22728_v20 = vld [vmem:[#allocation20_spill] sm:$0xff] }
 0x283   : > { %15690 = vmatprep.mubr.msk.f32.mxu0 %vm215_vm0, %v19592_v23  ;;  %16106 = vmatprep.mubr.msk.f32.mxu1 %vm215_vm0, %v19982_v11  ;;  %v20004_v23 = vld [vmem:[#allocation2 + $0x2aa] sm:$0xff]  ;;  %22732 = vst [vmem:[#allocation20_spill] sm:$0xff] %v20016_v47 }
 0x286   : > { %15691 = vmatmul.mubr.msk.f32.gmra.mrb[48].mxu0 %vm215_vm0, %v19602_v27  ;;  %16107 = vmatmul.mubr.msk.f32.gmra.mrb[48].mxu1 %vm215_vm0, %v19992_v15  ;;  %v22731_v27 = vld [vmem:[#allocation22_spill] sm:$0xff] }
 0x287   : > { %15693 = vmatprep.mubr.msk.f32.mxu0 %vm215_vm0, %v22728_v20  ;;  %16109 = vmatprep.mubr.msk.f32.mxu1 %vm215_vm0, %v19994_v17  ;;  %22736 = vst [vmem:[#allocation22_spill] sm:$0xff] %v20028_v24  ;;  %v22738_v20 = vld [vmem:[#allocation25_spill] sm:$0xff] }
 0x28a   : > { %15694 = vmatmul.mubr.msk.f32.gmra.mrb[50].mxu0 %vm215_vm0, %v22730_v39  ;;  %16110 = vmatmul.mubr.msk.f32.gmra.mrb[50].mxu1 %vm215_vm0, %v20004_v23  ;;  %v22739_v39 = vld [vmem:[#allocation11_spill] sm:$0xff] }
 0x28b   : > { %15696 = vmatprep.mubr.msk.f32.mxu0 %vm215_vm0, %v22731_v27  ;;  %16112 = vmatprep.mubr.msk.f32.mxu1 %vm215_vm0, %v20006_v31  ;;  %v20040_v27 = vld [vmem:[#allocation2 + $0x2f2] sm:$0xff] }
 0x28c   : > { %22740 = vst [vmem:[#allocation24_spill] sm:$0xff] %v20040_v27 }
 0x28e   : > { %15697 = vmatmul.mubr.msk.f32.gmra.mrb[52].mxu0 %vm215_vm0, %v22734_v51  ;;  %16113 = vmatmul.mubr.msk.f32.gmra.mrb[52].mxu1 %vm215_vm0, %v20016_v47  ;;  %v20042_v51 = vld [vmem:[#allocation2 + $0x302] sm:$0xff]  ;;  %v6210_v47 = vld [vmem:[#allocation5 + $0x118] sm:$0xff] }
 0x28f   : > { %15699 = vmatprep.mubr.msk.f32.mxu0 %vm215_vm0, %v22735_v45  ;;  %16115 = vmatprep.mubr.msk.f32.mxu1 %vm215_vm0, %v20018_v18  ;;  %22741 = vst [vmem:[#allocation25_spill] sm:$0xff] %v20042_v51  ;;  %v22742_v45 = vld [vmem:[#allocation12_spill] sm:$0xff] }
 0x290   : > { %v6209_v18 = vld [vmem:[#allocation5 + $0x110] sm:$0xff] }
 0x291   : > { %v17038_v31 = vpack.c.bf16 %v6210_v47, %v6209_v18  ;;  %v7501_v47 = vld [vmem:[#allocation5 + $0x148] sm:$0xff] }
 0x292   : > { %15700 = vmatmul.mubr.msk.f32.gmra.mrb[54].mxu0 %vm215_vm0, %v22738_v20  ;;  %16116 = vmatmul.mubr.msk.f32.gmra.mrb[54].mxu1 %vm215_vm0, %v20028_v24  ;;  %v22743_v20 = vld [vmem:[#allocation13_spill] sm:$0xff]  ;;  %v20054_v24 = vld [vmem:[#allocation2 + $0x31a] sm:$0xff] }
 0x293   : > { %15702 = vmatprep.mubr.msk.f32.mxu0 %vm215_vm0, %v22739_v39  ;;  %16118 = vmatprep.mubr.msk.f32.mxu1 %vm215_vm0, %v20030_v19  ;;  %v20052_v39 = vld [vmem:[#allocation2 + $0x30a] sm:$0xff]  ;;  %22745 = vst [vmem:[#allocation12_spill] sm:$0xff] %v20054_v24  ;;  %v22746_v19 = vld [vmem:[#allocation14_spill] sm:$0xff] }
 0x294   : > { %22744 = vst [vmem:[#allocation11_spill] sm:$0xff] %v20052_v39 }
 0x296   : > { %15703 = vmatmul.mubr.msk.f32.gmra.mrb[56].mxu0 %vm215_vm0, %v22742_v45  ;;  %16119 = vmatmul.mubr.msk.f32.gmra.mrb[56].mxu1 %vm215_vm0, %v20040_v27  ;;  %v22747_v45 = vld [vmem:[#allocation15_spill] sm:$0xff]  ;;  %v20066_v27 = vld [vmem:[#allocation2 + $0x332] sm:$0xff] }
 0x297   : > { %15705 = vmatprep.mubr.msk.f32.mxu0 %vm215_vm0, %v22743_v20  ;;  %16121 = vmatprep.mubr.msk.f32.mxu1 %vm215_vm0, %v20042_v51  ;;  %v20064_v20 = vld [vmem:[#allocation2 + $0x322] sm:$0xff]  ;;  %22749 = vst [vmem:[#allocation14_spill] sm:$0xff] %v20066_v27  ;;  %v22750_v51 = vld [vmem:[#allocation16_spill] sm:$0xff] }
 0x298   : > { %22748 = vst [vmem:[#allocation13_spill] sm:$0xff] %v20064_v20 }
 0x29a   : > { %15706 = vmatmul.mubr.msk.f32.gmra.mrb[58].mxu0 %vm215_vm0, %v22746_v19  ;;  %16122 = vmatmul.mubr.msk.f32.gmra.mrb[58].mxu1 %vm215_vm0, %v20052_v39  ;;  %v22751_v19 = vld [vmem:[#allocation17_spill] sm:$0xff] }
 0x29b   : > { %15708 = vmatprep.mubr.msk.f32.mxu0 %vm215_vm0, %v22747_v45  ;;  %16124 = vmatprep.mubr.msk.f32.mxu1 %vm215_vm0, %v20054_v24  ;;  %v20076_v45 = vld [vmem:[#allocation2 + $0x33a] sm:$0xff] }
 0x29c   : > { %v20078_v39 = vld [vmem:[#allocation2 + $0x19] sm:$0xff] }
 0x29d   : > { %22752 = vst [vmem:[#allocation15_spill] sm:$0xff] %v20078_v39  ;;  %v22753_v24 = vld [vmem:[#allocation18_spill] sm:$0xff] }
 0x29e   : > { %15709 = vmatmul.mubr.msk.f32.gmra.mrb[60].mxu0 %vm215_vm0, %v22750_v51  ;;  %16125 = vmatmul.mubr.msk.f32.gmra.mrb[60].mxu1 %vm215_vm0, %v20064_v20  ;;  %v20086_v51 = vld [vmem:[#allocation2 + $0x21] sm:$0xff]  ;;  %v9052_v20 = vld [vmem:[#allocation5 + $0x198] sm:$0xff] }
 0x29f   : > { %15711 = vmatprep.mubr.msk.f32.mxu0 %vm215_vm0, %v22751_v19  ;;  %16127 = vmatprep.mubr.msk.f32.mxu1 %vm215_vm0, %v20066_v27  ;;  %v9051_v19 = vld [vmem:[#allocation5 + $0x190] sm:$0xff] }
 0x2a0   : > { %v20090_v27 = vld [vmem:[#allocation2 + $0x31] sm:$0xff] }
 0x2a2   : > { %15712 = vmatmul.mubr.msk.f32.gmra.mrb[62].mxu0 %vm215_vm0, %v22753_v24  ;;  %16128 = vmatmul.mubr.msk.f32.gmra.mrb[62].mxu1 %vm215_vm0, %v20076_v45  ;;  %v17070_v24 = vpack.c.bf16 %v9052_v20, %v9051_v19  ;;  %v10342_v20 = vld [vmem:[#allocation5 + $0x1c8] sm:$0xff] }
 0x2a3   : > { %16138 = vmatprep.mubr.msk.f32.mxu0 %vm215_vm0, %v20078_v39  ;;  %16554 = vmatprep.mubr.msk.f32.mxu1 %vm215_vm0, %v19687_v25  ;;  %v20097_v39 = vld [vmem:[#allocation2 + $0x39] sm:$0xff]  ;;  %v20102_v25 = vld [vmem:[#allocation2 + $0x49] sm:$0xff] }
 0x2a6   : > { %16139 = vmatmul.mubr.msk.f32.vlgmr.msra.gmra.mrb[64].mxu0 %vm215_vm0, %v20086_v51  ;;  %16555 = vmatmul.mubr.msk.f32.vlgmr.msra.gmra.mrb[64].mxu1 %vm215_vm0, %v19696_v35  ;;  %v7500_v35 = vld [vmem:[#allocation5 + $0x140] sm:$0xff] }
 0x2a7   : > { %17037 = vmatpush3.bf16.msra.mxu0 %v19714_v5  ;;  %17069 = vmatpush3.bf16.msra.mxu1 %v19718_v53  ;;  %v10341_v5 = vld [vmem:[#allocation5 + $0x1c0] sm:$0xff]  ;;  %v20112_v53 = vld [vmem:[#allocation2 + $0x51] sm:$0xff]  ;;  %v20114_v18 = vpack.c.bf16 %v7501_v47, %v7500_v35 }
 0x2a8   : > { %16141 = vmatprep.mubr.msk.f32.mxu0 %vm215_vm0, %v20090_v27  ;;  %16557 = vmatprep.mubr.msk.f32.mxu1 %vm215_vm0, %v19700_v16  ;;  %v20118_v16 = vld [vmem:[#allocation2 + $0x61] sm:$0xff]  ;;  %v20120_v19 = vpack.c.bf16 %v10342_v20, %v10341_v5 }
 0x2a9   : > { %17039 = vmatprep.subr.bf16.mxu0 %v17038_v31  ;;  %17071 = vmatprep.subr.bf16.mxu1 %v17070_v24 }
 0x2aa   : > { %16142 = vmatmul.mubr.msk.f32.gmra.mrb[66].mxu0 %vm215_vm0, %v20097_v39  ;;  %16558 = vmatmul.mubr.msk.f32.gmra.mrb[66].mxu1 %vm215_vm0, %v19708_v57  ;;  %v20130_v57 = vld [vmem:[#allocation2 + $0x69] sm:$0xff] }
 0x2ab   : > { %16144 = vmatprep.mubr.msk.f32.mxu0 %vm215_vm0, %v20102_v25  ;;  %16560 = vmatprep.mubr.msk.f32.mxu1 %vm215_vm0, %v19712_v21  ;;  %v20134_v21 = vld [vmem:[#allocation2 + $0x79] sm:$0xff] }
 0x2ac   : > { %17041 = vmatpush3.bf16.msra.mxu0 %v17038_v31  ;;  %17073 = vmatpush3.bf16.msra.mxu1 %v17070_v24  ;;  %v20146_v31 = vld [vmem:[#allocation2 + $0x91] sm:$0xff]  ;;  %v6231_v24 = vld [vmem:[#allocation2 + $0x109] sm:$0xff] }
 0x2ad   : > { %17043 = vmatprep.subr.bf16.mxu0 %v20114_v18  ;;  %17075 = vmatprep.subr.bf16.mxu1 %v20120_v19 }
 0x2ae   : > { %16145 = vmatmul.mubr.msk.f32.gmra.mrb[68].mxu0 %vm215_vm0, %v20112_v53  ;;  %16561 = vmatmul.mubr.msk.f32.gmra.mrb[68].mxu1 %vm215_vm0, %v19726_v30  ;;  %v20142_v30 = vld [vmem:[#allocation2 + $0x81] sm:$0xff] }
 0x2af   : > { %16147 = vmatprep.mubr.msk.f32.mxu0 %vm215_vm0, %v20118_v16  ;;  %16563 = vmatprep.mubr.msk.f32.mxu1 %vm215_vm0, %v19728_v29  ;;  %v20154_v29 = vld [vmem:[#allocation2 + $0x99] sm:$0xff] }
 0x2b2   : > { %16148 = vmatmul.mubr.msk.f32.gmra.mrb[70].mxu0 %vm215_vm0, %v20130_v57  ;;  %16564 = vmatmul.mubr.msk.f32.gmra.mrb[70].mxu1 %vm215_vm0, %v19740_v4  ;;  %v20158_v4 = vld [vmem:[#allocation2 + $0xa9] sm:$0xff] }
 0x2b3   : > { %16150 = vmatprep.mubr.msk.f32.mxu0 %vm215_vm0, %v20134_v21  ;;  %16566 = vmatprep.mubr.msk.f32.mxu1 %vm215_vm0, %v19742_v7  ;;  %v20166_v7 = vld [vmem:[#allocation2 + $0xb1] sm:$0xff] }
 0x2b6   : > { %16151 = vmatmul.mubr.msk.f32.gmra.mrb[72].mxu0 %vm215_vm0, %v20142_v30  ;;  %16567 = vmatmul.mubr.msk.f32.gmra.mrb[72].mxu1 %vm215_vm0, %v19752_v12  ;;  %v20170_v12 = vld [vmem:[#allocation2 + $0xc1] sm:$0xff] }
 0x2b7   : > { %16153 = vmatprep.mubr.msk.f32.mxu0 %vm215_vm0, %v20146_v31  ;;  %16569 = vmatprep.mubr.msk.f32.mxu1 %vm215_vm0, %v19754_v22  ;;  %v20178_v22 = vld [vmem:[#allocation2 + $0xc9] sm:$0xff] }
 0x2ba   : > { %16154 = vmatmul.mubr.msk.f32.gmra.mrb[74].mxu0 %vm215_vm0, %v20154_v29  ;;  %16570 = vmatmul.mubr.msk.f32.gmra.mrb[74].mxu1 %vm215_vm0, %v19764_v59  ;;  %v6227_v59 = vld [vmem:[#allocation2 + $0xd9] sm:$0xff] }
 0x2bb   : > { %16156 = vmatprep.mubr.msk.f32.mxu0 %vm215_vm0, %v20158_v4  ;;  %16572 = vmatprep.mubr.msk.f32.mxu1 %vm215_vm0, %v19766_v46  ;;  %v6228_v46 = vld [vmem:[#allocation2 + $0xe1] sm:$0xff] }
 0x2be   : > { %16157 = vmatmul.mubr.msk.f32.gmra.mrb[76].mxu0 %vm215_vm0, %v20166_v7  ;;  %16573 = vmatmul.mubr.msk.f32.gmra.mrb[76].mxu1 %vm215_vm0, %v19776_v48  ;;  %v6229_v48 = vld [vmem:[#allocation2 + $0xf1] sm:$0xff] }
 0x2bf   : > { %16159 = vmatprep.mubr.msk.f32.mxu0 %vm215_vm0, %v20170_v12  ;;  %16575 = vmatprep.mubr.msk.f32.mxu1 %vm215_vm0, %v19778_v50  ;;  %v6230_v50 = vld [vmem:[#allocation2 + $0xf9] sm:$0xff] }
 0x2c2   : > { %16160 = vmatmul.mubr.msk.f32.gmra.mrb[78].mxu0 %vm215_vm0, %v20178_v22  ;;  %16576 = vmatmul.mubr.msk.f32.gmra.mrb[78].mxu1 %vm215_vm0, %v19788_v52  ;;  %v6232_v52 = vld [vmem:[#allocation2 + $0x111] sm:$0xff] }
 0x2c3   : > { %16162 = vmatprep.mubr.msk.f32.mxu0 %vm215_vm0, %v6227_v59  ;;  %16578 = vmatprep.mubr.msk.f32.mxu1 %vm215_vm0, %v19790_v61  ;;  %v6233_v61 = vld [vmem:[#allocation2 + $0x121] sm:$0xff] }
 0x2c6   : > { %16163 = vmatmul.mubr.msk.f32.gmra.mrb[80].mxu0 %vm215_vm0, %v6228_v46  ;;  %16579 = vmatmul.mubr.msk.f32.gmra.mrb[80].mxu1 %vm215_vm0, %v19800_v54  ;;  %v6234_v54 = vld [vmem:[#allocation2 + $0x129] sm:$0xff] }
 0x2c7   : > { %16165 = vmatprep.mubr.msk.f32.mxu0 %vm215_vm0, %v6229_v48  ;;  %16581 = vmatprep.mubr.msk.f32.mxu1 %vm215_vm0, %v19802_v56  ;;  %v6235_v56 = vld [vmem:[#allocation2 + $0x139] sm:$0xff]  ;;  %v6257_v48 = vld [vmem:[#allocation2 + $0x271] sm:$0xff] }
 0x2ca   : > { %16166 = vmatmul.mubr.msk.f32.gmra.mrb[82].mxu0 %vm215_vm0, %v6230_v50  ;;  %16582 = vmatmul.mubr.msk.f32.gmra.mrb[82].mxu1 %vm215_vm0, %v19812_v58  ;;  %v6236_v58 = vld [vmem:[#allocation2 + $0x141] sm:$0xff] }
 0x2cb   : > { %16168 = vmatprep.mubr.msk.f32.mxu0 %vm215_vm0, %v6231_v24  ;;  %16584 = vmatprep.mubr.msk.f32.mxu1 %vm215_vm0, %v19814_v60  ;;  %v6237_v60 = vld [vmem:[#allocation2 + $0x151] sm:$0xff] }
 0x2ce   : > { %16169 = vmatmul.mubr.msk.f32.gmra.mrb[84].mxu0 %vm215_vm0, %v6232_v52  ;;  %16585 = vmatmul.mubr.msk.f32.gmra.mrb[84].mxu1 %vm215_vm0, %v19824_v62  ;;  %v6238_v62 = vld [vmem:[#allocation2 + $0x159] sm:$0xff] }
 0x2cf   : > { %16171 = vmatprep.mubr.msk.f32.mxu0 %vm215_vm0, %v6233_v61  ;;  %16587 = vmatprep.mubr.msk.f32.mxu1 %vm215_vm0, %v19826_v0  ;;  %v6239_v0 = vld [vmem:[#allocation2 + $0x169] sm:$0xff] }
 0x2d2   : > { %16172 = vmatmul.mubr.msk.f32.gmra.mrb[86].mxu0 %vm215_vm0, %v6234_v54  ;;  %16588 = vmatmul.mubr.msk.f32.gmra.mrb[86].mxu1 %vm215_vm0, %v19836_v2  ;;  %v6240_v2 = vld [vmem:[#allocation2 + $0x171] sm:$0xff] }
 0x2d3   : > { %16174 = vmatprep.mubr.msk.f32.mxu0 %vm215_vm0, %v6235_v56  ;;  %16590 = vmatprep.mubr.msk.f32.mxu1 %vm215_vm0, %v19838_v10  ;;  %v6241_v10 = vld [vmem:[#allocation2 + $0x181] sm:$0xff]  ;;  %v6258_v56 = vld [vmem:[#allocation2 + $0x279] sm:$0xff] }
 0x2d6   : > { %16175 = vmatmul.mubr.msk.f32.gmra.mrb[88].mxu0 %vm215_vm0, %v6236_v58  ;;  %16591 = vmatmul.mubr.msk.f32.gmra.mrb[88].mxu1 %vm215_vm0, %v19848_v14  ;;  %v6242_v14 = vld [vmem:[#allocation2 + $0x189] sm:$0xff] }
 0x2d7   : > { %16177 = vmatprep.mubr.msk.f32.mxu0 %vm215_vm0, %v6237_v60  ;;  %16593 = vmatprep.mubr.msk.f32.mxu1 %vm215_vm0, %v19850_v32  ;;  %v6243_v32 = vld [vmem:[#allocation2 + $0x1c9] sm:$0xff] }
 0x2d8   : > { %v6259_v60 = vld [vmem:[#allocation2 + $0x289] sm:$0xff] }
 0x2da   : > { %16178 = vmatmul.mubr.msk.f32.gmra.mrb[90].mxu0 %vm215_vm0, %v6238_v62  ;;  %16594 = vmatmul.mubr.msk.f32.gmra.mrb[90].mxu1 %vm215_vm0, %v19860_v34  ;;  %v6244_v34 = vld [vmem:[#allocation2 + $0x1d1] sm:$0xff] }
 0x2db   : > { %16180 = vmatprep.mubr.msk.f32.mxu0 %vm215_vm0, %v6239_v0  ;;  %16596 = vmatprep.mubr.msk.f32.mxu1 %vm215_vm0, %v19862_v36  ;;  %v6245_v36 = vld [vmem:[#allocation2 + $0x1e1] sm:$0xff] }
 0x2de   : > { %16181 = vmatmul.mubr.msk.f32.gmra.mrb[92].mxu0 %vm215_vm0, %v6240_v2  ;;  %16597 = vmatmul.mubr.msk.f32.gmra.mrb[92].mxu1 %vm215_vm0, %v19872_v38  ;;  %v6246_v38 = vld [vmem:[#allocation2 + $0x1e9] sm:$0xff] }
 0x2df   : > { %16183 = vmatprep.mubr.msk.f32.mxu0 %vm215_vm0, %v6241_v10  ;;  %16599 = vmatprep.mubr.msk.f32.mxu1 %vm215_vm0, %v19874_v40  ;;  %v6247_v40 = vld [vmem:[#allocation2 + $0x1f9] sm:$0xff] }
 0x2e2   : > { %16184 = vmatmul.mubr.msk.f32.gmra.mrb[94].mxu0 %vm215_vm0, %v6242_v14  ;;  %16600 = vmatmul.mubr.msk.f32.gmra.mrb[94].mxu1 %vm215_vm0, %v19884_v42  ;;  %v6248_v42 = vld [vmem:[#allocation2 + $0x201] sm:$0xff] }
 0x2e3   : > { %16186 = vmatprep.mubr.msk.f32.mxu0 %vm215_vm0, %v6243_v32  ;;  %16602 = vmatprep.mubr.msk.f32.mxu1 %vm215_vm0, %v19886_v44  ;;  %v6249_v44 = vld [vmem:[#allocation2 + $0x211] sm:$0xff] }
 0x2e4   : > { %v6260_v32 = vld [vmem:[#allocation2 + $0x291] sm:$0xff] }
 0x2e6   : > { %16187 = vmatmul.mubr.msk.f32.gmra.mrb[96].mxu0 %vm215_vm0, %v6244_v34  ;;  %16603 = vmatmul.mubr.msk.f32.gmra.mrb[96].mxu1 %vm215_vm0, %v19896_v49  ;;  %v6250_v49 = vld [vmem:[#allocation2 + $0x219] sm:$0xff] }
 0x2e7   : > { %16189 = vmatprep.mubr.msk.f32.mxu0 %vm215_vm0, %v6245_v36  ;;  %16605 = vmatprep.mubr.msk.f32.mxu1 %vm215_vm0, %v19898_v1  ;;  %v6251_v1 = vld [vmem:[#allocation2 + $0x229] sm:$0xff]  ;;  %v6261_v36 = vld [vmem:[#allocation2 + $0x2a1] sm:$0xff] }
 0x2ea   : > { %16190 = vmatmul.mubr.msk.f32.gmra.mrb[98].mxu0 %vm215_vm0, %v6246_v38  ;;  %16606 = vmatmul.mubr.msk.f32.gmra.mrb[98].mxu1 %vm215_vm0, %v19908_v26  ;;  %v6252_v26 = vld [vmem:[#allocation2 + $0x231] sm:$0xff] }
 0x2eb   : > { %16192 = vmatprep.mubr.msk.f32.mxu0 %vm215_vm0, %v6247_v40  ;;  %16608 = vmatprep.mubr.msk.f32.mxu1 %vm215_vm0, %v19910_v9  ;;  %v6253_v9 = vld [vmem:[#allocation2 + $0x241] sm:$0xff] }
 0x2ee   : > { %16193 = vmatmul.mubr.msk.f32.gmra.mrb[100].mxu0 %vm215_vm0, %v6248_v42  ;;  %16609 = vmatmul.mubr.msk.f32.gmra.mrb[100].mxu1 %vm215_vm0, %v19920_v28  ;;  %v20265_v28 = vld [vmem:[#allocation7] ss:$0 sm:$0xff] }
 0x2ef   : > { %16195 = vmatprep.mubr.msk.f32.mxu0 %vm215_vm0, %v6249_v44  ;;  %16611 = vmatprep.mubr.msk.f32.mxu1 %vm215_vm0, %v19922_v13  ;;  %v6254_v13 = vld [vmem:[#allocation2 + $0x249] sm:$0xff] }
 0x2f2   : > { %16196 = vmatmul.mubr.msk.f32.gmra.mrb[102].mxu0 %vm215_vm0, %v6250_v49  ;;  %16612 = vmatmul.mubr.msk.f32.gmra.mrb[102].mxu1 %vm215_vm0, %v19932_v33  ;;  %v6255_v33 = vld [vmem:[#allocation2 + $0x259] sm:$0xff] }
 0x2f3   : > { %16198 = vmatprep.mubr.msk.f32.mxu0 %vm215_vm0, %v6251_v1  ;;  %16614 = vmatprep.mubr.msk.f32.mxu1 %vm215_vm0, %v19934_v55  ;;  %v6262_v1 = vld [vmem:[#allocation2 + $0x2a9] sm:$0xff] }
 0x2f6   : > { %16199 = vmatmul.mubr.msk.f32.gmra.mrb[104].mxu0 %vm215_vm0, %v6252_v26  ;;  %16615 = vmatmul.mubr.msk.f32.gmra.mrb[104].mxu1 %vm215_vm0, %v19944_v37 }
 0x2f7   : > { %16201 = vmatprep.mubr.msk.f32.mxu0 %vm215_vm0, %v6253_v9  ;;  %16617 = vmatprep.mubr.msk.f32.mxu1 %vm215_vm0, %v19946_v43  ;;  %v6256_v43 = vld [vmem:[#allocation2 + $0x261] sm:$0xff]  ;;  %v6263_v9 = vld [vmem:[#allocation2 + $0x2b9] sm:$0xff] }
 0x2f9   : > { %v15620_v35 = vpop.f32.mrb[0].mxu0  ;;  %v16036_v47 = vpop.f32.mrb[0].mxu1 }
 0x2fa   : > { %v3173_v55 = vadd.f32 %v15620_v35, %v20265_v28  ;;  %v2783_v5 = vpop.f32.mrb[1].mxu0  ;;  %16202 = vmatmul.mubr.msk.f32.gmra.mrb[106].mxu0 %vm215_vm0, %v6254_v13  ;;  %v6014_v20 = vadd.f32 %v16036_v47, %v20265_v28  ;;  %v5630_v59 = vpop.f32.mrb[1].mxu1  ;;  %16618 = vmatmul.mubr.msk.f32.gmra.mrb[106].mxu1 %vm215_vm0, %v19956_v41 }
 0x2fb   : > { %v3172_v37 = vadd.f32 %v20265_v28, %v2783_v5  ;;  %16204 = vmatprep.mubr.msk.f32.mxu0 %vm215_vm0, %v6255_v33  ;;  %v6013_v46 = vadd.f32 %v20265_v28, %v5630_v59  ;;  %16620 = vmatprep.mubr.msk.f32.mxu1 %vm215_vm0, %v19958_v63  ;;  %v6264_v5 = vld [vmem:[#allocation2 + $0x2c1] sm:$0xff]  ;;  %v6265_v59 = vld [vmem:[#allocation2 + $0x2d1] sm:$0xff] }
 0x2fc   : > { %3238 = vst.msk [vmem:[%s20277_s18 + $0x8] sm:$0xff] %vm3236_vm2, %v3173_v55  ;;  %13497 = vst.msk [vmem:[%s20277_s18 + $0x208] sm:$0xff] %vm3236_vm2, %v6014_v20 }
 0x2fd   : > { %3237 = vst.msk [vmem:[%s20277_s18] sm:$0xff] %vm3236_vm2, %v3172_v37  ;;  %v15623_v41 = vpop.f32.mrb[2].mxu0  ;;  %13496 = vst.msk [vmem:[%s20277_s18 + $0x200] sm:$0xff] %vm3236_vm2, %v6013_v46  ;;  %v16039_v24 = vpop.f32.mrb[2].mxu1  ;;  %v22754_v37 = vld [vmem:[#allocation19_spill] sm:$0xff] }
 0x2fe   : > { %v3175_v50 = vadd.f32 %v15623_v41, %v20265_v28  ;;  %v2793_v52 = vpop.f32.mrb[3].mxu0  ;;  %16205 = vmatmul.mubr.msk.f32.gmra.mrb[108].mxu0 %vm215_vm0, %v6256_v43  ;;  %v6016_v63 = vadd.f32 %v16039_v24, %v20265_v28  ;;  %v5640_v54 = vpop.f32.mrb[3].mxu1  ;;  %16621 = vmatmul.mubr.msk.f32.gmra.mrb[108].mxu1 %vm215_vm0, %v19968_v3 }
 0x2ff   : > { %v3174_v61 = vadd.f32 %v20265_v28, %v2793_v52  ;;  %16207 = vmatprep.mubr.msk.f32.mxu0 %vm215_vm0, %v6257_v48  ;;  %v6015_v58 = vadd.f32 %v20265_v28, %v5640_v54  ;;  %16623 = vmatprep.mubr.msk.f32.mxu1 %vm215_vm0, %v19970_v6  ;;  %v22755_v52 = vld [vmem:[#allocation20_spill] sm:$0xff]  ;;  %v22756_v54 = vld [vmem:[#allocation21_spill] sm:$0xff] }
 0x300   : > { %3240 = vst.msk [vmem:[%s20277_s18 + $0x18] sm:$0xff] %vm3236_vm2, %v3175_v50  ;;  %13499 = vst.msk [vmem:[%s20277_s18 + $0x218] sm:$0xff] %vm3236_vm2, %v6016_v63  ;;  %v6266_v63 = vld [vmem:[#allocation2 + $0x2d9] sm:$0xff] }
 0x301   : > { %3239 = vst.msk [vmem:[%s20277_s18 + $0x10] sm:$0xff] %vm3236_vm2, %v3174_v61  ;;  %v15626_v62 = vpop.f32.mrb[4].mxu0  ;;  %13498 = vst.msk [vmem:[%s20277_s18 + $0x210] sm:$0xff] %vm3236_vm2, %v6015_v58  ;;  %v16042_v0 = vpop.f32.mrb[4].mxu1 }
 0x302   : > { %v3177_v3 = vadd.f32 %v15626_v62, %v20265_v28  ;;  %v2803_v2 = vpop.f32.mrb[5].mxu0  ;;  %16208 = vmatmul.mubr.msk.f32.gmra.mrb[110].mxu0 %vm215_vm0, %v6258_v56  ;;  %v6018_v6 = vadd.f32 %v16042_v0, %v20265_v28  ;;  %v5650_v14 = vpop.f32.mrb[5].mxu1  ;;  %16624 = vmatmul.mubr.msk.f32.gmra.mrb[110].mxu1 %vm215_vm0, %v19980_v8  ;;  %v6267_v56 = vld [vmem:[#allocation2 + $0x2e9] sm:$0xff] }
 0x303   : > { %v3176_v10 = vadd.f32 %v20265_v28, %v2803_v2  ;;  %16210 = vmatprep.mubr.msk.f32.mxu0 %vm215_vm0, %v6259_v60  ;;  %v6017_v34 = vadd.f32 %v20265_v28, %v5650_v14  ;;  %16626 = vmatprep.mubr.msk.f32.mxu1 %vm215_vm0, %v19982_v11  ;;  %v6268_v14 = vld [vmem:[#allocation2 + $0x2f1] sm:$0xff] }
 0x304   : > { %3242 = vst.msk [vmem:[%s20277_s18 + $0x28] sm:$0xff] %vm3236_vm2, %v3177_v3  ;;  %13501 = vst.msk [vmem:[%s20277_s18 + $0x228] sm:$0xff] %vm3236_vm2, %v6018_v6 }
 0x305   : > { %3241 = vst.msk [vmem:[%s20277_s18 + $0x20] sm:$0xff] %vm3236_vm2, %v3176_v10  ;;  %v15629_v38 = vpop.f32.mrb[6].mxu0  ;;  %13500 = vst.msk [vmem:[%s20277_s18 + $0x220] sm:$0xff] %vm3236_vm2, %v6017_v34  ;;  %v16045_v40 = vpop.f32.mrb[6].mxu1  ;;  %v22757_v10 = vld [vmem:[#allocation22_spill] sm:$0xff]  ;;  %v22758_v34 = vld [vmem:[#allocation23_spill] sm:$0xff] }
 0x306   : > { %v3179_v8 = vadd.f32 %v15629_v38, %v20265_v28  ;;  %v2813_v42 = vpop.f32.mrb[7].mxu0  ;;  %16211 = vmatmul.mubr.msk.f32.gmra.mrb[112].mxu0 %vm215_vm0, %v6260_v32  ;;  %v6020_v11 = vadd.f32 %v16045_v40, %v20265_v28  ;;  %v5660_v49 = vpop.f32.mrb[7].mxu1  ;;  %16627 = vmatmul.mubr.msk.f32.gmra.mrb[112].mxu1 %vm215_vm0, %v19992_v15 }
 0x307   : > { %v3178_v44 = vadd.f32 %v20265_v28, %v2813_v42  ;;  %16213 = vmatprep.mubr.msk.f32.mxu0 %vm215_vm0, %v6261_v36  ;;  %v6019_v26 = vadd.f32 %v20265_v28, %v5660_v49  ;;  %16629 = vmatprep.mubr.msk.f32.mxu1 %vm215_vm0, %v19994_v17  ;;  %v6269_v36 = vld [vmem:[#allocation2 + $0x301] sm:$0xff] }
 0x308   : > { %3244 = vst.msk [vmem:[%s20277_s18 + $0x38] sm:$0xff] %vm3236_vm2, %v3179_v8  ;;  %13503 = vst.msk [vmem:[%s20277_s18 + $0x238] sm:$0xff] %vm3236_vm2, %v6020_v11 }
 0x309   : > { %3243 = vst.msk [vmem:[%s20277_s18 + $0x30] sm:$0xff] %vm3236_vm2, %v3178_v44  ;;  %v15632_v13 = vpop.f32.mrb[8].mxu0  ;;  %13502 = vst.msk [vmem:[%s20277_s18 + $0x230] sm:$0xff] %vm3236_vm2, %v6019_v26  ;;  %v16048_v33 = vpop.f32.mrb[8].mxu1  ;;  %v6270_v26 = vld [vmem:[#allocation2 + $0x309] sm:$0xff] }
 0x30a   : > { %v3181_v15 = vadd.f32 %v15632_v13, %v20265_v28  ;;  %v2823_v35 = vpop.f32.mrb[9].mxu0  ;;  %16214 = vmatmul.mubr.msk.f32.gmra.mrb[114].mxu0 %vm215_vm0, %v6262_v1  ;;  %v6022_v17 = vadd.f32 %v16048_v33, %v20265_v28  ;;  %v5670_v47 = vpop.f32.mrb[9].mxu1  ;;  %16630 = vmatmul.mubr.msk.f32.gmra.mrb[114].mxu1 %vm215_vm0, %v20004_v23  ;;  %v22759_v1 = vld [vmem:[#allocation24_spill] sm:$0xff]  ;;  %v22760_v13 = vld [vmem:[#allocation25_spill] sm:$0xff] }
 0x30b   : > { %v3180_v55 = vadd.f32 %v20265_v28, %v2823_v35  ;;  %16216 = vmatprep.mubr.msk.f32.mxu0 %vm215_vm0, %v6263_v9  ;;  %v6021_v20 = vadd.f32 %v20265_v28, %v5670_v47  ;;  %16632 = vmatprep.mubr.msk.f32.mxu1 %vm215_vm0, %v22754_v37  ;;  %v22761_v37 = vld [vmem:[#allocation11_spill] sm:$0xff] }
 0x30c   : > { %3246 = vst.msk [vmem:[%s20277_s18 + $0x48] sm:$0xff] %vm3236_vm2, %v3181_v15  ;;  %13505 = vst.msk [vmem:[%s20277_s18 + $0x248] sm:$0xff] %vm3236_vm2, %v6022_v17  ;;  %v6271_v15 = vld [vmem:[#allocation2 + $0x319] sm:$0xff] }
 0x30d   : > { %3245 = vst.msk [vmem:[%s20277_s18 + $0x40] sm:$0xff] %vm3236_vm2, %v3180_v55  ;;  %v15635_v43 = vpop.f32.mrb[10].mxu0  ;;  %13504 = vst.msk [vmem:[%s20277_s18 + $0x240] sm:$0xff] %vm3236_vm2, %v6021_v20  ;;  %v16051_v46 = vpop.f32.mrb[10].mxu1 }
 0x30e   : > { %v3183_v23 = vadd.f32 %v15635_v43, %v20265_v28  ;;  %v2833_v48 = vpop.f32.mrb[11].mxu0  ;;  %16217 = vmatmul.mubr.msk.f32.gmra.mrb[116].mxu0 %vm215_vm0, %v6264_v5  ;;  %v6024_v41 = vadd.f32 %v16051_v46, %v20265_v28  ;;  %v5680_v24 = vpop.f32.mrb[11].mxu1  ;;  %16633 = vmatmul.mubr.msk.f32.gmra.mrb[116].mxu1 %vm215_vm0, %v22755_v52  ;;  %v6273_v46 = vld [vmem:[#allocation2 + $0x331] sm:$0xff] }
 0x30f   : > { %v3182_v50 = vadd.f32 %v20265_v28, %v2833_v48  ;;  %16219 = vmatprep.mubr.msk.f32.mxu0 %vm215_vm0, %v6265_v59  ;;  %v6023_v61 = vadd.f32 %v20265_v28, %v5680_v24  ;;  %16635 = vmatprep.mubr.msk.f32.mxu1 %vm215_vm0, %v22756_v54  ;;  %v6272_v59 = vld [vmem:[#allocation2 + $0x321] sm:$0xff]  ;;  %v22763_v54 = vld [vmem:[#allocation13_spill] sm:$0xff] }
 0x310   : > { %3248 = vst.msk [vmem:[%s20277_s18 + $0x58] sm:$0xff] %vm3236_vm2, %v3183_v23  ;;  %13507 = vst.msk [vmem:[%s20277_s18 + $0x258] sm:$0xff] %vm3236_vm2, %v6024_v41  ;;  %v22762_v23 = vld [vmem:[#allocation12_spill] sm:$0xff] }
 0x311   : > { %3247 = vst.msk [vmem:[%s20277_s18 + $0x50] sm:$0xff] %vm3236_vm2, %v3182_v50  ;;  %v15638_v58 = vpop.f32.mrb[12].mxu0  ;;  %13506 = vst.msk [vmem:[%s20277_s18 + $0x250] sm:$0xff] %vm3236_vm2, %v6023_v61  ;;  %v16054_v62 = vpop.f32.mrb[12].mxu1 }
 0x312   : > { %v3185_v60 = vadd.f32 %v15638_v58, %v20265_v28  ;;  %v2843_v3 = vpop.f32.mrb[13].mxu0  ;;  %16220 = vmatmul.mubr.msk.f32.gmra.mrb[118].mxu0 %vm215_vm0, %v6266_v63  ;;  %v6026_v0 = vadd.f32 %v16054_v62, %v20265_v28  ;;  %v5690_v6 = vpop.f32.mrb[13].mxu1  ;;  %16636 = vmatmul.mubr.msk.f32.gmra.mrb[118].mxu1 %vm215_vm0, %v22757_v10  ;;  %v6142_v62 = vld [vmem:[#allocation2 + $0x18] sm:$0xff]  ;;  %v7502_v10 = vld [vmem:[#allocation5 + $0x150] sm:$0xff] }
 0x313   : > { %v3184_v2 = vadd.f32 %v20265_v28, %v2843_v3  ;;  %16222 = vmatprep.mubr.msk.f32.mxu0 %vm215_vm0, %v6267_v56  ;;  %v6025_v32 = vadd.f32 %v20265_v28, %v5690_v6  ;;  %16638 = vmatprep.mubr.msk.f32.mxu1 %vm215_vm0, %v22758_v34  ;;  %v6274_v56 = vld [vmem:[#allocation2 + $0x339] sm:$0xff] }
 0x314   : > { %3250 = vst.msk [vmem:[%s20277_s18 + $0x68] sm:$0xff] %vm3236_vm2, %v3185_v60  ;;  %13509 = vst.msk [vmem:[%s20277_s18 + $0x268] sm:$0xff] %vm3236_vm2, %v6026_v0  ;;  %v22764_v60 = vld [vmem:[#allocation14_spill] sm:$0xff] }
 0x315   : > { %3249 = vst.msk [vmem:[%s20277_s18 + $0x60] sm:$0xff] %vm3236_vm2, %v3184_v2  ;;  %v15641_v38 = vpop.f32.mrb[14].mxu0  ;;  %13508 = vst.msk [vmem:[%s20277_s18 + $0x260] sm:$0xff] %vm3236_vm2, %v6025_v32  ;;  %v16057_v40 = vpop.f32.mrb[14].mxu1 }
 0x316   : > { %v3187_v8 = vadd.f32 %v15641_v38, %v20265_v28  ;;  %v2853_v42 = vpop.f32.mrb[15].mxu0  ;;  %16223 = vmatmul.mubr.msk.f32.gmra.mrb[120].mxu0 %vm215_vm0, %v6268_v14  ;;  %v6028_v11 = vadd.f32 %v16057_v40, %v20265_v28  ;;  %v5700_v49 = vpop.f32.mrb[15].mxu1  ;;  %16639 = vmatmul.mubr.msk.f32.gmra.mrb[120].mxu1 %vm215_vm0, %v22759_v1  ;;  %v7503_v14 = vld [vmem:[#allocation5 + $0x158] sm:$0xff]  ;;  %v6143_v38 = vld [vmem:[#allocation2 + $0x20] sm:$0xff] }
 0x317   : > { %v3186_v44 = vadd.f32 %v20265_v28, %v2853_v42  ;;  %16225 = vmatprep.mubr.msk.f32.mxu0 %vm215_vm0, %v6269_v36  ;;  %v6027_v9 = vadd.f32 %v20265_v28, %v5700_v49  ;;  %16641 = vmatprep.mubr.msk.f32.mxu1 %vm215_vm0, %v22760_v13  ;;  %v10344_v40 = vld [vmem:[#allocation5 + $0x1d8] sm:$0xff]  ;;  %v20468_v49 = vld [vmem:[#allocation2 + $0x30] sm:$0xff] }
 0x318   : > { %3252 = vst.msk [vmem:[%s20277_s18 + $0x78] sm:$0xff] %vm3236_vm2, %v3187_v8  ;;  %13511 = vst.msk [vmem:[%s20277_s18 + $0x278] sm:$0xff] %vm3236_vm2, %v6028_v11  ;;  %v10343_v8 = vld [vmem:[#allocation5 + $0x1d0] sm:$0xff]  ;;  %v22765_v11 = vld [vmem:[#allocation15_spill] sm:$0xff] }
 0x319   : > { %3251 = vst.msk [vmem:[%s20277_s18 + $0x70] sm:$0xff] %vm3236_vm2, %v3186_v44  ;;  %v15644_v33 = vpop.f32.mrb[16].mxu0  ;;  %13510 = vst.msk [vmem:[%s20277_s18 + $0x270] sm:$0xff] %vm3236_vm2, %v6027_v9  ;;  %v16060_v17 = vpop.f32.mrb[16].mxu1  ;;  %v17078_v13 = vpack.c.bf16 %v10344_v40, %v10343_v8 }
 0x31a   : > { %v3189_v35 = vadd.f32 %v15644_v33, %v20265_v28  ;;  %v2863_v55 = vpop.f32.mrb[17].mxu0  ;;  %16226 = vmatmul.mubr.msk.f32.gmra.mrb[122].mxu0 %vm215_vm0, %v6270_v26  ;;  %v6030_v47 = vadd.f32 %v16060_v17, %v20265_v28  ;;  %v5710_v20 = vpop.f32.mrb[17].mxu1  ;;  %16642 = vmatmul.mubr.msk.f32.gmra.mrb[122].mxu1 %vm215_vm0, %v22761_v37  ;;  %v8211_v33 = vld [vmem:[#allocation5 + $0x168] sm:$0xff] }
 0x31b   : > { %v3188_v5 = vadd.f32 %v20265_v28, %v2863_v55  ;;  %16228 = vmatprep.mubr.msk.f32.mxu0 %vm215_vm0, %v6271_v15  ;;  %v6029_v43 = vadd.f32 %v20265_v28, %v5710_v20  ;;  %16644 = vmatprep.mubr.msk.f32.mxu1 %vm215_vm0, %v22762_v23  ;;  %v8210_v15 = vld [vmem:[#allocation5 + $0x160] sm:$0xff]  ;;  %v11052_v20 = vld [vmem:[#allocation5 + $0x1e8] sm:$0xff] }
 0x31c   : > { %3254 = vst.msk [vmem:[%s20277_s18 + $0x88] sm:$0xff] %vm3236_vm2, %v3189_v35  ;;  %13513 = vst.msk [vmem:[%s20277_s18 + $0x288] sm:$0xff] %vm3236_vm2, %v6030_v47  ;;  %v20479_v47 = vld [vmem:[#allocation2 + $0x38] sm:$0xff] }
 0x31d   : > { %3253 = vst.msk [vmem:[%s20277_s18 + $0x80] sm:$0xff] %vm3236_vm2, %v3188_v5  ;;  %v15647_v48 = vpop.f32.mrb[18].mxu0  ;;  %13512 = vst.msk [vmem:[%s20277_s18 + $0x280] sm:$0xff] %vm3236_vm2, %v6029_v43  ;;  %v16063_v50 = vpop.f32.mrb[18].mxu1  ;;  %v11051_v5 = vld [vmem:[#allocation5 + $0x1e0] sm:$0xff] }
 0x31e   : > { %v3191_v41 = vadd.f32 %v15647_v48, %v20265_v28  ;;  %v2873_v24 = vpop.f32.mrb[19].mxu0  ;;  %16229 = vmatmul.mubr.msk.f32.gmra.mrb[124].mxu0 %vm215_vm0, %v6272_v59  ;;  %v6032_v52 = vadd.f32 %v16063_v50, %v20265_v28  ;;  %v5720_v61 = vpop.f32.mrb[19].mxu1  ;;  %16645 = vmatmul.mubr.msk.f32.gmra.mrb[124].mxu1 %vm215_vm0, %v22763_v54  ;;  %v20487_v59 = vld [vmem:[#allocation2 + $0x48] sm:$0xff]  ;;  %v20510_v50 = vld [vmem:[#allocation2 + $0x50] sm:$0xff] }
 0x31f   : > { %v3190_v63 = vadd.f32 %v20265_v28, %v2873_v24  ;;  %16231 = vmatprep.mubr.msk.f32.mxu0 %vm215_vm0, %v6273_v46  ;;  %v6031_v58 = vadd.f32 %v20265_v28, %v5720_v61  ;;  %16647 = vmatprep.mubr.msk.f32.mxu1 %vm215_vm0, %v22764_v60  ;;  %v20502_v46 = vpack.c.bf16 %v11052_v20, %v11051_v5  ;;  %v20536_v60 = vld [vmem:[#allocation2 + $0x68] sm:$0xff] }
 0x320   : > { %3256 = vst.msk [vmem:[%s20277_s18 + $0x98] sm:$0xff] %vm3236_vm2, %v3191_v41  ;;  %13515 = vst.msk [vmem:[%s20277_s18 + $0x298] sm:$0xff] %vm3236_vm2, %v6032_v52  ;;  %v20517_v52 = vld [vmem:[#allocation2 + $0x60] sm:$0xff] }
 0x321   : > { %3255 = vst.msk [vmem:[%s20277_s18 + $0x90] sm:$0xff] %vm3236_vm2, %v3190_v63  ;;  %v15650_v3 = vpop.f32.mrb[20].mxu0  ;;  %13514 = vst.msk [vmem:[%s20277_s18 + $0x290] sm:$0xff] %vm3236_vm2, %v6031_v58  ;;  %v16066_v2 = vpop.f32.mrb[20].mxu1 }
 0x322   : > { %v3193_v0 = vadd.f32 %v15650_v3, %v20265_v28  ;;  %v2883_v6 = vpop.f32.mrb[21].mxu0  ;;  %16232 = vmatmul.mubr.msk.f32.gmra.mrb[126].mxu0 %vm215_vm0, %v6274_v56  ;;  %v6034_v32 = vadd.f32 %v16066_v2, %v20265_v28  ;;  %v5730_v36 = vpop.f32.mrb[21].mxu1  ;;  %16648 = vmatmul.mubr.msk.f32.gmra.mrb[126].mxu1 %vm215_vm0, %v20076_v45  ;;  %v17046_v45 = vpack.c.bf16 %v7503_v14, %v7502_v10  ;;  %v20543_v3 = vld [vmem:[#allocation2 + $0x78] sm:$0xff] }
 0x323   : > { %v3192_v34 = vadd.f32 %v20265_v28, %v2883_v6  ;;  %16242 = vmatprep.mubr.msk.f32.mxu0 %vm215_vm0, %v6142_v62  ;;  %v6033_v42 = vadd.f32 %v20265_v28, %v5730_v36  ;;  %16658 = vmatprep.mubr.msk.f32.mxu1 %vm215_vm0, %v22765_v11  ;;  %v20567_v36 = vld [vmem:[#allocation2 + $0x90] sm:$0xff] }
 0x324   : > { %3258 = vst.msk [vmem:[%s20277_s18 + $0xa8] sm:$0xff] %vm3236_vm2, %v3193_v0  ;;  %13517 = vst.msk [vmem:[%s20277_s18 + $0x2a8] sm:$0xff] %vm3236_vm2, %v6034_v32  ;;  %v20560_v32 = vld [vmem:[#allocation2 + $0x80] sm:$0xff] }
 0x325   : > { %3257 = vst.msk [vmem:[%s20277_s18 + $0xa0] sm:$0xff] %vm3236_vm2, %v3192_v34  ;;  %v15653_v44 = vpop.f32.mrb[22].mxu0  ;;  %13516 = vst.msk [vmem:[%s20277_s18 + $0x2a0] sm:$0xff] %vm3236_vm2, %v6033_v42  ;;  %v16069_v26 = vpop.f32.mrb[22].mxu1 }
 0x326   : > { %v3195_v1 = vadd.f32 %v15653_v44, %v20265_v28  ;;  %v2893_v9 = vpop.f32.mrb[23].mxu0  ;;  %16243 = vmatmul.mubr.msk.f32.vlgmr.msra.gmra.mrb[64].mxu0 %vm215_vm0, %v6143_v38  ;;  %v6036_v35 = vadd.f32 %v16069_v26, %v20265_v28  ;;  %v5740_v55 = vpop.f32.mrb[23].mxu1  ;;  %16659 = vmatmul.mubr.msk.f32.vlgmr.msra.gmra.mrb[64].mxu1 %vm215_vm0, %v20086_v51  ;;  %v20584_v44 = vld [vmem:[#allocation2 + $0x98] sm:$0xff] }
 0x327   : > { %v3194_v17 = vadd.f32 %v20265_v28, %v2893_v9  ;;  %17045 = vmatpush3.bf16.msra.mxu0 %v20114_v18  ;;  %v6035_v37 = vadd.f32 %v20265_v28, %v5740_v55  ;;  %17077 = vmatpush3.bf16.msra.mxu1 %v20120_v19  ;;  %v20495_v18 = vpack.c.bf16 %v8211_v33, %v8210_v15  ;;  %v20615_v55 = vld [vmem:[#allocation2 + $0xc0] sm:$0xff] }
 0x328   : > { %3260 = vst.msk [vmem:[%s20277_s18 + $0xb8] sm:$0xff] %vm3236_vm2, %v3195_v1  ;;  %16245 = vmatprep.mubr.msk.f32.mxu0 %vm215_vm0, %v20468_v49  ;;  %13519 = vst.msk [vmem:[%s20277_s18 + $0x2b8] sm:$0xff] %vm3236_vm2, %v6036_v35  ;;  %16661 = vmatprep.mubr.msk.f32.mxu1 %vm215_vm0, %v20090_v27  ;;  %v20591_v1 = vld [vmem:[#allocation2 + $0xa8] sm:$0xff]  ;;  %v20608_v35 = vld [vmem:[#allocation2 + $0xb0] sm:$0xff] }
 0x329   : > { %3259 = vst.msk [vmem:[%s20277_s18 + $0xb0] sm:$0xff] %vm3236_vm2, %v3194_v17  ;;  %v15656_v51 = vpop.f32.mrb[24].mxu0  ;;  %17047 = vmatprep.subr.bf16.mxu0 %v17046_v45  ;;  %13518 = vst.msk [vmem:[%s20277_s18 + $0x2b0] sm:$0xff] %vm3236_vm2, %v6035_v37  ;;  %v16072_v43 = vpop.f32.mrb[24].mxu1  ;;  %17079 = vmatprep.subr.bf16.mxu1 %v17078_v13 }
 0x32a   : > { %v3197_v19 = vadd.f32 %v15656_v51, %v20265_v28  ;;  %v2903_v23 = vpop.f32.mrb[25].mxu0  ;;  %16246 = vmatmul.mubr.msk.f32.gmra.mrb[66].mxu0 %vm215_vm0, %v20479_v47  ;;  %v6038_v27 = vadd.f32 %v16072_v43, %v20265_v28  ;;  %v5750_v41 = vpop.f32.mrb[25].mxu1  ;;  %16662 = vmatmul.mubr.msk.f32.gmra.mrb[66].mxu1 %vm215_vm0, %v20097_v39  ;;  %v20632_v43 = vld [vmem:[#allocation2 + $0xc8] sm:$0xff] }
 0x32b   : > { %v3196_v48 = vadd.f32 %v20265_v28, %v2903_v23  ;;  %16248 = vmatprep.mubr.msk.f32.mxu0 %vm215_vm0, %v20487_v59  ;;  %v6037_v24 = vadd.f32 %v20265_v28, %v5750_v41  ;;  %16664 = vmatprep.mubr.msk.f32.mxu1 %vm215_vm0, %v20102_v25 }
 0x32c   : > { %3262 = vst.msk [vmem:[%s20277_s18 + $0xc8] sm:$0xff] %vm3236_vm2, %v3197_v19  ;;  %17049 = vmatpush3.bf16.msra.mxu0 %v17046_v45  ;;  %13521 = vst.msk [vmem:[%s20277_s18 + $0x2c8] sm:$0xff] %vm3236_vm2, %v6038_v27  ;;  %17081 = vmatpush3.bf16.msra.mxu1 %v17078_v13  ;;  %v20639_v27 = vld [vmem:[#allocation2 + $0xd8] sm:$0xff] }
 0x32d   : > { %3261 = vst.msk [vmem:[%s20277_s18 + $0xc0] sm:$0xff] %vm3236_vm2, %v3196_v48  ;;  %v15659_v39 = vpop.f32.mrb[26].mxu0  ;;  %17051 = vmatprep.subr.bf16.mxu0 %v20495_v18  ;;  %13520 = vst.msk [vmem:[%s20277_s18 + $0x2c0] sm:$0xff] %vm3236_vm2, %v6037_v24  ;;  %v16075_v61 = vpop.f32.mrb[26].mxu1  ;;  %17083 = vmatprep.subr.bf16.mxu1 %v20502_v46  ;;  %v20645_v48 = vld [vmem:[#allocation2 + $0xd9] sm:$0xff] }
 0x32e   : > { %v3199_v63 = vadd.f32 %v15659_v39, %v20265_v28  ;;  %v2913_v25 = vpop.f32.mrb[27].mxu0  ;;  %16249 = vmatmul.mubr.msk.f32.gmra.mrb[68].mxu0 %vm215_vm0, %v20510_v50  ;;  %v6040_v54 = vadd.f32 %v16075_v61, %v20265_v28  ;;  %v5760_v58 = vpop.f32.mrb[27].mxu1  ;;  %16665 = vmatmul.mubr.msk.f32.gmra.mrb[68].mxu1 %vm215_vm0, %v20112_v53 }
 0x32f   : > { %v3198_v56 = vadd.f32 %v20265_v28, %v2913_v25  ;;  %16251 = vmatprep.mubr.msk.f32.mxu0 %vm215_vm0, %v20517_v52  ;;  %v6039_v62 = vadd.f32 %v20265_v28, %v5760_v58  ;;  %16667 = vmatprep.mubr.msk.f32.mxu1 %vm215_vm0, %v20118_v16  ;;  %v20658_v25 = vld [vmem:[#allocation2 + $0xe0] sm:$0xff]  ;;  %v20667_v58 = vld [vmem:[#allocation2 + $0xf0] sm:$0xff] }
 0x330   : > { %3264 = vst.msk [vmem:[%s20277_s18 + $0xd8] sm:$0xff] %vm3236_vm2, %v3199_v63  ;;  %13523 = vst.msk [vmem:[%s20277_s18 + $0x2d8] sm:$0xff] %vm3236_vm2, %v6040_v54 }
 0x331   : > { %3263 = vst.msk [vmem:[%s20277_s18 + $0xd0] sm:$0xff] %vm3236_vm2, %v3198_v56  ;;  %v15662_v53 = vpop.f32.mrb[28].mxu0  ;;  %13522 = vst.msk [vmem:[%s20277_s18 + $0x2d0] sm:$0xff] %vm3236_vm2, %v6039_v62  ;;  %v16078_v2 = vpop.f32.mrb[28].mxu1  ;;  %v20665_v56 = vld [vmem:[#allocation2 + $0xe1] sm:$0xff]  ;;  %v20673_v62 = vld [vmem:[#allocation2 + $0xf1] sm:$0xff] }
 0x332   : > { %v3201_v0 = vadd.f32 %v15662_v53, %v20265_v28  ;;  %v2923_v6 = vpop.f32.mrb[29].mxu0  ;;  %16252 = vmatmul.mubr.msk.f32.gmra.mrb[70].mxu0 %vm215_vm0, %v20536_v60  ;;  %v6042_v16 = vadd.f32 %v16078_v2, %v20265_v28  ;;  %v5770_v14 = vpop.f32.mrb[29].mxu1  ;;  %16668 = vmatmul.mubr.msk.f32.gmra.mrb[70].mxu1 %vm215_vm0, %v20130_v57 }
 0x333   : > { %v3200_v10 = vadd.f32 %v20265_v28, %v2923_v6  ;;  %16254 = vmatprep.mubr.msk.f32.mxu0 %vm215_vm0, %v20543_v3  ;;  %v6041_v34 = vadd.f32 %v20265_v28, %v5770_v14  ;;  %16670 = vmatprep.mubr.msk.f32.mxu1 %vm215_vm0, %v20134_v21  ;;  %v20686_v14 = vld [vmem:[#allocation2 + $0xf8] sm:$0xff] }
 0x334   : > { %3266 = vst.msk [vmem:[%s20277_s18 + $0xe8] sm:$0xff] %vm3236_vm2, %v3201_v0  ;;  %13525 = vst.msk [vmem:[%s20277_s18 + $0x2e8] sm:$0xff] %vm3236_vm2, %v6042_v16 }
 0x335   : > { %3265 = vst.msk [vmem:[%s20277_s18 + $0xe0] sm:$0xff] %vm3236_vm2, %v3200_v10  ;;  %v15665_v57 = vpop.f32.mrb[30].mxu0  ;;  %13524 = vst.msk [vmem:[%s20277_s18 + $0x2e0] sm:$0xff] %vm3236_vm2, %v6041_v34  ;;  %v16081_v8 = vpop.f32.mrb[30].mxu1 }
 0x336   : > { %v3203_v38 = vadd.f32 %v15665_v57, %v20265_v28  ;;  %v2933_v40 = vpop.f32.mrb[31].mxu0  ;;  %16255 = vmatmul.mubr.msk.f32.gmra.mrb[72].mxu0 %vm215_vm0, %v20560_v32  ;;  %v6044_v21 = vadd.f32 %v16081_v8, %v20265_v28  ;;  %v5780_v11 = vpop.f32.mrb[31].mxu1  ;;  %16671 = vmatmul.mubr.msk.f32.gmra.mrb[72].mxu1 %vm215_vm0, %v20142_v30  ;;  %v20693_v57 = vld [vmem:[#allocation2 + $0xf9] sm:$0xff] }
 0x337   : > { %v3202_v42 = vadd.f32 %v20265_v28, %v2933_v40  ;;  %16257 = vmatprep.mubr.msk.f32.mxu0 %vm215_vm0, %v20567_v36  ;;  %v6043_v45 = vadd.f32 %v20265_v28, %v5780_v11  ;;  %16673 = vmatprep.mubr.msk.f32.mxu1 %vm215_vm0, %v20146_v31  ;;  %v20701_v40 = vld [vmem:[#allocation2 + $0x109] sm:$0xff] }
 0x338   : > { %3268 = vst.msk [vmem:[%s20277_s18 + $0xf8] sm:$0xff] %vm3236_vm2, %v3203_v38  ;;  %13527 = vst.msk [vmem:[%s20277_s18 + $0x2f8] sm:$0xff] %vm3236_vm2, %v6044_v21  ;;  %v20695_v38 = vld [vmem:[#allocation2 + $0x108] sm:$0xff] }
 0x339   : > { %3267 = vst.msk [vmem:[%s20277_s18 + $0xf0] sm:$0xff] %vm3236_vm2, %v3202_v42  ;;  %v15668_v30 = vpop.f32.mrb[32].mxu0  ;;  %13526 = vst.msk [vmem:[%s20277_s18 + $0x2f0] sm:$0xff] %vm3236_vm2, %v6043_v45  ;;  %v16084_v9 = vpop.f32.mrb[32].mxu1 }
 0x33a   : > { %v3205_v26 = vadd.f32 %v15668_v30, %v20265_v28  ;;  %v2943_v13 = vpop.f32.mrb[33].mxu0  ;;  %16258 = vmatmul.mubr.msk.f32.gmra.mrb[74].mxu0 %vm215_vm0, %v20584_v44  ;;  %v6046_v31 = vadd.f32 %v16084_v9, %v20265_v28  ;;  %v5790_v33 = vpop.f32.mrb[33].mxu1  ;;  %16674 = vmatmul.mubr.msk.f32.gmra.mrb[74].mxu1 %vm215_vm0, %v20154_v29  ;;  %v20714_v9 = vld [vmem:[#allocation2 + $0x110] sm:$0xff] }
 0x33b   : > { %v3204_v15 = vadd.f32 %v20265_v28, %v2943_v13  ;;  %16260 = vmatprep.mubr.msk.f32.mxu0 %vm215_vm0, %v20591_v1  ;;  %v6045_v17 = vadd.f32 %v20265_v28, %v5790_v33  ;;  %16676 = vmatprep.mubr.msk.f32.mxu1 %vm215_vm0, %v20158_v4 }
 0x33c   : > { %3270 = vst.msk [vmem:[%s20277_s18 + $0x108] sm:$0xff] %vm3236_vm2, %v3205_v26  ;;  %13529 = vst.msk [vmem:[%s20277_s18 + $0x308] sm:$0xff] %vm3236_vm2, %v6046_v31  ;;  %v20721_v31 = vld [vmem:[#allocation2 + $0x111] sm:$0xff] }
 0x33d   : > { %3269 = vst.msk [vmem:[%s20277_s18 + $0x100] sm:$0xff] %vm3236_vm2, %v3204_v15  ;;  %v15671_v29 = vpop.f32.mrb[34].mxu0  ;;  %13528 = vst.msk [vmem:[%s20277_s18 + $0x300] sm:$0xff] %vm3236_vm2, %v6045_v17  ;;  %v16087_v20 = vpop.f32.mrb[34].mxu1  ;;  %v20723_v15 = vld [vmem:[#allocation2 + $0x120] sm:$0xff] }
 0x33e   : > { %v3207_v5 = vadd.f32 %v15671_v29, %v20265_v28  ;;  %v2953_v37 = vpop.f32.mrb[35].mxu0  ;;  %16261 = vmatmul.mubr.msk.f32.gmra.mrb[76].mxu0 %vm215_vm0, %v20608_v35  ;;  %v6048_v4 = vadd.f32 %v16087_v20, %v20265_v28  ;;  %v5800_v19 = vpop.f32.mrb[35].mxu1  ;;  %16677 = vmatmul.mubr.msk.f32.gmra.mrb[76].mxu1 %vm215_vm0, %v20166_v7  ;;  %v20729_v17 = vld [vmem:[#allocation2 + $0x121] sm:$0xff] }
 0x33f   : > { %v3206_v51 = vadd.f32 %v20265_v28, %v2953_v37  ;;  %16263 = vmatprep.mubr.msk.f32.mxu0 %vm215_vm0, %v20615_v55  ;;  %v6047_v23 = vadd.f32 %v20265_v28, %v5800_v19  ;;  %16679 = vmatprep.mubr.msk.f32.mxu1 %vm215_vm0, %v20170_v12  ;;  %v20742_v19 = vld [vmem:[#allocation2 + $0x128] sm:$0xff] }
 0x340   : > { %3272 = vst.msk [vmem:[%s20277_s18 + $0x118] sm:$0xff] %vm3236_vm2, %v3207_v5  ;;  %13531 = vst.msk [vmem:[%s20277_s18 + $0x318] sm:$0xff] %vm3236_vm2, %v6048_v4 }
 0x341   : > { %3271 = vst.msk [vmem:[%s20277_s18 + $0x110] sm:$0xff] %vm3236_vm2, %v3206_v51  ;;  %v15674_v7 = vpop.f32.mrb[36].mxu0  ;;  %13530 = vst.msk [vmem:[%s20277_s18 + $0x310] sm:$0xff] %vm3236_vm2, %v6047_v23  ;;  %v16090_v24 = vpop.f32.mrb[36].mxu1 }
 0x342   : > { %v3209_v41 = vadd.f32 %v15674_v7, %v20265_v28  ;;  %v2963_v39 = vpop.f32.mrb[37].mxu0  ;;  %16264 = vmatmul.mubr.msk.f32.gmra.mrb[78].mxu0 %vm215_vm0, %v20632_v43  ;;  %v6050_v12 = vadd.f32 %v16090_v24, %v20265_v28  ;;  %v5810_v61 = vpop.f32.mrb[37].mxu1  ;;  %16680 = vmatmul.mubr.msk.f32.gmra.mrb[78].mxu1 %vm215_vm0, %v20178_v22  ;;  %v20749_v7 = vld [vmem:[#allocation2 + $0x129] sm:$0xff] }
 0x343   : > { %v3208_v63 = vadd.f32 %v20265_v28, %v2963_v39  ;;  %16266 = vmatprep.mubr.msk.f32.mxu0 %vm215_vm0, %v20639_v27  ;;  %v6049_v54 = vadd.f32 %v20265_v28, %v5810_v61  ;;  %16682 = vmatprep.mubr.msk.f32.mxu1 %vm215_vm0, %v20645_v48  ;;  %v20757_v39 = vld [vmem:[#allocation2 + $0x139] sm:$0xff] }
 0x344   : > { %3274 = vst.msk [vmem:[%s20277_s18 + $0x128] sm:$0xff] %vm3236_vm2, %v3209_v41  ;;  %13533 = vst.msk [vmem:[%s20277_s18 + $0x328] sm:$0xff] %vm3236_vm2, %v6050_v12  ;;  %v20751_v41 = vld [vmem:[#allocation2 + $0x138] sm:$0xff] }
 0x345   : > { %3273 = vst.msk [vmem:[%s20277_s18 + $0x120] sm:$0xff] %vm3236_vm2, %v3208_v63  ;;  %v15677_v22 = vpop.f32.mrb[38].mxu0  ;;  %13532 = vst.msk [vmem:[%s20277_s18 + $0x320] sm:$0xff] %vm3236_vm2, %v6049_v54  ;;  %v16093_v0 = vpop.f32.mrb[38].mxu1 }
 0x346   : > { %v3211_v53 = vadd.f32 %v15677_v22, %v20265_v28  ;;  %v2973_v2 = vpop.f32.mrb[39].mxu0  ;;  %16267 = vmatmul.mubr.msk.f32.gmra.mrb[80].mxu0 %vm215_vm0, %v20658_v25  ;;  %v6052_v6 = vadd.f32 %v16093_v0, %v20265_v28  ;;  %v5820_v10 = vpop.f32.mrb[39].mxu1  ;;  %16683 = vmatmul.mubr.msk.f32.gmra.mrb[80].mxu1 %vm215_vm0, %v20665_v56  ;;  %v20770_v0 = vld [vmem:[#allocation2 + $0x140] sm:$0xff] }
 0x347   : > { %v3210_v16 = vadd.f32 %v20265_v28, %v2973_v2  ;;  %16269 = vmatprep.mubr.msk.f32.mxu0 %vm215_vm0, %v20667_v58  ;;  %v6051_v34 = vadd.f32 %v20265_v28, %v5820_v10  ;;  %16685 = vmatprep.mubr.msk.f32.mxu1 %vm215_vm0, %v20673_v62 }
 0x348   : > { %3276 = vst.msk [vmem:[%s20277_s18 + $0x138] sm:$0xff] %vm3236_vm2, %v3211_v53  ;;  %13535 = vst.msk [vmem:[%s20277_s18 + $0x338] sm:$0xff] %vm3236_vm2, %v6052_v6  ;;  %v20777_v6 = vld [vmem:[#allocation2 + $0x141] sm:$0xff] }
 0x349   : > { %3275 = vst.msk [vmem:[%s20277_s18 + $0x130] sm:$0xff] %vm3236_vm2, %v3210_v16  ;;  %v15680_v8 = vpop.f32.mrb[40].mxu0  ;;  %13534 = vst.msk [vmem:[%s20277_s18 + $0x330] sm:$0xff] %vm3236_vm2, %v6051_v34  ;;  %v16096_v42 = vpop.f32.mrb[40].mxu1  ;;  %v20779_v16 = vld [vmem:[#allocation2 + $0x150] sm:$0xff] }
 0x34a   : > { %v3213_v21 = vadd.f32 %v15680_v8, %v20265_v28  ;;  %v2983_v11 = vpop.f32.mrb[41].mxu0  ;;  %16270 = vmatmul.mubr.msk.f32.gmra.mrb[82].mxu0 %vm215_vm0, %v20686_v14  ;;  %v6054_v45 = vadd.f32 %v16096_v42, %v20265_v28  ;;  %v5830_v26 = vpop.f32.mrb[41].mxu1  ;;  %16686 = vmatmul.mubr.msk.f32.gmra.mrb[82].mxu1 %vm215_vm0, %v20693_v57  ;;  %v20785_v34 = vld [vmem:[#allocation2 + $0x151] sm:$0xff] }
 0x34b   : > { %v3212_v30 = vadd.f32 %v20265_v28, %v2983_v11  ;;  %16272 = vmatprep.mubr.msk.f32.mxu0 %vm215_vm0, %v20695_v38  ;;  %v6053_v13 = vadd.f32 %v20265_v28, %v5830_v26  ;;  %16688 = vmatprep.mubr.msk.f32.mxu1 %vm215_vm0, %v20701_v40  ;;  %v20798_v26 = vld [vmem:[#allocation2 + $0x158] sm:$0xff] }
 0x34c   : > { %3278 = vst.msk [vmem:[%s20277_s18 + $0x148] sm:$0xff] %vm3236_vm2, %v3213_v21  ;;  %13537 = vst.msk [vmem:[%s20277_s18 + $0x348] sm:$0xff] %vm3236_vm2, %v6054_v45 }
 0x34d   : > { %3277 = vst.msk [vmem:[%s20277_s18 + $0x140] sm:$0xff] %vm3236_vm2, %v3212_v30  ;;  %v15683_v33 = vpop.f32.mrb[42].mxu0  ;;  %13536 = vst.msk [vmem:[%s20277_s18 + $0x340] sm:$0xff] %vm3236_vm2, %v6053_v13  ;;  %v16099_v5 = vpop.f32.mrb[42].mxu1 }
 0x34e   : > { %v3215_v29 = vadd.f32 %v15683_v33, %v20265_v28  ;;  %v2993_v20 = vpop.f32.mrb[43].mxu0  ;;  %16273 = vmatmul.mubr.msk.f32.gmra.mrb[84].mxu0 %vm215_vm0, %v20714_v9  ;;  %v6056_v37 = vadd.f32 %v16099_v5, %v20265_v28  ;;  %v5840_v51 = vpop.f32.mrb[43].mxu1  ;;  %16689 = vmatmul.mubr.msk.f32.gmra.mrb[84].mxu1 %vm215_vm0, %v20721_v31  ;;  %v20805_v33 = vld [vmem:[#allocation2 + $0x159] sm:$0xff] }
 0x34f   : > { %v3214_v4 = vadd.f32 %v20265_v28, %v2993_v20  ;;  %16275 = vmatprep.mubr.msk.f32.mxu0 %vm215_vm0, %v20723_v15  ;;  %v6055_v23 = vadd.f32 %v20265_v28, %v5840_v51  ;;  %16691 = vmatprep.mubr.msk.f32.mxu1 %vm215_vm0, %v20729_v17  ;;  %v20813_v20 = vld [vmem:[#allocation2 + $0x169] sm:$0xff] }
 0x350   : > { %3280 = vst.msk [vmem:[%s20277_s18 + $0x158] sm:$0xff] %vm3236_vm2, %v3215_v29  ;;  %13539 = vst.msk [vmem:[%s20277_s18 + $0x358] sm:$0xff] %vm3236_vm2, %v6056_v37  ;;  %v20807_v29 = vld [vmem:[#allocation2 + $0x168] sm:$0xff] }
 0x351   : > { %3279 = vst.msk [vmem:[%s20277_s18 + $0x150] sm:$0xff] %vm3236_vm2, %v3214_v4  ;;  %v15686_v24 = vpop.f32.mrb[44].mxu0  ;;  %13538 = vst.msk [vmem:[%s20277_s18 + $0x350] sm:$0xff] %vm3236_vm2, %v6055_v23  ;;  %v16102_v63 = vpop.f32.mrb[44].mxu1 }
 0x352   : > { %v3217_v12 = vadd.f32 %v15686_v24, %v20265_v28  ;;  %v3003_v61 = vpop.f32.mrb[45].mxu0  ;;  %16276 = vmatmul.mubr.msk.f32.gmra.mrb[86].mxu0 %vm215_vm0, %v20742_v19  ;;  %v6058_v54 = vadd.f32 %v16102_v63, %v20265_v28  ;;  %v5850_v53 = vpop.f32.mrb[45].mxu1  ;;  %16692 = vmatmul.mubr.msk.f32.gmra.mrb[86].mxu1 %vm215_vm0, %v20749_v7  ;;  %v20826_v63 = vld [vmem:[#allocation2 + $0x170] sm:$0xff] }
 0x353   : > { %v3216_v22 = vadd.f32 %v20265_v28, %v3003_v61  ;;  %16278 = vmatprep.mubr.msk.f32.mxu0 %vm215_vm0, %v20751_v41  ;;  %v6057_v2 = vadd.f32 %v20265_v28, %v5850_v53  ;;  %16694 = vmatprep.mubr.msk.f32.mxu1 %vm215_vm0, %v20757_v39 }
 0x354   : > { %3282 = vst.msk [vmem:[%s20277_s18 + $0x168] sm:$0xff] %vm3236_vm2, %v3217_v12  ;;  %13541 = vst.msk [vmem:[%s20277_s18 + $0x368] sm:$0xff] %vm3236_vm2, %v6058_v54  ;;  %v20833_v54 = vld [vmem:[#allocation2 + $0x171] sm:$0xff] }
 0x355   : > { %3281 = vst.msk [vmem:[%s20277_s18 + $0x160] sm:$0xff] %vm3236_vm2, %v3216_v22  ;;  %v15689_v10 = vpop.f32.mrb[46].mxu0  ;;  %13540 = vst.msk [vmem:[%s20277_s18 + $0x360] sm:$0xff] %vm3236_vm2, %v6057_v2  ;;  %v16105_v21 = vpop.f32.mrb[46].mxu1  ;;  %v20835_v22 = vld [vmem:[#allocation2 + $0x180] sm:$0xff] }
 0x356   : > { %v3219_v8 = vadd.f32 %v15689_v10, %v20265_v28  ;;  %v3013_v42 = vpop.f32.mrb[47].mxu0  ;;  %16279 = vmatmul.mubr.msk.f32.gmra.mrb[88].mxu0 %vm215_vm0, %v20770_v0  ;;  %v6060_v11 = vadd.f32 %v16105_v21, %v20265_v28  ;;  %v5860_v30 = vpop.f32.mrb[47].mxu1  ;;  %16695 = vmatmul.mubr.msk.f32.gmra.mrb[88].mxu1 %vm215_vm0, %v20777_v6  ;;  %v20841_v2 = vld [vmem:[#allocation2 + $0x181] sm:$0xff] }
 0x357   : > { %v3218_v45 = vadd.f32 %v20265_v28, %v3013_v42  ;;  %16281 = vmatprep.mubr.msk.f32.mxu0 %vm215_vm0, %v20779_v16  ;;  %v6059_v13 = vadd.f32 %v20265_v28, %v5860_v30  ;;  %16697 = vmatprep.mubr.msk.f32.mxu1 %vm215_vm0, %v20785_v34  ;;  %v20854_v30 = vld [vmem:[#allocation2 + $0x188] sm:$0xff] }
 0x358   : > { %3284 = vst.msk [vmem:[%s20277_s18 + $0x178] sm:$0xff] %vm3236_vm2, %v3219_v8  ;;  %13543 = vst.msk [vmem:[%s20277_s18 + $0x378] sm:$0xff] %vm3236_vm2, %v6060_v11 }
 0x359   : > { %3283 = vst.msk [vmem:[%s20277_s18 + $0x170] sm:$0xff] %vm3236_vm2, %v3218_v45  ;;  %v15692_v5 = vpop.f32.mrb[48].mxu0  ;;  %13542 = vst.msk [vmem:[%s20277_s18 + $0x370] sm:$0xff] %vm3236_vm2, %v6059_v13  ;;  %v16108_v4 = vpop.f32.mrb[48].mxu1 }
 0x35a   : > { %v3221_v37 = vadd.f32 %v15692_v5, %v20265_v28  ;;  %v3023_v51 = vpop.f32.mrb[49].mxu0  ;;  %16282 = vmatmul.mubr.msk.f32.gmra.mrb[90].mxu0 %vm215_vm0, %v20798_v26  ;;  %v6062_v23 = vadd.f32 %v16108_v4, %v20265_v28  ;;  %v5870_v12 = vpop.f32.mrb[49].mxu1  ;;  %16698 = vmatmul.mubr.msk.f32.gmra.mrb[90].mxu1 %vm215_vm0, %v20805_v33  ;;  %v20861_v5 = vld [vmem:[#allocation2 + $0x189] sm:$0xff] }
 0x35b   : > { %v3220_v24 = vadd.f32 %v20265_v28, %v3023_v51  ;;  %16284 = vmatprep.mubr.msk.f32.mxu0 %vm215_vm0, %v20807_v29  ;;  %v6061_v61 = vadd.f32 %v20265_v28, %v5870_v12  ;;  %16700 = vmatprep.mubr.msk.f32.mxu1 %vm215_vm0, %v20813_v20  ;;  %v9016_v51 = vld [vmem:[#allocation2 + $0x1c9] sm:$0xff] }
 0x35c   : > { %3286 = vst.msk [vmem:[%s20277_s18 + $0x188] sm:$0xff] %vm3236_vm2, %v3221_v37  ;;  %13545 = vst.msk [vmem:[%s20277_s18 + $0x388] sm:$0xff] %vm3236_vm2, %v6062_v23  ;;  %v6174_v37 = vld [vmem:[#allocation2 + $0x1c8] sm:$0xff]  ;;  %v20869_v23 = vld [vmem:[#allocation7] ss:$0 sm:$0xff] }
 0x35d   : > { %3285 = vst.msk [vmem:[%s20277_s18 + $0x180] sm:$0xff] %vm3236_vm2, %v3220_v24  ;;  %v15695_v53 = vpop.f32.mrb[50].mxu0  ;;  %13544 = vst.msk [vmem:[%s20277_s18 + $0x380] sm:$0xff] %vm3236_vm2, %v6061_v61  ;;  %v16111_v8 = vpop.f32.mrb[50].mxu1 }
 0x35e   : > { %v3223_v10 = vadd.f32 %v15695_v53, %v20265_v28  ;;  %v3033_v21 = vpop.f32.mrb[51].mxu0  ;;  %16285 = vmatmul.mubr.msk.f32.gmra.mrb[92].mxu0 %vm215_vm0, %v20826_v63  ;;  %v6064_v42 = vadd.f32 %v16111_v8, %v20265_v28  ;;  %v5880_v45 = vpop.f32.mrb[51].mxu1  ;;  %16701 = vmatmul.mubr.msk.f32.gmra.mrb[92].mxu1 %vm215_vm0, %v20833_v54  ;;  %v6175_v8 = vld [vmem:[#allocation2 + $0x1d0] sm:$0xff] }
 0x35f   : > { %v3222_v11 = vadd.f32 %v20265_v28, %v3033_v21  ;;  %16287 = vmatprep.mubr.msk.f32.mxu0 %vm215_vm0, %v20835_v22  ;;  %v6063_v13 = vadd.f32 %v20265_v28, %v5880_v45  ;;  %16703 = vmatprep.mubr.msk.f32.mxu1 %vm215_vm0, %v20841_v2 }
 0x360   : > { %3288 = vst.msk [vmem:[%s20277_s18 + $0x198] sm:$0xff] %vm3236_vm2, %v3223_v10  ;;  %13547 = vst.msk [vmem:[%s20277_s18 + $0x398] sm:$0xff] %vm3236_vm2, %v6064_v42  ;;  %v9017_v42 = vld [vmem:[#allocation2 + $0x1d1] sm:$0xff] }
 0x361   : > { %3287 = vst.msk [vmem:[%s20277_s18 + $0x190] sm:$0xff] %vm3236_vm2, %v3222_v11  ;;  %v15698_v4 = vpop.f32.mrb[52].mxu0  ;;  %13546 = vst.msk [vmem:[%s20277_s18 + $0x390] sm:$0xff] %vm3236_vm2, %v6063_v13  ;;  %v16114_v24 = vpop.f32.mrb[52].mxu1  ;;  %v20883_v11 = vld [vmem:[#allocation2 + $0x1e0] sm:$0xff] }
 0x362   : > { %v3225_v28 = vadd.f32 %v20869_v23, %v15698_v4  ;;  %v3043_v12 = vpop.f32.mrb[53].mxu0  ;;  %16288 = vmatmul.mubr.msk.f32.gmra.mrb[94].mxu0 %vm215_vm0, %v20854_v30  ;;  %v6066_v61 = vadd.f32 %v20869_v23, %v16114_v24  ;;  %v5890_v10 = vpop.f32.mrb[53].mxu1  ;;  %16704 = vmatmul.mubr.msk.f32.gmra.mrb[94].mxu1 %vm215_vm0, %v20861_v5  ;;  %v20889_v13 = vld [vmem:[#allocation2 + $0x1e1] sm:$0xff] }
 0x363   : > { %v3224_v53 = vadd.f32 %v20869_v23, %v3043_v12  ;;  %16290 = vmatprep.mubr.msk.f32.mxu0 %vm215_vm0, %v6174_v37  ;;  %v6065_v21 = vadd.f32 %v20869_v23, %v5890_v10  ;;  %16706 = vmatprep.mubr.msk.f32.mxu1 %vm215_vm0, %v9016_v51  ;;  %v20907_v10 = vld [vmem:[#allocation2 + $0x1e9] sm:$0xff] }
 0x364   : > { %3290 = vst.msk [vmem:[%s20277_s18 + $0x1a8] sm:$0xff] %vm3236_vm2, %v3225_v28  ;;  %13549 = vst.msk [vmem:[%s20277_s18 + $0x3a8] sm:$0xff] %vm3236_vm2, %v6066_v61  ;;  %v20900_v61 = vld [vmem:[#allocation2 + $0x1e8] sm:$0xff] }
 0x365   : > { %3289 = vst.msk [vmem:[%s20277_s18 + $0x1a0] sm:$0xff] %vm3236_vm2, %v3224_v53  ;;  %v15701_v45 = vpop.f32.mrb[54].mxu0  ;;  %13548 = vst.msk [vmem:[%s20277_s18 + $0x3a0] sm:$0xff] %vm3236_vm2, %v6065_v21  ;;  %v16117_v4 = vpop.f32.mrb[54].mxu1 }
 0x366   : > { %v3227_v37 = vadd.f32 %v20869_v23, %v15701_v45  ;;  %v3053_v28 = vpop.f32.mrb[55].mxu0  ;;  %16291 = vmatmul.mubr.msk.f32.gmra.mrb[96].mxu0 %vm215_vm0, %v6175_v8  ;;  %v6068_v51 = vadd.f32 %v20869_v23, %v16117_v4  ;;  %v5900_v12 = vpop.f32.mrb[55].mxu1  ;;  %16707 = vmatmul.mubr.msk.f32.gmra.mrb[96].mxu1 %vm215_vm0, %v9017_v42  ;;  %22766 = vst [vmem:[#allocation16_spill] sm:$0xff] %v20907_v10  ;;  %v20909_v8 = vld [vmem:[#allocation2 + $0x1f8] sm:$0xff] }
 0x367   : > { %v3226_v24 = vadd.f32 %v20869_v23, %v3053_v28  ;;  %16293 = vmatprep.mubr.msk.f32.mxu0 %vm215_vm0, %v20883_v11  ;;  %v6067_v53 = vadd.f32 %v20869_v23, %v5900_v12  ;;  %16709 = vmatprep.mubr.msk.f32.mxu1 %vm215_vm0, %v20889_v13  ;;  %22767 = vst [vmem:[#allocation17_spill] sm:$0xff] %v20909_v8  ;;  %v20915_v42 = vld [vmem:[#allocation2 + $0x1f9] sm:$0xff] }
 0x368   : > { %3292 = vst.msk [vmem:[%s20277_s18 + $0x1b8] sm:$0xff] %vm3236_vm2, %v3227_v37  ;;  %13551 = vst.msk [vmem:[%s20277_s18 + $0x3b8] sm:$0xff] %vm3236_vm2, %v6068_v51  ;;  %v20928_v12 = vld [vmem:[#allocation2 + $0x200] sm:$0xff] }
 0x369   : > { %3291 = vst.msk [vmem:[%s20277_s18 + $0x1b0] sm:$0xff] %vm3236_vm2, %v3226_v24  ;;  %v15704_v21 = vpop.f32.mrb[56].mxu0  ;;  %22768 = vst [vmem:[#allocation18_spill] sm:$0xff] %v20915_v42  ;;  %v16120_v37 = vpop.f32.mrb[56].mxu1 }
 0x36a   : > { %13550 = vst.msk [vmem:[%s20277_s18 + $0x3b0] sm:$0xff] %vm3236_vm2, %v6067_v53  ;;  %v3229_v45 = vadd.f32 %v20869_v23, %v15704_v21  ;;  %v3063_v4 = vpop.f32.mrb[57].mxu0  ;;  %16294 = vmatmul.mubr.msk.f32.gmra.mrb[98].mxu0 %vm215_vm0, %v20900_v61  ;;  %v6070_v28 = vadd.f32 %v20869_v23, %v16120_v37  ;;  %v5910_v24 = vpop.f32.mrb[57].mxu1  ;;  %16710 = vmatmul.mubr.msk.f32.gmra.mrb[98].mxu1 %vm215_vm0, %v20907_v10  ;;  %22769 = vst [vmem:[#allocation19_spill] sm:$0xff] %v20928_v12  ;;  %v20935_v21 = vld [vmem:[#allocation2 + $0x201] sm:$0xff]  ;;  %v20937_v37 = vld [vmem:[#allocation2 + $0x210] sm:$0xff] }
 0x36b   : > { %v3228_v51 = vadd.f32 %v20869_v23, %v3063_v4  ;;  %16296 = vmatprep.mubr.msk.f32.mxu0 %vm215_vm0, %v20909_v8  ;;  %v6069_v53 = vadd.f32 %v20869_v23, %v5910_v24  ;;  %16712 = vmatprep.mubr.msk.f32.mxu1 %vm215_vm0, %v20915_v42  ;;  %22770 = vst [vmem:[#allocation20_spill] sm:$0xff] %v20935_v21  ;;  %22771 = vst [vmem:[#allocation21_spill] sm:$0xff] %v20937_v37  ;;  %v20943_v8 = vld [vmem:[#allocation2 + $0x211] sm:$0xff] }
 0x36c   : > { %3294 = vst.msk [vmem:[%s20277_s18 + $0x1c8] sm:$0xff] %vm3236_vm2, %v3229_v45  ;;  %13553 = vst.msk [vmem:[%s20277_s18 + $0x3c8] sm:$0xff] %vm3236_vm2, %v6070_v28 }
 0x36d   : > { %3293 = vst.msk [vmem:[%s20277_s18 + $0x1c0] sm:$0xff] %vm3236_vm2, %v3228_v51  ;;  %v15707_v4 = vpop.f32.mrb[58].mxu0  ;;  %22772 = vst [vmem:[#allocation22_spill] sm:$0xff] %v20943_v8  ;;  %v16123_v24 = vpop.f32.mrb[58].mxu1 }
 0x36e   : > { %13552 = vst.msk [vmem:[%s20277_s18 + $0x3c0] sm:$0xff] %vm3236_vm2, %v6069_v53  ;;  %v3231_v45 = vadd.f32 %v20869_v23, %v15707_v4  ;;  %v3073_v42 = vpop.f32.mrb[59].mxu0  ;;  %16297 = vmatmul.mubr.msk.f32.gmra.mrb[100].mxu0 %vm215_vm0, %v20928_v12  ;;  %v6072_v10 = vadd.f32 %v20869_v23, %v16123_v24  ;;  %v5920_v51 = vpop.f32.mrb[59].mxu1  ;;  %16713 = vmatmul.mubr.msk.f32.gmra.mrb[100].mxu1 %vm215_vm0, %v20935_v21  ;;  %v20956_v53 = vld [vmem:[#allocation2 + $0x218] sm:$0xff]  ;;  %v20965_v24 = vld [vmem:[#allocation2 + $0x228] sm:$0xff] }
 0x36f   : > { %v3230_v28 = vadd.f32 %v20869_v23, %v3073_v42  ;;  %16299 = vmatprep.mubr.msk.f32.mxu0 %vm215_vm0, %v20937_v37  ;;  %22773 = vst [vmem:[#allocation23_spill] sm:$0xff] %v20956_v53  ;;  %v6071_v4 = vadd.f32 %v20869_v23, %v5920_v51  ;;  %16715 = vmatprep.mubr.msk.f32.mxu1 %vm215_vm0, %v20943_v8  ;;  %v20963_v12 = vld [vmem:[#allocation2 + $0x219] sm:$0xff]  ;;  %22775 = vst [vmem:[#allocation25_spill] sm:$0xff] %v20965_v24  ;;  %v20971_v37 = vld [vmem:[#allocation2 + $0x229] sm:$0xff] }
 0x370   : > { %3296 = vst.msk [vmem:[%s20277_s18 + $0x1d8] sm:$0xff] %vm3236_vm2, %v3231_v45  ;;  %22774 = vst [vmem:[#allocation24_spill] sm:$0xff] %v20963_v12 }
 0x371   : > { %13555 = vst.msk [vmem:[%s20277_s18 + $0x3d8] sm:$0xff] %vm3236_vm2, %v6072_v10  ;;  %3295 = vst.msk [vmem:[%s20277_s18 + $0x1d0] sm:$0xff] %vm3236_vm2, %v3230_v28  ;;  %v15710_v42 = vpop.f32.mrb[60].mxu0  ;;  %v16126_v51 = vpop.f32.mrb[60].mxu1 }
 0x372   : > { %22776 = vst [vmem:[#allocation11_spill] sm:$0xff] %v20971_v37  ;;  %13554 = vst.msk [vmem:[%s20277_s18 + $0x3d0] sm:$0xff] %vm3236_vm2, %v6071_v4  ;;  %v3233_v45 = vadd.f32 %v20869_v23, %v15710_v42  ;;  %v3083_v8 = vpop.f32.mrb[61].mxu0  ;;  %16300 = vmatmul.mubr.msk.f32.gmra.mrb[102].mxu0 %vm215_vm0, %v20956_v53  ;;  %v6074_v21 = vadd.f32 %v20869_v23, %v16126_v51  ;;  %v5930_v28 = vpop.f32.mrb[61].mxu1  ;;  %16716 = vmatmul.mubr.msk.f32.gmra.mrb[102].mxu1 %vm215_vm0, %v20963_v12  ;;  %v20984_v4 = vld [vmem:[#allocation2 + $0x230] sm:$0xff]  ;;  %v20993_v51 = vld [vmem:[#allocation2 + $0x240] sm:$0xff] }
 0x373   : > { %v3232_v10 = vadd.f32 %v20869_v23, %v3083_v8  ;;  %16302 = vmatprep.mubr.msk.f32.mxu0 %vm215_vm0, %v20965_v24  ;;  %22777 = vst [vmem:[#allocation12_spill] sm:$0xff] %v20984_v4  ;;  %v6073_v42 = vadd.f32 %v20869_v23, %v5930_v28  ;;  %16718 = vmatprep.mubr.msk.f32.mxu1 %vm215_vm0, %v20971_v37  ;;  %v20991_v53 = vld [vmem:[#allocation2 + $0x231] sm:$0xff]  ;;  %v20999_v24 = vld [vmem:[#allocation2 + $0x241] sm:$0xff] }
 0x374   : > { %3298 = vst.msk [vmem:[%s20277_s18 + $0x1e8] sm:$0xff] %vm3236_vm2, %v3233_v45  ;;  %13557 = vst.msk [vmem:[%s20277_s18 + $0x3e8] sm:$0xff] %vm3236_vm2, %v6074_v21 }
 0x375   : > { %3297 = vst.msk [vmem:[%s20277_s18 + $0x1e0] sm:$0xff] %vm3236_vm2, %v3232_v10  ;;  %v15713_v8 = vpop.f32.mrb[62].mxu0  ;;  %13556 = vst.msk [vmem:[%s20277_s18 + $0x3e0] sm:$0xff] %vm3236_vm2, %v6073_v42  ;;  %v16129_v28 = vpop.f32.mrb[62].mxu1  ;;  %v21012_v42 = vld [vmem:[#allocation2 + $0x248] sm:$0xff] }
 0x376   : > { %v3235_v45 = vadd.f32 %v20869_v23, %v15713_v8  ;;  %v3093_v37 = vpop.f32.mrb[63].mxu0  ;;  %16303 = vmatmul.mubr.msk.f32.gmra.mrb[104].mxu0 %vm215_vm0, %v20984_v4  ;;  %v6076_v12 = vadd.f32 %v20869_v23, %v16129_v28  ;;  %v5940_v10 = vpop.f32.mrb[63].mxu1  ;;  %16719 = vmatmul.mubr.msk.f32.gmra.mrb[104].mxu1 %vm215_vm0, %v20991_v53  ;;  %22778 = vst [vmem:[#allocation13_spill] sm:$0xff] %v21012_v42  ;;  %v21019_v4 = vld [vmem:[#allocation2 + $0x249] sm:$0xff]  ;;  %v21021_v28 = vld [vmem:[#allocation2 + $0x258] sm:$0xff] }
 0x377   : > { %v3234_v21 = vadd.f32 %v20869_v23, %v3093_v37  ;;  %16305 = vmatprep.mubr.msk.f32.mxu0 %vm215_vm0, %v20993_v51  ;;  %v6075_v8 = vadd.f32 %v20869_v23, %v5940_v10  ;;  %16721 = vmatprep.mubr.msk.f32.mxu1 %vm215_vm0, %v20999_v24  ;;  %22779 = vst [vmem:[#allocation14_spill] sm:$0xff] %v21019_v4  ;;  %22780 = vst [vmem:[#allocation15_spill] sm:$0xff] %v21021_v28  ;;  %v21027_v37 = vld [vmem:[#allocation2 + $0x259] sm:$0xff] }
 0x378   : > { %3300 = vst.msk [vmem:[%s20277_s18 + $0x1f8] sm:$0xff] %vm3236_vm2, %v3235_v45  ;;  %13559 = vst.msk [vmem:[%s20277_s18 + $0x3f8] sm:$0xff] %vm3236_vm2, %v6076_v12  ;;  %v21037_v23 = vld [vmem:[#allocation2 + $0x260] sm:$0xff]  ;;  %v21043_v45 = vld [vmem:[#allocation2 + $0x270] sm:$0xff] }
 0x379   : > { %3299 = vst.msk [vmem:[%s20277_s18 + $0x1f0] sm:$0xff] %vm3236_vm2, %v3234_v21  ;;  %22781 = vst [vmem:[#allocation26_spill] sm:$0xff] %v21027_v37  ;;  %v21041_v12 = vld [vmem:[#allocation2 + $0x261] sm:$0xff]  ;;  %v21045_v21 = vld [vmem:[#allocation2 + $0x271] sm:$0xff] }
 0x37a   : > { %13558 = vst.msk [vmem:[%s20277_s18 + $0x3f0] sm:$0xff] %vm3236_vm2, %v6075_v8  ;;  %16306 = vmatmul.mubr.msk.f32.gmra.mrb[106].mxu0 %vm215_vm0, %v21012_v42  ;;  %16722 = vmatmul.mubr.msk.f32.gmra.mrb[106].mxu1 %vm215_vm0, %v21019_v4  ;;  %22782 = vst [vmem:[#allocation27_spill] sm:$0xff] %v21037_v23  ;;  %v21053_v10 = vld [vmem:[#allocation2 + $0x278] sm:$0xff] }
 0x37b   : > { %16308 = vmatprep.mubr.msk.f32.mxu0 %vm215_vm0, %v21021_v28  ;;  %16724 = vmatprep.mubr.msk.f32.mxu1 %vm215_vm0, %v21027_v37  ;;  %22783 = vst [vmem:[#allocation28_spill] sm:$0xff] %v21041_v12  ;;  %22784 = vst [vmem:[#allocation29_spill] sm:$0xff] %v21043_v45  ;;  %v21057_v8 = vld [vmem:[#allocation2 + $0x279] sm:$0xff]  ;;  %v21059_v37 = vld [vmem:[#allocation2 + $0x288] sm:$0xff] }
 0x37c   : > { %22785 = vst [vmem:[#allocation30_spill] sm:$0xff] %v21045_v21  ;;  %22786 = vst [vmem:[#allocation31_spill] sm:$0xff] %v21053_v10  ;;  %v21061_v28 = vld [vmem:[#allocation2 + $0x289] sm:$0xff] }
 0x37d   : > { %22787 = vst [vmem:[#allocation32_spill] sm:$0xff] %v21057_v8  ;;  %22788 = vst [vmem:[#allocation33_spill] sm:$0xff] %v21059_v37 }
 0x37e   : > { %16309 = vmatmul.mubr.msk.f32.gmra.mrb[108].mxu0 %vm215_vm0, %v21037_v23  ;;  %16725 = vmatmul.mubr.msk.f32.gmra.mrb[108].mxu1 %vm215_vm0, %v21041_v12  ;;  %22789 = vst [vmem:[#allocation34_spill] sm:$0xff] %v21061_v28  ;;  %v21075_v12 = vld [vmem:[#allocation2 + $0x2a0] sm:$0xff] }
 0x37f   : > { %16311 = vmatprep.mubr.msk.f32.mxu0 %vm215_vm0, %v21043_v45  ;;  %16727 = vmatprep.mubr.msk.f32.mxu1 %vm215_vm0, %v21045_v21  ;;  %v21069_v45 = vld [vmem:[#allocation2 + $0x290] sm:$0xff]  ;;  %22792 = vst [vmem:[#allocation37_spill] sm:$0xff] %v21075_v12  ;;  %v21077_v23 = vld [vmem:[#allocation2 + $0x2a1] sm:$0xff] }
 0x380   : > { %22790 = vst [vmem:[#allocation35_spill] sm:$0xff] %v21069_v45  ;;  %v21073_v21 = vld [vmem:[#allocation2 + $0x291] sm:$0xff]  ;;  %22793 = vst [vmem:[#allocation38_spill] sm:$0xff] %v21077_v23 }
 0x381   : > { %22791 = vst [vmem:[#allocation36_spill] sm:$0xff] %v21073_v21 }
 0x382   : > { %16312 = vmatmul.mubr.msk.f32.gmra.mrb[110].mxu0 %vm215_vm0, %v21053_v10  ;;  %16728 = vmatmul.mubr.msk.f32.gmra.mrb[110].mxu1 %vm215_vm0, %v21057_v8  ;;  %v21091_v8 = vld [vmem:[#allocation2 + $0x2b8] sm:$0xff] }
 0x383   : > { %16314 = vmatprep.mubr.msk.f32.mxu0 %vm215_vm0, %v21059_v37  ;;  %16730 = vmatprep.mubr.msk.f32.mxu1 %vm215_vm0, %v21061_v28  ;;  %v21085_v37 = vld [vmem:[#allocation2 + $0x2a8] sm:$0xff]  ;;  %22796 = vst [vmem:[#allocation41_spill] sm:$0xff] %v21091_v8  ;;  %v21093_v10 = vld [vmem:[#allocation2 + $0x2b9] sm:$0xff] }
 0x384   : > { %22794 = vst [vmem:[#allocation39_spill] sm:$0xff] %v21085_v37  ;;  %v21089_v28 = vld [vmem:[#allocation2 + $0x2a9] sm:$0xff]  ;;  %22797 = vst [vmem:[#allocation42_spill] sm:$0xff] %v21093_v10 }
 0x385   : > { %22795 = vst [vmem:[#allocation40_spill] sm:$0xff] %v21089_v28 }
 0x386   : > { %16315 = vmatmul.mubr.msk.f32.gmra.mrb[112].mxu0 %vm215_vm0, %v21069_v45  ;;  %16731 = vmatmul.mubr.msk.f32.gmra.mrb[112].mxu1 %vm215_vm0, %v21073_v21  ;;  %v21107_v21 = vld [vmem:[#allocation2 + $0x2d0] sm:$0xff] }
 0x387   : > { %16317 = vmatprep.mubr.msk.f32.mxu0 %vm215_vm0, %v21075_v12  ;;  %16733 = vmatprep.mubr.msk.f32.mxu1 %vm215_vm0, %v21077_v23  ;;  %v21101_v12 = vld [vmem:[#allocation2 + $0x2c0] sm:$0xff]  ;;  %22800 = vst [vmem:[#allocation45_spill] sm:$0xff] %v21107_v21  ;;  %v21109_v45 = vld [vmem:[#allocation2 + $0x2d1] sm:$0xff] }
 0x388   : > { %22798 = vst [vmem:[#allocation43_spill] sm:$0xff] %v21101_v12  ;;  %v21105_v23 = vld [vmem:[#allocation2 + $0x2c1] sm:$0xff]  ;;  %22801 = vst [vmem:[#allocation46_spill] sm:$0xff] %v21109_v45 }
 0x389   : > { %22799 = vst [vmem:[#allocation44_spill] sm:$0xff] %v21105_v23 }
 0x38a   : > { %16318 = vmatmul.mubr.msk.f32.gmra.mrb[114].mxu0 %vm215_vm0, %v21085_v37  ;;  %16734 = vmatmul.mubr.msk.f32.gmra.mrb[114].mxu1 %vm215_vm0, %v21089_v28  ;;  %v21123_v28 = vld [vmem:[#allocation2 + $0x2e8] sm:$0xff] }
 0x38b   : > { %16320 = vmatprep.mubr.msk.f32.mxu0 %vm215_vm0, %v21091_v8  ;;  %16736 = vmatprep.mubr.msk.f32.mxu1 %vm215_vm0, %v21093_v10  ;;  %v21117_v8 = vld [vmem:[#allocation2 + $0x2d8] sm:$0xff]  ;;  %22804 = vst [vmem:[#allocation49_spill] sm:$0xff] %v21123_v28  ;;  %v21125_v37 = vld [vmem:[#allocation2 + $0x2e9] sm:$0xff] }
 0x38c   : > { %22802 = vst [vmem:[#allocation47_spill] sm:$0xff] %v21117_v8  ;;  %v21121_v10 = vld [vmem:[#allocation2 + $0x2d9] sm:$0xff]  ;;  %22805 = vst [vmem:[#allocation50_spill] sm:$0xff] %v21125_v37 }
 0x38d   : > { %22803 = vst [vmem:[#allocation48_spill] sm:$0xff] %v21121_v10 }
 0x38e   : > { %16321 = vmatmul.mubr.msk.f32.gmra.mrb[116].mxu0 %vm215_vm0, %v21101_v12  ;;  %16737 = vmatmul.mubr.msk.f32.gmra.mrb[116].mxu1 %vm215_vm0, %v21105_v23  ;;  %v21139_v23 = vld [vmem:[#allocation2 + $0x300] sm:$0xff] }
 0x38f   : > { %16323 = vmatprep.mubr.msk.f32.mxu0 %vm215_vm0, %v21107_v21  ;;  %16739 = vmatprep.mubr.msk.f32.mxu1 %vm215_vm0, %v21109_v45  ;;  %v21133_v21 = vld [vmem:[#allocation2 + $0x2f0] sm:$0xff]  ;;  %22808 = vst [vmem:[#allocation53_spill] sm:$0xff] %v21139_v23  ;;  %v21141_v12 = vld [vmem:[#allocation2 + $0x301] sm:$0xff] }
 0x390   : > { %22806 = vst [vmem:[#allocation51_spill] sm:$0xff] %v21133_v21  ;;  %v21137_v45 = vld [vmem:[#allocation2 + $0x2f1] sm:$0xff]  ;;  %22809 = vst [vmem:[#allocation54_spill] sm:$0xff] %v21141_v12 }
 0x391   : > { %22807 = vst [vmem:[#allocation52_spill] sm:$0xff] %v21137_v45 }
 0x392   : > { %16324 = vmatmul.mubr.msk.f32.gmra.mrb[118].mxu0 %vm215_vm0, %v21117_v8  ;;  %16740 = vmatmul.mubr.msk.f32.gmra.mrb[118].mxu1 %vm215_vm0, %v21121_v10  ;;  %v21155_v10 = vld [vmem:[#allocation2 + $0x318] sm:$0xff] }
 0x393   : > { %16326 = vmatprep.mubr.msk.f32.mxu0 %vm215_vm0, %v21123_v28  ;;  %16742 = vmatprep.mubr.msk.f32.mxu1 %vm215_vm0, %v21125_v37  ;;  %v21149_v28 = vld [vmem:[#allocation2 + $0x308] sm:$0xff]  ;;  %22812 = vst [vmem:[#allocation57_spill] sm:$0xff] %v21155_v10  ;;  %v21157_v8 = vld [vmem:[#allocation2 + $0x319] sm:$0xff] }
 0x394   : > { %22810 = vst [vmem:[#allocation55_spill] sm:$0xff] %v21149_v28  ;;  %v21153_v37 = vld [vmem:[#allocation2 + $0x309] sm:$0xff]  ;;  %22813 = vst [vmem:[#allocation58_spill] sm:$0xff] %v21157_v8 }
 0x395   : > { %22811 = vst [vmem:[#allocation56_spill] sm:$0xff] %v21153_v37 }
 0x396   : > { %16327 = vmatmul.mubr.msk.f32.gmra.mrb[120].mxu0 %vm215_vm0, %v21133_v21  ;;  %16743 = vmatmul.mubr.msk.f32.gmra.mrb[120].mxu1 %vm215_vm0, %v21137_v45  ;;  %v21171_v45 = vld [vmem:[#allocation2 + $0x330] sm:$0xff] }
 0x397   : > { %16329 = vmatprep.mubr.msk.f32.mxu0 %vm215_vm0, %v21139_v23  ;;  %16745 = vmatprep.mubr.msk.f32.mxu1 %vm215_vm0, %v21141_v12  ;;  %v21165_v23 = vld [vmem:[#allocation2 + $0x320] sm:$0xff]  ;;  %22816 = vst [vmem:[#allocation61_spill] sm:$0xff] %v21171_v45  ;;  %v21173_v21 = vld [vmem:[#allocation2 + $0x331] sm:$0xff] }
 0x398   : > { %22814 = vst [vmem:[#allocation59_spill] sm:$0xff] %v21165_v23  ;;  %v21169_v12 = vld [vmem:[#allocation2 + $0x321] sm:$0xff]  ;;  %22817 = vst [vmem:[#allocation62_spill] sm:$0xff] %v21173_v21 }
 0x399   : > { %22815 = vst [vmem:[#allocation60_spill] sm:$0xff] %v21169_v12 }
 0x39a   : > { %16330 = vmatmul.mubr.msk.f32.gmra.mrb[122].mxu0 %vm215_vm0, %v21149_v28  ;;  %16746 = vmatmul.mubr.msk.f32.gmra.mrb[122].mxu1 %vm215_vm0, %v21153_v37  ;;  %v21187_v37 = vld [vmem:[#allocation2 + $0x31] sm:$0xff] }
 0x39b   : > { %16332 = vmatprep.mubr.msk.f32.mxu0 %vm215_vm0, %v21155_v10  ;;  %16748 = vmatprep.mubr.msk.f32.mxu1 %vm215_vm0, %v21157_v8  ;;  %v21181_v10 = vld [vmem:[#allocation2 + $0x338] sm:$0xff]  ;;  %v8212_v28 = vld [vmem:[#allocation5 + $0x170] sm:$0xff] }
 0x39c   : > { %22818 = vst [vmem:[#allocation63_spill] sm:$0xff] %v21181_v10  ;;  %v21185_v8 = vld [vmem:[#allocation2 + $0x339] sm:$0xff] }
 0x39e   : > { %16333 = vmatmul.mubr.msk.f32.gmra.mrb[124].mxu0 %vm215_vm0, %v21165_v23  ;;  %16749 = vmatmul.mubr.msk.f32.gmra.mrb[124].mxu1 %vm215_vm0, %v21169_v12  ;;  %v8213_v23 = vld [vmem:[#allocation5 + $0x178] sm:$0xff] }
 0x39f   : > { %16335 = vmatprep.mubr.msk.f32.mxu0 %vm215_vm0, %v21171_v45  ;;  %16751 = vmatprep.mubr.msk.f32.mxu1 %vm215_vm0, %v21173_v21  ;;  %v11053_v45 = vld [vmem:[#allocation5 + $0x1f0] sm:$0xff]  ;;  %v11054_v12 = vld [vmem:[#allocation5 + $0x1f8] sm:$0xff]  ;;  %v17054_v4 = vpack.c.bf16 %v8213_v23, %v8212_v28  ;;  %v21213_v28 = vld [vmem:[#allocation2 + $0x61] sm:$0xff] }
 0x3a0   : > { %v21197_v21 = vld [vmem:[#allocation2 + $0x39] sm:$0xff]  ;;  %v17086_v42 = vpack.c.bf16 %v11054_v12, %v11053_v45  ;;  %v22863_v45 = vld [vmem:[#allocation55_spill] sm:$0xff] }
 0x3a1   : > { %v22861_v23 = vld [vmem:[#allocation53_spill] sm:$0xff]  ;;  %v22862_v12 = vld [vmem:[#allocation54_spill] sm:$0xff] }
 0x3a2   : > { %16336 = vmatmul.mubr.msk.f32.gmra.mrb[126].mxu0 %vm215_vm0, %v21181_v10  ;;  %16752 = vmatmul.mubr.msk.f32.gmra.mrb[126].mxu1 %vm215_vm0, %v21185_v8  ;;  %v21201_v10 = vld [vmem:[#allocation2 + $0x49] sm:$0xff] }
 0x3a3   : > { %16346 = vmatprep.mubr.msk.f32.mxu0 %vm215_vm0, %v20468_v49  ;;  %16762 = vmatprep.mubr.msk.f32.mxu1 %vm215_vm0, %v21187_v37  ;;  %v21209_v49 = vld [vmem:[#allocation2 + $0x51] sm:$0xff] }
 0x3a6   : > { %16347 = vmatmul.mubr.msk.f32.vlgmr.msra.gmra.mrb[64].mxu0 %vm215_vm0, %v20479_v47  ;;  %16763 = vmatmul.mubr.msk.f32.vlgmr.msra.gmra.mrb[64].mxu1 %vm215_vm0, %v21197_v21  ;;  %v21223_v47 = vld [vmem:[#allocation2 + $0x69] sm:$0xff] }
 0x3a7   : > { %17053 = vmatpush3.bf16.msra.mxu0 %v20495_v18  ;;  %17085 = vmatpush3.bf16.msra.mxu1 %v20502_v46  ;;  %v21235_v18 = vld [vmem:[#allocation2 + $0x81] sm:$0xff]  ;;  %v21237_v46 = vld [vmem:[#allocation2 + $0x91] sm:$0xff] }
 0x3a8   : > { %16349 = vmatprep.mubr.msk.f32.mxu0 %vm215_vm0, %v20487_v59  ;;  %16765 = vmatprep.mubr.msk.f32.mxu1 %vm215_vm0, %v21201_v10  ;;  %v21225_v59 = vld [vmem:[#allocation2 + $0x79] sm:$0xff] }
 0x3a9   : > { %17055 = vmatprep.subr.bf16.mxu0 %v17054_v4  ;;  %17087 = vmatprep.subr.bf16.mxu1 %v17086_v42 }
 0x3aa   : > { %16350 = vmatmul.mubr.msk.f32.gmra.mrb[66].mxu0 %vm215_vm0, %v20510_v50  ;;  %16766 = vmatmul.mubr.msk.f32.gmra.mrb[66].mxu1 %vm215_vm0, %v21209_v49  ;;  %v21247_v50 = vld [vmem:[#allocation2 + $0x99] sm:$0xff] }
 0x3ab   : > { %16352 = vmatprep.mubr.msk.f32.mxu0 %vm215_vm0, %v20517_v52  ;;  %16768 = vmatprep.mubr.msk.f32.mxu1 %vm215_vm0, %v21213_v28  ;;  %v21249_v52 = vld [vmem:[#allocation2 + $0xa9] sm:$0xff] }
 0x3ac   : > { %17057 = vmatpush3.bf16.msra.mxu0 %v17054_v4  ;;  %17089 = vmatpush3.bf16.msra.mxu1 %v17086_v42  ;;  %v22858_v4 = vld [vmem:[#allocation50_spill] sm:$0xff]  ;;  %v22860_v42 = vld [vmem:[#allocation52_spill] sm:$0xff] }
 0x3ae   : > { %16353 = vmatmul.mubr.msk.f32.gmra.mrb[68].mxu0 %vm215_vm0, %v20536_v60  ;;  %16769 = vmatmul.mubr.msk.f32.gmra.mrb[68].mxu1 %vm215_vm0, %v21223_v47  ;;  %v21259_v60 = vld [vmem:[#allocation2 + $0xb1] sm:$0xff] }
 0x3af   : > { %16355 = vmatprep.mubr.msk.f32.mxu0 %vm215_vm0, %v20543_v3  ;;  %16771 = vmatprep.mubr.msk.f32.mxu1 %vm215_vm0, %v21225_v59  ;;  %v21261_v3 = vld [vmem:[#allocation2 + $0xc1] sm:$0xff] }
 0x3b2   : > { %16356 = vmatmul.mubr.msk.f32.gmra.mrb[70].mxu0 %vm215_vm0, %v20560_v32  ;;  %16772 = vmatmul.mubr.msk.f32.gmra.mrb[70].mxu1 %vm215_vm0, %v21235_v18  ;;  %v21271_v32 = vld [vmem:[#allocation2 + $0xc9] sm:$0xff] }
 0x3b3   : > { %16358 = vmatprep.mubr.msk.f32.mxu0 %vm215_vm0, %v20567_v36  ;;  %16774 = vmatprep.mubr.msk.f32.mxu1 %vm215_vm0, %v21237_v46  ;;  %v7465_v36 = vld [vmem:[#allocation2 + $0x198] sm:$0xff] }
 0x3b6   : > { %16359 = vmatmul.mubr.msk.f32.gmra.mrb[72].mxu0 %vm215_vm0, %v20584_v44  ;;  %16775 = vmatmul.mubr.msk.f32.gmra.mrb[72].mxu1 %vm215_vm0, %v21247_v50  ;;  %v21337_v44 = vld [vmem:[#allocation2 + $0x199] sm:$0xff] }
 0x3b7   : > { %16361 = vmatprep.mubr.msk.f32.mxu0 %vm215_vm0, %v20591_v1  ;;  %16777 = vmatprep.mubr.msk.f32.mxu1 %vm215_vm0, %v21249_v52  ;;  %v7466_v1 = vld [vmem:[#allocation2 + $0x1a0] sm:$0xff] }
 0x3ba   : > { %16362 = vmatmul.mubr.msk.f32.gmra.mrb[74].mxu0 %vm215_vm0, %v20608_v35  ;;  %16778 = vmatmul.mubr.msk.f32.gmra.mrb[74].mxu1 %vm215_vm0, %v21259_v60  ;;  %v21346_v35 = vld [vmem:[#allocation2 + $0x1a1] sm:$0xff] }
 0x3bb   : > { %16364 = vmatprep.mubr.msk.f32.mxu0 %vm215_vm0, %v20615_v55  ;;  %16780 = vmatprep.mubr.msk.f32.mxu1 %vm215_vm0, %v21261_v3  ;;  %v22819_v55 = vld [vmem:[#allocation16_spill] sm:$0xff] }
 0x3be   : > { %16365 = vmatmul.mubr.msk.f32.gmra.mrb[76].mxu0 %vm215_vm0, %v20632_v43  ;;  %16781 = vmatmul.mubr.msk.f32.gmra.mrb[76].mxu1 %vm215_vm0, %v21271_v32  ;;  %v22820_v43 = vld [vmem:[#allocation17_spill] sm:$0xff] }
 0x3bf   : > { %16367 = vmatprep.mubr.msk.f32.mxu0 %vm215_vm0, %v20639_v27  ;;  %16783 = vmatprep.mubr.msk.f32.mxu1 %vm215_vm0, %v20645_v48  ;;  %v22821_v27 = vld [vmem:[#allocation18_spill] sm:$0xff]  ;;  %v22822_v48 = vld [vmem:[#allocation19_spill] sm:$0xff] }
 0x3c2   : > { %16368 = vmatmul.mubr.msk.f32.gmra.mrb[78].mxu0 %vm215_vm0, %v20658_v25  ;;  %16784 = vmatmul.mubr.msk.f32.gmra.mrb[78].mxu1 %vm215_vm0, %v20665_v56  ;;  %v22823_v25 = vld [vmem:[#allocation20_spill] sm:$0xff]  ;;  %v22824_v56 = vld [vmem:[#allocation21_spill] sm:$0xff] }
 0x3c3   : > { %16370 = vmatprep.mubr.msk.f32.mxu0 %vm215_vm0, %v20667_v58  ;;  %16786 = vmatprep.mubr.msk.f32.mxu1 %vm215_vm0, %v20673_v62  ;;  %v22825_v58 = vld [vmem:[#allocation22_spill] sm:$0xff]  ;;  %v22826_v62 = vld [vmem:[#allocation23_spill] sm:$0xff] }
 0x3c6   : > { %16371 = vmatmul.mubr.msk.f32.gmra.mrb[80].mxu0 %vm215_vm0, %v20686_v14  ;;  %16787 = vmatmul.mubr.msk.f32.gmra.mrb[80].mxu1 %vm215_vm0, %v20693_v57  ;;  %v22827_v14 = vld [vmem:[#allocation24_spill] sm:$0xff]  ;;  %v22828_v57 = vld [vmem:[#allocation25_spill] sm:$0xff] }
 0x3c7   : > { %16373 = vmatprep.mubr.msk.f32.mxu0 %vm215_vm0, %v20695_v38  ;;  %16789 = vmatprep.mubr.msk.f32.mxu1 %vm215_vm0, %v20701_v40  ;;  %v22829_v38 = vld [vmem:[#allocation11_spill] sm:$0xff]  ;;  %v22830_v40 = vld [vmem:[#allocation12_spill] sm:$0xff] }
 0x3ca   : > { %16374 = vmatmul.mubr.msk.f32.gmra.mrb[82].mxu0 %vm215_vm0, %v20714_v9  ;;  %16790 = vmatmul.mubr.msk.f32.gmra.mrb[82].mxu1 %vm215_vm0, %v20721_v31  ;;  %v22831_v9 = vld [vmem:[#allocation13_spill] sm:$0xff]  ;;  %v22832_v31 = vld [vmem:[#allocation14_spill] sm:$0xff] }
 0x3cb   : > { %16376 = vmatprep.mubr.msk.f32.mxu0 %vm215_vm0, %v20723_v15  ;;  %16792 = vmatprep.mubr.msk.f32.mxu1 %vm215_vm0, %v20729_v17  ;;  %v22833_v15 = vld [vmem:[#allocation15_spill] sm:$0xff]  ;;  %v22834_v17 = vld [vmem:[#allocation26_spill] sm:$0xff] }
 0x3ce   : > { %16377 = vmatmul.mubr.msk.f32.gmra.mrb[84].mxu0 %vm215_vm0, %v20742_v19  ;;  %16793 = vmatmul.mubr.msk.f32.gmra.mrb[84].mxu1 %vm215_vm0, %v20749_v7  ;;  %v22835_v19 = vld [vmem:[#allocation27_spill] sm:$0xff]  ;;  %v22836_v7 = vld [vmem:[#allocation28_spill] sm:$0xff] }
 0x3cf   : > { %16379 = vmatprep.mubr.msk.f32.mxu0 %vm215_vm0, %v20751_v41  ;;  %16795 = vmatprep.mubr.msk.f32.mxu1 %vm215_vm0, %v20757_v39  ;;  %v22837_v41 = vld [vmem:[#allocation29_spill] sm:$0xff]  ;;  %v22838_v39 = vld [vmem:[#allocation30_spill] sm:$0xff] }
 0x3d2   : > { %16380 = vmatmul.mubr.msk.f32.gmra.mrb[86].mxu0 %vm215_vm0, %v20770_v0  ;;  %16796 = vmatmul.mubr.msk.f32.gmra.mrb[86].mxu1 %vm215_vm0, %v20777_v6  ;;  %v22839_v0 = vld [vmem:[#allocation31_spill] sm:$0xff]  ;;  %v22840_v6 = vld [vmem:[#allocation32_spill] sm:$0xff] }
 0x3d3   : > { %16382 = vmatprep.mubr.msk.f32.mxu0 %vm215_vm0, %v20779_v16  ;;  %16798 = vmatprep.mubr.msk.f32.mxu1 %vm215_vm0, %v20785_v34  ;;  %v22841_v16 = vld [vmem:[#allocation33_spill] sm:$0xff]  ;;  %v22842_v34 = vld [vmem:[#allocation34_spill] sm:$0xff] }
 0x3d6   : > { %16383 = vmatmul.mubr.msk.f32.gmra.mrb[88].mxu0 %vm215_vm0, %v20798_v26  ;;  %16799 = vmatmul.mubr.msk.f32.gmra.mrb[88].mxu1 %vm215_vm0, %v20805_v33  ;;  %v22843_v26 = vld [vmem:[#allocation35_spill] sm:$0xff]  ;;  %v22844_v33 = vld [vmem:[#allocation36_spill] sm:$0xff] }
 0x3d7   : > { %16385 = vmatprep.mubr.msk.f32.mxu0 %vm215_vm0, %v20807_v29  ;;  %16801 = vmatprep.mubr.msk.f32.mxu1 %vm215_vm0, %v20813_v20  ;;  %v22845_v29 = vld [vmem:[#allocation37_spill] sm:$0xff]  ;;  %v22846_v20 = vld [vmem:[#allocation38_spill] sm:$0xff] }
 0x3da   : > { %16386 = vmatmul.mubr.msk.f32.gmra.mrb[90].mxu0 %vm215_vm0, %v20826_v63  ;;  %16802 = vmatmul.mubr.msk.f32.gmra.mrb[90].mxu1 %vm215_vm0, %v20833_v54  ;;  %v22847_v63 = vld [vmem:[#allocation39_spill] sm:$0xff]  ;;  %v22848_v54 = vld [vmem:[#allocation40_spill] sm:$0xff] }
 0x3db   : > { %16388 = vmatprep.mubr.msk.f32.mxu0 %vm215_vm0, %v20835_v22  ;;  %16804 = vmatprep.mubr.msk.f32.mxu1 %vm215_vm0, %v20841_v2  ;;  %v22849_v22 = vld [vmem:[#allocation41_spill] sm:$0xff]  ;;  %v22850_v2 = vld [vmem:[#allocation42_spill] sm:$0xff] }
 0x3de   : > { %16389 = vmatmul.mubr.msk.f32.gmra.mrb[92].mxu0 %vm215_vm0, %v20854_v30  ;;  %16805 = vmatmul.mubr.msk.f32.gmra.mrb[92].mxu1 %vm215_vm0, %v20861_v5  ;;  %v22851_v30 = vld [vmem:[#allocation43_spill] sm:$0xff]  ;;  %v22852_v5 = vld [vmem:[#allocation44_spill] sm:$0xff] }
 0x3df   : > { %16391 = vmatprep.mubr.msk.f32.mxu0 %vm215_vm0, %v7465_v36  ;;  %16807 = vmatprep.mubr.msk.f32.mxu1 %vm215_vm0, %v21337_v44  ;;  %v22864_v36 = vld [vmem:[#allocation56_spill] sm:$0xff] }
 0x3e2   : > { %16392 = vmatmul.mubr.msk.f32.gmra.mrb[94].mxu0 %vm215_vm0, %v7466_v1  ;;  %16808 = vmatmul.mubr.msk.f32.gmra.mrb[94].mxu1 %vm215_vm0, %v21346_v35  ;;  %v22865_v1 = vld [vmem:[#allocation57_spill] sm:$0xff] }
 0x3e3   : > { %16394 = vmatprep.mubr.msk.f32.mxu0 %vm215_vm0, %v20883_v11  ;;  %16810 = vmatprep.mubr.msk.f32.mxu1 %vm215_vm0, %v20889_v13  ;;  %v22853_v11 = vld [vmem:[#allocation45_spill] sm:$0xff]  ;;  %v22854_v13 = vld [vmem:[#allocation46_spill] sm:$0xff] }
 0x3e6   : > { %16395 = vmatmul.mubr.msk.f32.gmra.mrb[96].mxu0 %vm215_vm0, %v20900_v61  ;;  %16811 = vmatmul.mubr.msk.f32.gmra.mrb[96].mxu1 %vm215_vm0, %v22819_v55  ;;  %v22855_v61 = vld [vmem:[#allocation47_spill] sm:$0xff]  ;;  %v22866_v55 = vld [vmem:[#allocation58_spill] sm:$0xff] }
 0x3e7   : > { %16397 = vmatprep.mubr.msk.f32.mxu0 %vm215_vm0, %v22820_v43  ;;  %16813 = vmatprep.mubr.msk.f32.mxu1 %vm215_vm0, %v22821_v27  ;;  %v22867_v43 = vld [vmem:[#allocation59_spill] sm:$0xff]  ;;  %v22868_v27 = vld [vmem:[#allocation60_spill] sm:$0xff] }
 0x3ea   : > { %16398 = vmatmul.mubr.msk.f32.gmra.mrb[98].mxu0 %vm215_vm0, %v22822_v48  ;;  %16814 = vmatmul.mubr.msk.f32.gmra.mrb[98].mxu1 %vm215_vm0, %v22823_v25  ;;  %v22869_v48 = vld [vmem:[#allocation61_spill] sm:$0xff]  ;;  %v22870_v25 = vld [vmem:[#allocation62_spill] sm:$0xff] }
 0x3eb   : > { %16400 = vmatprep.mubr.msk.f32.mxu0 %vm215_vm0, %v22824_v56  ;;  %16816 = vmatprep.mubr.msk.f32.mxu1 %vm215_vm0, %v22825_v58  ;;  %v7497_v56 = vld [vmem:[#allocation2 + $0x348] sm:$0xff] }
 0x3ec   : > { %v21467_v58 = vld [vmem:[#allocation2 + $0x349] sm:$0xff] }
 0x3ee   : > { %16401 = vmatmul.mubr.msk.f32.gmra.mrb[100].mxu0 %vm215_vm0, %v22826_v62  ;;  %16817 = vmatmul.mubr.msk.f32.gmra.mrb[100].mxu1 %vm215_vm0, %v22827_v14  ;;  %v22871_v62 = vld [vmem:[#allocation63_spill] sm:$0xff]  ;;  %v7498_v14 = vld [vmem:[#allocation2 + $0x350] sm:$0xff] }
 0x3ef   : > { %16403 = vmatprep.mubr.msk.f32.mxu0 %vm215_vm0, %v22828_v57  ;;  %16819 = vmatprep.mubr.msk.f32.mxu1 %vm215_vm0, %v22829_v38  ;;  %v21476_v57 = vld [vmem:[#allocation2 + $0x351] sm:$0xff] }
 0x3f0   : > { %v10986_v38 = vld [vmem:[#allocation2 + $0x32] sm:$0xff] }
 0x3f2   : > { %16404 = vmatmul.mubr.msk.f32.gmra.mrb[102].mxu0 %vm215_vm0, %v22830_v40  ;;  %16820 = vmatmul.mubr.msk.f32.gmra.mrb[102].mxu1 %vm215_vm0, %v20991_v53  ;;  %v22856_v53 = vld [vmem:[#allocation48_spill] sm:$0xff] }
 0x3f3   : > { %16406 = vmatprep.mubr.msk.f32.mxu0 %vm215_vm0, %v20993_v51  ;;  %16822 = vmatprep.mubr.msk.f32.mxu1 %vm215_vm0, %v20999_v24  ;;  %v22857_v24 = vld [vmem:[#allocation49_spill] sm:$0xff]  ;;  %v22859_v51 = vld [vmem:[#allocation51_spill] sm:$0xff]  ;;  %v10988_v40 = vld [vmem:[#allocation2 + $0x4a] sm:$0xff] }
 0x3f6   : > { %16407 = vmatmul.mubr.msk.f32.gmra.mrb[104].mxu0 %vm215_vm0, %v22831_v9  ;;  %16823 = vmatmul.mubr.msk.f32.gmra.mrb[104].mxu1 %vm215_vm0, %v22832_v31  ;;  %v10989_v9 = vld [vmem:[#allocation2 + $0x52] sm:$0xff]  ;;  %v10990_v31 = vld [vmem:[#allocation2 + $0x62] sm:$0xff] }
 0x3f7   : > { %16409 = vmatprep.mubr.msk.f32.mxu0 %vm215_vm0, %v22833_v15  ;;  %16825 = vmatprep.mubr.msk.f32.mxu1 %vm215_vm0, %v22834_v17  ;;  %v11000_v15 = vld [vmem:[#allocation2 + $0xda] sm:$0xff]  ;;  %v8161_v17 = vld [vmem:[#allocation2 + $0xf1] sm:$0xff] }
 0x3fa   : > { %16410 = vmatmul.mubr.msk.f32.gmra.mrb[106].mxu0 %vm215_vm0, %v22835_v19  ;;  %16826 = vmatmul.mubr.msk.f32.gmra.mrb[106].mxu1 %vm215_vm0, %v22836_v7  ;;  %v11002_v19 = vld [vmem:[#allocation2 + $0xf2] sm:$0xff]  ;;  %v8163_v7 = vld [vmem:[#allocation2 + $0x109] sm:$0xff] }
 0x3fb   : > { %16412 = vmatprep.mubr.msk.f32.mxu0 %vm215_vm0, %v22837_v41  ;;  %16828 = vmatprep.mubr.msk.f32.mxu1 %vm215_vm0, %v22838_v39  ;;  %v11004_v41 = vld [vmem:[#allocation2 + $0x10a] sm:$0xff] }
 0x3fc   : > { %v8164_v39 = vld [vmem:[#allocation2 + $0x111] sm:$0xff] }
 0x3fe   : > { %16413 = vmatmul.mubr.msk.f32.gmra.mrb[108].mxu0 %vm215_vm0, %v22839_v0  ;;  %16829 = vmatmul.mubr.msk.f32.gmra.mrb[108].mxu1 %vm215_vm0, %v22840_v6  ;;  %v11005_v0 = vld [vmem:[#allocation2 + $0x112] sm:$0xff]  ;;  %v8165_v6 = vld [vmem:[#allocation2 + $0x121] sm:$0xff] }
 0x3ff   : > { %16415 = vmatprep.mubr.msk.f32.mxu0 %vm215_vm0, %v22841_v16  ;;  %16831 = vmatprep.mubr.msk.f32.mxu1 %vm215_vm0, %v22842_v34  ;;  %v11006_v16 = vld [vmem:[#allocation2 + $0x122] sm:$0xff] }
 0x400   : > { %v8166_v34 = vld [vmem:[#allocation2 + $0x129] sm:$0xff] }
 0x402   : > { %16416 = vmatmul.mubr.msk.f32.gmra.mrb[110].mxu0 %vm215_vm0, %v22843_v26  ;;  %16832 = vmatmul.mubr.msk.f32.gmra.mrb[110].mxu1 %vm215_vm0, %v22844_v33  ;;  %v11007_v26 = vld [vmem:[#allocation2 + $0x12a] sm:$0xff]  ;;  %v8167_v33 = vld [vmem:[#allocation2 + $0x139] sm:$0xff] }
 0x403   : > { %16418 = vmatprep.mubr.msk.f32.mxu0 %vm215_vm0, %v22845_v29  ;;  %16834 = vmatprep.mubr.msk.f32.mxu1 %vm215_vm0, %v22846_v20  ;;  %v11008_v29 = vld [vmem:[#allocation2 + $0x13a] sm:$0xff] }
 0x404   : > { %v8168_v20 = vld [vmem:[#allocation2 + $0x141] sm:$0xff] }
 0x406   : > { %16419 = vmatmul.mubr.msk.f32.gmra.mrb[112].mxu0 %vm215_vm0, %v22847_v63  ;;  %16835 = vmatmul.mubr.msk.f32.gmra.mrb[112].mxu1 %vm215_vm0, %v22848_v54  ;;  %v11009_v63 = vld [vmem:[#allocation2 + $0x142] sm:$0xff]  ;;  %v8169_v54 = vld [vmem:[#allocation2 + $0x151] sm:$0xff] }
 0x407   : > { %16421 = vmatprep.mubr.msk.f32.mxu0 %vm215_vm0, %v22849_v22  ;;  %16837 = vmatprep.mubr.msk.f32.mxu1 %vm215_vm0, %v22850_v2  ;;  %v11010_v22 = vld [vmem:[#allocation2 + $0x152] sm:$0xff] }
 0x408   : > { %v8170_v2 = vld [vmem:[#allocation2 + $0x159] sm:$0xff] }
 0x40a   : > { %16422 = vmatmul.mubr.msk.f32.gmra.mrb[114].mxu0 %vm215_vm0, %v22851_v30  ;;  %16838 = vmatmul.mubr.msk.f32.gmra.mrb[114].mxu1 %vm215_vm0, %v22852_v5  ;;  %v11011_v30 = vld [vmem:[#allocation2 + $0x15a] sm:$0xff]  ;;  %v8171_v5 = vld [vmem:[#allocation2 + $0x169] sm:$0xff] }
 0x40b   : > { %16424 = vmatprep.mubr.msk.f32.mxu0 %vm215_vm0, %v22853_v11  ;;  %16840 = vmatprep.mubr.msk.f32.mxu1 %vm215_vm0, %v22854_v13  ;;  %v11012_v11 = vld [vmem:[#allocation2 + $0x16a] sm:$0xff] }
 0x40c   : > { %v8172_v13 = vld [vmem:[#allocation2 + $0x171] sm:$0xff] }
 0x40e   : > { %16425 = vmatmul.mubr.msk.f32.gmra.mrb[116].mxu0 %vm215_vm0, %v22855_v61  ;;  %16841 = vmatmul.mubr.msk.f32.gmra.mrb[116].mxu1 %vm215_vm0, %v22856_v53  ;;  %v11013_v61 = vld [vmem:[#allocation2 + $0x172] sm:$0xff]  ;;  %v8173_v53 = vld [vmem:[#allocation2 + $0x181] sm:$0xff] }
 0x40f   : > { %16427 = vmatprep.mubr.msk.f32.mxu0 %vm215_vm0, %v22857_v24  ;;  %16843 = vmatprep.mubr.msk.f32.mxu1 %vm215_vm0, %v22858_v4  ;;  %v11014_v24 = vld [vmem:[#allocation2 + $0x182] sm:$0xff] }
 0x410   : > { %v8174_v4 = vld [vmem:[#allocation2 + $0x189] sm:$0xff] }
 0x412   : > { %16428 = vmatmul.mubr.msk.f32.gmra.mrb[118].mxu0 %vm215_vm0, %v22859_v51  ;;  %16844 = vmatmul.mubr.msk.f32.gmra.mrb[118].mxu1 %vm215_vm0, %v22860_v42  ;;  %v11015_v51 = vld [vmem:[#allocation2 + $0x18a] sm:$0xff]  ;;  %v11016_v42 = vld [vmem:[#allocation2 + $0x19a] sm:$0xff] }
 0x413   : > { %16430 = vmatprep.mubr.msk.f32.mxu0 %vm215_vm0, %v22861_v23  ;;  %16846 = vmatprep.mubr.msk.f32.mxu1 %vm215_vm0, %v22862_v12  ;;  %v11017_v23 = vld [vmem:[#allocation2 + $0x1a2] sm:$0xff] }
 0x414   : > { %v8177_v12 = vld [vmem:[#allocation2 + $0x1e1] sm:$0xff] }
 0x416   : > { %16431 = vmatmul.mubr.msk.f32.gmra.mrb[120].mxu0 %vm215_vm0, %v22863_v45  ;;  %16847 = vmatmul.mubr.msk.f32.gmra.mrb[120].mxu1 %vm215_vm0, %v22864_v36  ;;  %v11018_v45 = vld [vmem:[#allocation2 + $0x1e2] sm:$0xff] }
 0x417   : > { %16433 = vmatprep.mubr.msk.f32.mxu0 %vm215_vm0, %v22865_v1  ;;  %16849 = vmatprep.mubr.msk.f32.mxu1 %vm215_vm0, %v22866_v55  ;;  %v8178_v36 = vld [vmem:[#allocation2 + $0x1e9] sm:$0xff]  ;;  %v8179_v55 = vld [vmem:[#allocation2 + $0x1f9] sm:$0xff] }
 0x418   : > { %v11019_v1 = vld [vmem:[#allocation2 + $0x1ea] sm:$0xff] }
 0x41a   : > { %16434 = vmatmul.mubr.msk.f32.gmra.mrb[122].mxu0 %vm215_vm0, %v22867_v43  ;;  %16850 = vmatmul.mubr.msk.f32.gmra.mrb[122].mxu1 %vm215_vm0, %v22868_v27  ;;  %v11020_v43 = vld [vmem:[#allocation2 + $0x1fa] sm:$0xff]  ;;  %v8181_v27 = vld [vmem:[#allocation2 + $0x211] sm:$0xff] }
 0x41b   : > { %16436 = vmatprep.mubr.msk.f32.mxu0 %vm215_vm0, %v22869_v48  ;;  %16852 = vmatprep.mubr.msk.f32.mxu1 %vm215_vm0, %v22870_v25  ;;  %v11022_v48 = vld [vmem:[#allocation2 + $0x212] sm:$0xff] }
 0x41c   : > { %v8182_v25 = vld [vmem:[#allocation2 + $0x219] sm:$0xff] }
 0x41e   : > { %16437 = vmatmul.mubr.msk.f32.gmra.mrb[124].mxu0 %vm215_vm0, %v22871_v62  ;;  %16853 = vmatmul.mubr.msk.f32.gmra.mrb[124].mxu1 %vm215_vm0, %v21185_v8  ;;  %v10987_v8 = vld [vmem:[#allocation2 + $0x3a] sm:$0xff]  ;;  %v8183_v62 = vld [vmem:[#allocation2 + $0x229] sm:$0xff] }
 0x41f   : > { %16439 = vmatprep.mubr.msk.f32.mxu0 %vm215_vm0, %v7497_v56  ;;  %16855 = vmatprep.mubr.msk.f32.mxu1 %vm215_vm0, %v21467_v58  ;;  %v11023_v56 = vld [vmem:[#allocation2 + $0x21a] sm:$0xff] }
 0x422   : > { %16440 = vmatmul.mubr.msk.f32.gmra.mrb[126].mxu0 %vm215_vm0, %v7498_v14  ;;  %16856 = vmatmul.mubr.msk.f32.gmra.mrb[126].mxu1 %vm215_vm0, %v21476_v57  ;;  %v11024_v14 = vld [vmem:[#allocation2 + $0x22a] sm:$0xff] }
 0x423   : > { %16450 = vmatprep.mubr.msk.f32.mxu0 %vm215_vm0, %v21187_v37  ;;  %16866 = vmatprep.mubr.msk.f32.mxu1 %vm215_vm0, %v10986_v38  ;;  %v10991_v37 = vld [vmem:[#allocation2 + $0x6a] sm:$0xff] }
 0x424   : > { %v8184_v38 = vld [vmem:[#allocation2 + $0x231] sm:$0xff] }
 0x426   : > { %16451 = vmatmul.mubr.msk.f32.vlgmr.msra.gmra.mrb[64].mxu0 %vm215_vm0, %v21197_v21  ;;  %16867 = vmatmul.mubr.msk.f32.vlgmr.msra.gmra.mrb[64].mxu1 %vm215_vm0, %v10987_v8  ;;  %v10992_v21 = vld [vmem:[#allocation2 + $0x7a] sm:$0xff]  ;;  %v11025_v8 = vld [vmem:[#allocation2 + $0x232] sm:$0xff] }
 0x427   : > { %16453 = vmatprep.mubr.msk.f32.mxu0 %vm215_vm0, %v21201_v10  ;;  %16869 = vmatprep.mubr.msk.f32.mxu1 %vm215_vm0, %v10988_v40  ;;  %v10993_v10 = vld [vmem:[#allocation2 + $0x82] sm:$0xff] }
 0x428   : > { %v8185_v40 = vld [vmem:[#allocation2 + $0x241] sm:$0xff] }
 0x42a   : > { %16454 = vmatmul.mubr.msk.f32.gmra.mrb[66].mxu0 %vm215_vm0, %v21209_v49  ;;  %16870 = vmatmul.mubr.msk.f32.gmra.mrb[66].mxu1 %vm215_vm0, %v10989_v9  ;;  %v10994_v49 = vld [vmem:[#allocation2 + $0x92] sm:$0xff]  ;;  %v11026_v9 = vld [vmem:[#allocation2 + $0x242] sm:$0xff] }
 0x42b   : > { %16456 = vmatprep.mubr.msk.f32.mxu0 %vm215_vm0, %v21213_v28  ;;  %16872 = vmatprep.mubr.msk.f32.mxu1 %vm215_vm0, %v10990_v31  ;;  %v10995_v28 = vld [vmem:[#allocation2 + $0x9a] sm:$0xff]  ;;  %v8186_v31 = vld [vmem:[#allocation2 + $0x249] sm:$0xff] }
 0x42e   : > { %16457 = vmatmul.mubr.msk.f32.gmra.mrb[68].mxu0 %vm215_vm0, %v21223_v47  ;;  %16873 = vmatmul.mubr.msk.f32.gmra.mrb[68].mxu1 %vm215_vm0, %v10991_v37  ;;  %v10996_v47 = vld [vmem:[#allocation2 + $0xaa] sm:$0xff] }
 0x42f   : > { %16459 = vmatprep.mubr.msk.f32.mxu0 %vm215_vm0, %v21225_v59  ;;  %16875 = vmatprep.mubr.msk.f32.mxu1 %vm215_vm0, %v10992_v21  ;;  %v10997_v59 = vld [vmem:[#allocation2 + $0xb2] sm:$0xff]  ;;  %v11027_v37 = vld [vmem:[#allocation2 + $0x24a] sm:$0xff] }
 0x430   : > { %v8187_v21 = vld [vmem:[#allocation2 + $0x259] sm:$0xff] }
 0x432   : > { %16460 = vmatmul.mubr.msk.f32.gmra.mrb[70].mxu0 %vm215_vm0, %v21235_v18  ;;  %16876 = vmatmul.mubr.msk.f32.gmra.mrb[70].mxu1 %vm215_vm0, %v10993_v10  ;;  %v10998_v18 = vld [vmem:[#allocation2 + $0xc2] sm:$0xff]  ;;  %v11028_v10 = vld [vmem:[#allocation2 + $0x25a] sm:$0xff] }
 0x433   : > { %16462 = vmatprep.mubr.msk.f32.mxu0 %vm215_vm0, %v21237_v46  ;;  %16878 = vmatprep.mubr.msk.f32.mxu1 %vm215_vm0, %v10994_v49  ;;  %v10999_v46 = vld [vmem:[#allocation2 + $0xca] sm:$0xff]  ;;  %v8188_v49 = vld [vmem:[#allocation2 + $0x261] sm:$0xff] }
 0x436   : > { %16463 = vmatmul.mubr.msk.f32.gmra.mrb[72].mxu0 %vm215_vm0, %v21247_v50  ;;  %16879 = vmatmul.mubr.msk.f32.gmra.mrb[72].mxu1 %vm215_vm0, %v10995_v28  ;;  %v8159_v50 = vld [vmem:[#allocation2 + $0xd9] sm:$0xff]  ;;  %v11029_v28 = vld [vmem:[#allocation2 + $0x262] sm:$0xff] }
 0x437   : > { %16465 = vmatprep.mubr.msk.f32.mxu0 %vm215_vm0, %v21249_v52  ;;  %16881 = vmatprep.mubr.msk.f32.mxu1 %vm215_vm0, %v10996_v47  ;;  %v8160_v52 = vld [vmem:[#allocation2 + $0xe1] sm:$0xff]  ;;  %v8189_v47 = vld [vmem:[#allocation2 + $0x271] sm:$0xff] }
 0x43a   : > { %16466 = vmatmul.mubr.msk.f32.gmra.mrb[74].mxu0 %vm215_vm0, %v21259_v60  ;;  %16882 = vmatmul.mubr.msk.f32.gmra.mrb[74].mxu1 %vm215_vm0, %v10997_v59  ;;  %v11001_v60 = vld [vmem:[#allocation2 + $0xe2] sm:$0xff]  ;;  %v11030_v59 = vld [vmem:[#allocation2 + $0x272] sm:$0xff] }
 0x43b   : > { %16468 = vmatprep.mubr.msk.f32.mxu0 %vm215_vm0, %v21261_v3  ;;  %16884 = vmatprep.mubr.msk.f32.mxu1 %vm215_vm0, %v10998_v18  ;;  %v8162_v3 = vld [vmem:[#allocation2 + $0xf9] sm:$0xff] }
 0x43c   : > { %v8190_v18 = vld [vmem:[#allocation2 + $0x279] sm:$0xff] }
 0x43e   : > { %16469 = vmatmul.mubr.msk.f32.gmra.mrb[76].mxu0 %vm215_vm0, %v21271_v32  ;;  %16885 = vmatmul.mubr.msk.f32.gmra.mrb[76].mxu1 %vm215_vm0, %v10999_v46  ;;  %v11003_v32 = vld [vmem:[#allocation2 + $0xfa] sm:$0xff] }
 0x43f   : > { %16471 = vmatprep.mubr.msk.f32.mxu0 %vm215_vm0, %v8159_v50  ;;  %16887 = vmatprep.mubr.msk.f32.mxu1 %vm215_vm0, %v11000_v15  ;;  %v11031_v46 = vld [vmem:[#allocation2 + $0x27a] sm:$0xff]  ;;  %v8191_v50 = vld [vmem:[#allocation2 + $0x289] sm:$0xff] }
 0x440   : > { %v11032_v15 = vld [vmem:[#allocation2 + $0x28a] sm:$0xff] }
 0x442   : > { %16472 = vmatmul.mubr.msk.f32.gmra.mrb[78].mxu0 %vm215_vm0, %v8160_v52  ;;  %16888 = vmatmul.mubr.msk.f32.gmra.mrb[78].mxu1 %vm215_vm0, %v11001_v60  ;;  %v8192_v52 = vld [vmem:[#allocation2 + $0x291] sm:$0xff] }
 0x443   : > { %16474 = vmatprep.mubr.msk.f32.mxu0 %vm215_vm0, %v8161_v17  ;;  %16890 = vmatprep.mubr.msk.f32.mxu1 %vm215_vm0, %v11002_v19  ;;  %v11033_v60 = vld [vmem:[#allocation2 + $0x292] sm:$0xff]  ;;  %v8193_v17 = vld [vmem:[#allocation2 + $0x2a1] sm:$0xff] }
 0x444   : > { %v11034_v19 = vld [vmem:[#allocation2 + $0x2a2] sm:$0xff] }
 0x446   : > { %16475 = vmatmul.mubr.msk.f32.gmra.mrb[80].mxu0 %vm215_vm0, %v8162_v3  ;;  %16891 = vmatmul.mubr.msk.f32.gmra.mrb[80].mxu1 %vm215_vm0, %v11003_v32  ;;  %v8194_v3 = vld [vmem:[#allocation2 + $0x2a9] sm:$0xff] }
 0x447   : > { %16477 = vmatprep.mubr.msk.f32.mxu0 %vm215_vm0, %v8163_v7  ;;  %16893 = vmatprep.mubr.msk.f32.mxu1 %vm215_vm0, %v11004_v41  ;;  %v11035_v32 = vld [vmem:[#allocation2 + $0x2aa] sm:$0xff]  ;;  %v8195_v7 = vld [vmem:[#allocation2 + $0x2b9] sm:$0xff] }
 0x448   : > { %v11036_v41 = vld [vmem:[#allocation2 + $0x2ba] sm:$0xff] }
 0x44a   : > { %16478 = vmatmul.mubr.msk.f32.gmra.mrb[82].mxu0 %vm215_vm0, %v8164_v39  ;;  %16894 = vmatmul.mubr.msk.f32.gmra.mrb[82].mxu1 %vm215_vm0, %v11005_v0  ;;  %v8196_v39 = vld [vmem:[#allocation2 + $0x2c1] sm:$0xff] }
 0x44b   : > { %16480 = vmatprep.mubr.msk.f32.mxu0 %vm215_vm0, %v8165_v6  ;;  %16896 = vmatprep.mubr.msk.f32.mxu1 %vm215_vm0, %v11006_v16  ;;  %v11037_v0 = vld [vmem:[#allocation2 + $0x2c2] sm:$0xff]  ;;  %v8197_v6 = vld [vmem:[#allocation2 + $0x2d1] sm:$0xff] }
 0x44c   : > { %v11038_v16 = vld [vmem:[#allocation2 + $0x2d2] sm:$0xff] }
 0x44e   : > { %16481 = vmatmul.mubr.msk.f32.gmra.mrb[84].mxu0 %vm215_vm0, %v8166_v34  ;;  %16897 = vmatmul.mubr.msk.f32.gmra.mrb[84].mxu1 %vm215_vm0, %v11007_v26  ;;  %v8198_v34 = vld [vmem:[#allocation2 + $0x2d9] sm:$0xff] }
 0x44f   : > { %16483 = vmatprep.mubr.msk.f32.mxu0 %vm215_vm0, %v8167_v33  ;;  %16899 = vmatprep.mubr.msk.f32.mxu1 %vm215_vm0, %v11008_v29  ;;  %v11039_v26 = vld [vmem:[#allocation2 + $0x2da] sm:$0xff]  ;;  %v8199_v33 = vld [vmem:[#allocation2 + $0x2e9] sm:$0xff] }
 0x450   : > { %v11040_v29 = vld [vmem:[#allocation2 + $0x2ea] sm:$0xff] }
 0x452   : > { %16484 = vmatmul.mubr.msk.f32.gmra.mrb[86].mxu0 %vm215_vm0, %v8168_v20  ;;  %16900 = vmatmul.mubr.msk.f32.gmra.mrb[86].mxu1 %vm215_vm0, %v11009_v63  ;;  %v8200_v20 = vld [vmem:[#allocation2 + $0x2f1] sm:$0xff] }
 0x453   : > { %16486 = vmatprep.mubr.msk.f32.mxu0 %vm215_vm0, %v8169_v54  ;;  %16902 = vmatprep.mubr.msk.f32.mxu1 %vm215_vm0, %v11010_v22  ;;  %v11041_v63 = vld [vmem:[#allocation2 + $0x2f2] sm:$0xff]  ;;  %v8201_v54 = vld [vmem:[#allocation2 + $0x301] sm:$0xff] }
 0x454   : > { %v11042_v22 = vld [vmem:[#allocation2 + $0x302] sm:$0xff] }
 0x456   : > { %16487 = vmatmul.mubr.msk.f32.gmra.mrb[88].mxu0 %vm215_vm0, %v8170_v2  ;;  %16903 = vmatmul.mubr.msk.f32.gmra.mrb[88].mxu1 %vm215_vm0, %v11011_v30  ;;  %v8202_v2 = vld [vmem:[#allocation2 + $0x309] sm:$0xff] }
 0x457   : > { %16489 = vmatprep.mubr.msk.f32.mxu0 %vm215_vm0, %v8171_v5  ;;  %16905 = vmatprep.mubr.msk.f32.mxu1 %vm215_vm0, %v11012_v11  ;;  %v11043_v30 = vld [vmem:[#allocation2 + $0x30a] sm:$0xff]  ;;  %v8203_v5 = vld [vmem:[#allocation2 + $0x319] sm:$0xff] }
 0x458   : > { %v11044_v11 = vld [vmem:[#allocation2 + $0x31a] sm:$0xff] }
 0x45a   : > { %16490 = vmatmul.mubr.msk.f32.gmra.mrb[90].mxu0 %vm215_vm0, %v8172_v13  ;;  %16906 = vmatmul.mubr.msk.f32.gmra.mrb[90].mxu1 %vm215_vm0, %v11013_v61  ;;  %v8204_v13 = vld [vmem:[#allocation2 + $0x321] sm:$0xff] }
 0x45b   : > { %16492 = vmatprep.mubr.msk.f32.mxu0 %vm215_vm0, %v8173_v53  ;;  %16908 = vmatprep.mubr.msk.f32.mxu1 %vm215_vm0, %v11014_v24  ;;  %v11045_v61 = vld [vmem:[#allocation2 + $0x322] sm:$0xff]  ;;  %v8205_v53 = vld [vmem:[#allocation2 + $0x331] sm:$0xff] }
 0x45c   : > { %v11046_v24 = vld [vmem:[#allocation2 + $0x332] sm:$0xff] }
 0x45e   : > { %16493 = vmatmul.mubr.msk.f32.gmra.mrb[92].mxu0 %vm215_vm0, %v8174_v4  ;;  %16909 = vmatmul.mubr.msk.f32.gmra.mrb[92].mxu1 %vm215_vm0, %v11015_v51  ;;  %v8206_v4 = vld [vmem:[#allocation2 + $0x339] sm:$0xff] }
 0x45f   : > { %16495 = vmatprep.mubr.msk.f32.mxu0 %vm215_vm0, %v21337_v44  ;;  %16911 = vmatprep.mubr.msk.f32.mxu1 %vm215_vm0, %v11016_v42  ;;  %v8180_v44 = vld [vmem:[#allocation2 + $0x201] sm:$0xff]  ;;  %v11048_v42 = vld [vmem:[#allocation2 + $0x34a] sm:$0xff] }
 0x460   : > { %v11047_v51 = vld [vmem:[#allocation2 + $0x33a] sm:$0xff] }
 0x462   : > { %16496 = vmatmul.mubr.msk.f32.gmra.mrb[94].mxu0 %vm215_vm0, %v21346_v35  ;;  %16912 = vmatmul.mubr.msk.f32.gmra.mrb[94].mxu1 %vm215_vm0, %v11017_v23  ;;  %v11021_v35 = vld [vmem:[#allocation2 + $0x202] sm:$0xff]  ;;  %v11049_v23 = vld [vmem:[#allocation2 + $0x352] sm:$0xff] }
 0x463   : > { %16498 = vmatprep.mubr.msk.f32.mxu0 %vm215_vm0, %v8177_v12  ;;  %16914 = vmatprep.mubr.msk.f32.mxu1 %vm215_vm0, %v11018_v45  ;;  %v21627_v45 = vld [vmem:[#allocation7] ss:$0 sm:$0xff] }
 0x466   : > { %16499 = vmatmul.mubr.msk.f32.gmra.mrb[96].mxu0 %vm215_vm0, %v8178_v36  ;;  %16915 = vmatmul.mubr.msk.f32.gmra.mrb[96].mxu1 %vm215_vm0, %v11019_v1 }
 0x467   : > { %16501 = vmatprep.mubr.msk.f32.mxu0 %vm215_vm0, %v8179_v55  ;;  %16917 = vmatprep.mubr.msk.f32.mxu1 %vm215_vm0, %v11020_v43 }
 0x46a   : > { %16502 = vmatmul.mubr.msk.f32.gmra.mrb[98].mxu0 %vm215_vm0, %v8180_v44  ;;  %16918 = vmatmul.mubr.msk.f32.gmra.mrb[98].mxu1 %vm215_vm0, %v11021_v35 }
 0x46b   : > { %16504 = vmatprep.mubr.msk.f32.mxu0 %vm215_vm0, %v8181_v27  ;;  %16920 = vmatprep.mubr.msk.f32.mxu1 %vm215_vm0, %v11022_v48 }
 0x46e   : > { %16505 = vmatmul.mubr.msk.f32.gmra.mrb[100].mxu0 %vm215_vm0, %v8182_v25  ;;  %16921 = vmatmul.mubr.msk.f32.gmra.mrb[100].mxu1 %vm215_vm0, %v11023_v56 }
 0x46f   : > { %16507 = vmatprep.mubr.msk.f32.mxu0 %vm215_vm0, %v8183_v62  ;;  %16923 = vmatprep.mubr.msk.f32.mxu1 %vm215_vm0, %v11024_v14 }
 0x472   : > { %16508 = vmatmul.mubr.msk.f32.gmra.mrb[102].mxu0 %vm215_vm0, %v8184_v38  ;;  %16924 = vmatmul.mubr.msk.f32.gmra.mrb[102].mxu1 %vm215_vm0, %v11025_v8 }
 0x473   : > { %16510 = vmatprep.mubr.msk.f32.mxu0 %vm215_vm0, %v8185_v40  ;;  %16926 = vmatprep.mubr.msk.f32.mxu1 %vm215_vm0, %v11026_v9 }
 0x476   : > { %16511 = vmatmul.mubr.msk.f32.gmra.mrb[104].mxu0 %vm215_vm0, %v8186_v31  ;;  %16927 = vmatmul.mubr.msk.f32.gmra.mrb[104].mxu1 %vm215_vm0, %v11027_v37 }
 0x477   : > { %16513 = vmatprep.mubr.msk.f32.mxu0 %vm215_vm0, %v8187_v21  ;;  %16929 = vmatprep.mubr.msk.f32.mxu1 %vm215_vm0, %v11028_v10 }
 0x47a   : > { %16514 = vmatmul.mubr.msk.f32.gmra.mrb[106].mxu0 %vm215_vm0, %v8188_v49  ;;  %16930 = vmatmul.mubr.msk.f32.gmra.mrb[106].mxu1 %vm215_vm0, %v11029_v28 }
 0x47b   : > { %16516 = vmatprep.mubr.msk.f32.mxu0 %vm215_vm0, %v8189_v47  ;;  %16932 = vmatprep.mubr.msk.f32.mxu1 %vm215_vm0, %v11030_v59 }
 0x47e   : > { %16517 = vmatmul.mubr.msk.f32.gmra.mrb[108].mxu0 %vm215_vm0, %v8190_v18  ;;  %16933 = vmatmul.mubr.msk.f32.gmra.mrb[108].mxu1 %vm215_vm0, %v11031_v46 }
 0x47f   : > { %16519 = vmatprep.mubr.msk.f32.mxu0 %vm215_vm0, %v8191_v50  ;;  %16935 = vmatprep.mubr.msk.f32.mxu1 %vm215_vm0, %v11032_v15 }
 0x482   : > { %16520 = vmatmul.mubr.msk.f32.gmra.mrb[110].mxu0 %vm215_vm0, %v8192_v52  ;;  %16936 = vmatmul.mubr.msk.f32.gmra.mrb[110].mxu1 %vm215_vm0, %v11033_v60 }
 0x483   : > { %16522 = vmatprep.mubr.msk.f32.mxu0 %vm215_vm0, %v8193_v17  ;;  %16938 = vmatprep.mubr.msk.f32.mxu1 %vm215_vm0, %v11034_v19 }
 0x486   : > { %16523 = vmatmul.mubr.msk.f32.gmra.mrb[112].mxu0 %vm215_vm0, %v8194_v3  ;;  %16939 = vmatmul.mubr.msk.f32.gmra.mrb[112].mxu1 %vm215_vm0, %v11035_v32 }
 0x487   : > { %16525 = vmatprep.mubr.msk.f32.mxu0 %vm215_vm0, %v8195_v7  ;;  %16941 = vmatprep.mubr.msk.f32.mxu1 %vm215_vm0, %v11036_v41 }
 0x48a   : > { %16526 = vmatmul.mubr.msk.f32.gmra.mrb[114].mxu0 %vm215_vm0, %v8196_v39  ;;  %16942 = vmatmul.mubr.msk.f32.gmra.mrb[114].mxu1 %vm215_vm0, %v11037_v0 }
 0x48b   : > { %16528 = vmatprep.mubr.msk.f32.mxu0 %vm215_vm0, %v8197_v6  ;;  %16944 = vmatprep.mubr.msk.f32.mxu1 %vm215_vm0, %v11038_v16 }
 0x48e   : > { %16529 = vmatmul.mubr.msk.f32.gmra.mrb[116].mxu0 %vm215_vm0, %v8198_v34  ;;  %16945 = vmatmul.mubr.msk.f32.gmra.mrb[116].mxu1 %vm215_vm0, %v11039_v26 }
 0x48f   : > { %16531 = vmatprep.mubr.msk.f32.mxu0 %vm215_vm0, %v8199_v33  ;;  %16947 = vmatprep.mubr.msk.f32.mxu1 %vm215_vm0, %v11040_v29 }
 0x492   : > { %16532 = vmatmul.mubr.msk.f32.gmra.mrb[118].mxu0 %vm215_vm0, %v8200_v20  ;;  %16948 = vmatmul.mubr.msk.f32.gmra.mrb[118].mxu1 %vm215_vm0, %v11041_v63 }
 0x493   : > { %16534 = vmatprep.mubr.msk.f32.mxu0 %vm215_vm0, %v8201_v54  ;;  %16950 = vmatprep.mubr.msk.f32.mxu1 %vm215_vm0, %v11042_v22 }
 0x496   : > { %16535 = vmatmul.mubr.msk.f32.gmra.mrb[120].mxu0 %vm215_vm0, %v8202_v2  ;;  %16951 = vmatmul.mubr.msk.f32.gmra.mrb[120].mxu1 %vm215_vm0, %v11043_v30 }
 0x497   : > { %16537 = vmatprep.mubr.msk.f32.mxu0 %vm215_vm0, %v8203_v5  ;;  %16953 = vmatprep.mubr.msk.f32.mxu1 %vm215_vm0, %v11044_v11 }
 0x49a   : > { %16538 = vmatmul.mubr.msk.f32.gmra.mrb[122].mxu0 %vm215_vm0, %v8204_v13  ;;  %16954 = vmatmul.mubr.msk.f32.gmra.mrb[122].mxu1 %vm215_vm0, %v11045_v61 }
 0x49b   : > { %16540 = vmatprep.mubr.msk.f32.mxu0 %vm215_vm0, %v8205_v53  ;;  %16956 = vmatprep.mubr.msk.f32.mxu1 %vm215_vm0, %v11046_v24 }
 0x49e   : > { %16541 = vmatmul.mubr.msk.f32.gmra.mrb[124].mxu0 %vm215_vm0, %v8206_v4  ;;  %16957 = vmatmul.mubr.msk.f32.gmra.mrb[124].mxu1 %vm215_vm0, %v11047_v51 }
 0x49f   : > { %16543 = vmatprep.mubr.msk.f32.mxu0 %vm215_vm0, %v21467_v58  ;;  %16959 = vmatprep.mubr.msk.f32.mxu1 %vm215_vm0, %v11048_v42 }
 0x4a2   : > { %16544 = vmatmul.mubr.msk.f32.gmra.mrb[126].mxu0 %vm215_vm0, %v21476_v57  ;;  %16960 = vmatmul.mubr.msk.f32.gmra.mrb[126].mxu1 %vm215_vm0, %v11049_v23 }
 0x4f9   : > { %v16452_v12 = vpop.f32.mrb[64].mxu0  ;;  %v16868_v1 = vpop.f32.mrb[64].mxu1 }
 0x4fa   : > { %v8856_v36 = vadd.f32 %v21627_v45, %v16452_v12  ;;  %v8472_v55 = vpop.f32.mrb[65].mxu0  ;;  %v11697_v58 = vadd.f32 %v21627_v45, %v16868_v1  ;;  %v11313_v44 = vpop.f32.mrb[65].mxu1 }
 0x4fb   : > { %v8855_v43 = vadd.f32 %v21627_v45, %v8472_v55  ;;  %v11696_v57 = vadd.f32 %v21627_v45, %v11313_v44 }
 0x4fc   : > { %13817 = vst.msk [vmem:[%s20277_s18 + $0x408] sm:$0xff] %vm3236_vm2, %v8856_v36  ;;  %14137 = vst.msk [vmem:[%s20277_s18 + $0x608] sm:$0xff] %vm3236_vm2, %v11697_v58 }
 0x4fd   : > { %13816 = vst.msk [vmem:[%s20277_s18 + $0x400] sm:$0xff] %vm3236_vm2, %v8855_v43  ;;  %v16455_v35 = vpop.f32.mrb[66].mxu0  ;;  %14136 = vst.msk [vmem:[%s20277_s18 + $0x600] sm:$0xff] %vm3236_vm2, %v11696_v57  ;;  %v16871_v48 = vpop.f32.mrb[66].mxu1 }
 0x4fe   : > { %v8858_v27 = vadd.f32 %v21627_v45, %v16455_v35  ;;  %v8482_v25 = vpop.f32.mrb[67].mxu0  ;;  %v11699_v56 = vadd.f32 %v21627_v45, %v16871_v48  ;;  %v11323_v14 = vpop.f32.mrb[67].mxu1 }
 0x4ff   : > { %v8857_v62 = vadd.f32 %v21627_v45, %v8482_v25  ;;  %v11698_v38 = vadd.f32 %v21627_v45, %v11323_v14 }
 0x500   : > { %13819 = vst.msk [vmem:[%s20277_s18 + $0x418] sm:$0xff] %vm3236_vm2, %v8858_v27  ;;  %14139 = vst.msk [vmem:[%s20277_s18 + $0x618] sm:$0xff] %vm3236_vm2, %v11699_v56 }
 0x501   : > { %13818 = vst.msk [vmem:[%s20277_s18 + $0x410] sm:$0xff] %vm3236_vm2, %v8857_v62  ;;  %v16458_v8 = vpop.f32.mrb[68].mxu0  ;;  %14138 = vst.msk [vmem:[%s20277_s18 + $0x610] sm:$0xff] %vm3236_vm2, %v11698_v38  ;;  %v16874_v9 = vpop.f32.mrb[68].mxu1 }
 0x502   : > { %v8860_v40 = vadd.f32 %v21627_v45, %v16458_v8  ;;  %v8492_v31 = vpop.f32.mrb[69].mxu0  ;;  %v11701_v37 = vadd.f32 %v21627_v45, %v16874_v9  ;;  %v11333_v10 = vpop.f32.mrb[69].mxu1 }
 0x503   : > { %v8859_v21 = vadd.f32 %v21627_v45, %v8492_v31  ;;  %v11700_v49 = vadd.f32 %v21627_v45, %v11333_v10 }
 0x504   : > { %13821 = vst.msk [vmem:[%s20277_s18 + $0x428] sm:$0xff] %vm3236_vm2, %v8860_v40  ;;  %14141 = vst.msk [vmem:[%s20277_s18 + $0x628] sm:$0xff] %vm3236_vm2, %v11701_v37 }
 0x505   : > { %13820 = vst.msk [vmem:[%s20277_s18 + $0x420] sm:$0xff] %vm3236_vm2, %v8859_v21  ;;  %v16461_v28 = vpop.f32.mrb[70].mxu0  ;;  %14140 = vst.msk [vmem:[%s20277_s18 + $0x620] sm:$0xff] %vm3236_vm2, %v11700_v49  ;;  %v16877_v59 = vpop.f32.mrb[70].mxu1 }
 0x506   : > { %v8862_v47 = vadd.f32 %v21627_v45, %v16461_v28  ;;  %v8502_v18 = vpop.f32.mrb[71].mxu0  ;;  %v11703_v46 = vadd.f32 %v21627_v45, %v16877_v59  ;;  %v11343_v15 = vpop.f32.mrb[71].mxu1 }
 0x507   : > { %v8861_v50 = vadd.f32 %v21627_v45, %v8502_v18  ;;  %v11702_v52 = vadd.f32 %v21627_v45, %v11343_v15 }
 0x508   : > { %13823 = vst.msk [vmem:[%s20277_s18 + $0x438] sm:$0xff] %vm3236_vm2, %v8862_v47  ;;  %14143 = vst.msk [vmem:[%s20277_s18 + $0x638] sm:$0xff] %vm3236_vm2, %v11703_v46 }
 0x509   : > { %13822 = vst.msk [vmem:[%s20277_s18 + $0x430] sm:$0xff] %vm3236_vm2, %v8861_v50  ;;  %v16464_v60 = vpop.f32.mrb[72].mxu0  ;;  %14142 = vst.msk [vmem:[%s20277_s18 + $0x630] sm:$0xff] %vm3236_vm2, %v11702_v52  ;;  %v16880_v19 = vpop.f32.mrb[72].mxu1 }
 0x50a   : > { %v8864_v17 = vadd.f32 %v21627_v45, %v16464_v60  ;;  %v8512_v3 = vpop.f32.mrb[73].mxu0  ;;  %v11705_v32 = vadd.f32 %v21627_v45, %v16880_v19  ;;  %v11353_v41 = vpop.f32.mrb[73].mxu1 }
 0x50b   : > { %v8863_v7 = vadd.f32 %v21627_v45, %v8512_v3  ;;  %v11704_v39 = vadd.f32 %v21627_v45, %v11353_v41 }
 0x50c   : > { %13825 = vst.msk [vmem:[%s20277_s18 + $0x448] sm:$0xff] %vm3236_vm2, %v8864_v17  ;;  %14145 = vst.msk [vmem:[%s20277_s18 + $0x648] sm:$0xff] %vm3236_vm2, %v11705_v32 }
 0x50d   : > { %13824 = vst.msk [vmem:[%s20277_s18 + $0x440] sm:$0xff] %vm3236_vm2, %v8863_v7  ;;  %v16467_v0 = vpop.f32.mrb[74].mxu0  ;;  %14144 = vst.msk [vmem:[%s20277_s18 + $0x640] sm:$0xff] %vm3236_vm2, %v11704_v39  ;;  %v16883_v16 = vpop.f32.mrb[74].mxu1 }
 0x50e   : > { %v8866_v6 = vadd.f32 %v21627_v45, %v16467_v0  ;;  %v8522_v34 = vpop.f32.mrb[75].mxu0  ;;  %v11707_v26 = vadd.f32 %v21627_v45, %v16883_v16  ;;  %v11363_v29 = vpop.f32.mrb[75].mxu1 }
 0x50f   : > { %v8865_v33 = vadd.f32 %v21627_v45, %v8522_v34  ;;  %v11706_v20 = vadd.f32 %v21627_v45, %v11363_v29 }
 0x510   : > { %13827 = vst.msk [vmem:[%s20277_s18 + $0x458] sm:$0xff] %vm3236_vm2, %v8866_v6  ;;  %14147 = vst.msk [vmem:[%s20277_s18 + $0x658] sm:$0xff] %vm3236_vm2, %v11707_v26 }
 0x511   : > { %13826 = vst.msk [vmem:[%s20277_s18 + $0x450] sm:$0xff] %vm3236_vm2, %v8865_v33  ;;  %v16470_v63 = vpop.f32.mrb[76].mxu0  ;;  %14146 = vst.msk [vmem:[%s20277_s18 + $0x650] sm:$0xff] %vm3236_vm2, %v11706_v20  ;;  %v16886_v22 = vpop.f32.mrb[76].mxu1 }
 0x512   : > { %v8868_v54 = vadd.f32 %v21627_v45, %v16470_v63  ;;  %v8532_v2 = vpop.f32.mrb[77].mxu0  ;;  %v11709_v30 = vadd.f32 %v21627_v45, %v16886_v22  ;;  %v11373_v11 = vpop.f32.mrb[77].mxu1 }
 0x513   : > { %v8867_v5 = vadd.f32 %v21627_v45, %v8532_v2  ;;  %v11708_v13 = vadd.f32 %v21627_v45, %v11373_v11 }
 0x514   : > { %13829 = vst.msk [vmem:[%s20277_s18 + $0x468] sm:$0xff] %vm3236_vm2, %v8868_v54  ;;  %14149 = vst.msk [vmem:[%s20277_s18 + $0x668] sm:$0xff] %vm3236_vm2, %v11709_v30 }
 0x515   : > { %13828 = vst.msk [vmem:[%s20277_s18 + $0x460] sm:$0xff] %vm3236_vm2, %v8867_v5  ;;  %v16473_v61 = vpop.f32.mrb[78].mxu0  ;;  %14148 = vst.msk [vmem:[%s20277_s18 + $0x660] sm:$0xff] %vm3236_vm2, %v11708_v13  ;;  %v16889_v24 = vpop.f32.mrb[78].mxu1 }
 0x516   : > { %v8870_v53 = vadd.f32 %v21627_v45, %v16473_v61  ;;  %v8542_v4 = vpop.f32.mrb[79].mxu0  ;;  %v11711_v51 = vadd.f32 %v21627_v45, %v16889_v24  ;;  %v11383_v23 = vpop.f32.mrb[79].mxu1 }
 0x517   : > { %v8869_v42 = vadd.f32 %v21627_v45, %v8542_v4  ;;  %v11710_v12 = vadd.f32 %v21627_v45, %v11383_v23 }
 0x518   : > { %13831 = vst.msk [vmem:[%s20277_s18 + $0x478] sm:$0xff] %vm3236_vm2, %v8870_v53  ;;  %14151 = vst.msk [vmem:[%s20277_s18 + $0x678] sm:$0xff] %vm3236_vm2, %v11711_v51 }
 0x519   : > { %13830 = vst.msk [vmem:[%s20277_s18 + $0x470] sm:$0xff] %vm3236_vm2, %v8869_v42  ;;  %v16476_v36 = vpop.f32.mrb[80].mxu0  ;;  %14150 = vst.msk [vmem:[%s20277_s18 + $0x670] sm:$0xff] %vm3236_vm2, %v11710_v12  ;;  %v16892_v55 = vpop.f32.mrb[80].mxu1 }
 0x51a   : > { %v8872_v1 = vadd.f32 %v21627_v45, %v16476_v36  ;;  %v8552_v58 = vpop.f32.mrb[81].mxu0  ;;  %v11713_v43 = vadd.f32 %v21627_v45, %v16892_v55  ;;  %v11393_v57 = vpop.f32.mrb[81].mxu1 }
 0x51b   : > { %v8871_v44 = vadd.f32 %v21627_v45, %v8552_v58  ;;  %v11712_v35 = vadd.f32 %v21627_v45, %v11393_v57 }
 0x51c   : > { %13833 = vst.msk [vmem:[%s20277_s18 + $0x488] sm:$0xff] %vm3236_vm2, %v8872_v1  ;;  %14153 = vst.msk [vmem:[%s20277_s18 + $0x688] sm:$0xff] %vm3236_vm2, %v11713_v43 }
 0x51d   : > { %13832 = vst.msk [vmem:[%s20277_s18 + $0x480] sm:$0xff] %vm3236_vm2, %v8871_v44  ;;  %v16479_v27 = vpop.f32.mrb[82].mxu0  ;;  %14152 = vst.msk [vmem:[%s20277_s18 + $0x680] sm:$0xff] %vm3236_vm2, %v11712_v35  ;;  %v16895_v25 = vpop.f32.mrb[82].mxu1 }
 0x51e   : > { %v8874_v48 = vadd.f32 %v21627_v45, %v16479_v27  ;;  %v8562_v56 = vpop.f32.mrb[83].mxu0  ;;  %v11715_v62 = vadd.f32 %v21627_v45, %v16895_v25  ;;  %v11403_v38 = vpop.f32.mrb[83].mxu1 }
 0x51f   : > { %v8873_v14 = vadd.f32 %v21627_v45, %v8562_v56  ;;  %v11714_v8 = vadd.f32 %v21627_v45, %v11403_v38 }
 0x520   : > { %13835 = vst.msk [vmem:[%s20277_s18 + $0x498] sm:$0xff] %vm3236_vm2, %v8874_v48  ;;  %14155 = vst.msk [vmem:[%s20277_s18 + $0x698] sm:$0xff] %vm3236_vm2, %v11715_v62 }
 0x521   : > { %13834 = vst.msk [vmem:[%s20277_s18 + $0x490] sm:$0xff] %vm3236_vm2, %v8873_v14  ;;  %v16482_v40 = vpop.f32.mrb[84].mxu0  ;;  %14154 = vst.msk [vmem:[%s20277_s18 + $0x690] sm:$0xff] %vm3236_vm2, %v11714_v8  ;;  %v16898_v31 = vpop.f32.mrb[84].mxu1 }
 0x522   : > { %v8876_v9 = vadd.f32 %v21627_v45, %v16482_v40  ;;  %v8572_v37 = vpop.f32.mrb[85].mxu0  ;;  %v11717_v21 = vadd.f32 %v21627_v45, %v16898_v31  ;;  %v11413_v49 = vpop.f32.mrb[85].mxu1 }
 0x523   : > { %v8875_v10 = vadd.f32 %v21627_v45, %v8572_v37  ;;  %v11716_v28 = vadd.f32 %v21627_v45, %v11413_v49 }
 0x524   : > { %13837 = vst.msk [vmem:[%s20277_s18 + $0x4a8] sm:$0xff] %vm3236_vm2, %v8876_v9  ;;  %14157 = vst.msk [vmem:[%s20277_s18 + $0x6a8] sm:$0xff] %vm3236_vm2, %v11717_v21 }
 0x525   : > { %13836 = vst.msk [vmem:[%s20277_s18 + $0x4a0] sm:$0xff] %vm3236_vm2, %v8875_v10  ;;  %v16485_v47 = vpop.f32.mrb[86].mxu0  ;;  %14156 = vst.msk [vmem:[%s20277_s18 + $0x6a0] sm:$0xff] %vm3236_vm2, %v11716_v28  ;;  %v16901_v18 = vpop.f32.mrb[86].mxu1 }
 0x526   : > { %v8878_v59 = vadd.f32 %v21627_v45, %v16485_v47  ;;  %v8582_v46 = vpop.f32.mrb[87].mxu0  ;;  %v11719_v50 = vadd.f32 %v21627_v45, %v16901_v18  ;;  %v11423_v52 = vpop.f32.mrb[87].mxu1 }
 0x527   : > { %v8877_v15 = vadd.f32 %v21627_v45, %v8582_v46  ;;  %v11718_v60 = vadd.f32 %v21627_v45, %v11423_v52 }
 0x528   : > { %13839 = vst.msk [vmem:[%s20277_s18 + $0x4b8] sm:$0xff] %vm3236_vm2, %v8878_v59  ;;  %14159 = vst.msk [vmem:[%s20277_s18 + $0x6b8] sm:$0xff] %vm3236_vm2, %v11719_v50 }
 0x529   : > { %13838 = vst.msk [vmem:[%s20277_s18 + $0x4b0] sm:$0xff] %vm3236_vm2, %v8877_v15  ;;  %v16488_v17 = vpop.f32.mrb[88].mxu0  ;;  %14158 = vst.msk [vmem:[%s20277_s18 + $0x6b0] sm:$0xff] %vm3236_vm2, %v11718_v60  ;;  %v16904_v3 = vpop.f32.mrb[88].mxu1 }
 0x52a   : > { %v8880_v19 = vadd.f32 %v21627_v45, %v16488_v17  ;;  %v8592_v32 = vpop.f32.mrb[89].mxu0  ;;  %v11721_v7 = vadd.f32 %v21627_v45, %v16904_v3  ;;  %v11433_v39 = vpop.f32.mrb[89].mxu1 }
 0x52b   : > { %v8879_v41 = vadd.f32 %v21627_v45, %v8592_v32  ;;  %v11720_v0 = vadd.f32 %v21627_v45, %v11433_v39 }
 0x52c   : > { %13841 = vst.msk [vmem:[%s20277_s18 + $0x4c8] sm:$0xff] %vm3236_vm2, %v8880_v19  ;;  %14161 = vst.msk [vmem:[%s20277_s18 + $0x6c8] sm:$0xff] %vm3236_vm2, %v11721_v7 }
 0x52d   : > { %13840 = vst.msk [vmem:[%s20277_s18 + $0x4c0] sm:$0xff] %vm3236_vm2, %v8879_v41  ;;  %v16491_v6 = vpop.f32.mrb[90].mxu0  ;;  %14160 = vst.msk [vmem:[%s20277_s18 + $0x6c0] sm:$0xff] %vm3236_vm2, %v11720_v0  ;;  %v16907_v34 = vpop.f32.mrb[90].mxu1 }
 0x52e   : > { %v8882_v16 = vadd.f32 %v21627_v45, %v16491_v6  ;;  %v8602_v26 = vpop.f32.mrb[91].mxu0  ;;  %v11723_v33 = vadd.f32 %v21627_v45, %v16907_v34  ;;  %v11443_v20 = vpop.f32.mrb[91].mxu1 }
 0x52f   : > { %v8881_v29 = vadd.f32 %v21627_v45, %v8602_v26  ;;  %v11722_v63 = vadd.f32 %v21627_v45, %v11443_v20 }
 0x530   : > { %13843 = vst.msk [vmem:[%s20277_s18 + $0x4d8] sm:$0xff] %vm3236_vm2, %v8882_v16  ;;  %14163 = vst.msk [vmem:[%s20277_s18 + $0x6d8] sm:$0xff] %vm3236_vm2, %v11723_v33 }
 0x531   : > { %13842 = vst.msk [vmem:[%s20277_s18 + $0x4d0] sm:$0xff] %vm3236_vm2, %v8881_v29  ;;  %v16494_v54 = vpop.f32.mrb[92].mxu0  ;;  %14162 = vst.msk [vmem:[%s20277_s18 + $0x6d0] sm:$0xff] %vm3236_vm2, %v11722_v63  ;;  %v16910_v2 = vpop.f32.mrb[92].mxu1 }
 0x532   : > { %v8884_v22 = vadd.f32 %v21627_v45, %v16494_v54  ;;  %v8612_v30 = vpop.f32.mrb[93].mxu0  ;;  %v11725_v5 = vadd.f32 %v21627_v45, %v16910_v2  ;;  %v11453_v13 = vpop.f32.mrb[93].mxu1 }
 0x533   : > { %v8883_v11 = vadd.f32 %v21627_v45, %v8612_v30  ;;  %v11724_v61 = vadd.f32 %v21627_v45, %v11453_v13 }
 0x534   : > { %13845 = vst.msk [vmem:[%s20277_s18 + $0x4e8] sm:$0xff] %vm3236_vm2, %v8884_v22  ;;  %14165 = vst.msk [vmem:[%s20277_s18 + $0x6e8] sm:$0xff] %vm3236_vm2, %v11725_v5 }
 0x535   : > { %13844 = vst.msk [vmem:[%s20277_s18 + $0x4e0] sm:$0xff] %vm3236_vm2, %v8883_v11  ;;  %v16497_v53 = vpop.f32.mrb[94].mxu0  ;;  %14164 = vst.msk [vmem:[%s20277_s18 + $0x6e0] sm:$0xff] %vm3236_vm2, %v11724_v61  ;;  %v16913_v4 = vpop.f32.mrb[94].mxu1 }
 0x536   : > { %v8886_v24 = vadd.f32 %v21627_v45, %v16497_v53  ;;  %v8622_v51 = vpop.f32.mrb[95].mxu0  ;;  %v11727_v42 = vadd.f32 %v21627_v45, %v16913_v4  ;;  %v11463_v12 = vpop.f32.mrb[95].mxu1 }
 0x537   : > { %v8885_v23 = vadd.f32 %v21627_v45, %v8622_v51  ;;  %v11726_v36 = vadd.f32 %v21627_v45, %v11463_v12 }
 0x538   : > { %13847 = vst.msk [vmem:[%s20277_s18 + $0x4f8] sm:$0xff] %vm3236_vm2, %v8886_v24  ;;  %14167 = vst.msk [vmem:[%s20277_s18 + $0x6f8] sm:$0xff] %vm3236_vm2, %v11727_v42 }
 0x539   : > { %13846 = vst.msk [vmem:[%s20277_s18 + $0x4f0] sm:$0xff] %vm3236_vm2, %v8885_v23  ;;  %v16500_v1 = vpop.f32.mrb[96].mxu0  ;;  %14166 = vst.msk [vmem:[%s20277_s18 + $0x6f0] sm:$0xff] %vm3236_vm2, %v11726_v36  ;;  %v16916_v58 = vpop.f32.mrb[96].mxu1 }
 0x53a   : > { %v8888_v55 = vadd.f32 %v21627_v45, %v16500_v1  ;;  %v8632_v43 = vpop.f32.mrb[97].mxu0  ;;  %v11729_v44 = vadd.f32 %v21627_v45, %v16916_v58  ;;  %v11473_v35 = vpop.f32.mrb[97].mxu1 }
 0x53b   : > { %v8887_v57 = vadd.f32 %v21627_v45, %v8632_v43  ;;  %v11728_v27 = vadd.f32 %v21627_v45, %v11473_v35 }
 0x53c   : > { %13849 = vst.msk [vmem:[%s20277_s18 + $0x508] sm:$0xff] %vm3236_vm2, %v8888_v55  ;;  %14169 = vst.msk [vmem:[%s20277_s18 + $0x708] sm:$0xff] %vm3236_vm2, %v11729_v44 }
 0x53d   : > { %13848 = vst.msk [vmem:[%s20277_s18 + $0x500] sm:$0xff] %vm3236_vm2, %v8887_v57  ;;  %v16503_v48 = vpop.f32.mrb[98].mxu0  ;;  %14168 = vst.msk [vmem:[%s20277_s18 + $0x700] sm:$0xff] %vm3236_vm2, %v11728_v27  ;;  %v16919_v56 = vpop.f32.mrb[98].mxu1 }
 0x53e   : > { %v8890_v25 = vadd.f32 %v21627_v45, %v16503_v48  ;;  %v8642_v62 = vpop.f32.mrb[99].mxu0  ;;  %v11731_v14 = vadd.f32 %v21627_v45, %v16919_v56  ;;  %v11483_v8 = vpop.f32.mrb[99].mxu1 }
 0x53f   : > { %v8889_v38 = vadd.f32 %v21627_v45, %v8642_v62  ;;  %v11730_v40 = vadd.f32 %v21627_v45, %v11483_v8 }
 0x540   : > { %13851 = vst.msk [vmem:[%s20277_s18 + $0x518] sm:$0xff] %vm3236_vm2, %v8890_v25  ;;  %14171 = vst.msk [vmem:[%s20277_s18 + $0x718] sm:$0xff] %vm3236_vm2, %v11731_v14 }
 0x541   : > { %13850 = vst.msk [vmem:[%s20277_s18 + $0x510] sm:$0xff] %vm3236_vm2, %v8889_v38  ;;  %v16506_v9 = vpop.f32.mrb[100].mxu0  ;;  %14170 = vst.msk [vmem:[%s20277_s18 + $0x710] sm:$0xff] %vm3236_vm2, %v11730_v40  ;;  %v16922_v37 = vpop.f32.mrb[100].mxu1 }
 0x542   : > { %v8892_v31 = vadd.f32 %v21627_v45, %v16506_v9  ;;  %v8652_v21 = vpop.f32.mrb[101].mxu0  ;;  %v11733_v10 = vadd.f32 %v21627_v45, %v16922_v37  ;;  %v11493_v28 = vpop.f32.mrb[101].mxu1 }
 0x543   : > { %v8891_v49 = vadd.f32 %v21627_v45, %v8652_v21  ;;  %v11732_v47 = vadd.f32 %v21627_v45, %v11493_v28 }
 0x544   : > { %13853 = vst.msk [vmem:[%s20277_s18 + $0x528] sm:$0xff] %vm3236_vm2, %v8892_v31  ;;  %14173 = vst.msk [vmem:[%s20277_s18 + $0x728] sm:$0xff] %vm3236_vm2, %v11733_v10 }
 0x545   : > { %13852 = vst.msk [vmem:[%s20277_s18 + $0x520] sm:$0xff] %vm3236_vm2, %v8891_v49  ;;  %v16509_v59 = vpop.f32.mrb[102].mxu0  ;;  %14172 = vst.msk [vmem:[%s20277_s18 + $0x720] sm:$0xff] %vm3236_vm2, %v11732_v47  ;;  %v16925_v46 = vpop.f32.mrb[102].mxu1 }
 0x546   : > { %v8894_v18 = vadd.f32 %v21627_v45, %v16509_v59  ;;  %v8662_v50 = vpop.f32.mrb[103].mxu0  ;;  %v11735_v15 = vadd.f32 %v21627_v45, %v16925_v46  ;;  %v11503_v60 = vpop.f32.mrb[103].mxu1 }
 0x547   : > { %v8893_v52 = vadd.f32 %v21627_v45, %v8662_v50  ;;  %v11734_v17 = vadd.f32 %v21627_v45, %v11503_v60 }
 0x548   : > { %13855 = vst.msk [vmem:[%s20277_s18 + $0x538] sm:$0xff] %vm3236_vm2, %v8894_v18  ;;  %14175 = vst.msk [vmem:[%s20277_s18 + $0x738] sm:$0xff] %vm3236_vm2, %v11735_v15 }
 0x549   : > { %13854 = vst.msk [vmem:[%s20277_s18 + $0x530] sm:$0xff] %vm3236_vm2, %v8893_v52  ;;  %v16512_v19 = vpop.f32.mrb[104].mxu0  ;;  %14174 = vst.msk [vmem:[%s20277_s18 + $0x730] sm:$0xff] %vm3236_vm2, %v11734_v17  ;;  %v16928_v32 = vpop.f32.mrb[104].mxu1 }
 0x54a   : > { %v8896_v3 = vadd.f32 %v21627_v45, %v16512_v19  ;;  %v8672_v7 = vpop.f32.mrb[105].mxu0  ;;  %v11737_v41 = vadd.f32 %v21627_v45, %v16928_v32  ;;  %v11513_v0 = vpop.f32.mrb[105].mxu1 }
 0x54b   : > { %v8895_v39 = vadd.f32 %v21627_v45, %v8672_v7  ;;  %v11736_v6 = vadd.f32 %v21627_v45, %v11513_v0 }
 0x54c   : > { %13857 = vst.msk [vmem:[%s20277_s18 + $0x548] sm:$0xff] %vm3236_vm2, %v8896_v3  ;;  %14177 = vst.msk [vmem:[%s20277_s18 + $0x748] sm:$0xff] %vm3236_vm2, %v11737_v41 }
 0x54d   : > { %13856 = vst.msk [vmem:[%s20277_s18 + $0x540] sm:$0xff] %vm3236_vm2, %v8895_v39  ;;  %v16515_v16 = vpop.f32.mrb[106].mxu0  ;;  %14176 = vst.msk [vmem:[%s20277_s18 + $0x740] sm:$0xff] %vm3236_vm2, %v11736_v6  ;;  %v16931_v26 = vpop.f32.mrb[106].mxu1 }
 0x54e   : > { %v8898_v34 = vadd.f32 %v21627_v45, %v16515_v16  ;;  %v8682_v33 = vpop.f32.mrb[107].mxu0  ;;  %v11739_v29 = vadd.f32 %v21627_v45, %v16931_v26  ;;  %v11523_v63 = vpop.f32.mrb[107].mxu1 }
 0x54f   : > { %v8897_v20 = vadd.f32 %v21627_v45, %v8682_v33  ;;  %v11738_v54 = vadd.f32 %v21627_v45, %v11523_v63 }
 0x550   : > { %13859 = vst.msk [vmem:[%s20277_s18 + $0x558] sm:$0xff] %vm3236_vm2, %v8898_v34  ;;  %14179 = vst.msk [vmem:[%s20277_s18 + $0x758] sm:$0xff] %vm3236_vm2, %v11739_v29 }
 0x551   : > { %13858 = vst.msk [vmem:[%s20277_s18 + $0x550] sm:$0xff] %vm3236_vm2, %v8897_v20  ;;  %v16518_v22 = vpop.f32.mrb[108].mxu0  ;;  %14178 = vst.msk [vmem:[%s20277_s18 + $0x750] sm:$0xff] %vm3236_vm2, %v11738_v54  ;;  %v16934_v30 = vpop.f32.mrb[108].mxu1 }
 0x552   : > { %v8900_v2 = vadd.f32 %v21627_v45, %v16518_v22  ;;  %v8692_v5 = vpop.f32.mrb[109].mxu0  ;;  %v11741_v11 = vadd.f32 %v21627_v45, %v16934_v30  ;;  %v11533_v61 = vpop.f32.mrb[109].mxu1 }
 0x553   : > { %v8899_v13 = vadd.f32 %v21627_v45, %v8692_v5  ;;  %v11740_v53 = vadd.f32 %v21627_v45, %v11533_v61 }
 0x554   : > { %13861 = vst.msk [vmem:[%s20277_s18 + $0x568] sm:$0xff] %vm3236_vm2, %v8900_v2  ;;  %14181 = vst.msk [vmem:[%s20277_s18 + $0x768] sm:$0xff] %vm3236_vm2, %v11741_v11 }
 0x555   : > { %13860 = vst.msk [vmem:[%s20277_s18 + $0x560] sm:$0xff] %vm3236_vm2, %v8899_v13  ;;  %v16521_v24 = vpop.f32.mrb[110].mxu0  ;;  %14180 = vst.msk [vmem:[%s20277_s18 + $0x760] sm:$0xff] %vm3236_vm2, %v11740_v53  ;;  %v16937_v51 = vpop.f32.mrb[110].mxu1 }
 0x556   : > { %v8902_v4 = vadd.f32 %v21627_v45, %v16521_v24  ;;  %v8702_v42 = vpop.f32.mrb[111].mxu0  ;;  %v11743_v23 = vadd.f32 %v21627_v45, %v16937_v51  ;;  %v11543_v36 = vpop.f32.mrb[111].mxu1 }
 0x557   : > { %v8901_v12 = vadd.f32 %v21627_v45, %v8702_v42  ;;  %v11742_v1 = vadd.f32 %v21627_v45, %v11543_v36 }
 0x558   : > { %13863 = vst.msk [vmem:[%s20277_s18 + $0x578] sm:$0xff] %vm3236_vm2, %v8902_v4  ;;  %14183 = vst.msk [vmem:[%s20277_s18 + $0x778] sm:$0xff] %vm3236_vm2, %v11743_v23 }
 0x559   : > { %13862 = vst.msk [vmem:[%s20277_s18 + $0x570] sm:$0xff] %vm3236_vm2, %v8901_v12  ;;  %v16524_v55 = vpop.f32.mrb[112].mxu0  ;;  %14182 = vst.msk [vmem:[%s20277_s18 + $0x770] sm:$0xff] %vm3236_vm2, %v11742_v1  ;;  %v16940_v43 = vpop.f32.mrb[112].mxu1 }
 0x55a   : > { %v8904_v58 = vadd.f32 %v21627_v45, %v16524_v55  ;;  %v8712_v44 = vpop.f32.mrb[113].mxu0  ;;  %v11745_v57 = vadd.f32 %v21627_v45, %v16940_v43  ;;  %v11553_v27 = vpop.f32.mrb[113].mxu1  ;;  %v12377_v43 = vld [vmem:[%s20277_s18 + $0x10] sm:$0xff] (%p18187_p11) }
 0x55b   : > { %v8903_v35 = vadd.f32 %v21627_v45, %v8712_v44  ;;  %v11744_v48 = vadd.f32 %v21627_v45, %v11553_v27  ;;  %v12379_v44 = vld [vmem:[%s20277_s18 + $0x18] sm:$0xff] (%p18187_p11)  ;;  %12378 = vst [vmem:[%s22022_s19 + $0x10] sm:$0xff] (%p18187_p11), %v12377_v43  ;;  %v12385_v27 = vld [vmem:[%s20277_s18 + $0x30] sm:$0xff] (%p18187_p11) }
 0x55c   : > { %13865 = vst.msk [vmem:[%s20277_s18 + $0x588] sm:$0xff] %vm3236_vm2, %v8904_v58  ;;  %14185 = vst.msk [vmem:[%s20277_s18 + $0x788] sm:$0xff] %vm3236_vm2, %v11745_v57  ;;  %v12375_v58 = vld [vmem:[%s20277_s18 + $0x8] sm:$0xff] (%p18187_p11)  ;;  %v12381_v57 = vld [vmem:[%s20277_s18 + $0x20] sm:$0xff] (%p18187_p11) }
 0x55d   : > { %13864 = vst.msk [vmem:[%s20277_s18 + $0x580] sm:$0xff] %vm3236_vm2, %v8903_v35  ;;  %v16527_v25 = vpop.f32.mrb[114].mxu0  ;;  %14184 = vst.msk [vmem:[%s20277_s18 + $0x780] sm:$0xff] %vm3236_vm2, %v11744_v48  ;;  %v16943_v62 = vpop.f32.mrb[114].mxu1  ;;  %v12383_v35 = vld [vmem:[%s20277_s18 + $0x28] sm:$0xff] (%p18187_p11)  ;;  %v12387_v48 = vld [vmem:[%s20277_s18 + $0x38] sm:$0xff] (%p18187_p11) }
 0x55e   : > { %v8906_v56 = vadd.f32 %v21627_v45, %v16527_v25  ;;  %v8722_v14 = vpop.f32.mrb[115].mxu0  ;;  %v11747_v38 = vadd.f32 %v21627_v45, %v16943_v62  ;;  %v11563_v40 = vpop.f32.mrb[115].mxu1  ;;  %12376 = vst [vmem:[%s22022_s19 + $0x8] sm:$0xff] (%p18187_p11), %v12375_v58  ;;  %12380 = vst [vmem:[%s22022_s19 + $0x18] sm:$0xff] (%p18187_p11), %v12379_v44  ;;  %v12389_v25 = vld [vmem:[%s20277_s18 + $0x40] sm:$0xff] (%p18187_p11)  ;;  %v12393_v62 = vld [vmem:[%s20277_s18 + $0x50] sm:$0xff] (%p18187_p11) }
 0x55f   : > { %v8905_v8 = vadd.f32 %v21627_v45, %v8722_v14  ;;  %v11746_v9 = vadd.f32 %v21627_v45, %v11563_v40  ;;  %12382 = vst [vmem:[%s22022_s19 + $0x20] sm:$0xff] (%p18187_p11), %v12381_v57  ;;  %12384 = vst [vmem:[%s22022_s19 + $0x28] sm:$0xff] (%p18187_p11), %v12383_v35  ;;  %v12395_v14 = vld [vmem:[%s20277_s18 + $0x58] sm:$0xff] (%p18187_p11)  ;;  %v12401_v40 = vld [vmem:[%s20277_s18 + $0x70] sm:$0xff] (%p18187_p11) }
 0x560   : > { %13867 = vst.msk [vmem:[%s20277_s18 + $0x598] sm:$0xff] %vm3236_vm2, %v8906_v56  ;;  %14187 = vst.msk [vmem:[%s20277_s18 + $0x798] sm:$0xff] %vm3236_vm2, %v11747_v38  ;;  %v12391_v56 = vld [vmem:[%s20277_s18 + $0x48] sm:$0xff] (%p18187_p11)  ;;  %v12397_v38 = vld [vmem:[%s20277_s18 + $0x60] sm:$0xff] (%p18187_p11) }
 0x561   : > { %13866 = vst.msk [vmem:[%s20277_s18 + $0x590] sm:$0xff] %vm3236_vm2, %v8905_v8  ;;  %v16530_v31 = vpop.f32.mrb[116].mxu0  ;;  %14186 = vst.msk [vmem:[%s20277_s18 + $0x790] sm:$0xff] %vm3236_vm2, %v11746_v9  ;;  %v16946_v21 = vpop.f32.mrb[116].mxu1  ;;  %v12399_v8 = vld [vmem:[%s20277_s18 + $0x68] sm:$0xff] (%p18187_p11)  ;;  %v12403_v9 = vld [vmem:[%s20277_s18 + $0x78] sm:$0xff] (%p18187_p11) }
 0x562   : > { %v8908_v37 = vadd.f32 %v21627_v45, %v16530_v31  ;;  %v8732_v10 = vpop.f32.mrb[117].mxu0  ;;  %v11749_v49 = vadd.f32 %v21627_v45, %v16946_v21  ;;  %v11573_v47 = vpop.f32.mrb[117].mxu1  ;;  %12386 = vst [vmem:[%s22022_s19 + $0x30] sm:$0xff] (%p18187_p11), %v12385_v27  ;;  %12388 = vst [vmem:[%s22022_s19 + $0x38] sm:$0xff] (%p18187_p11), %v12387_v48  ;;  %v12405_v31 = vld [vmem:[%s20277_s18 + $0x80] sm:$0xff] (%p18187_p11)  ;;  %v12409_v21 = vld [vmem:[%s20277_s18 + $0x90] sm:$0xff] (%p18187_p11) }
 0x563   : > { %v8907_v28 = vadd.f32 %v21627_v45, %v8732_v10  ;;  %v11748_v59 = vadd.f32 %v21627_v45, %v11573_v47  ;;  %12390 = vst [vmem:[%s22022_s19 + $0x40] sm:$0xff] (%p18187_p11), %v12389_v25  ;;  %12392 = vst [vmem:[%s22022_s19 + $0x48] sm:$0xff] (%p18187_p11), %v12391_v56  ;;  %v12411_v10 = vld [vmem:[%s20277_s18 + $0x98] sm:$0xff] (%p18187_p11)  ;;  %v12417_v47 = vld [vmem:[%s20277_s18 + $0xb0] sm:$0xff] (%p18187_p11) }
 0x564   : > { %13869 = vst.msk [vmem:[%s20277_s18 + $0x5a8] sm:$0xff] %vm3236_vm2, %v8908_v37  ;;  %14189 = vst.msk [vmem:[%s20277_s18 + $0x7a8] sm:$0xff] %vm3236_vm2, %v11749_v49  ;;  %v12407_v37 = vld [vmem:[%s20277_s18 + $0x88] sm:$0xff] (%p18187_p11)  ;;  %v12413_v49 = vld [vmem:[%s20277_s18 + $0xa0] sm:$0xff] (%p18187_p11) }
 0x565   : > { %13868 = vst.msk [vmem:[%s20277_s18 + $0x5a0] sm:$0xff] %vm3236_vm2, %v8907_v28  ;;  %v16533_v18 = vpop.f32.mrb[118].mxu0  ;;  %14188 = vst.msk [vmem:[%s20277_s18 + $0x7a0] sm:$0xff] %vm3236_vm2, %v11748_v59  ;;  %v16949_v50 = vpop.f32.mrb[118].mxu1  ;;  %v12415_v28 = vld [vmem:[%s20277_s18 + $0xa8] sm:$0xff] (%p18187_p11)  ;;  %v12419_v59 = vld [vmem:[%s20277_s18 + $0xb8] sm:$0xff] (%p18187_p11) }
 0x566   : > { %v8910_v46 = vadd.f32 %v21627_v45, %v16533_v18  ;;  %v8742_v15 = vpop.f32.mrb[119].mxu0  ;;  %v11751_v52 = vadd.f32 %v21627_v45, %v16949_v50  ;;  %v11583_v17 = vpop.f32.mrb[119].mxu1  ;;  %12394 = vst [vmem:[%s22022_s19 + $0x50] sm:$0xff] (%p18187_p11), %v12393_v62  ;;  %12396 = vst [vmem:[%s22022_s19 + $0x58] sm:$0xff] (%p18187_p11), %v12395_v14  ;;  %v12421_v18 = vld [vmem:[%s20277_s18 + $0xc0] sm:$0xff] (%p18187_p11)  ;;  %v12425_v50 = vld [vmem:[%s20277_s18 + $0xd0] sm:$0xff] (%p18187_p11) }
 0x567   : > { %v8909_v60 = vadd.f32 %v21627_v45, %v8742_v15  ;;  %v11750_v19 = vadd.f32 %v21627_v45, %v11583_v17  ;;  %12398 = vst [vmem:[%s22022_s19 + $0x60] sm:$0xff] (%p18187_p11), %v12397_v38  ;;  %12400 = vst [vmem:[%s22022_s19 + $0x68] sm:$0xff] (%p18187_p11), %v12399_v8  ;;  %v12427_v15 = vld [vmem:[%s20277_s18 + $0xd8] sm:$0xff] (%p18187_p11)  ;;  %v12433_v17 = vld [vmem:[%s20277_s18 + $0xf0] sm:$0xff] (%p18187_p11) }
 0x568   : > { %13871 = vst.msk [vmem:[%s20277_s18 + $0x5b8] sm:$0xff] %vm3236_vm2, %v8910_v46  ;;  %14191 = vst.msk [vmem:[%s20277_s18 + $0x7b8] sm:$0xff] %vm3236_vm2, %v11751_v52  ;;  %v12423_v46 = vld [vmem:[%s20277_s18 + $0xc8] sm:$0xff] (%p18187_p11)  ;;  %v12429_v52 = vld [vmem:[%s20277_s18 + $0xe0] sm:$0xff] (%p18187_p11) }
 0x569   : > { %13870 = vst.msk [vmem:[%s20277_s18 + $0x5b0] sm:$0xff] %vm3236_vm2, %v8909_v60  ;;  %v16536_v3 = vpop.f32.mrb[120].mxu0  ;;  %14190 = vst.msk [vmem:[%s20277_s18 + $0x7b0] sm:$0xff] %vm3236_vm2, %v11750_v19  ;;  %v16952_v7 = vpop.f32.mrb[120].mxu1  ;;  %v12431_v60 = vld [vmem:[%s20277_s18 + $0xe8] sm:$0xff] (%p18187_p11)  ;;  %v12435_v19 = vld [vmem:[%s20277_s18 + $0xf8] sm:$0xff] (%p18187_p11) }
 0x56a   : > { %v8912_v32 = vadd.f32 %v21627_v45, %v16536_v3  ;;  %v8752_v41 = vpop.f32.mrb[121].mxu0  ;;  %v11753_v39 = vadd.f32 %v21627_v45, %v16952_v7  ;;  %v11593_v6 = vpop.f32.mrb[121].mxu1  ;;  %12402 = vst [vmem:[%s22022_s19 + $0x70] sm:$0xff] (%p18187_p11), %v12401_v40  ;;  %12404 = vst [vmem:[%s22022_s19 + $0x78] sm:$0xff] (%p18187_p11), %v12403_v9  ;;  %v12437_v3 = vld [vmem:[%s20277_s18 + $0x100] sm:$0xff] (%p18187_p11)  ;;  %v12441_v7 = vld [vmem:[%s20277_s18 + $0x110] sm:$0xff] (%p18187_p11) }
 0x56b   : > { %v8911_v0 = vadd.f32 %v21627_v45, %v8752_v41  ;;  %v11752_v16 = vadd.f32 %v21627_v45, %v11593_v6  ;;  %12406 = vst [vmem:[%s22022_s19 + $0x80] sm:$0xff] (%p18187_p11), %v12405_v31  ;;  %12408 = vst [vmem:[%s22022_s19 + $0x88] sm:$0xff] (%p18187_p11), %v12407_v37  ;;  %v12443_v41 = vld [vmem:[%s20277_s18 + $0x118] sm:$0xff] (%p18187_p11)  ;;  %v12449_v6 = vld [vmem:[%s20277_s18 + $0x130] sm:$0xff] (%p18187_p11) }
 0x56c   : > { %13873 = vst.msk [vmem:[%s20277_s18 + $0x5c8] sm:$0xff] %vm3236_vm2, %v8912_v32  ;;  %14193 = vst.msk [vmem:[%s20277_s18 + $0x7c8] sm:$0xff] %vm3236_vm2, %v11753_v39  ;;  %v12439_v32 = vld [vmem:[%s20277_s18 + $0x108] sm:$0xff] (%p18187_p11)  ;;  %v12445_v39 = vld [vmem:[%s20277_s18 + $0x120] sm:$0xff] (%p18187_p11) }
 0x56d   : > { %13872 = vst.msk [vmem:[%s20277_s18 + $0x5c0] sm:$0xff] %vm3236_vm2, %v8911_v0  ;;  %v16539_v34 = vpop.f32.mrb[122].mxu0  ;;  %14192 = vst.msk [vmem:[%s20277_s18 + $0x7c0] sm:$0xff] %vm3236_vm2, %v11752_v16  ;;  %v16955_v33 = vpop.f32.mrb[122].mxu1  ;;  %v12447_v0 = vld [vmem:[%s20277_s18 + $0x128] sm:$0xff] (%p18187_p11)  ;;  %v12451_v16 = vld [vmem:[%s20277_s18 + $0x138] sm:$0xff] (%p18187_p11) }
 0x56e   : > { %v8914_v26 = vadd.f32 %v21627_v45, %v16539_v34  ;;  %v8762_v29 = vpop.f32.mrb[123].mxu0  ;;  %v11755_v20 = vadd.f32 %v21627_v45, %v16955_v33  ;;  %v11603_v54 = vpop.f32.mrb[123].mxu1  ;;  %12410 = vst [vmem:[%s22022_s19 + $0x90] sm:$0xff] (%p18187_p11), %v12409_v21  ;;  %12412 = vst [vmem:[%s22022_s19 + $0x98] sm:$0xff] (%p18187_p11), %v12411_v10  ;;  %v12453_v34 = vld [vmem:[%s20277_s18 + $0x140] sm:$0xff] (%p18187_p11)  ;;  %v12457_v33 = vld [vmem:[%s20277_s18 + $0x150] sm:$0xff] (%p18187_p11) }
 0x56f   : > { %v8913_v63 = vadd.f32 %v21627_v45, %v8762_v29  ;;  %v11754_v22 = vadd.f32 %v21627_v45, %v11603_v54  ;;  %12414 = vst [vmem:[%s22022_s19 + $0xa0] sm:$0xff] (%p18187_p11), %v12413_v49  ;;  %12416 = vst [vmem:[%s22022_s19 + $0xa8] sm:$0xff] (%p18187_p11), %v12415_v28  ;;  %v12459_v29 = vld [vmem:[%s20277_s18 + $0x158] sm:$0xff] (%p18187_p11)  ;;  %v12465_v54 = vld [vmem:[%s20277_s18 + $0x170] sm:$0xff] (%p18187_p11) }
 0x570   : > { %13875 = vst.msk [vmem:[%s20277_s18 + $0x5d8] sm:$0xff] %vm3236_vm2, %v8914_v26  ;;  %14195 = vst.msk [vmem:[%s20277_s18 + $0x7d8] sm:$0xff] %vm3236_vm2, %v11755_v20  ;;  %v12455_v26 = vld [vmem:[%s20277_s18 + $0x148] sm:$0xff] (%p18187_p11)  ;;  %v12461_v20 = vld [vmem:[%s20277_s18 + $0x160] sm:$0xff] (%p18187_p11) }
 0x571   : > { %13874 = vst.msk [vmem:[%s20277_s18 + $0x5d0] sm:$0xff] %vm3236_vm2, %v8913_v63  ;;  %v16542_v2 = vpop.f32.mrb[124].mxu0  ;;  %14194 = vst.msk [vmem:[%s20277_s18 + $0x7d0] sm:$0xff] %vm3236_vm2, %v11754_v22  ;;  %v16958_v5 = vpop.f32.mrb[124].mxu1  ;;  %v12463_v63 = vld [vmem:[%s20277_s18 + $0x168] sm:$0xff] (%p18187_p11)  ;;  %v12467_v22 = vld [vmem:[%s20277_s18 + $0x178] sm:$0xff] (%p18187_p11) }
 0x572   : > { %v8916_v30 = vadd.f32 %v21627_v45, %v16542_v2  ;;  %v8772_v11 = vpop.f32.mrb[125].mxu0  ;;  %v11757_v13 = vadd.f32 %v21627_v45, %v16958_v5  ;;  %v11613_v53 = vpop.f32.mrb[125].mxu1  ;;  %12418 = vst [vmem:[%s22022_s19 + $0xb0] sm:$0xff] (%p18187_p11), %v12417_v47  ;;  %12420 = vst [vmem:[%s22022_s19 + $0xb8] sm:$0xff] (%p18187_p11), %v12419_v59  ;;  %v12469_v2 = vld [vmem:[%s20277_s18 + $0x180] sm:$0xff] (%p18187_p11)  ;;  %v12473_v5 = vld [vmem:[%s20277_s18 + $0x190] sm:$0xff] (%p18187_p11) }
 0x573   : > { %v8915_v61 = vadd.f32 %v21627_v45, %v8772_v11  ;;  %v11756_v24 = vadd.f32 %v21627_v45, %v11613_v53  ;;  %11831 = sbr.rel (!%p18187_p11) target bundleno = 1516 (0x5ec), region = 48  ;;  %12422 = vst [vmem:[%s22022_s19 + $0xc0] sm:$0xff] (%p18187_p11), %v12421_v18  ;;  %12424 = vst [vmem:[%s22022_s19 + $0xc8] sm:$0xff] (%p18187_p11), %v12423_v46  ;;  %v12475_v11 = vld [vmem:[%s20277_s18 + $0x198] sm:$0xff] (%p18187_p11)  ;;  %v12481_v53 = vld [vmem:[%s20277_s18 + $0x1b0] sm:$0xff] (%p18187_p11) }
 0x574   : > { %13877 = vst.msk [vmem:[%s20277_s18 + $0x5e8] sm:$0xff] %vm3236_vm2, %v8916_v30  ;;  %14197 = vst.msk [vmem:[%s20277_s18 + $0x7e8] sm:$0xff] %vm3236_vm2, %v11757_v13  ;;  %v12471_v30 = vld [vmem:[%s20277_s18 + $0x188] sm:$0xff] (%p18187_p11)  ;;  %v12477_v13 = vld [vmem:[%s20277_s18 + $0x1a0] sm:$0xff] (%p18187_p11) }
 0x575   : > { %13876 = vst.msk [vmem:[%s20277_s18 + $0x5e0] sm:$0xff] %vm3236_vm2, %v8915_v61  ;;  %v16545_v4 = vpop.f32.mrb[126].mxu0  ;;  %14196 = vst.msk [vmem:[%s20277_s18 + $0x7e0] sm:$0xff] %vm3236_vm2, %v11756_v24  ;;  %v16961_v42 = vpop.f32.mrb[126].mxu1  ;;  %v12479_v61 = vld [vmem:[%s20277_s18 + $0x1a8] sm:$0xff] (%p18187_p11)  ;;  %v12483_v24 = vld [vmem:[%s20277_s18 + $0x1b8] sm:$0xff] (%p18187_p11) }
 0x576   : > { %v8918_v51 = vadd.f32 %v21627_v45, %v16545_v4  ;;  %v8782_v23 = vpop.f32.mrb[127].mxu0  ;;  %v11759_v12 = vadd.f32 %v21627_v45, %v16961_v42  ;;  %v11623_v1 = vpop.f32.mrb[127].mxu1  ;;  %12426 = vst [vmem:[%s22022_s19 + $0xd0] sm:$0xff] (%p18187_p11), %v12425_v50  ;;  %12428 = vst [vmem:[%s22022_s19 + $0xd8] sm:$0xff] (%p18187_p11), %v12427_v15  ;;  %v12485_v4 = vld [vmem:[%s20277_s18 + $0x1c0] sm:$0xff] (%p18187_p11)  ;;  %v12489_v42 = vld [vmem:[%s20277_s18 + $0x1d0] sm:$0xff] (%p18187_p11) }
 0x577   : > { %v8917_v36 = vadd.f32 %v21627_v45, %v8782_v23  ;;  %v11758_v55 = vadd.f32 %v21627_v45, %v11623_v1  ;;  %v12373_v45 = vld [vmem:[%s20277_s18] sm:$0xff] (%p18187_p11)  ;;  %12430 = vst [vmem:[%s22022_s19 + $0xe0] sm:$0xff] (%p18187_p11), %v12429_v52  ;;  %12432 = vst [vmem:[%s22022_s19 + $0xe8] sm:$0xff] (%p18187_p11), %v12431_v60  ;;  %v12491_v23 = vld [vmem:[%s20277_s18 + $0x1d8] sm:$0xff] (%p18187_p11) }
 0x578   : > { %13879 = vst.msk [vmem:[%s20277_s18 + $0x5f8] sm:$0xff] %vm3236_vm2, %v8918_v51  ;;  %14199 = vst.msk [vmem:[%s20277_s18 + $0x7f8] sm:$0xff] %vm3236_vm2, %v11759_v12  ;;  %v12487_v51 = vld [vmem:[%s20277_s18 + $0x1c8] sm:$0xff] (%p18187_p11)  ;;  %v12493_v12 = vld [vmem:[%s20277_s18 + $0x1e0] sm:$0xff] (%p18187_p11) }
 0x579   : > { %13878 = vst.msk [vmem:[%s20277_s18 + $0x5f0] sm:$0xff] %vm3236_vm2, %v8917_v36  ;;  %14198 = vst.msk [vmem:[%s20277_s18 + $0x7f0] sm:$0xff] %vm3236_vm2, %v11758_v55  ;;  %v12495_v36 = vld [vmem:[%s20277_s18 + $0x1e8] sm:$0xff] (%p18187_p11)  ;;  %v12497_v1 = vld [vmem:[%s20277_s18 + $0x1f0] sm:$0xff] (%p18187_p11) }
 0x57a   : > { %12374 = vst [vmem:[%s22022_s19] sm:$0xff] %v12373_v45  ;;  %12434 = vst [vmem:[%s22022_s19 + $0xf0] sm:$0xff] %v12433_v17  ;;  %v12499_v55 = vld [vmem:[%s20277_s18 + $0x1f8] sm:$0xff]  ;;  %v12501_v45 = vld [vmem:[%s20277_s18 + $0x200] sm:$0xff] }
 0x57b   : > { %12436 = vst [vmem:[%s22022_s19 + $0xf8] sm:$0xff] %v12435_v19  ;;  %12438 = vst [vmem:[%s22022_s19 + $0x100] sm:$0xff] %v12437_v3  ;;  %v12503_v58 = vld [vmem:[%s20277_s18 + $0x208] sm:$0xff]  ;;  %v12505_v43 = vld [vmem:[%s20277_s18 + $0x210] sm:$0xff] }
 0x57c   : > { %12440 = vst [vmem:[%s22022_s19 + $0x108] sm:$0xff] %v12439_v32  ;;  %12442 = vst [vmem:[%s22022_s19 + $0x110] sm:$0xff] %v12441_v7  ;;  %v12507_v44 = vld [vmem:[%s20277_s18 + $0x218] sm:$0xff]  ;;  %v12509_v57 = vld [vmem:[%s20277_s18 + $0x220] sm:$0xff] }
 0x57d   : > { %12444 = vst [vmem:[%s22022_s19 + $0x118] sm:$0xff] %v12443_v41  ;;  %12446 = vst [vmem:[%s22022_s19 + $0x120] sm:$0xff] %v12445_v39  ;;  %v12511_v35 = vld [vmem:[%s20277_s18 + $0x228] sm:$0xff]  ;;  %v12513_v27 = vld [vmem:[%s20277_s18 + $0x230] sm:$0xff] }
 0x57e   : > { %12448 = vst [vmem:[%s22022_s19 + $0x128] sm:$0xff] %v12447_v0  ;;  %12450 = vst [vmem:[%s22022_s19 + $0x130] sm:$0xff] %v12449_v6  ;;  %v12515_v48 = vld [vmem:[%s20277_s18 + $0x238] sm:$0xff]  ;;  %v12517_v25 = vld [vmem:[%s20277_s18 + $0x240] sm:$0xff] }
 0x57f   : > { %12452 = vst [vmem:[%s22022_s19 + $0x138] sm:$0xff] %v12451_v16  ;;  %12454 = vst [vmem:[%s22022_s19 + $0x140] sm:$0xff] %v12453_v34  ;;  %v12519_v56 = vld [vmem:[%s20277_s18 + $0x248] sm:$0xff]  ;;  %v12521_v62 = vld [vmem:[%s20277_s18 + $0x250] sm:$0xff] }
 0x580   : > { %12456 = vst [vmem:[%s22022_s19 + $0x148] sm:$0xff] %v12455_v26  ;;  %12458 = vst [vmem:[%s22022_s19 + $0x150] sm:$0xff] %v12457_v33  ;;  %v12523_v14 = vld [vmem:[%s20277_s18 + $0x258] sm:$0xff]  ;;  %v12525_v38 = vld [vmem:[%s20277_s18 + $0x260] sm:$0xff] }
 0x581   : > { %12460 = vst [vmem:[%s22022_s19 + $0x158] sm:$0xff] %v12459_v29  ;;  %12462 = vst [vmem:[%s22022_s19 + $0x160] sm:$0xff] %v12461_v20  ;;  %v12527_v8 = vld [vmem:[%s20277_s18 + $0x268] sm:$0xff]  ;;  %v12529_v40 = vld [vmem:[%s20277_s18 + $0x270] sm:$0xff] }
 0x582   : > { %12464 = vst [vmem:[%s22022_s19 + $0x168] sm:$0xff] %v12463_v63  ;;  %12466 = vst [vmem:[%s22022_s19 + $0x170] sm:$0xff] %v12465_v54  ;;  %v12531_v9 = vld [vmem:[%s20277_s18 + $0x278] sm:$0xff]  ;;  %v12533_v31 = vld [vmem:[%s20277_s18 + $0x280] sm:$0xff] }
 0x583   : > { %12468 = vst [vmem:[%s22022_s19 + $0x178] sm:$0xff] %v12467_v22  ;;  %12470 = vst [vmem:[%s22022_s19 + $0x180] sm:$0xff] %v12469_v2  ;;  %v12535_v37 = vld [vmem:[%s20277_s18 + $0x288] sm:$0xff]  ;;  %v12537_v21 = vld [vmem:[%s20277_s18 + $0x290] sm:$0xff] }
 0x584   : > { %12472 = vst [vmem:[%s22022_s19 + $0x188] sm:$0xff] %v12471_v30  ;;  %12474 = vst [vmem:[%s22022_s19 + $0x190] sm:$0xff] %v12473_v5  ;;  %v12539_v10 = vld [vmem:[%s20277_s18 + $0x298] sm:$0xff]  ;;  %v12541_v49 = vld [vmem:[%s20277_s18 + $0x2a0] sm:$0xff] }
 0x585   : > { %12476 = vst [vmem:[%s22022_s19 + $0x198] sm:$0xff] %v12475_v11  ;;  %12478 = vst [vmem:[%s22022_s19 + $0x1a0] sm:$0xff] %v12477_v13  ;;  %v12543_v28 = vld [vmem:[%s20277_s18 + $0x2a8] sm:$0xff]  ;;  %v12545_v47 = vld [vmem:[%s20277_s18 + $0x2b0] sm:$0xff] }
 0x586   : > { %12480 = vst [vmem:[%s22022_s19 + $0x1a8] sm:$0xff] %v12479_v61  ;;  %12482 = vst [vmem:[%s22022_s19 + $0x1b0] sm:$0xff] %v12481_v53  ;;  %v12547_v59 = vld [vmem:[%s20277_s18 + $0x2b8] sm:$0xff]  ;;  %v12549_v18 = vld [vmem:[%s20277_s18 + $0x2c0] sm:$0xff] }
 0x587   : > { %12484 = vst [vmem:[%s22022_s19 + $0x1b8] sm:$0xff] %v12483_v24  ;;  %12486 = vst [vmem:[%s22022_s19 + $0x1c0] sm:$0xff] %v12485_v4  ;;  %v12551_v46 = vld [vmem:[%s20277_s18 + $0x2c8] sm:$0xff]  ;;  %v12553_v50 = vld [vmem:[%s20277_s18 + $0x2d0] sm:$0xff] }
 0x588   : > { %12488 = vst [vmem:[%s22022_s19 + $0x1c8] sm:$0xff] %v12487_v51  ;;  %12490 = vst [vmem:[%s22022_s19 + $0x1d0] sm:$0xff] %v12489_v42  ;;  %v12555_v15 = vld [vmem:[%s20277_s18 + $0x2d8] sm:$0xff]  ;;  %v12557_v52 = vld [vmem:[%s20277_s18 + $0x2e0] sm:$0xff] }
 0x589   : > { %12492 = vst [vmem:[%s22022_s19 + $0x1d8] sm:$0xff] %v12491_v23  ;;  %12494 = vst [vmem:[%s22022_s19 + $0x1e0] sm:$0xff] %v12493_v12  ;;  %v12559_v60 = vld [vmem:[%s20277_s18 + $0x2e8] sm:$0xff]  ;;  %v12561_v17 = vld [vmem:[%s20277_s18 + $0x2f0] sm:$0xff] }
 0x58a   : > { %12496 = vst [vmem:[%s22022_s19 + $0x1e8] sm:$0xff] %v12495_v36  ;;  %12498 = vst [vmem:[%s22022_s19 + $0x1f0] sm:$0xff] %v12497_v1  ;;  %v12563_v19 = vld [vmem:[%s20277_s18 + $0x2f8] sm:$0xff]  ;;  %v12565_v3 = vld [vmem:[%s20277_s18 + $0x300] sm:$0xff] }
 0x58b   : > { %12500 = vst [vmem:[%s22022_s19 + $0x1f8] sm:$0xff] %v12499_v55  ;;  %12502 = vst [vmem:[%s22022_s19 + $0x400] sm:$0xff] %v12501_v45  ;;  %v12567_v32 = vld [vmem:[%s20277_s18 + $0x308] sm:$0xff]  ;;  %v12569_v7 = vld [vmem:[%s20277_s18 + $0x310] sm:$0xff] }
 0x58c   : > { %12504 = vst [vmem:[%s22022_s19 + $0x408] sm:$0xff] %v12503_v58  ;;  %12506 = vst [vmem:[%s22022_s19 + $0x410] sm:$0xff] %v12505_v43  ;;  %v12571_v41 = vld [vmem:[%s20277_s18 + $0x318] sm:$0xff]  ;;  %v12573_v39 = vld [vmem:[%s20277_s18 + $0x320] sm:$0xff] }
 0x58d   : > { %12508 = vst [vmem:[%s22022_s19 + $0x418] sm:$0xff] %v12507_v44  ;;  %12510 = vst [vmem:[%s22022_s19 + $0x420] sm:$0xff] %v12509_v57  ;;  %v12575_v0 = vld [vmem:[%s20277_s18 + $0x328] sm:$0xff]  ;;  %v12577_v6 = vld [vmem:[%s20277_s18 + $0x330] sm:$0xff] }
 0x58e   : > { %12512 = vst [vmem:[%s22022_s19 + $0x428] sm:$0xff] %v12511_v35  ;;  %12514 = vst [vmem:[%s22022_s19 + $0x430] sm:$0xff] %v12513_v27  ;;  %v12579_v16 = vld [vmem:[%s20277_s18 + $0x338] sm:$0xff]  ;;  %v12581_v34 = vld [vmem:[%s20277_s18 + $0x340] sm:$0xff] }
 0x58f   : > { %12516 = vst [vmem:[%s22022_s19 + $0x438] sm:$0xff] %v12515_v48  ;;  %12518 = vst [vmem:[%s22022_s19 + $0x440] sm:$0xff] %v12517_v25  ;;  %v12583_v26 = vld [vmem:[%s20277_s18 + $0x348] sm:$0xff]  ;;  %v12585_v33 = vld [vmem:[%s20277_s18 + $0x350] sm:$0xff] }
 0x590   : > { %12520 = vst [vmem:[%s22022_s19 + $0x448] sm:$0xff] %v12519_v56  ;;  %12522 = vst [vmem:[%s22022_s19 + $0x450] sm:$0xff] %v12521_v62  ;;  %v12587_v29 = vld [vmem:[%s20277_s18 + $0x358] sm:$0xff]  ;;  %v12589_v20 = vld [vmem:[%s20277_s18 + $0x360] sm:$0xff] }
 0x591   : > { %12524 = vst [vmem:[%s22022_s19 + $0x458] sm:$0xff] %v12523_v14  ;;  %12526 = vst [vmem:[%s22022_s19 + $0x460] sm:$0xff] %v12525_v38  ;;  %v12591_v63 = vld [vmem:[%s20277_s18 + $0x368] sm:$0xff]  ;;  %v12593_v54 = vld [vmem:[%s20277_s18 + $0x370] sm:$0xff] }
 0x592   : > { %12528 = vst [vmem:[%s22022_s19 + $0x468] sm:$0xff] %v12527_v8  ;;  %12530 = vst [vmem:[%s22022_s19 + $0x470] sm:$0xff] %v12529_v40  ;;  %v12595_v22 = vld [vmem:[%s20277_s18 + $0x378] sm:$0xff]  ;;  %v12597_v2 = vld [vmem:[%s20277_s18 + $0x380] sm:$0xff] }
 0x593   : > { %12532 = vst [vmem:[%s22022_s19 + $0x478] sm:$0xff] %v12531_v9  ;;  %12534 = vst [vmem:[%s22022_s19 + $0x480] sm:$0xff] %v12533_v31  ;;  %v12599_v30 = vld [vmem:[%s20277_s18 + $0x388] sm:$0xff]  ;;  %v12601_v5 = vld [vmem:[%s20277_s18 + $0x390] sm:$0xff] }
 0x594   : > { %12536 = vst [vmem:[%s22022_s19 + $0x488] sm:$0xff] %v12535_v37  ;;  %12538 = vst [vmem:[%s22022_s19 + $0x490] sm:$0xff] %v12537_v21  ;;  %v12603_v11 = vld [vmem:[%s20277_s18 + $0x398] sm:$0xff]  ;;  %v12605_v13 = vld [vmem:[%s20277_s18 + $0x3a0] sm:$0xff] }
 0x595   : > { %12540 = vst [vmem:[%s22022_s19 + $0x498] sm:$0xff] %v12539_v10  ;;  %12542 = vst [vmem:[%s22022_s19 + $0x4a0] sm:$0xff] %v12541_v49  ;;  %v12607_v61 = vld [vmem:[%s20277_s18 + $0x3a8] sm:$0xff]  ;;  %v12609_v53 = vld [vmem:[%s20277_s18 + $0x3b0] sm:$0xff] }
 0x596   : > { %12544 = vst [vmem:[%s22022_s19 + $0x4a8] sm:$0xff] %v12543_v28  ;;  %12546 = vst [vmem:[%s22022_s19 + $0x4b0] sm:$0xff] %v12545_v47  ;;  %v12611_v24 = vld [vmem:[%s20277_s18 + $0x3b8] sm:$0xff]  ;;  %v12613_v4 = vld [vmem:[%s20277_s18 + $0x3c0] sm:$0xff] }
 0x597   : > { %12548 = vst [vmem:[%s22022_s19 + $0x4b8] sm:$0xff] %v12547_v59  ;;  %12550 = vst [vmem:[%s22022_s19 + $0x4c0] sm:$0xff] %v12549_v18  ;;  %v12615_v51 = vld [vmem:[%s20277_s18 + $0x3c8] sm:$0xff]  ;;  %v12617_v42 = vld [vmem:[%s20277_s18 + $0x3d0] sm:$0xff] }
 0x598   : > { %12552 = vst [vmem:[%s22022_s19 + $0x4c8] sm:$0xff] %v12551_v46  ;;  %12554 = vst [vmem:[%s22022_s19 + $0x4d0] sm:$0xff] %v12553_v50  ;;  %v12619_v23 = vld [vmem:[%s20277_s18 + $0x3d8] sm:$0xff]  ;;  %v12621_v12 = vld [vmem:[%s20277_s18 + $0x3e0] sm:$0xff] }
 0x599   : > { %12556 = vst [vmem:[%s22022_s19 + $0x4d8] sm:$0xff] %v12555_v15  ;;  %12558 = vst [vmem:[%s22022_s19 + $0x4e0] sm:$0xff] %v12557_v52  ;;  %v12623_v36 = vld [vmem:[%s20277_s18 + $0x3e8] sm:$0xff]  ;;  %v12625_v1 = vld [vmem:[%s20277_s18 + $0x3f0] sm:$0xff] }
 0x59a   : > { %12560 = vst [vmem:[%s22022_s19 + $0x4e8] sm:$0xff] %v12559_v60  ;;  %12562 = vst [vmem:[%s22022_s19 + $0x4f0] sm:$0xff] %v12561_v17  ;;  %v12627_v55 = vld [vmem:[%s20277_s18 + $0x3f8] sm:$0xff]  ;;  %v12629_v45 = vld [vmem:[%s20277_s18 + $0x400] sm:$0xff] }
 0x59b   : > { %12564 = vst [vmem:[%s22022_s19 + $0x4f8] sm:$0xff] %v12563_v19  ;;  %12566 = vst [vmem:[%s22022_s19 + $0x500] sm:$0xff] %v12565_v3  ;;  %v12631_v58 = vld [vmem:[%s20277_s18 + $0x408] sm:$0xff]  ;;  %v12633_v43 = vld [vmem:[%s20277_s18 + $0x410] sm:$0xff] }
 0x59c   : > { %12568 = vst [vmem:[%s22022_s19 + $0x508] sm:$0xff] %v12567_v32  ;;  %12570 = vst [vmem:[%s22022_s19 + $0x510] sm:$0xff] %v12569_v7  ;;  %v12635_v44 = vld [vmem:[%s20277_s18 + $0x418] sm:$0xff]  ;;  %v12637_v57 = vld [vmem:[%s20277_s18 + $0x420] sm:$0xff] }
 0x59d   : > { %12572 = vst [vmem:[%s22022_s19 + $0x518] sm:$0xff] %v12571_v41  ;;  %12574 = vst [vmem:[%s22022_s19 + $0x520] sm:$0xff] %v12573_v39  ;;  %v12639_v35 = vld [vmem:[%s20277_s18 + $0x428] sm:$0xff]  ;;  %v12641_v27 = vld [vmem:[%s20277_s18 + $0x430] sm:$0xff] }
 0x59e   : > { %12576 = vst [vmem:[%s22022_s19 + $0x528] sm:$0xff] %v12575_v0  ;;  %12578 = vst [vmem:[%s22022_s19 + $0x530] sm:$0xff] %v12577_v6  ;;  %v12643_v48 = vld [vmem:[%s20277_s18 + $0x438] sm:$0xff]  ;;  %v12645_v25 = vld [vmem:[%s20277_s18 + $0x440] sm:$0xff] }
 0x59f   : > { %12580 = vst [vmem:[%s22022_s19 + $0x538] sm:$0xff] %v12579_v16  ;;  %12582 = vst [vmem:[%s22022_s19 + $0x540] sm:$0xff] %v12581_v34  ;;  %v12647_v56 = vld [vmem:[%s20277_s18 + $0x448] sm:$0xff]  ;;  %v12649_v62 = vld [vmem:[%s20277_s18 + $0x450] sm:$0xff] }
 0x5a0   : > { %12584 = vst [vmem:[%s22022_s19 + $0x548] sm:$0xff] %v12583_v26  ;;  %12586 = vst [vmem:[%s22022_s19 + $0x550] sm:$0xff] %v12585_v33  ;;  %v12651_v14 = vld [vmem:[%s20277_s18 + $0x458] sm:$0xff]  ;;  %v12653_v38 = vld [vmem:[%s20277_s18 + $0x460] sm:$0xff] }
 0x5a1   : > { %12588 = vst [vmem:[%s22022_s19 + $0x558] sm:$0xff] %v12587_v29  ;;  %12590 = vst [vmem:[%s22022_s19 + $0x560] sm:$0xff] %v12589_v20  ;;  %v12655_v8 = vld [vmem:[%s20277_s18 + $0x468] sm:$0xff]  ;;  %v12657_v40 = vld [vmem:[%s20277_s18 + $0x470] sm:$0xff] }
 0x5a2   : > { %12592 = vst [vmem:[%s22022_s19 + $0x568] sm:$0xff] %v12591_v63  ;;  %12594 = vst [vmem:[%s22022_s19 + $0x570] sm:$0xff] %v12593_v54  ;;  %v12659_v9 = vld [vmem:[%s20277_s18 + $0x478] sm:$0xff]  ;;  %v12661_v31 = vld [vmem:[%s20277_s18 + $0x480] sm:$0xff] }
 0x5a3   : > { %12596 = vst [vmem:[%s22022_s19 + $0x578] sm:$0xff] %v12595_v22  ;;  %12598 = vst [vmem:[%s22022_s19 + $0x580] sm:$0xff] %v12597_v2  ;;  %v12663_v37 = vld [vmem:[%s20277_s18 + $0x488] sm:$0xff]  ;;  %v12665_v21 = vld [vmem:[%s20277_s18 + $0x490] sm:$0xff] }
 0x5a4   : > { %12600 = vst [vmem:[%s22022_s19 + $0x588] sm:$0xff] %v12599_v30  ;;  %12602 = vst [vmem:[%s22022_s19 + $0x590] sm:$0xff] %v12601_v5  ;;  %v12667_v10 = vld [vmem:[%s20277_s18 + $0x498] sm:$0xff]  ;;  %v12669_v49 = vld [vmem:[%s20277_s18 + $0x4a0] sm:$0xff] }
 0x5a5   : > { %12604 = vst [vmem:[%s22022_s19 + $0x598] sm:$0xff] %v12603_v11  ;;  %12606 = vst [vmem:[%s22022_s19 + $0x5a0] sm:$0xff] %v12605_v13  ;;  %v12671_v28 = vld [vmem:[%s20277_s18 + $0x4a8] sm:$0xff]  ;;  %v12673_v47 = vld [vmem:[%s20277_s18 + $0x4b0] sm:$0xff] }
 0x5a6   : > { %12608 = vst [vmem:[%s22022_s19 + $0x5a8] sm:$0xff] %v12607_v61  ;;  %12610 = vst [vmem:[%s22022_s19 + $0x5b0] sm:$0xff] %v12609_v53  ;;  %v12675_v59 = vld [vmem:[%s20277_s18 + $0x4b8] sm:$0xff]  ;;  %v12677_v18 = vld [vmem:[%s20277_s18 + $0x4c0] sm:$0xff] }
 0x5a7   : > { %12612 = vst [vmem:[%s22022_s19 + $0x5b8] sm:$0xff] %v12611_v24  ;;  %12614 = vst [vmem:[%s22022_s19 + $0x5c0] sm:$0xff] %v12613_v4  ;;  %v12679_v46 = vld [vmem:[%s20277_s18 + $0x4c8] sm:$0xff]  ;;  %v12681_v50 = vld [vmem:[%s20277_s18 + $0x4d0] sm:$0xff] }
 0x5a8   : > { %12616 = vst [vmem:[%s22022_s19 + $0x5c8] sm:$0xff] %v12615_v51  ;;  %12618 = vst [vmem:[%s22022_s19 + $0x5d0] sm:$0xff] %v12617_v42  ;;  %v12683_v15 = vld [vmem:[%s20277_s18 + $0x4d8] sm:$0xff]  ;;  %v12685_v52 = vld [vmem:[%s20277_s18 + $0x4e0] sm:$0xff] }
 0x5a9   : > { %12620 = vst [vmem:[%s22022_s19 + $0x5d8] sm:$0xff] %v12619_v23  ;;  %12622 = vst [vmem:[%s22022_s19 + $0x5e0] sm:$0xff] %v12621_v12  ;;  %v12687_v60 = vld [vmem:[%s20277_s18 + $0x4e8] sm:$0xff]  ;;  %v12689_v17 = vld [vmem:[%s20277_s18 + $0x4f0] sm:$0xff] }
 0x5aa   : > { %12624 = vst [vmem:[%s22022_s19 + $0x5e8] sm:$0xff] %v12623_v36  ;;  %12626 = vst [vmem:[%s22022_s19 + $0x5f0] sm:$0xff] %v12625_v1  ;;  %v12691_v19 = vld [vmem:[%s20277_s18 + $0x4f8] sm:$0xff]  ;;  %v12693_v3 = vld [vmem:[%s20277_s18 + $0x500] sm:$0xff] }
 0x5ab   : > { %12628 = vst [vmem:[%s22022_s19 + $0x5f8] sm:$0xff] %v12627_v55  ;;  %12630 = vst [vmem:[%s22022_s19 + $0x800] sm:$0xff] %v12629_v45  ;;  %v12695_v32 = vld [vmem:[%s20277_s18 + $0x508] sm:$0xff]  ;;  %v12697_v7 = vld [vmem:[%s20277_s18 + $0x510] sm:$0xff] }
 0x5ac   : > { %12632 = vst [vmem:[%s22022_s19 + $0x808] sm:$0xff] %v12631_v58  ;;  %12634 = vst [vmem:[%s22022_s19 + $0x810] sm:$0xff] %v12633_v43  ;;  %v12699_v41 = vld [vmem:[%s20277_s18 + $0x518] sm:$0xff]  ;;  %v12701_v39 = vld [vmem:[%s20277_s18 + $0x520] sm:$0xff] }
 0x5ad   : > { %12636 = vst [vmem:[%s22022_s19 + $0x818] sm:$0xff] %v12635_v44  ;;  %12638 = vst [vmem:[%s22022_s19 + $0x820] sm:$0xff] %v12637_v57  ;;  %v12703_v0 = vld [vmem:[%s20277_s18 + $0x528] sm:$0xff]  ;;  %v12705_v6 = vld [vmem:[%s20277_s18 + $0x530] sm:$0xff] }
 0x5ae   : > { %12640 = vst [vmem:[%s22022_s19 + $0x828] sm:$0xff] %v12639_v35  ;;  %12642 = vst [vmem:[%s22022_s19 + $0x830] sm:$0xff] %v12641_v27  ;;  %v12707_v16 = vld [vmem:[%s20277_s18 + $0x538] sm:$0xff]  ;;  %v12709_v34 = vld [vmem:[%s20277_s18 + $0x540] sm:$0xff] }
 0x5af   : > { %12644 = vst [vmem:[%s22022_s19 + $0x838] sm:$0xff] %v12643_v48  ;;  %12646 = vst [vmem:[%s22022_s19 + $0x840] sm:$0xff] %v12645_v25  ;;  %v12711_v26 = vld [vmem:[%s20277_s18 + $0x548] sm:$0xff]  ;;  %v12713_v33 = vld [vmem:[%s20277_s18 + $0x550] sm:$0xff] }
 0x5b0   : > { %12648 = vst [vmem:[%s22022_s19 + $0x848] sm:$0xff] %v12647_v56  ;;  %12650 = vst [vmem:[%s22022_s19 + $0x850] sm:$0xff] %v12649_v62  ;;  %v12715_v29 = vld [vmem:[%s20277_s18 + $0x558] sm:$0xff]  ;;  %v12717_v20 = vld [vmem:[%s20277_s18 + $0x560] sm:$0xff] }
 0x5b1   : > { %12652 = vst [vmem:[%s22022_s19 + $0x858] sm:$0xff] %v12651_v14  ;;  %12654 = vst [vmem:[%s22022_s19 + $0x860] sm:$0xff] %v12653_v38  ;;  %v12719_v63 = vld [vmem:[%s20277_s18 + $0x568] sm:$0xff]  ;;  %v12721_v54 = vld [vmem:[%s20277_s18 + $0x570] sm:$0xff] }
 0x5b2   : > { %12656 = vst [vmem:[%s22022_s19 + $0x868] sm:$0xff] %v12655_v8  ;;  %12658 = vst [vmem:[%s22022_s19 + $0x870] sm:$0xff] %v12657_v40  ;;  %v12723_v22 = vld [vmem:[%s20277_s18 + $0x578] sm:$0xff]  ;;  %v12725_v2 = vld [vmem:[%s20277_s18 + $0x580] sm:$0xff] }
 0x5b3   : > { %12660 = vst [vmem:[%s22022_s19 + $0x878] sm:$0xff] %v12659_v9  ;;  %12662 = vst [vmem:[%s22022_s19 + $0x880] sm:$0xff] %v12661_v31  ;;  %v12727_v30 = vld [vmem:[%s20277_s18 + $0x588] sm:$0xff]  ;;  %v12729_v5 = vld [vmem:[%s20277_s18 + $0x590] sm:$0xff] }
 0x5b4   : > { %12664 = vst [vmem:[%s22022_s19 + $0x888] sm:$0xff] %v12663_v37  ;;  %12666 = vst [vmem:[%s22022_s19 + $0x890] sm:$0xff] %v12665_v21  ;;  %v12731_v11 = vld [vmem:[%s20277_s18 + $0x598] sm:$0xff]  ;;  %v12733_v13 = vld [vmem:[%s20277_s18 + $0x5a0] sm:$0xff] }
 0x5b5   : > { %12668 = vst [vmem:[%s22022_s19 + $0x898] sm:$0xff] %v12667_v10  ;;  %12670 = vst [vmem:[%s22022_s19 + $0x8a0] sm:$0xff] %v12669_v49  ;;  %v12735_v61 = vld [vmem:[%s20277_s18 + $0x5a8] sm:$0xff]  ;;  %v12737_v53 = vld [vmem:[%s20277_s18 + $0x5b0] sm:$0xff] }
 0x5b6   : > { %12672 = vst [vmem:[%s22022_s19 + $0x8a8] sm:$0xff] %v12671_v28  ;;  %12674 = vst [vmem:[%s22022_s19 + $0x8b0] sm:$0xff] %v12673_v47  ;;  %v12739_v24 = vld [vmem:[%s20277_s18 + $0x5b8] sm:$0xff]  ;;  %v12741_v4 = vld [vmem:[%s20277_s18 + $0x5c0] sm:$0xff] }
 0x5b7   : > { %12676 = vst [vmem:[%s22022_s19 + $0x8b8] sm:$0xff] %v12675_v59  ;;  %12678 = vst [vmem:[%s22022_s19 + $0x8c0] sm:$0xff] %v12677_v18  ;;  %v12743_v51 = vld [vmem:[%s20277_s18 + $0x5c8] sm:$0xff]  ;;  %v12745_v42 = vld [vmem:[%s20277_s18 + $0x5d0] sm:$0xff] }
 0x5b8   : > { %12680 = vst [vmem:[%s22022_s19 + $0x8c8] sm:$0xff] %v12679_v46  ;;  %12682 = vst [vmem:[%s22022_s19 + $0x8d0] sm:$0xff] %v12681_v50  ;;  %v12747_v23 = vld [vmem:[%s20277_s18 + $0x5d8] sm:$0xff]  ;;  %v12749_v12 = vld [vmem:[%s20277_s18 + $0x5e0] sm:$0xff] }
 0x5b9   : > { %12684 = vst [vmem:[%s22022_s19 + $0x8d8] sm:$0xff] %v12683_v15  ;;  %12686 = vst [vmem:[%s22022_s19 + $0x8e0] sm:$0xff] %v12685_v52  ;;  %v12751_v36 = vld [vmem:[%s20277_s18 + $0x5e8] sm:$0xff]  ;;  %v12753_v1 = vld [vmem:[%s20277_s18 + $0x5f0] sm:$0xff] }
 0x5ba   : > { %12688 = vst [vmem:[%s22022_s19 + $0x8e8] sm:$0xff] %v12687_v60  ;;  %12690 = vst [vmem:[%s22022_s19 + $0x8f0] sm:$0xff] %v12689_v17  ;;  %v12755_v55 = vld [vmem:[%s20277_s18 + $0x5f8] sm:$0xff]  ;;  %v12757_v45 = vld [vmem:[%s20277_s18 + $0x600] sm:$0xff] }
 0x5bb   : > { %12692 = vst [vmem:[%s22022_s19 + $0x8f8] sm:$0xff] %v12691_v19  ;;  %12694 = vst [vmem:[%s22022_s19 + $0x900] sm:$0xff] %v12693_v3  ;;  %v12759_v58 = vld [vmem:[%s20277_s18 + $0x608] sm:$0xff]  ;;  %v12761_v43 = vld [vmem:[%s20277_s18 + $0x610] sm:$0xff] }
 0x5bc   : > { %12696 = vst [vmem:[%s22022_s19 + $0x908] sm:$0xff] %v12695_v32  ;;  %12698 = vst [vmem:[%s22022_s19 + $0x910] sm:$0xff] %v12697_v7  ;;  %v12763_v44 = vld [vmem:[%s20277_s18 + $0x618] sm:$0xff]  ;;  %v12765_v57 = vld [vmem:[%s20277_s18 + $0x620] sm:$0xff] }
 0x5bd   : > { %12700 = vst [vmem:[%s22022_s19 + $0x918] sm:$0xff] %v12699_v41  ;;  %12702 = vst [vmem:[%s22022_s19 + $0x920] sm:$0xff] %v12701_v39  ;;  %v12767_v35 = vld [vmem:[%s20277_s18 + $0x628] sm:$0xff]  ;;  %v12769_v27 = vld [vmem:[%s20277_s18 + $0x630] sm:$0xff] }
 0x5be   : > { %12704 = vst [vmem:[%s22022_s19 + $0x928] sm:$0xff] %v12703_v0  ;;  %12706 = vst [vmem:[%s22022_s19 + $0x930] sm:$0xff] %v12705_v6  ;;  %v12771_v48 = vld [vmem:[%s20277_s18 + $0x638] sm:$0xff]  ;;  %v12773_v25 = vld [vmem:[%s20277_s18 + $0x640] sm:$0xff] }
 0x5bf   : > { %12708 = vst [vmem:[%s22022_s19 + $0x938] sm:$0xff] %v12707_v16  ;;  %12710 = vst [vmem:[%s22022_s19 + $0x940] sm:$0xff] %v12709_v34  ;;  %v12775_v56 = vld [vmem:[%s20277_s18 + $0x648] sm:$0xff]  ;;  %v12777_v62 = vld [vmem:[%s20277_s18 + $0x650] sm:$0xff] }
 0x5c0   : > { %12712 = vst [vmem:[%s22022_s19 + $0x948] sm:$0xff] %v12711_v26  ;;  %12714 = vst [vmem:[%s22022_s19 + $0x950] sm:$0xff] %v12713_v33  ;;  %v12779_v14 = vld [vmem:[%s20277_s18 + $0x658] sm:$0xff]  ;;  %v12781_v38 = vld [vmem:[%s20277_s18 + $0x660] sm:$0xff] }
 0x5c1   : > { %12716 = vst [vmem:[%s22022_s19 + $0x958] sm:$0xff] %v12715_v29  ;;  %12718 = vst [vmem:[%s22022_s19 + $0x960] sm:$0xff] %v12717_v20  ;;  %v12783_v8 = vld [vmem:[%s20277_s18 + $0x668] sm:$0xff]  ;;  %v12785_v40 = vld [vmem:[%s20277_s18 + $0x670] sm:$0xff] }
 0x5c2   : > { %12720 = vst [vmem:[%s22022_s19 + $0x968] sm:$0xff] %v12719_v63  ;;  %12722 = vst [vmem:[%s22022_s19 + $0x970] sm:$0xff] %v12721_v54  ;;  %v12787_v9 = vld [vmem:[%s20277_s18 + $0x678] sm:$0xff]  ;;  %v12789_v31 = vld [vmem:[%s20277_s18 + $0x680] sm:$0xff] }
 0x5c3   : > { %12724 = vst [vmem:[%s22022_s19 + $0x978] sm:$0xff] %v12723_v22  ;;  %12726 = vst [vmem:[%s22022_s19 + $0x980] sm:$0xff] %v12725_v2  ;;  %v12791_v37 = vld [vmem:[%s20277_s18 + $0x688] sm:$0xff]  ;;  %v12793_v21 = vld [vmem:[%s20277_s18 + $0x690] sm:$0xff] }
 0x5c4   : > { %12728 = vst [vmem:[%s22022_s19 + $0x988] sm:$0xff] %v12727_v30  ;;  %12730 = vst [vmem:[%s22022_s19 + $0x990] sm:$0xff] %v12729_v5  ;;  %v12795_v10 = vld [vmem:[%s20277_s18 + $0x698] sm:$0xff]  ;;  %v12797_v49 = vld [vmem:[%s20277_s18 + $0x6a0] sm:$0xff] }
 0x5c5   : > { %12732 = vst [vmem:[%s22022_s19 + $0x998] sm:$0xff] %v12731_v11  ;;  %12734 = vst [vmem:[%s22022_s19 + $0x9a0] sm:$0xff] %v12733_v13  ;;  %v12799_v28 = vld [vmem:[%s20277_s18 + $0x6a8] sm:$0xff]  ;;  %v12801_v47 = vld [vmem:[%s20277_s18 + $0x6b0] sm:$0xff] }
 0x5c6   : > { %12736 = vst [vmem:[%s22022_s19 + $0x9a8] sm:$0xff] %v12735_v61  ;;  %12738 = vst [vmem:[%s22022_s19 + $0x9b0] sm:$0xff] %v12737_v53  ;;  %v12803_v59 = vld [vmem:[%s20277_s18 + $0x6b8] sm:$0xff]  ;;  %v12805_v18 = vld [vmem:[%s20277_s18 + $0x6c0] sm:$0xff] }
 0x5c7   : > { %12740 = vst [vmem:[%s22022_s19 + $0x9b8] sm:$0xff] %v12739_v24  ;;  %12742 = vst [vmem:[%s22022_s19 + $0x9c0] sm:$0xff] %v12741_v4  ;;  %v12807_v46 = vld [vmem:[%s20277_s18 + $0x6c8] sm:$0xff]  ;;  %v12809_v50 = vld [vmem:[%s20277_s18 + $0x6d0] sm:$0xff] }
 0x5c8   : > { %12744 = vst [vmem:[%s22022_s19 + $0x9c8] sm:$0xff] %v12743_v51  ;;  %12746 = vst [vmem:[%s22022_s19 + $0x9d0] sm:$0xff] %v12745_v42  ;;  %v12811_v15 = vld [vmem:[%s20277_s18 + $0x6d8] sm:$0xff]  ;;  %v12813_v52 = vld [vmem:[%s20277_s18 + $0x6e0] sm:$0xff] }
 0x5c9   : > { %12748 = vst [vmem:[%s22022_s19 + $0x9d8] sm:$0xff] %v12747_v23  ;;  %12750 = vst [vmem:[%s22022_s19 + $0x9e0] sm:$0xff] %v12749_v12  ;;  %v12815_v60 = vld [vmem:[%s20277_s18 + $0x6e8] sm:$0xff]  ;;  %v12817_v17 = vld [vmem:[%s20277_s18 + $0x6f0] sm:$0xff] }
 0x5ca   : > { %12752 = vst [vmem:[%s22022_s19 + $0x9e8] sm:$0xff] %v12751_v36  ;;  %12754 = vst [vmem:[%s22022_s19 + $0x9f0] sm:$0xff] %v12753_v1  ;;  %v12819_v19 = vld [vmem:[%s20277_s18 + $0x6f8] sm:$0xff]  ;;  %v12821_v3 = vld [vmem:[%s20277_s18 + $0x700] sm:$0xff] }
 0x5cb   : > { %12756 = vst [vmem:[%s22022_s19 + $0x9f8] sm:$0xff] %v12755_v55  ;;  %12758 = vst [vmem:[%s22022_s19 + $0xc00] sm:$0xff] %v12757_v45  ;;  %v12823_v32 = vld [vmem:[%s20277_s18 + $0x708] sm:$0xff]  ;;  %v12825_v7 = vld [vmem:[%s20277_s18 + $0x710] sm:$0xff] }
 0x5cc   : > { %12760 = vst [vmem:[%s22022_s19 + $0xc08] sm:$0xff] %v12759_v58  ;;  %12762 = vst [vmem:[%s22022_s19 + $0xc10] sm:$0xff] %v12761_v43  ;;  %v12827_v41 = vld [vmem:[%s20277_s18 + $0x718] sm:$0xff]  ;;  %v12829_v39 = vld [vmem:[%s20277_s18 + $0x720] sm:$0xff] }
 0x5cd   : > { %12764 = vst [vmem:[%s22022_s19 + $0xc18] sm:$0xff] %v12763_v44  ;;  %12766 = vst [vmem:[%s22022_s19 + $0xc20] sm:$0xff] %v12765_v57  ;;  %v12831_v0 = vld [vmem:[%s20277_s18 + $0x728] sm:$0xff]  ;;  %v12833_v6 = vld [vmem:[%s20277_s18 + $0x730] sm:$0xff] }
 0x5ce   : > { %12768 = vst [vmem:[%s22022_s19 + $0xc28] sm:$0xff] %v12767_v35  ;;  %12770 = vst [vmem:[%s22022_s19 + $0xc30] sm:$0xff] %v12769_v27  ;;  %v12835_v16 = vld [vmem:[%s20277_s18 + $0x738] sm:$0xff]  ;;  %v12837_v34 = vld [vmem:[%s20277_s18 + $0x740] sm:$0xff] }
 0x5cf   : > { %12772 = vst [vmem:[%s22022_s19 + $0xc38] sm:$0xff] %v12771_v48  ;;  %12774 = vst [vmem:[%s22022_s19 + $0xc40] sm:$0xff] %v12773_v25  ;;  %v12839_v26 = vld [vmem:[%s20277_s18 + $0x748] sm:$0xff]  ;;  %v12841_v33 = vld [vmem:[%s20277_s18 + $0x750] sm:$0xff] }
 0x5d0   : > { %12776 = vst [vmem:[%s22022_s19 + $0xc48] sm:$0xff] %v12775_v56  ;;  %12778 = vst [vmem:[%s22022_s19 + $0xc50] sm:$0xff] %v12777_v62  ;;  %v12843_v29 = vld [vmem:[%s20277_s18 + $0x758] sm:$0xff]  ;;  %v12845_v20 = vld [vmem:[%s20277_s18 + $0x760] sm:$0xff] }
 0x5d1   : > { %12780 = vst [vmem:[%s22022_s19 + $0xc58] sm:$0xff] %v12779_v14  ;;  %12782 = vst [vmem:[%s22022_s19 + $0xc60] sm:$0xff] %v12781_v38  ;;  %v12847_v63 = vld [vmem:[%s20277_s18 + $0x768] sm:$0xff]  ;;  %v12849_v54 = vld [vmem:[%s20277_s18 + $0x770] sm:$0xff] }
 0x5d2   : > { %12784 = vst [vmem:[%s22022_s19 + $0xc68] sm:$0xff] %v12783_v8  ;;  %12786 = vst [vmem:[%s22022_s19 + $0xc70] sm:$0xff] %v12785_v40  ;;  %v12851_v22 = vld [vmem:[%s20277_s18 + $0x778] sm:$0xff]  ;;  %v12853_v2 = vld [vmem:[%s20277_s18 + $0x780] sm:$0xff] }
 0x5d3   : > { %12788 = vst [vmem:[%s22022_s19 + $0xc78] sm:$0xff] %v12787_v9  ;;  %12790 = vst [vmem:[%s22022_s19 + $0xc80] sm:$0xff] %v12789_v31  ;;  %v12855_v30 = vld [vmem:[%s20277_s18 + $0x788] sm:$0xff]  ;;  %v12857_v5 = vld [vmem:[%s20277_s18 + $0x790] sm:$0xff] }
 0x5d4   : > { %12792 = vst [vmem:[%s22022_s19 + $0xc88] sm:$0xff] %v12791_v37  ;;  %12794 = vst [vmem:[%s22022_s19 + $0xc90] sm:$0xff] %v12793_v21  ;;  %v12859_v11 = vld [vmem:[%s20277_s18 + $0x798] sm:$0xff]  ;;  %v12861_v13 = vld [vmem:[%s20277_s18 + $0x7a0] sm:$0xff] }
 0x5d5   : > { %12796 = vst [vmem:[%s22022_s19 + $0xc98] sm:$0xff] %v12795_v10  ;;  %12798 = vst [vmem:[%s22022_s19 + $0xca0] sm:$0xff] %v12797_v49  ;;  %v12863_v61 = vld [vmem:[%s20277_s18 + $0x7a8] sm:$0xff]  ;;  %v12865_v53 = vld [vmem:[%s20277_s18 + $0x7b0] sm:$0xff] }
 0x5d6   : > { %12800 = vst [vmem:[%s22022_s19 + $0xca8] sm:$0xff] %v12799_v28  ;;  %12802 = vst [vmem:[%s22022_s19 + $0xcb0] sm:$0xff] %v12801_v47  ;;  %v12867_v24 = vld [vmem:[%s20277_s18 + $0x7b8] sm:$0xff]  ;;  %v12869_v4 = vld [vmem:[%s20277_s18 + $0x7c0] sm:$0xff] }
 0x5d7   : > { %12804 = vst [vmem:[%s22022_s19 + $0xcb8] sm:$0xff] %v12803_v59  ;;  %12806 = vst [vmem:[%s22022_s19 + $0xcc0] sm:$0xff] %v12805_v18  ;;  %v12871_v51 = vld [vmem:[%s20277_s18 + $0x7c8] sm:$0xff]  ;;  %v12873_v42 = vld [vmem:[%s20277_s18 + $0x7d0] sm:$0xff] }
 0x5d8   : > { %12808 = vst [vmem:[%s22022_s19 + $0xcc8] sm:$0xff] %v12807_v46  ;;  %12810 = vst [vmem:[%s22022_s19 + $0xcd0] sm:$0xff] %v12809_v50  ;;  %v12875_v23 = vld [vmem:[%s20277_s18 + $0x7d8] sm:$0xff]  ;;  %v12877_v12 = vld [vmem:[%s20277_s18 + $0x7e0] sm:$0xff] }
 0x5d9   : > { %12812 = vst [vmem:[%s22022_s19 + $0xcd8] sm:$0xff] %v12811_v15  ;;  %12814 = vst [vmem:[%s22022_s19 + $0xce0] sm:$0xff] %v12813_v52  ;;  %v12879_v36 = vld [vmem:[%s20277_s18 + $0x7e8] sm:$0xff]  ;;  %v12881_v1 = vld [vmem:[%s20277_s18 + $0x7f0] sm:$0xff] }
 0x5da   : > { %12816 = vst [vmem:[%s22022_s19 + $0xce8] sm:$0xff] %v12815_v60  ;;  %12818 = vst [vmem:[%s22022_s19 + $0xcf0] sm:$0xff] %v12817_v17  ;;  %v12883_v55 = vld [vmem:[%s20277_s18 + $0x7f8] sm:$0xff] }
 0x5db   : > { %12820 = vst [vmem:[%s22022_s19 + $0xcf8] sm:$0xff] %v12819_v19  ;;  %12822 = vst [vmem:[%s22022_s19 + $0xd00] sm:$0xff] %v12821_v3 }
 0x5dc   : > { %12824 = vst [vmem:[%s22022_s19 + $0xd08] sm:$0xff] %v12823_v32  ;;  %12826 = vst [vmem:[%s22022_s19 + $0xd10] sm:$0xff] %v12825_v7 }
 0x5dd   : > { %12828 = vst [vmem:[%s22022_s19 + $0xd18] sm:$0xff] %v12827_v41  ;;  %12830 = vst [vmem:[%s22022_s19 + $0xd20] sm:$0xff] %v12829_v39 }
 0x5de   : > { %12832 = vst [vmem:[%s22022_s19 + $0xd28] sm:$0xff] %v12831_v0  ;;  %12834 = vst [vmem:[%s22022_s19 + $0xd30] sm:$0xff] %v12833_v6 }
 0x5df   : > { %12836 = vst [vmem:[%s22022_s19 + $0xd38] sm:$0xff] %v12835_v16  ;;  %12838 = vst [vmem:[%s22022_s19 + $0xd40] sm:$0xff] %v12837_v34 }
 0x5e0   : > { %12840 = vst [vmem:[%s22022_s19 + $0xd48] sm:$0xff] %v12839_v26  ;;  %12842 = vst [vmem:[%s22022_s19 + $0xd50] sm:$0xff] %v12841_v33 }
 0x5e1   : > { %12844 = vst [vmem:[%s22022_s19 + $0xd58] sm:$0xff] %v12843_v29  ;;  %12846 = vst [vmem:[%s22022_s19 + $0xd60] sm:$0xff] %v12845_v20 }
 0x5e2   : > { %12848 = vst [vmem:[%s22022_s19 + $0xd68] sm:$0xff] %v12847_v63  ;;  %12850 = vst [vmem:[%s22022_s19 + $0xd70] sm:$0xff] %v12849_v54 }
 0x5e3   : > { %12852 = vst [vmem:[%s22022_s19 + $0xd78] sm:$0xff] %v12851_v22  ;;  %12854 = vst [vmem:[%s22022_s19 + $0xd80] sm:$0xff] %v12853_v2 }
 0x5e4   : > { %12856 = vst [vmem:[%s22022_s19 + $0xd88] sm:$0xff] %v12855_v30  ;;  %12858 = vst [vmem:[%s22022_s19 + $0xd90] sm:$0xff] %v12857_v5 }
 0x5e5   : > { %12860 = vst [vmem:[%s22022_s19 + $0xd98] sm:$0xff] %v12859_v11  ;;  %12862 = vst [vmem:[%s22022_s19 + $0xda0] sm:$0xff] %v12861_v13 }
 0x5e6   : > { %12864 = vst [vmem:[%s22022_s19 + $0xda8] sm:$0xff] %v12863_v61  ;;  %12866 = vst [vmem:[%s22022_s19 + $0xdb0] sm:$0xff] %v12865_v53 }
 0x5e7   : > { %12868 = vst [vmem:[%s22022_s19 + $0xdb8] sm:$0xff] %v12867_v24  ;;  %12870 = vst [vmem:[%s22022_s19 + $0xdc0] sm:$0xff] %v12869_v4 }
 0x5e8   : > { %12872 = vst [vmem:[%s22022_s19 + $0xdc8] sm:$0xff] %v12871_v51  ;;  %12874 = vst [vmem:[%s22022_s19 + $0xdd0] sm:$0xff] %v12873_v42 }
 0x5e9   : > { %12876 = vst [vmem:[%s22022_s19 + $0xdd8] sm:$0xff] %v12875_v23  ;;  %12878 = vst [vmem:[%s22022_s19 + $0xde0] sm:$0xff] %v12877_v12 }
 0x5ea   : > { %12880 = vst [vmem:[%s22022_s19 + $0xde8] sm:$0xff] %v12879_v36  ;;  %12882 = vst [vmem:[%s22022_s19 + $0xdf0] sm:$0xff] %v12881_v1 }
 0x5eb   : > { %12884 = vst [vmem:[%s22022_s19 + $0xdf8] sm:$0xff] %v12883_v55 }
 0x5ec PF: > { %p14_p11 = scmp.ge.s32.totalorder %s18173_s28, 4   ;;  %s22872_s12 = smov %s18039_s13 }
 0x5ed   : > { %s22873_s13 = smov %s18043_s14  ;;  %s22874_s14 = smov %s18183_s30 }
 0x5ee   : > { %s22875_s15 = smov %s18173_s28  ;;  %16 = sbr.rel (!%p14_p11) target bundleno = 4 (0x4), region = 138 }
 0x5f5   :  { %12900 = vsyncpa [#allocation4], 1 }
 0x5f6   :  { %12902 = vsyncpa [#allocation4 + $0x1], 1 }
 0x5f7   :  { %12903 = vsyncpa [#allocation6], 1 }

</bundles_post_ra>
